<compile_context>
chip_gen: v7x
topology: tpu7x:2x2x1
jax: 0.10.0
libtpu: 0.0.40
codegen_flags: <defaults>
</compile_context>

<pallas_src>
import math
import functools

import jax
import jax.numpy as jnp
from jax import lax
from jax.experimental import pallas as pl
from jax.experimental.pallas import tpu as pltpu

EPS = 1e-5        # torch.nn.LayerNorm default eps
_W_COLS = 128     # lane width of the packed parameter slab


# ----------------------------- shared math helpers (in-kernel and reference) ---------------

def _layer_norm(x, g, b):
    mu = jnp.mean(x, axis=-1, keepdims=True)
    var = jnp.mean((x - mu) ** 2, axis=-1, keepdims=True)
    return (x - mu) * lax.rsqrt(var + EPS) * g + b


def _gelu_exact(x):
    # torch nn.GELU() default (erf-based, not tanh approximation)
    return 0.5 * x * (1.0 + lax.erf(x * (1.0 / math.sqrt(2.0))))


def _matmul_nt(x, w):
    # x @ w.T with f32 accumulation (contract last dim of both)
    return lax.dot_general(x, w, (((1,), (1,)), ((), ())),
                           preferred_element_type=jnp.float32)


def _matmul_nn(x, w):
    # x @ w with f32 accumulation (no explicit transpose materialized)
    return lax.dot_general(x, w, (((1,), (0,)), ((), ())),
                           preferred_element_type=jnp.float32)


# ----------------------------- host-side exact parameter folding + packing -----------------

def _pack_params(params, num_heads):
    """Fold edge_weights into Wk, 1/sqrt(D) into Wq, augment V with per-head one-channels,
    and pack every weight/bias into a single (rows, 128) f32 slab (one BlockSpec)."""
    dim_h, dim_in = params["wq"].shape
    dim_out = params["wo"].shape[0]
    D = dim_h // num_heads
    assert max(dim_in, dim_h, dim_out, 2 * dim_h) <= _W_COLS

    # edge_k = We_h @ (Wk_h x + bk_h)  ==>  Wk'_h = We_h @ Wk_h , bk'_h = We_h @ bk_h (exact)
    we = params["we"]
    wk = params["wk"].reshape(num_heads, D, dim_in)
    bk = params["bk"].reshape(num_heads, D)
    wk_f = jnp.einsum("hde,hef->hdf", we, wk).reshape(dim_h, dim_in)
    bk_f = jnp.einsum("hde,he->hd", we, bk).reshape(dim_h)

    # V augmented per head with a constant-one output channel: a single (TN,TK)x(TK,D+1)
    # matmul then yields [sum(e*v) | sum(e)] per head (denominator for free on the MXU).
    wv = params["wv"].reshape(num_heads, D, dim_in)
    bv = params["bv"][0].reshape(num_heads, D)
    v_aug_w = jnp.concatenate(
        [jnp.concatenate([wv[h], jnp.zeros((1, dim_in), jnp.float32)], axis=0)
         for h in range(num_heads)], axis=0)                       # (H*(D+1), dim_in)
    v_aug_b = jnp.concatenate(
        [jnp.concatenate([bv[h], jnp.ones((1,), jnp.float32)], axis=0)
         for h in range(num_heads)], axis=0)                       # (H*(D+1),)

    wkv = jnp.concatenate([wk_f, v_aug_w], axis=0)                 # (dim_h + H*(D+1), F)
    bkv = jnp.concatenate([bk_f, v_aug_b], axis=0)

    scale = 1.0 / math.sqrt(D)                                     # fold 1/sqrt(D) into q
    entries = [
        ("ln1_g", params["ln1_g"][0]), ("ln1_b", params["ln1_b"][0]),
        ("ln2_g", params["ln2_g"][0]), ("ln2_b", params["ln2_b"][0]),
        ("bq", params["bq"][0] * scale), ("bkv", bkv),
        ("bo", params["bo"][0]), ("b1", params["b1"][0]), ("b2", params["b2"][0]),
        ("wq", params["wq"] * scale), ("wkv", wkv),
        ("wo", params["wo"]), ("w1", params["w1"]), ("w2", params["w2"]),
    ]
    layout, rows, row = {}, [], 0
    for name, arr in entries:
        arr2 = arr if arr.ndim == 2 else arr[None, :]
        r, c = arr2.shape
        rows.append(jnp.pad(arr2.astype(jnp.float32), ((0, 0), (0, _W_COLS - c))))
        layout[name] = (row, r, c)
        row += r
    pad_rows = (-row) % 8
    if pad_rows:
        rows.append(jnp.zeros((pad_rows, _W_COLS), jnp.float32))
    slab = jnp.concatenate(rows, axis=0)
    return slab, layout


# ----------------------------- the fused kernel --------------------------------------------

def fraudgt_kernel(bmask_ref, kmap_ref,                 # scalar prefetch (SMEM)
                   hd_ref, hs_ref, adj_ref, w_ref,      # dst feats (f32), src feats (bf16),
                   y_ref,                               # adjacency (int8), packed params
                   q_sc, acc_sc,                        # VMEM scratch
                   *, num_heads, head_dim, layout):
    i = pl.program_id(0)
    k = pl.program_id(1)
    dim_h = num_heads * head_dim
    DV = head_dim + 1                                   # per-head augmented value width

    def vec(name):
        r, _, c = layout[name]
        return w_ref[r, 0:c]

    def mat(name):
        r, n, c = layout[name]
        return w_ref[r:r + n, 0:c]

    ln1g, ln1b = vec("ln1_g"), vec("ln1_b")

    # ---- per-dst-tile init: q projection (1/sqrt(D) pre-folded) + zero accumulators -------
    @pl.when(k == 0)
    def _init():
        xn = _layer_norm(hd_ref[...], ln1g, ln1b)                        # norm1_global
        q = _matmul_nt(xn, mat("wq")) + vec("bq")                        # q_lin (scaled)
        q_sc[...] = q.astype(jnp.bfloat16)
        acc_sc[...] = jnp.zeros_like(acc_sc)

    # ---- per-(dst, src) block accumulation; all-zero adjacency blocks are skipped both in
    #      compute (pl.when) and, via the kmap index remap, in DMA. ------------------------
    @pl.when(bmask_ref[i, k] > 0)
    def _accumulate():
        # LN1 + fused (edge-weighted K | V-augmented) projection of the src tile, recomputed
        # tile-locally: far cheaper than an HBM kv round-trip at these feature widths.
        xs = _layer_norm(hs_ref[...].astype(jnp.float32), ln1g, ln1b)
        kv = (_matmul_nt(xs.astype(jnp.bfloat16), mat("wkv").astype(jnp.bfloat16))
              + vec("bkv")).astype(jnp.bfloat16)          # (TK, dim_h + H*(D+1))
        a = adj_ref[...].astype(jnp.float32)               # edge multiplicities (int8 -> f32)
        q = q_sc[...]                                      # (TN, dim_h) bf16, pre-scaled

        parts = []
        for hh in range(num_heads):
            ksl = slice(hh * head_dim, (hh + 1) * head_dim)
            vsl = slice(dim_h + hh * DV, dim_h + (hh + 1) * DV)
            s = _matmul_nt(q[:, ksl], kv[:, ksl])          # (TN, TK), sum(q*k')/sqrt(D)
            s = jnp.clip(s, -5.0, 5.0)                     # torch.clamp
            # clamp bounds exp(s) in [e^-5, e^5] -> no row max needed; a==0 masks non-edges
            e = (jnp.exp(s) * a).astype(jnp.bfloat16)
            parts.append(_matmul_nn(e, kv[:, vsl]))        # (TN, D+1) = [sum(e*v) | sum(e)]
        # ONE lane-dense scratch update per src step
        acc_sc[...] += jnp.concatenate(parts, axis=-1)

    # ---- finalize: softmax normalize, o_lin, residual, LN2, FFN, residual ------------------
    @pl.when(k == pl.num_programs(1) - 1)
    def _finalize():
        acc = acc_sc[...]
        pv = jnp.concatenate(
            [acc[:, hh * DV:hh * DV + head_dim] /
             jnp.maximum(acc[:, hh * DV + head_dim:(hh + 1) * DV], 1e-30)   # degree-0 guard
             for hh in range(num_heads)], axis=-1)                          # (TN, dim_h)
        out = _matmul_nt(pv, mat("wo")) + vec("bo")                         # o_lin
        h_attn = out + hd_ref[...]                                          # residual (h_in)
        x = _layer_norm(h_attn, vec("ln2_g"), vec("ln2_b"))                 # norm2_ffn
        f1 = _gelu_exact(_matmul_nt(x, mat("w1")) + vec("b1"))              # ff_linear1+GELU
        f2 = _matmul_nt(f1, mat("w2")) + vec("b2")                          # ff_linear2
        y_ref[...] = (x + f2).astype(y_ref.dtype)                           # h + ff_block(h)


# ----------------------------- wrapper ------------------------------------------------------

def _pick_tile(n, *, cap, min_blocks=1):
    """Largest multiple of 128 <= cap that divides n and leaves >= min_blocks blocks."""
    if n <= 128:
        return n
    best = None
    t = 128
    while t <= min(cap, n):
        if n % t == 0 and n // t >= min_blocks:
            best = t
        t += 128
    return best if best is not None else n


def fraudgt_layer_forward(h, adj_i8, params, *, num_heads,
                          tile_n=None, tile_k=None, edge_index=None):
    N, F = h.shape
    dim_h = params["wq"].shape[0]
    dim_out = params["wo"].shape[0]
    head_dim = dim_h // num_heads

    # dst tiles: keep >= 2 so the "parallel" axis spans both v7x TensorCores; src tiles can
    # take the full extent (reduction axis, "arbitrary", last in the grid).
    if tile_n is None:
        tile_n = _pick_tile(N, cap=512, min_blocks=2)
    if tile_k is None:
        tile_k = _pick_tile(N, cap=512, min_blocks=1)
    nb_i, nb_k = N // tile_n, N // tile_k

    slab, layout = _pack_params(params, num_heads)

    # per-(dst-tile, src-tile) nonzero mask: from the edge list when available (no dense
    # adjacency pass), otherwise an int8 any-reduce (never an int32 copy of adj).
    if edge_index is not None:
        src, dst = edge_index
        bmask = (jnp.zeros((nb_i, nb_k), jnp.int32)
                 .at[dst // tile_n, src // tile_k].add(1) > 0)
    else:
        bmask = (adj_i8 != 0).reshape(nb_i, tile_n, nb_k, tile_k).any(axis=(1, 3))
    bmask = bmask.reshape(nb_i, nb_k).astype(jnp.int32)

    # kmap[i, k] = src-block index to fetch at grid step (i, k): masked-out steps repeat the
    # previously fetched index so Pallas skips the (unchanged-index) adj / h_src DMAs.
    flat_mask = bmask.reshape(-1) > 0
    step = jnp.arange(flat_mask.size, dtype=jnp.int32)
    last_valid = jnp.maximum(lax.cummax(jnp.where(flat_mask, step, -1), axis=0), 0)
    ks = jnp.tile(jnp.arange(nb_k, dtype=jnp.int32), nb_i)
    kmap = ks[last_valid].reshape(nb_i, nb_k)

    h_src = h.astype(jnp.bfloat16)   # the re-streamed operand: half the HBM bytes

    kernel = functools.partial(fraudgt_kernel, num_heads=num_heads,
                               head_dim=head_dim, layout=layout)

    return pl.pallas_call(
        kernel,
        out_shape=jax.ShapeDtypeStruct((N, dim_out), jnp.float32),
        grid_spec=pltpu.PrefetchScalarGridSpec(
            num_scalar_prefetch=2,
            grid=(nb_i, nb_k),                                   # src (reduction) axis last
            in_specs=[
                pl.BlockSpec((tile_n, F), lambda i, k, bm, km: (i, 0)),         # h dst (f32)
                pl.BlockSpec((tile_k, F), lambda i, k, bm, km: (km[i, k], 0)),  # h src (bf16)
                pl.BlockSpec((tile_n, tile_k),
                             lambda i, k, bm, km: (i, km[i, k])),               # adj (int8)
                pl.BlockSpec(slab.shape, lambda i, k, bm, km: (0, 0)),          # packed params
            ],
            out_specs=pl.BlockSpec((tile_n, dim_out), lambda i, k, bm, km: (i, 0)),
            scratch_shapes=[
                pltpu.VMEM((tile_n, dim_h), jnp.bfloat16),                        # q (scaled)
                pltpu.VMEM((tile_n, num_heads * (head_dim + 1)), jnp.float32),    # [acc|den]
            ],
        ),
        compiler_params=pltpu.CompilerParams(
            dimension_semantics=("parallel", "arbitrary")),
    )(bmask, kmap, h, h_src, adj_i8, slab)


# ----------------------------- pure-JAX reference (unfolded, matches PyTorch math) ----------

def reference_forward(h, adj, params, *, num_heads):
    dim_h = params["wq"].shape[0]
    head_dim = dim_h // num_heads
    xn = _layer_norm(h, params["ln1_g"][0], params["ln1_b"][0])
    q = _matmul_nt(xn, params["wq"]) + params["bq"][0]
    k = _matmul_nt(xn, params["wk"]) + params["bk"][0]
    v = _matmul_nt(xn, params["wv"]) + params["bv"][0]
    outs = []
    for hh in range(num_heads):
        sl = slice(hh * head_dim, (hh + 1) * head_dim)
        kp_h = _matmul_nt(k[:, sl], params["we"][hh])
        s = _matmul_nt(q[:, sl], kp_h) / math.sqrt(head_dim)
        s = jnp.clip(s, -5.0, 5.0)
        m = jnp.max(jnp.where(adj > 0, s, -1e30), axis=-1, keepdims=True)
        e = jnp.exp(s - m) * adj
        p = e / jnp.sum(e, axis=-1, keepdims=True)
        outs.append(_matmul_nn(p, v[:, sl]))
    out = jnp.concatenate(outs, axis=-1)
    out = _matmul_nt(out, params["wo"]) + params["bo"][0]
    h_attn = out + h
    x = _layer_norm(h_attn, params["ln2_g"][0], params["ln2_b"][0])
    f1 = _gelu_exact(_matmul_nt(x, params["w1"]) + params["b1"][0])
    f2 = _matmul_nt(f1, params["w2"]) + params["b2"][0]
    return x + f2


# ----------------------------- deterministic parameter construction ------------------------

def make_params(key, dim_in, dim_h, dim_out, num_heads):
    head_dim = dim_h // num_heads
    keys = jax.random.split(key, 16)

    def lin(kk, out_f, in_f):
        bound = 1.0 / math.sqrt(in_f)
        w = jax.random.uniform(kk, (out_f, in_f), jnp.float32, -bound, bound)
        b = jax.random.uniform(jax.random.fold_in(kk, 1), (1, out_f), jnp.float32, -bound, bound)
        return w, b

    wq, bq = lin(keys[0], dim_h, dim_in)
    wk, bk = lin(keys[1], dim_h, dim_in)
    wv, bv = lin(keys[2], dim_h, dim_in)
    wo, bo = lin(keys[3], dim_out, dim_h)
    w1, b1 = lin(keys[4], 2 * dim_h, dim_h)
    w2, b2 = lin(keys[5], dim_h, 2 * dim_h)
    # edge_weights: xavier_uniform over (n_edge_types=1, H, D, D); take the single edge type
    xav = math.sqrt(6.0 / (head_dim + head_dim))
    we = jax.random.uniform(keys[6], (num_heads, head_dim, head_dim), jnp.float32, -xav, xav)
    # TODO(synk): self.bias, attn_bi, skip_local/global, msg_weights, e/g/oe_lin, project and
    # the edge-attr FFNs are constructed by __init__ but unused on this forward path; omitted.
    return dict(
        ln1_g=jnp.ones((1, dim_in), jnp.float32), ln1_b=jnp.zeros((1, dim_in), jnp.float32),
        ln2_g=jnp.ones((1, dim_h), jnp.float32), ln2_b=jnp.zeros((1, dim_h), jnp.float32),
        wq=wq, bq=bq, wk=wk, bk=bk, wv=wv, bv=bv, we=we,
        wo=wo, bo=bo, w1=w1, b1=b1, w2=w2, b2=b2,
    )


# ----------------------------- main ---------------------------------------------------------

if __name__ == "__main__":
    N = 256          # nodes of the single node type
    dim_in = dim_h = dim_out = 32
    num_heads = 4
    deg = 8          # incoming edges per node (with possible multiplicity)

    root = jax.random.PRNGKey(0)
    k_x, k_e, k_p = jax.random.split(root, 3)

    x = jax.random.normal(k_x, (N, dim_in), jnp.float32)
    # edge list: for every dst node sample `deg` src nodes -> dense multiplicity matrix A[dst, src]
    src = jax.random.randint(k_e, (N, deg), 0, N)
    dst = jnp.broadcast_to(jnp.arange(N)[:, None], (N, deg))
    adj = jnp.zeros((N, N), jnp.float32).at[dst, src].add(1.0)
    adj_i8 = adj.astype(jnp.int8)    # multiplicities <= deg; int8 quarters the HBM stream

    params = make_params(k_p, dim_in, dim_h, dim_out, num_heads)

    y = fraudgt_layer_forward(x, adj_i8, params, num_heads=num_heads,
                              edge_index=(src.reshape(-1), dst.reshape(-1)))
    y = jax.block_until_ready(y)

    y_ref = reference_forward(x, adj, params, num_heads=num_heads)
    assert y.shape == (N, dim_out)
    # tolerance covers bf16 rounding of the MXU operands (q/K'/V/exp-scores/src features);
    # LayerNorm, softmax normalization and all accumulation stay in f32.
    max_err = float(jnp.max(jnp.abs(y - y_ref)))
    assert bool(jnp.allclose(y, y_ref, atol=3e-2, rtol=3e-2)), \
        f"Pallas kernel mismatch vs reference (max abs err {max_err})"
    print("KERNEL_OK")
</pallas_src>

<mosaic_0001>
module attributes {stable_mosaic.version = 11 : i64} {
  func.func @fraudgt_kernel(%arg0: i32, %arg1: i32, %arg2: memref<2x1xi32, #tpu.memory_space<smem>>, %arg3: memref<2x1xi32, #tpu.memory_space<smem>>, %arg4: memref<128x32xf32, #tpu.memory_space<vmem>>, %arg5: memref<256x32xbf16, #tpu.memory_space<vmem>>, %arg6: memref<128x256xi8, #tpu.memory_space<vmem>>, %arg7: memref<240x128xf32, #tpu.memory_space<vmem>>, %arg8: memref<128x32xf32, #tpu.memory_space<vmem>>, %arg9: memref<128x32xbf16, #tpu.memory_space<vmem>>, %arg10: memref<128x36xf32, #tpu.memory_space<vmem>>) attributes {dimension_semantics = [#tpu.dimension_semantics<parallel>, #tpu.dimension_semantics<arbitrary>], iteration_bounds = array<i64: 2, 1>, scalar_prefetch = 2 : i64, scratch_operands = 2 : i64, tpu.core_type = #tpu.core_type<tc>, window_params = [{transform_indices = @transform_0, window_bounds = array<i64: 128, 32>}, {transform_indices = @transform_1, window_bounds = array<i64: 256, 32>}, {transform_indices = @transform_2, window_bounds = array<i64: 128, 256>}, {pipeline_mode = #tpu.pipeline_mode<synchronous>, transform_indices = @transform_3, window_bounds = array<i64: 240, 128>}, {transform_indices = @transform_4, window_bounds = array<i64: 128, 32>}]} {
    %c0 = arith.constant 0 : index
    %c0_0 = arith.constant 0 : index
    %0 = vector.load %arg7[%c0, %c0_0] : memref<240x128xf32, #tpu.memory_space<vmem>>, vector<1x32xf32>
    %1 = vector.shape_cast %0 : vector<1x32xf32> to vector<32xf32>
    %c1 = arith.constant 1 : index
    %c0_1 = arith.constant 0 : index
    %2 = vector.load %arg7[%c1, %c0_1] : memref<240x128xf32, #tpu.memory_space<vmem>>, vector<1x32xf32>
    %3 = vector.shape_cast %2 : vector<1x32xf32> to vector<32xf32>
    %c0_i32 = arith.constant 0 : i32
    %4 = arith.cmpi eq, %arg1, %c0_i32 : i32
    %5 = arith.extui %4 : i1 to i32
    %c0_i32_2 = arith.constant 0 : i32
    %6 = arith.cmpi ne, %5, %c0_i32_2 : i32
    scf.if %6 {
      %c0_7 = arith.constant 0 : index
      %c0_8 = arith.constant 0 : index
      %16 = vector.load %arg4[%c0_7, %c0_8] : memref<128x32xf32, #tpu.memory_space<vmem>>, vector<128x32xf32>
      %cst = arith.constant dense<0.000000e+00> : vector<128xf32>
      %17 = vector.multi_reduction <add>, %16, %cst [1] : vector<128x32xf32> to vector<128xf32>
      %18 = vector.shape_cast %17 : vector<128xf32> to vector<128x1xf32>
      %cst_9 = arith.constant 3.200000e+01 : f32
      %19 = vector.broadcast %cst_9 : f32 to vector<128x1xf32>
      %20 = arith.divf %18, %19 : vector<128x1xf32>
      %21 = vector.broadcast %20 : vector<128x1xf32> to vector<128x32xf32>
      %22 = arith.subf %16, %21 : vector<128x32xf32>
      %23 = arith.mulf %22, %22 : vector<128x32xf32>
      %cst_10 = arith.constant dense<0.000000e+00> : vector<128xf32>
      %24 = vector.multi_reduction <add>, %23, %cst_10 [1] : vector<128x32xf32> to vector<128xf32>
      %25 = vector.shape_cast %24 : vector<128xf32> to vector<128x1xf32>
      %cst_11 = arith.constant 3.200000e+01 : f32
      %26 = vector.broadcast %cst_11 : f32 to vector<128x1xf32>
      %27 = arith.divf %25, %26 : vector<128x1xf32>
      %28 = vector.broadcast %20 : vector<128x1xf32> to vector<128x32xf32>
      %29 = arith.subf %16, %28 : vector<128x32xf32>
      %cst_12 = arith.constant 9.99999974E-6 : f32
      %30 = vector.broadcast %cst_12 : f32 to vector<128x1xf32>
      %31 = arith.addf %27, %30 : vector<128x1xf32>
      %32 = math.rsqrt %31 : vector<128x1xf32>
      %33 = vector.broadcast %32 : vector<128x1xf32> to vector<128x32xf32>
      %34 = arith.mulf %29, %33 : vector<128x32xf32>
      %35 = vector.shape_cast %1 : vector<32xf32> to vector<1x32xf32>
      %36 = vector.broadcast %35 : vector<1x32xf32> to vector<128x32xf32>
      %37 = arith.mulf %34, %36 : vector<128x32xf32>
      %38 = vector.shape_cast %3 : vector<32xf32> to vector<1x32xf32>
      %39 = vector.broadcast %38 : vector<1x32xf32> to vector<128x32xf32>
      %40 = arith.addf %37, %39 : vector<128x32xf32>
      %c9 = arith.constant 9 : index
      %c0_13 = arith.constant 0 : index
      %41 = vector.load %arg7[%c9, %c0_13] : memref<240x128xf32, #tpu.memory_space<vmem>>, vector<32x32xf32>
      %cst_14 = arith.constant dense<0.000000e+00> : vector<128x32xf32>
      %42 = tpu.matmul %40, %41, %cst_14 {dimension_numbers = #tpu.dot_dimension_numbers<[1], [1], [0], [0], [0, 0, 1, 0], [], []>} : vector<128x32xf32>, vector<32x32xf32>, vector<128x32xf32> -> vector<128x32xf32>
      %c4 = arith.constant 4 : index
      %c0_15 = arith.constant 0 : index
      %43 = vector.load %arg7[%c4, %c0_15] : memref<240x128xf32, #tpu.memory_space<vmem>>, vector<1x32xf32>
      %44 = vector.shape_cast %43 : vector<1x32xf32> to vector<32xf32>
      %45 = vector.shape_cast %44 : vector<32xf32> to vector<1x32xf32>
      %46 = vector.broadcast %45 : vector<1x32xf32> to vector<128x32xf32>
      %47 = arith.addf %42, %46 : vector<128x32xf32>
      %48 = arith.truncf %47 : vector<128x32xf32> to vector<128x32xbf16>
      %c0_16 = arith.constant 0 : index
      %c0_17 = arith.constant 0 : index
      %49 = vector.load %arg9[%c0_16, %c0_17] : memref<128x32xbf16, #tpu.memory_space<vmem>>, vector<128x32xbf16>
      tpu.vector_store %arg9[%c0_16, %c0_17], %48 {strides = array<i32>} : memref<128x32xbf16, #tpu.memory_space<vmem>>, vector<128x32xbf16>,
      %cst_18 = arith.constant 0.000000e+00 : f32
      %50 = vector.broadcast %cst_18 : f32 to vector<128x36xf32>
      %c0_19 = arith.constant 0 : index
      %c0_20 = arith.constant 0 : index
      %51 = vector.load %arg10[%c0_19, %c0_20] : memref<128x36xf32, #tpu.memory_space<vmem>>, vector<128x36xf32>
      tpu.vector_store %arg10[%c0_19, %c0_20], %50 {strides = array<i32>} : memref<128x36xf32, #tpu.memory_space<vmem>>, vector<128x36xf32>,
    } else {
    }
    %7 = arith.index_cast %arg0 : i32 to index
    %8 = arith.index_cast %arg1 : i32 to index
    %9 = memref.load %arg2[%7, %8] : memref<2x1xi32, #tpu.memory_space<smem>>
    %c0_i32_3 = arith.constant 0 : i32
    %10 = arith.cmpi sgt, %9, %c0_i32_3 : i32
    %11 = arith.extui %10 : i1 to i32
    %c0_i32_4 = arith.constant 0 : i32
    %12 = arith.cmpi ne, %11, %c0_i32_4 : i32
    scf.if %12 {
      %c0_7 = arith.constant 0 : index
      %c0_8 = arith.constant 0 : index
      %16 = vector.load %arg5[%c0_7, %c0_8] : memref<256x32xbf16, #tpu.memory_space<vmem>>, vector<256x32xbf16>
      %17 = arith.extf %16 : vector<256x32xbf16> to vector<256x32xf32>
      %cst = arith.constant dense<0.000000e+00> : vector<256xf32>
      %18 = vector.multi_reduction <add>, %17, %cst [1] : vector<256x32xf32> to vector<256xf32>
      %19 = vector.shape_cast %18 : vector<256xf32> to vector<256x1xf32>
      %cst_9 = arith.constant 3.200000e+01 : f32
      %20 = vector.broadcast %cst_9 : f32 to vector<256x1xf32>
      %21 = arith.divf %19, %20 : vector<256x1xf32>
      %22 = vector.broadcast %21 : vector<256x1xf32> to vector<256x32xf32>
      %23 = arith.subf %17, %22 : vector<256x32xf32>
      %24 = arith.mulf %23, %23 : vector<256x32xf32>
      %cst_10 = arith.constant dense<0.000000e+00> : vector<256xf32>
      %25 = vector.multi_reduction <add>, %24, %cst_10 [1] : vector<256x32xf32> to vector<256xf32>
      %26 = vector.shape_cast %25 : vector<256xf32> to vector<256x1xf32>
      %cst_11 = arith.constant 3.200000e+01 : f32
      %27 = vector.broadcast %cst_11 : f32 to vector<256x1xf32>
      %28 = arith.divf %26, %27 : vector<256x1xf32>
      %29 = vector.broadcast %21 : vector<256x1xf32> to vector<256x32xf32>
      %30 = arith.subf %17, %29 : vector<256x32xf32>
      %cst_12 = arith.constant 9.99999974E-6 : f32
      %31 = vector.broadcast %cst_12 : f32 to vector<256x1xf32>
      %32 = arith.addf %28, %31 : vector<256x1xf32>
      %33 = math.rsqrt %32 : vector<256x1xf32>
      %34 = vector.broadcast %33 : vector<256x1xf32> to vector<256x32xf32>
      %35 = arith.mulf %30, %34 : vector<256x32xf32>
      %36 = vector.shape_cast %1 : vector<32xf32> to vector<1x32xf32>
      %37 = vector.broadcast %36 : vector<1x32xf32> to vector<256x32xf32>
      %38 = arith.mulf %35, %37 : vector<256x32xf32>
      %39 = vector.shape_cast %3 : vector<32xf32> to vector<1x32xf32>
      %40 = vector.broadcast %39 : vector<1x32xf32> to vector<256x32xf32>
      %41 = arith.addf %38, %40 : vector<256x32xf32>
      %42 = arith.truncf %41 : vector<256x32xf32> to vector<256x32xbf16>
      %c41 = arith.constant 41 : index
      %c0_13 = arith.constant 0 : index
      %43 = vector.load %arg7[%c41, %c0_13] : memref<240x128xf32, #tpu.memory_space<vmem>>, vector<68x32xf32>
      %44 = arith.truncf %43 : vector<68x32xf32> to vector<68x32xbf16>
      %cst_14 = arith.constant dense<0.000000e+00> : vector<256x68xf32>
      %45 = tpu.matmul %42, %44, %cst_14 {dimension_numbers = #tpu.dot_dimension_numbers<[1], [1], [0], [0], [0, 0, 1, 0], [], []>} : vector<256x32xbf16>, vector<68x32xbf16>, vector<256x68xf32> -> vector<256x68xf32>
      %c5 = arith.constant 5 : index
      %c0_15 = arith.constant 0 : index
      %46 = vector.load %arg7[%c5, %c0_15] : memref<240x128xf32, #tpu.memory_space<vmem>>, vector<1x68xf32>
      %47 = vector.shape_cast %46 : vector<1x68xf32> to vector<68xf32>
      %48 = vector.shape_cast %47 : vector<68xf32> to vector<1x68xf32>
      %49 = vector.broadcast %48 : vector<1x68xf32> to vector<256x68xf32>
      %50 = arith.addf %45, %49 : vector<256x68xf32>
      %51 = arith.truncf %50 : vector<256x68xf32> to vector<256x68xbf16>
      %c0_16 = arith.constant 0 : index
      %c0_17 = arith.constant 0 : index
      %52 = vector.load %arg6[%c0_16, %c0_17] : memref<128x256xi8, #tpu.memory_space<vmem>>, vector<128x256xi8>
      %53 = arith.sitofp %52 : vector<128x256xi8> to vector<128x256xf32>
      %c0_18 = arith.constant 0 : index
      %c0_19 = arith.constant 0 : index
      %54 = vector.load %arg9[%c0_18, %c0_19] : memref<128x32xbf16, #tpu.memory_space<vmem>>, vector<128x32xbf16>
      %55 = vector.extract_strided_slice %54 {offsets = [0, 0], sizes = [128, 8], strides = [1, 1]} : vector<128x32xbf16> to vector<128x8xbf16>
      %56 = vector.extract_strided_slice %51 {offsets = [0, 0], sizes = [256, 8], strides = [1, 1]} : vector<256x68xbf16> to vector<256x8xbf16>
      %cst_20 = arith.constant dense<0.000000e+00> : vector<128x256xf32>
      %57 = tpu.matmul %55, %56, %cst_20 {dimension_numbers = #tpu.dot_dimension_numbers<[1], [1], [0], [0], [0, 0, 1, 0], [], []>} : vector<128x8xbf16>, vector<256x8xbf16>, vector<128x256xf32> -> vector<128x256xf32>
      %cst_21 = arith.constant -5.000000e+00 : f32
      %cst_22 = arith.constant 5.000000e+00 : f32
      %58 = vector.broadcast %cst_21 : f32 to vector<128x256xf32>
      %59 = arith.maximumf %58, %57 : vector<128x256xf32>
      %60 = vector.broadcast %cst_22 : f32 to vector<128x256xf32>
      %61 = arith.minimumf %60, %59 : vector<128x256xf32>
      %62 = math.exp %61 : vector<128x256xf32>
      %63 = arith.mulf %62, %53 : vector<128x256xf32>
      %64 = arith.truncf %63 : vector<128x256xf32> to vector<128x256xbf16>
      %65 = vector.extract_strided_slice %51 {offsets = [0, 32], sizes = [256, 9], strides = [1, 1]} : vector<256x68xbf16> to vector<256x9xbf16>
      %cst_23 = arith.constant dense<0.000000e+00> : vector<128x9xf32>
      %66 = tpu.matmul %64, %65, %cst_23 {dimension_numbers = #tpu.dot_dimension_numbers<[1], [0], [0], [1], [0, 0, 1, 1], [], []>} : vector<128x256xbf16>, vector<256x9xbf16>, vector<128x9xf32> -> vector<128x9xf32>
      %67 = vector.extract_strided_slice %54 {offsets = [0, 8], sizes = [128, 8], strides = [1, 1]} : vector<128x32xbf16> to vector<128x8xbf16>
      %68 = vector.extract_strided_slice %51 {offsets = [0, 8], sizes = [256, 8], strides = [1, 1]} : vector<256x68xbf16> to vector<256x8xbf16>
      %cst_24 = arith.constant dense<0.000000e+00> : vector<128x256xf32>
      %69 = tpu.matmul %67, %68, %cst_24 {dimension_numbers = #tpu.dot_dimension_numbers<[1], [1], [0], [0], [0, 0, 1, 0], [], []>} : vector<128x8xbf16>, vector<256x8xbf16>, vector<128x256xf32> -> vector<128x256xf32>
      %cst_25 = arith.constant -5.000000e+00 : f32
      %cst_26 = arith.constant 5.000000e+00 : f32
      %70 = vector.broadcast %cst_25 : f32 to vector<128x256xf32>
      %71 = arith.maximumf %70, %69 : vector<128x256xf32>
      %72 = vector.broadcast %cst_26 : f32 to vector<128x256xf32>
      %73 = arith.minimumf %72, %71 : vector<128x256xf32>
      %74 = math.exp %73 : vector<128x256xf32>
      %75 = arith.mulf %74, %53 : vector<128x256xf32>
      %76 = arith.truncf %75 : vector<128x256xf32> to vector<128x256xbf16>
      %77 = vector.extract_strided_slice %51 {offsets = [0, 41], sizes = [256, 9], strides = [1, 1]} : vector<256x68xbf16> to vector<256x9xbf16>
      %cst_27 = arith.constant dense<0.000000e+00> : vector<128x9xf32>
      %78 = tpu.matmul %76, %77, %cst_27 {dimension_numbers = #tpu.dot_dimension_numbers<[1], [0], [0], [1], [0, 0, 1, 1], [], []>} : vector<128x256xbf16>, vector<256x9xbf16>, vector<128x9xf32> -> vector<128x9xf32>
      %79 = vector.extract_strided_slice %54 {offsets = [0, 16], sizes = [128, 8], strides = [1, 1]} : vector<128x32xbf16> to vector<128x8xbf16>
      %80 = vector.extract_strided_slice %51 {offsets = [0, 16], sizes = [256, 8], strides = [1, 1]} : vector<256x68xbf16> to vector<256x8xbf16>
      %cst_28 = arith.constant dense<0.000000e+00> : vector<128x256xf32>
      %81 = tpu.matmul %79, %80, %cst_28 {dimension_numbers = #tpu.dot_dimension_numbers<[1], [1], [0], [0], [0, 0, 1, 0], [], []>} : vector<128x8xbf16>, vector<256x8xbf16>, vector<128x256xf32> -> vector<128x256xf32>
      %cst_29 = arith.constant -5.000000e+00 : f32
      %cst_30 = arith.constant 5.000000e+00 : f32
      %82 = vector.broadcast %cst_29 : f32 to vector<128x256xf32>
      %83 = arith.maximumf %82, %81 : vector<128x256xf32>
      %84 = vector.broadcast %cst_30 : f32 to vector<128x256xf32>
      %85 = arith.minimumf %84, %83 : vector<128x256xf32>
      %86 = math.exp %85 : vector<128x256xf32>
      %87 = arith.mulf %86, %53 : vector<128x256xf32>
      %88 = arith.truncf %87 : vector<128x256xf32> to vector<128x256xbf16>
      %89 = vector.extract_strided_slice %51 {offsets = [0, 50], sizes = [256, 9], strides = [1, 1]} : vector<256x68xbf16> to vector<256x9xbf16>
      %cst_31 = arith.constant dense<0.000000e+00> : vector<128x9xf32>
      %90 = tpu.matmul %88, %89, %cst_31 {dimension_numbers = #tpu.dot_dimension_numbers<[1], [0], [0], [1], [0, 0, 1, 1], [], []>} : vector<128x256xbf16>, vector<256x9xbf16>, vector<128x9xf32> -> vector<128x9xf32>
      %91 = vector.extract_strided_slice %54 {offsets = [0, 24], sizes = [128, 8], strides = [1, 1]} : vector<128x32xbf16> to vector<128x8xbf16>
      %92 = vector.extract_strided_slice %51 {offsets = [0, 24], sizes = [256, 8], strides = [1, 1]} : vector<256x68xbf16> to vector<256x8xbf16>
      %cst_32 = arith.constant dense<0.000000e+00> : vector<128x256xf32>
      %93 = tpu.matmul %91, %92, %cst_32 {dimension_numbers = #tpu.dot_dimension_numbers<[1], [1], [0], [0], [0, 0, 1, 0], [], []>} : vector<128x8xbf16>, vector<256x8xbf16>, vector<128x256xf32> -> vector<128x256xf32>
      %cst_33 = arith.constant -5.000000e+00 : f32
      %cst_34 = arith.constant 5.000000e+00 : f32
      %94 = vector.broadcast %cst_33 : f32 to vector<128x256xf32>
      %95 = arith.maximumf %94, %93 : vector<128x256xf32>
      %96 = vector.broadcast %cst_34 : f32 to vector<128x256xf32>
      %97 = arith.minimumf %96, %95 : vector<128x256xf32>
      %98 = math.exp %97 : vector<128x256xf32>
      %99 = arith.mulf %98, %53 : vector<128x256xf32>
      %100 = arith.truncf %99 : vector<128x256xf32> to vector<128x256xbf16>
      %101 = vector.extract_strided_slice %51 {offsets = [0, 59], sizes = [256, 9], strides = [1, 1]} : vector<256x68xbf16> to vector<256x9xbf16>
      %cst_35 = arith.constant dense<0.000000e+00> : vector<128x9xf32>
      %102 = tpu.matmul %100, %101, %cst_35 {dimension_numbers = #tpu.dot_dimension_numbers<[1], [0], [0], [1], [0, 0, 1, 1], [], []>} : vector<128x256xbf16>, vector<256x9xbf16>, vector<128x9xf32> -> vector<128x9xf32>
      %c0_36 = arith.constant 0 : index
      %c0_37 = arith.constant 0 : index
      %103 = vector.load %arg10[%c0_36, %c0_37] : memref<128x36xf32, #tpu.memory_space<vmem>>, vector<128x36xf32>
      %104 = tpu.concatenate %66, %78, %90, %102 in 1 : vector<128x9xf32>, vector<128x9xf32>, vector<128x9xf32>, vector<128x9xf32> -> vector<128x36xf32>
      %105 = arith.addf %103, %104 : vector<128x36xf32>
      %c0_38 = arith.constant 0 : index
      %c0_39 = arith.constant 0 : index
      %106 = vector.load %arg10[%c0_38, %c0_39] : memref<128x36xf32, #tpu.memory_space<vmem>>, vector<128x36xf32>
      tpu.vector_store %arg10[%c0_38, %c0_39], %105 {strides = array<i32>} : memref<128x36xf32, #tpu.memory_space<vmem>>, vector<128x36xf32>,
    } else {
    }
    %c0_i32_5 = arith.constant 0 : i32
    %13 = arith.cmpi eq, %arg1, %c0_i32_5 : i32
    %14 = arith.extui %13 : i1 to i32
    %c0_i32_6 = arith.constant 0 : i32
    %15 = arith.cmpi ne, %14, %c0_i32_6 : i32
    scf.if %15 {
      %c0_7 = arith.constant 0 : index
      %c0_8 = arith.constant 0 : index
      %16 = vector.load %arg10[%c0_7, %c0_8] : memref<128x36xf32, #tpu.memory_space<vmem>>, vector<128x36xf32>
      %17 = vector.extract_strided_slice %16 {offsets = [0, 0], sizes = [128, 8], strides = [1, 1]} : vector<128x36xf32> to vector<128x8xf32>
      %18 = vector.extract_strided_slice %16 {offsets = [0, 8], sizes = [128, 1], strides = [1, 1]} : vector<128x36xf32> to vector<128x1xf32>
      %cst = arith.constant 1.000000e-30 : f32
      %19 = vector.broadcast %cst : f32 to vector<128x1xf32>
      %20 = arith.maximumf %18, %19 : vector<128x1xf32>
      %21 = vector.broadcast %20 : vector<128x1xf32> to vector<128x8xf32>
      %22 = arith.divf %17, %21 : vector<128x8xf32>
      %23 = vector.extract_strided_slice %16 {offsets = [0, 9], sizes = [128, 8], strides = [1, 1]} : vector<128x36xf32> to vector<128x8xf32>
      %24 = vector.extract_strided_slice %16 {offsets = [0, 17], sizes = [128, 1], strides = [1, 1]} : vector<128x36xf32> to vector<128x1xf32>
      %cst_9 = arith.constant 1.000000e-30 : f32
      %25 = vector.broadcast %cst_9 : f32 to vector<128x1xf32>
      %26 = arith.maximumf %24, %25 : vector<128x1xf32>
      %27 = vector.broadcast %26 : vector<128x1xf32> to vector<128x8xf32>
      %28 = arith.divf %23, %27 : vector<128x8xf32>
      %29 = vector.extract_strided_slice %16 {offsets = [0, 18], sizes = [128, 8], strides = [1, 1]} : vector<128x36xf32> to vector<128x8xf32>
      %30 = vector.extract_strided_slice %16 {offsets = [0, 26], sizes = [128, 1], strides = [1, 1]} : vector<128x36xf32> to vector<128x1xf32>
      %cst_10 = arith.constant 1.000000e-30 : f32
      %31 = vector.broadcast %cst_10 : f32 to vector<128x1xf32>
      %32 = arith.maximumf %30, %31 : vector<128x1xf32>
      %33 = vector.broadcast %32 : vector<128x1xf32> to vector<128x8xf32>
      %34 = arith.divf %29, %33 : vector<128x8xf32>
      %35 = vector.extract_strided_slice %16 {offsets = [0, 27], sizes = [128, 8], strides = [1, 1]} : vector<128x36xf32> to vector<128x8xf32>
      %36 = vector.extract_strided_slice %16 {offsets = [0, 35], sizes = [128, 1], strides = [1, 1]} : vector<128x36xf32> to vector<128x1xf32>
      %cst_11 = arith.constant 1.000000e-30 : f32
      %37 = vector.broadcast %cst_11 : f32 to vector<128x1xf32>
      %38 = arith.maximumf %36, %37 : vector<128x1xf32>
      %39 = vector.broadcast %38 : vector<128x1xf32> to vector<128x8xf32>
      %40 = arith.divf %35, %39 : vector<128x8xf32>
      %41 = tpu.concatenate %22, %28, %34, %40 in 1 : vector<128x8xf32>, vector<128x8xf32>, vector<128x8xf32>, vector<128x8xf32> -> vector<128x32xf32>
      %c109 = arith.constant 109 : index
      %c0_12 = arith.constant 0 : index
      %42 = vector.load %arg7[%c109, %c0_12] : memref<240x128xf32, #tpu.memory_space<vmem>>, vector<32x32xf32>
      %cst_13 = arith.constant dense<0.000000e+00> : vector<128x32xf32>
      %43 = tpu.matmul %41, %42, %cst_13 {dimension_numbers = #tpu.dot_dimension_numbers<[1], [1], [0], [0], [0, 0, 1, 0], [], []>} : vector<128x32xf32>, vector<32x32xf32>, vector<128x32xf32> -> vector<128x32xf32>
      %c6 = arith.constant 6 : index
      %c0_14 = arith.constant 0 : index
      %44 = vector.load %arg7[%c6, %c0_14] : memref<240x128xf32, #tpu.memory_space<vmem>>, vector<1x32xf32>
      %45 = vector.shape_cast %44 : vector<1x32xf32> to vector<32xf32>
      %46 = vector.shape_cast %45 : vector<32xf32> to vector<1x32xf32>
      %47 = vector.broadcast %46 : vector<1x32xf32> to vector<128x32xf32>
      %48 = arith.addf %43, %47 : vector<128x32xf32>
      %c0_15 = arith.constant 0 : index
      %c0_16 = arith.constant 0 : index
      %49 = vector.load %arg4[%c0_15, %c0_16] : memref<128x32xf32, #tpu.memory_space<vmem>>, vector<128x32xf32>
      %50 = arith.addf %48, %49 : vector<128x32xf32>
      %c2 = arith.constant 2 : index
      %c0_17 = arith.constant 0 : index
      %51 = vector.load %arg7[%c2, %c0_17] : memref<240x128xf32, #tpu.memory_space<vmem>>, vector<1x32xf32>
      %52 = vector.shape_cast %51 : vector<1x32xf32> to vector<32xf32>
      %c3 = arith.constant 3 : index
      %c0_18 = arith.constant 0 : index
      %53 = vector.load %arg7[%c3, %c0_18] : memref<240x128xf32, #tpu.memory_space<vmem>>, vector<1x32xf32>
      %54 = vector.shape_cast %53 : vector<1x32xf32> to vector<32xf32>
      %cst_19 = arith.constant dense<0.000000e+00> : vector<128xf32>
      %55 = vector.multi_reduction <add>, %50, %cst_19 [1] : vector<128x32xf32> to vector<128xf32>
      %56 = vector.shape_cast %55 : vector<128xf32> to vector<128x1xf32>
      %cst_20 = arith.constant 3.200000e+01 : f32
      %57 = vector.broadcast %cst_20 : f32 to vector<128x1xf32>
      %58 = arith.divf %56, %57 : vector<128x1xf32>
      %59 = vector.broadcast %58 : vector<128x1xf32> to vector<128x32xf32>
      %60 = arith.subf %50, %59 : vector<128x32xf32>
      %61 = arith.mulf %60, %60 : vector<128x32xf32>
      %cst_21 = arith.constant dense<0.000000e+00> : vector<128xf32>
      %62 = vector.multi_reduction <add>, %61, %cst_21 [1] : vector<128x32xf32> to vector<128xf32>
      %63 = vector.shape_cast %62 : vector<128xf32> to vector<128x1xf32>
      %cst_22 = arith.constant 3.200000e+01 : f32
      %64 = vector.broadcast %cst_22 : f32 to vector<128x1xf32>
      %65 = arith.divf %63, %64 : vector<128x1xf32>
      %66 = vector.broadcast %58 : vector<128x1xf32> to vector<128x32xf32>
      %67 = arith.subf %50, %66 : vector<128x32xf32>
      %cst_23 = arith.constant 9.99999974E-6 : f32
      %68 = vector.broadcast %cst_23 : f32 to vector<128x1xf32>
      %69 = arith.addf %65, %68 : vector<128x1xf32>
      %70 = math.rsqrt %69 : vector<128x1xf32>
      %71 = vector.broadcast %70 : vector<128x1xf32> to vector<128x32xf32>
      %72 = arith.mulf %67, %71 : vector<128x32xf32>
      %73 = vector.shape_cast %52 : vector<32xf32> to vector<1x32xf32>
      %74 = vector.broadcast %73 : vector<1x32xf32> to vector<128x32xf32>
      %75 = arith.mulf %72, %74 : vector<128x32xf32>
      %76 = vector.shape_cast %54 : vector<32xf32> to vector<1x32xf32>
      %77 = vector.broadcast %76 : vector<1x32xf32> to vector<128x32xf32>
      %78 = arith.addf %75, %77 : vector<128x32xf32>
      %c141 = arith.constant 141 : index
      %c0_24 = arith.constant 0 : index
      %79 = vector.load %arg7[%c141, %c0_24] : memref<240x128xf32, #tpu.memory_space<vmem>>, vector<64x32xf32>
      %cst_25 = arith.constant dense<0.000000e+00> : vector<128x64xf32>
      %80 = tpu.matmul %78, %79, %cst_25 {dimension_numbers = #tpu.dot_dimension_numbers<[1], [1], [0], [0], [0, 0, 1, 0], [], []>} : vector<128x32xf32>, vector<64x32xf32>, vector<128x64xf32> -> vector<128x64xf32>
      %c7 = arith.constant 7 : index
      %c0_26 = arith.constant 0 : index
      %81 = vector.load %arg7[%c7, %c0_26] : memref<240x128xf32, #tpu.memory_space<vmem>>, vector<1x64xf32>
      %82 = vector.shape_cast %81 : vector<1x64xf32> to vector<64xf32>
      %83 = vector.shape_cast %82 : vector<64xf32> to vector<1x64xf32>
      %84 = vector.broadcast %83 : vector<1x64xf32> to vector<128x64xf32>
      %85 = arith.addf %80, %84 : vector<128x64xf32>
      %cst_27 = arith.constant 5.000000e-01 : f32
      %86 = vector.broadcast %cst_27 : f32 to vector<128x64xf32>
      %87 = arith.mulf %86, %85 : vector<128x64xf32>
      %cst_28 = arith.constant 0.707106769 : f32
      %88 = vector.broadcast %cst_28 : f32 to vector<128x64xf32>
      %89 = arith.mulf %85, %88 : vector<128x64xf32>
      %90 = math.erf %89 : vector<128x64xf32>
      %cst_29 = arith.constant 1.000000e+00 : f32
      %91 = vector.broadcast %cst_29 : f32 to vector<128x64xf32>
      %92 = arith.addf %91, %90 : vector<128x64xf32>
      %93 = arith.mulf %87, %92 : vector<128x64xf32>
      %c205 = arith.constant 205 : index
      %c0_30 = arith.constant 0 : index
      %94 = vector.load %arg7[%c205, %c0_30] : memref<240x128xf32, #tpu.memory_space<vmem>>, vector<32x64xf32>
      %cst_31 = arith.constant dense<0.000000e+00> : vector<128x32xf32>
      %95 = tpu.matmul %93, %94, %cst_31 {dimension_numbers = #tpu.dot_dimension_numbers<[1], [1], [0], [0], [0, 0, 1, 0], [], []>} : vector<128x64xf32>, vector<32x64xf32>, vector<128x32xf32> -> vector<128x32xf32>
      %c8 = arith.constant 8 : index
      %c0_32 = arith.constant 0 : index
      %96 = vector.load %arg7[%c8, %c0_32] : memref<240x128xf32, #tpu.memory_space<vmem>>, vector<1x32xf32>
      %97 = vector.shape_cast %96 : vector<1x32xf32> to vector<32xf32>
      %98 = vector.shape_cast %97 : vector<32xf32> to vector<1x32xf32>
      %99 = vector.broadcast %98 : vector<1x32xf32> to vector<128x32xf32>
      %100 = arith.addf %95, %99 : vector<128x32xf32>
      %101 = arith.addf %78, %100 : vector<128x32xf32>
      %c0_33 = arith.constant 0 : index
      %c0_34 = arith.constant 0 : index
      %102 = vector.load %arg8[%c0_33, %c0_34] : memref<128x32xf32, #tpu.memory_space<vmem>>, vector<128x32xf32>
      tpu.vector_store %arg8[%c0_33, %c0_34], %101 {strides = array<i32>} : memref<128x32xf32, #tpu.memory_space<vmem>>, vector<128x32xf32>,
    } else {
    }
    return
  }
  func.func @transform_0(%arg0: i32, %arg1: i32, %arg2: memref<2x1xi32, #tpu.memory_space<smem>>, %arg3: memref<2x1xi32, #tpu.memory_space<smem>>) -> (i32, i32) {
    %c0_i32 = arith.constant 0 : i32
    %c0_i32_0 = arith.constant 0 : i32
    return %arg0, %c0_i32 : i32, i32
  }
  func.func @transform_1(%arg0: i32, %arg1: i32, %arg2: memref<2x1xi32, #tpu.memory_space<smem>>, %arg3: memref<2x1xi32, #tpu.memory_space<smem>>) -> (i32, i32) {
    %0 = arith.index_cast %arg0 : i32 to index
    %1 = arith.index_cast %arg1 : i32 to index
    %2 = memref.load %arg3[%0, %1] : memref<2x1xi32, #tpu.memory_space<smem>>
    %c0_i32 = arith.constant 0 : i32
    %c0_i32_0 = arith.constant 0 : i32
    return %2, %c0_i32 : i32, i32
  }
  func.func @transform_2(%arg0: i32, %arg1: i32, %arg2: memref<2x1xi32, #tpu.memory_space<smem>>, %arg3: memref<2x1xi32, #tpu.memory_space<smem>>) -> (i32, i32) {
    %0 = arith.index_cast %arg0 : i32 to index
    %1 = arith.index_cast %arg1 : i32 to index
    %2 = memref.load %arg3[%0, %1] : memref<2x1xi32, #tpu.memory_space<smem>>
    %c0_i32 = arith.constant 0 : i32
    return %arg0, %2 : i32, i32
  }
  func.func @transform_3(%arg0: i32, %arg1: i32, %arg2: memref<2x1xi32, #tpu.memory_space<smem>>, %arg3: memref<2x1xi32, #tpu.memory_space<smem>>) -> (i32, i32) {
    %c0_i32 = arith.constant 0 : i32
    %c0_i32_0 = arith.constant 0 : i32
    %c0_i32_1 = arith.constant 0 : i32
    return %c0_i32, %c0_i32_0 : i32, i32
  }
  func.func @transform_4(%arg0: i32, %arg1: i32, %arg2: memref<2x1xi32, #tpu.memory_space<smem>>, %arg3: memref<2x1xi32, #tpu.memory_space<smem>>) -> (i32, i32) {
    %c0_i32 = arith.constant 0 : i32
    %c0_i32_0 = arith.constant 0 : i32
    return %arg0, %c0_i32 : i32, i32
  }
}

</mosaic_0001>

<bundles_post_ra>
// kernel: tpu_custom_call.1
= control target key start
LH: loop header
LB: loop body
LE: loop exit
PB: predicated region body
PF: predicated region fallthrough
CT: control target
= control target key end

     0   :  { %s11094_s0 = inlined_call_operand.vmem [shape: s32[2,1], index: 0, kind: input, shape index: {}]   ;;  %s11095_s2 = inlined_call_operand.vmem [shape: f32[256,32], index: 2, kind: input, shape index: {}]   ;;  %s11096_s3 = inlined_call_operand.vmem [shape: bf16[256,32], index: 3, kind: input, shape index: {}]   ;;  %s11097_s4 = inlined_call_operand.vmem [shape: s8[256,256], index: 4, kind: input, shape index: {}]   ;;  %s11098_s5 = inlined_call_operand.vmem [shape: f32[240,128], index: 5, kind: input, shape index: {}]   ;;  %s11099_s6 = inlined_call_operand.vmem [shape: f32[256,32], index: 6, kind: output, shape index: {}]   ;;  %s11100_s1 = inlined_call_operand.vmem [shape: s32[2,1], index: 1, kind: input, shape index: {}]  }
   0x1   :  { %s11_s23 = sshll.u32 %s11094_s0, 4  ;;  %s15_s26 = sshll.u32 %s11100_s1, 4  ;;  %s12_s23 = int_to_ptr.vmem [resolvable:$true] %s11_s23  ;;  %s16_s26 = int_to_ptr.vmem [resolvable:$true] %s15_s26 }
   0x2   :  { %s7932_s27 = scalar_lea.vmem %s12_s23, 32  ;;  %p7937_p1 = scmp.lt.s32.totalorder %s12_s23, %s12_s23 }
   0x3   :  { %p7933_p0 = scmp.ne.s32.totalorder %s12_s23, %s7932_s27  ;;  %p7938_p2 = scmp.lt.s32.totalorder %s7932_s27, %s7932_s27 }
   0x5   :  { %p7939_p3 = por %p7938_p2, %p7937_p1 }
   0x7   :  { %p7940_p4 = pnand %p7939_p3, %p7933_p0 }
   0x9   :  { %7943 = shalt.err (!%p7940_p4)  }
   0xa   :  { %s7982_s28 = smov [#allocation5]   ;;  %s7944_s29 = scalar_lea.vmem %s16_s26, 32 }
   0xb   :  { %14 = dma.vmem_to_smem %s12_s23, 32, %s7982_s28, [#allocation4] }
   0xc   :  { %p7945_p5 = scmp.ne.s32.totalorder %s16_s26, %s7944_s29  ;;  %p7949_p6 = scmp.lt.s32.totalorder %s16_s26, %s16_s26 }
   0xd   :  { %p7950_p7 = scmp.lt.s32.totalorder %s7944_s29, %s7944_s29 }
   0xf   :  { %p7951_p8 = por %p7950_p7, %p7949_p6 }
  0x11   :  { %p7952_p9 = pnand %p7951_p8, %p7945_p5 }
  0x13   :  { %7955 = shalt.err (!%p7952_p9)  }
  0x14   :  { %s7983_s0 = smov [#allocation6]  }
  0x15   :  { %18 = dma.vmem_to_smem %s16_s26, 32, %s7983_s0, [#allocation4] }
  0x16   :  { %7968 = dma.done.wait [#allocation4], 64 }
  0x17   :  { %7969 = vsyncadd [#allocation4], 4294967232 }
  0x18   :  { %20 = sfence }
  0x19   :  { %s8043_s1 = smov 0   ;;  %s8045_s30 = smov 0  }
  0x1a   :  { %s8047_s7 = smov 0  }
  0x1b LB: > { %s38_s8 = sadd.s32 1, %s7976_s30  ;;  %p6162_p10 = scmp.ge.s32.totalorder %s7980_s7, 1  ;;  %s7980_s7 = sphi %s8047_s7, %s26_s7   ;;  %s7976_s30 = sphi %s8045_s30, %s11175_s30   ;;  %s7972_s1 = sphi %s8043_s1, %s11174_s1  }
  0x1c   : > { %p40_p11 = scmp.ge.s32.totalorder %s38_s8, 2  ;;  %p281_p12 = scmp.lt.s32.totalorder %s7980_s7, 3 }
  0x1e   : > { %s11177_s8 = smov (%p40_p11, %s38_s8), 0  ;;  %p282_p13 = pnand %p6162_p10, %p281_p12 }
  0x20   : > { %285 = sbr.rel (%p282_p13) target bundleno = 3511 (0xdb7), region = 36 }
  0x27   : > { %s6163_s9 = sshll.u32 %s7972_s1, 4  ;;  %vm423_vm0 = vcmask 261120   ;;  %s8246_s21 = sshll.u32 %s7972_s1, 7  ;;  %vm903_vm2 = vcmask 293888  }
  0x28   : > { %p339_p0 = scmp.lt.s32.totalorder %s6163_s9, 31  ;;  %vm8227_vm1 = vmpackc.low %vm423_vm0, %vm423_vm0  ;;  %s6169_s22 = sshll.u32 %s7972_s1, 2 }
  0x29   : > { %s351_s23 = sld [smem:[#allocation6 + %s8246_s21]]  ;;  %p376_p1 = scmp.lt.s32.totalorder %s6169_s22, 7 }
  0x2a   : > { %s11179_s9 = smov (!%p339_p0, %s6163_s9), 31  ;;  %s373_s24 = sld [smem:[#allocation6 + %s8246_s21]] }
  0x2b   : > { %s6164_s10 = sshll.u32 %s11179_s9, 3  ;;  %s11181_s22 = smov (!%p376_p1, %s6169_s22), 7 }
  0x2c   : > { %s8067_s13 = scalar_lea.vmem %s11095_s2, %s6164_s10  ;;  %s8072_s16 = scalar_lea.vmem %s11099_s6, %s6164_s10 }
  0x2d   : > { %v407_v0 = vld [vmem:[%s8067_s13] sm:$0xff]  ;;  %v408_v1 = vld [vmem:[%s8067_s13 + $0x8] sm:$0xff]  ;;  %v409_v8 = vld [vmem:[%s8067_s13 + $0x10] sm:$0xff]  ;;  %s6171_s1 = sshll.u32 %s11181_s22, 1  ;;  %s8351_s25 = sld [smem:[#allocation5 + %s8246_s21]] }
  0x2e   : > { %v415_v2 = vld [vmem:[%s8067_s13 + $0x40] sm:$0xff]  ;;  %v424_v3 = vsel %vm423_vm0, %v407_v0, 0.0  ;;  %v427_v4 = vsel %vm423_vm0, %v408_v1, 0.0  ;;  %v416_v5 = vld [vmem:[%s8067_s13 + $0x48] sm:$0xff]  ;;  %v417_v9 = vld [vmem:[%s8067_s13 + $0x50] sm:$0xff]  ;;  %v430_v10 = vsel %vm423_vm0, %v409_v8, 0.0 }
  0x2f   : > { %425 = vadd.xlane.f32.xlu0 %v424_v3  ;;  %428 = vadd.xlane.f32.xlu1 %v427_v4  ;;  %v448_v6 = vsel %vm423_vm0, %v415_v2, 0.0  ;;  %v451_v7 = vsel %vm423_vm0, %v416_v5, 0.0  ;;  %v454_v11 = vsel %vm423_vm0, %v417_v9, 0.0  ;;  %v8087_v12 = vld [vmem:[%s8067_s13 + $0x18] sm:$0xff]  ;;  %v8097_v16 = vld [vmem:[%s8067_s13 + $0x20] sm:$0xff]  ;;  %v8107_v20 = vld [vmem:[%s8067_s13 + $0x28] sm:$0xff] }
  0x30   : > { %v8090_v13 = vld [vmem:[%s8067_s13 + $0x58] sm:$0xff]  ;;  %v433_v14 = vsel %vm423_vm0, %v8087_v12, 0.0  ;;  %v8100_v17 = vld [vmem:[%s8067_s13 + $0x60] sm:$0xff]  ;;  %v436_v18 = vsel %vm423_vm0, %v8097_v16, 0.0  ;;  %v8110_v21 = vld [vmem:[%s8067_s13 + $0x68] sm:$0xff]  ;;  %v439_v22 = vsel %vm423_vm0, %v8107_v20, 0.0 }
  0x31   : > { %v457_v15 = vsel %vm423_vm0, %v8090_v13, 0.0  ;;  %v460_v19 = vsel %vm423_vm0, %v8100_v17, 0.0  ;;  %v463_v23 = vsel %vm423_vm0, %v8110_v21, 0.0  ;;  %v8117_v24 = vld [vmem:[%s8067_s13 + $0x30] sm:$0xff]  ;;  %v8127_v28 = vld [vmem:[%s8067_s13 + $0x38] sm:$0xff]  ;;  %s6166_s29 = sshll.u32 %s351_s23, 5 }
  0x32   : > { %v8120_v25 = vld [vmem:[%s8067_s13 + $0x70] sm:$0xff]  ;;  %v442_v26 = vsel %vm423_vm0, %v8117_v24, 0.0  ;;  %v8130_v29 = vld [vmem:[%s8067_s13 + $0x78] sm:$0xff]  ;;  %v445_v30 = vsel %vm423_vm0, %v8127_v28, 0.0  ;;  %s6170_s0 = sshll.u32 %s373_s24, 1  ;;  %p353_p2 = scmp.lt.s32.totalorder %s6166_s29, 31 }
  0x33   : > { %449 = vadd.xlane.f32.xlu0 %v448_v6  ;;  %452 = vadd.xlane.f32.xlu1 %v451_v7  ;;  %v466_v27 = vsel %vm423_vm0, %v8120_v25, 0.0  ;;  %v469_v31 = vsel %vm423_vm0, %v8130_v29, 0.0  ;;  %p378_p3 = scmp.lt.s32.totalorder %s6170_s0, 1  ;;  %p6197_p4 = scmp.le.s32.totalorder %s8351_s25, 0 }
  0x34   : > { %s11183_s29 = smov (!%p353_p2, %s6166_s29), 31 }
  0x35   : > { %s11185_s0 = smov (!%p378_p3, %s6170_s0), 1  ;;  %s6167_s9 = sshll.u32 %s11183_s29, 2 }
  0x36   : > { %s8269_s12 = scalar_lea.vmem %s11096_s3, %s6167_s9  ;;  %s381_s14 = sadd.s32 %s6171_s1, %s11185_s0 }
  0x37   : > { %431 = vadd.xlane.f32.xlu0 %v430_v10  ;;  %455 = vadd.xlane.f32.xlu1 %v454_v11  ;;  %s6172_s15 = sshll.u32 %s381_s14, 3 }
  0x38   : > { %s8274_s19 = scalar_lea.vmem %s11097_s4, %s6172_s15 }
  0x3b   : > { %434 = vadd.xlane.f32.xlu0 %v433_v14  ;;  %458 = vadd.xlane.f32.xlu1 %v457_v15 }
  0x3f   : > { %437 = vadd.xlane.f32.xlu0 %v436_v18  ;;  %461 = vadd.xlane.f32.xlu1 %v460_v19 }
  0x43   : > { %440 = vadd.xlane.f32.xlu0 %v439_v22  ;;  %464 = vadd.xlane.f32.xlu1 %v463_v23 }
  0x47   : > { %443 = vadd.xlane.f32.xlu0 %v442_v26  ;;  %467 = vadd.xlane.f32.xlu1 %v466_v27 }
  0x4b   : > { %446 = vadd.xlane.f32.xlu0 %v445_v30  ;;  %470 = vadd.xlane.f32.xlu1 %v469_v31 }
  0xbc   : > { %v426_v32 = vpop.xlane.xlu0 %425  ;;  %v429_v33 = vpop.xlane.xlu1 %428 }
  0xbd   : > { %v473_v34 = vmul.f32 0.03125, %v426_v32  ;;  %v474_v35 = vmul.f32 0.03125, %v429_v33 }
  0xbf   : > { %v8136_v36 = vsub.f32 %v407_v0, %v473_v34  ;;  %v8138_v37 = vsub.f32 %v408_v1, %v474_v35 }
  0xc0   : > { %v450_v38 = vpop.xlane.xlu0 %449  ;;  %v453_v39 = vpop.xlane.xlu1 %452 }
  0xc1   : > { %v481_v40 = vmul.f32 0.03125, %v450_v38  ;;  %v482_v41 = vmul.f32 0.03125, %v453_v39  ;;  %v505_v42 = vmul.f32 %v8136_v36, %v8136_v36  ;;  %v506_v43 = vmul.f32 %v8138_v37, %v8138_v37 }
  0xc3   : > { %v8144_v44 = vsub.f32 %v415_v2, %v481_v40  ;;  %v8146_v45 = vsub.f32 %v416_v5, %v482_v41  ;;  %v521_v46 = vsel %vm423_vm0, %v505_v42, 0.0  ;;  %v524_v49 = vsel %vm423_vm0, %v506_v43, 0.0 }
  0xc4   : > { %522 = vadd.xlane.f32.xlu0 %v521_v46  ;;  %v432_v47 = vpop.xlane.xlu0 %431  ;;  %v456_v48 = vpop.xlane.xlu1 %455 }
  0xc5   : > { %v475_v50 = vmul.f32 0.03125, %v432_v47  ;;  %v483_v51 = vmul.f32 0.03125, %v456_v48  ;;  %v513_v52 = vmul.f32 %v8144_v44, %v8144_v44  ;;  %v514_v53 = vmul.f32 %v8146_v45, %v8146_v45  ;;  %v674_v47 = vld [vmem:[%s11098_s5 + $0x11] sm:$0xff] }
  0xc7   : > { %v8154_v54 = vsub.f32 %v409_v8, %v475_v50  ;;  %v8156_v55 = vsub.f32 %v417_v9, %v483_v51  ;;  %v545_v56 = vsel %vm423_vm0, %v513_v52, 0.0  ;;  %v548_v59 = vsel %vm423_vm0, %v514_v53, 0.0 }
  0xc8   : > { %525 = vadd.xlane.f32.xlu0 %v524_v49  ;;  %546 = vadd.xlane.f32.xlu1 %v545_v56  ;;  %v435_v57 = vpop.xlane.xlu0 %434  ;;  %v459_v58 = vpop.xlane.xlu1 %458  ;;  %v11129_v52 = vmov 0 }
  0xc9   : > { %v476_v60 = vmul.f32 0.03125, %v435_v57  ;;  %v484_v61 = vmul.f32 0.03125, %v459_v58  ;;  %v507_v62 = vmul.f32 %v8154_v54, %v8154_v54  ;;  %v515_v63 = vmul.f32 %v8156_v55, %v8156_v55  ;;  %v675_v58 = vld [vmem:[%s11098_s5 + $0x19] sm:$0xff] }
  0xca   : > { %v11130_v52 = vsel %vm8227_vm1, 4294967295, %v11129_v52 }
  0xcb   : > { %v8165_v0 = vsub.f32 %v8087_v12, %v476_v60  ;;  %v8168_v1 = vsub.f32 %v8090_v13, %v484_v61  ;;  %v527_v2 = vsel %vm423_vm0, %v507_v62, 0.0  ;;  %v551_v5 = vsel %vm423_vm0, %v515_v63, 0.0  ;;  %11131 = vst [vmem:[#allocation8_spill] sm:$0xff] %v11130_v52 }
  0xcc   : > { %549 = vadd.xlane.f32.xlu1 %v548_v59  ;;  %528 = vadd.xlane.f32.xlu0 %v527_v2  ;;  %v438_v3 = vpop.xlane.xlu0 %437  ;;  %v462_v4 = vpop.xlane.xlu1 %461  ;;  %v676_v59 = vld [vmem:[%s11098_s5 + $0x21] sm:$0xff] }
  0xcd   : > { %v477_v6 = vmul.f32 0.03125, %v438_v3  ;;  %v485_v7 = vmul.f32 0.03125, %v462_v4  ;;  %v508_v8 = vmul.f32 %v8165_v0, %v8165_v0  ;;  %v516_v9 = vmul.f32 %v8168_v1, %v8168_v1 }
  0xce   : > { %v7200_v60 = vpack.c.bf16 %v676_v59, %v675_v58 }
  0xcf   : > { %v8177_v10 = vsub.f32 %v8097_v16, %v477_v6  ;;  %v8180_v11 = vsub.f32 %v8100_v17, %v485_v7  ;;  %v530_v12 = vsel %vm423_vm0, %v508_v8, 0.0  ;;  %v554_v15 = vsel %vm423_vm0, %v516_v9, 0.0 }
  0xd0   : > { %552 = vadd.xlane.f32.xlu1 %v551_v5  ;;  %531 = vadd.xlane.f32.xlu0 %v530_v12  ;;  %v441_v13 = vpop.xlane.xlu0 %440  ;;  %v465_v14 = vpop.xlane.xlu1 %464 }
  0xd1   : > { %v478_v18 = vmul.f32 0.03125, %v441_v13  ;;  %v486_v19 = vmul.f32 0.03125, %v465_v14  ;;  %v509_v22 = vmul.f32 %v8177_v10, %v8177_v10  ;;  %v517_v16 = vmul.f32 %v8180_v11, %v8180_v11 }
  0xd3   : > { %v8189_v23 = vsub.f32 %v8107_v20, %v478_v18  ;;  %v8192_v17 = vsub.f32 %v8110_v21, %v486_v19  ;;  %v533_v26 = vsel %vm423_vm0, %v509_v22, 0.0  ;;  %v557_v31 = vsel %vm423_vm0, %v517_v16, 0.0 }
  0xd4   : > { %555 = vadd.xlane.f32.xlu1 %v554_v15  ;;  %534 = vadd.xlane.f32.xlu0 %v533_v26  ;;  %v444_v27 = vpop.xlane.xlu0 %443  ;;  %v468_v30 = vpop.xlane.xlu1 %467 }
  0xd5   : > { %v479_v32 = vmul.f32 0.03125, %v444_v27  ;;  %v487_v33 = vmul.f32 0.03125, %v468_v30  ;;  %v510_v34 = vmul.f32 %v8189_v23, %v8189_v23  ;;  %v518_v20 = vmul.f32 %v8192_v17, %v8192_v17 }
  0xd7   : > { %v8201_v35 = vsub.f32 %v8117_v24, %v479_v32  ;;  %v8204_v21 = vsub.f32 %v8120_v25, %v487_v33  ;;  %v536_v38 = vsel %vm423_vm0, %v510_v34, 0.0  ;;  %v560_v41 = vsel %vm423_vm0, %v518_v20, 0.0  ;;  %v673_v25 = vld [vmem:[%s11098_s5 + $0x9] sm:$0xff] }
  0xd8   : > { %558 = vadd.xlane.f32.xlu1 %v557_v31  ;;  %537 = vadd.xlane.f32.xlu0 %v536_v38  ;;  %v447_v39 = vpop.xlane.xlu0 %446  ;;  %v471_v40 = vpop.xlane.xlu1 %470  ;;  %v7194_v48 = vpack.c.bf16 %v674_v47, %v673_v25  ;;  %v8279_v31 = vld [vmem:[%s11098_s5] ss:$0 sm:$0xff] }
  0xd9   : > { %v480_v42 = vmul.f32 0.03125, %v447_v39  ;;  %v488_v43 = vmul.f32 0.03125, %v471_v40  ;;  %v511_v46 = vmul.f32 %v8201_v35, %v8201_v35  ;;  %v519_v24 = vmul.f32 %v8204_v21, %v8204_v21  ;;  %v8285_v39 = vld [vmem:[%s11098_s5 + $0x1] ss:$0 sm:$0xff] }
  0xda   : > { %7196 = vmatprep.subr.msk.bf16.mxu0 %vm8227_vm1, %v7194_v48  ;;  %7254 = vmatprep.subr.msk.bf16.mxu1 %vm8227_vm1, %v7194_v48 }
  0xdb   : > { %v8219_v49 = vsub.f32 %v8127_v28, %v480_v42  ;;  %v8222_v50 = vsub.f32 %v8130_v29, %v488_v43  ;;  %v539_v51 = vsel %vm423_vm0, %v511_v46, 0.0  ;;  %v563_v53 = vsel %vm423_vm0, %v519_v24, 0.0  ;;  %7199 = vmatpush3.bf16.xpose.msk.msra.mxu0 %vm8227_vm1, %v7194_v48  ;;  %7256 = vmatpush3.bf16.xpose.msk.msra.mxu1 %vm8227_vm1, %v7194_v48 }
  0xdc   : > { %561 = vadd.xlane.f32.xlu1 %v560_v41  ;;  %540 = vadd.xlane.f32.xlu0 %v539_v51 }
  0xdd   : > { %v512_v56 = vmul.f32 %v8219_v49, %v8219_v49  ;;  %v520_v28 = vmul.f32 %v8222_v50, %v8222_v50  ;;  %7202 = vmatprep.subr.msk.bf16.mxu0 %vm8227_vm1, %v7200_v60  ;;  %7255 = vmatprep.subr.msk.bf16.mxu1 %vm8227_vm1, %v7200_v60 }
  0xdf   : > { %v542_v29 = vsel %vm423_vm0, %v512_v56, 0.0  ;;  %v566_v57 = vsel %vm423_vm0, %v520_v28, 0.0 }
  0xe0   : > { %564 = vadd.xlane.f32.xlu1 %v563_v53  ;;  %543 = vadd.xlane.f32.xlu0 %v542_v29 }
  0xe3   : > { %7205 = vmatpush3.bf16.xpose.msk.msra.mxu0 %vm8227_vm1, %v7200_v60  ;;  %7257 = vmatpush3.bf16.xpose.msk.msra.mxu1 %vm8227_vm1, %v7200_v60 }
  0xe4   : > { %567 = vadd.xlane.f32.xlu1 %v566_v57 }
 0x151   : > { %v523_v61 = vpop.xlane.xlu0 %522 }
 0x152   : > { %v569_v62 = vmul.f32 0.03125, %v523_v61 }
 0x154   : > { %v585_v63 = vadd.f32 1e-05, %v569_v62 }
 0x155   : > { %v547_v2 = vpop.xlane.xlu1 %546  ;;  %v526_v3 = vpop.xlane.xlu0 %525 }
 0x156   : > { %7359 = vrsqrt.f32 %v585_v63  ;;  %v577_v4 = vmul.f32 0.03125, %v547_v2  ;;  %v570_v5 = vmul.f32 0.03125, %v526_v3 }
 0x158   : > { %v593_v6 = vadd.f32 1e-05, %v577_v4  ;;  %v586_v7 = vadd.f32 1e-05, %v570_v5 }
 0x159   : > { %v550_v8 = vpop.xlane.xlu1 %549  ;;  %v529_v9 = vpop.xlane.xlu0 %528 }
 0x15a   : > { %7361 = vrsqrt.f32 %v593_v6  ;;  %v578_v12 = vmul.f32 0.03125, %v550_v8  ;;  %v571_v13 = vmul.f32 0.03125, %v529_v9 }
 0x15b   : > { %7363 = vrsqrt.f32 %v586_v7 }
 0x15c   : > { %v594_v14 = vadd.f32 1e-05, %v578_v12  ;;  %v587_v15 = vadd.f32 1e-05, %v571_v13 }
 0x15d   : > { %v553_v18 = vpop.xlane.xlu1 %552  ;;  %v532_v19 = vpop.xlane.xlu0 %531 }
 0x15e   : > { %7365 = vrsqrt.f32 %v594_v14  ;;  %v579_v22 = vmul.f32 0.03125, %v553_v18  ;;  %v572_v16 = vmul.f32 0.03125, %v532_v19 }
 0x15f   : > { %7367 = vrsqrt.f32 %v587_v15 }
 0x160   : > { %v7360_v26 = vpop.eup %7359  ;;  %v595_v27 = vadd.f32 1e-05, %v579_v22  ;;  %v588_v30 = vadd.f32 1e-05, %v572_v16 }
 0x161   : > { %v556_v32 = vpop.xlane.xlu1 %555  ;;  %v535_v33 = vpop.xlane.xlu0 %534  ;;  %v617_v34 = vmul.f32 %v7360_v26, %v8136_v36 }
 0x162   : > { %7369 = vrsqrt.f32 %v595_v27  ;;  %v580_v20 = vmul.f32 0.03125, %v556_v32  ;;  %v573_v38 = vmul.f32 0.03125, %v535_v33 }
 0x163   : > { %7371 = vrsqrt.f32 %v588_v30  ;;  %v637_v40 = vmul.f32 %v8279_v31, %v617_v34 }
 0x164   : > { %v7362_v41 = vpop.eup %7361  ;;  %v596_v42 = vadd.f32 1e-05, %v580_v20  ;;  %v589_v43 = vadd.f32 1e-05, %v573_v38 }
 0x165   : > { %v7364_v46 = vpop.eup %7363  ;;  %v559_v24 = vpop.xlane.xlu1 %558  ;;  %v657_v47 = vadd.f32 %v8285_v39, %v637_v40  ;;  %v625_v36 = vmul.f32 %v7362_v41, %v8144_v44 }
 0x166   : > { %v538_v25 = vpop.xlane.xlu0 %537  ;;  %7373 = vrsqrt.f32 %v596_v42  ;;  %v581_v48 = vmul.f32 0.03125, %v559_v24  ;;  %v618_v53 = vmul.f32 %v7364_v46, %v8138_v37 }
 0x167   : > { %v574_v51 = vmul.f32 0.03125, %v538_v25  ;;  %7375 = vrsqrt.f32 %v589_v43  ;;  %7024 = vmatprep.mubr.msk.f32.mxu0 %vm423_vm0, %v657_v47  ;;  %v645_v56 = vmul.f32 %v8279_v31, %v625_v36 }
 0x168   : > { %v7366_v28 = vpop.eup %7365  ;;  %v597_v29 = vadd.f32 1e-05, %v581_v48  ;;  %v638_v58 = vmul.f32 %v8279_v31, %v618_v53 }
 0x169   : > { %v590_v57 = vadd.f32 1e-05, %v574_v51  ;;  %v7368_v59 = vpop.eup %7367  ;;  %v562_v60 = vpop.xlane.xlu1 %561  ;;  %v665_v44 = vadd.f32 %v8285_v39, %v645_v56  ;;  %v626_v62 = vmul.f32 %v7366_v28, %v8146_v45 }
 0x16a   : > { %v541_v61 = vpop.xlane.xlu0 %540  ;;  %7377 = vrsqrt.f32 %v597_v29  ;;  %v582_v63 = vmul.f32 0.03125, %v562_v60  ;;  %v658_v2 = vadd.f32 %v8285_v39, %v638_v58  ;;  %v619_v3 = vmul.f32 %v7368_v59, %v8154_v54 }
 0x16b   : > { %v575_v37 = vmul.f32 0.03125, %v541_v61  ;;  %7379 = vrsqrt.f32 %v590_v57  ;;  %7036 = vmatprep.mubr.msk.f32.mxu1 %vm423_vm0, %v665_v44  ;;  %v646_v4 = vmul.f32 %v8279_v31, %v626_v62 }
 0x16c   : > { %v7370_v5 = vpop.eup %7369  ;;  %v598_v6 = vadd.f32 1e-05, %v582_v63  ;;  %7025 = vmatmul.mubr.msk.f32.vlgmr.msra.gmra.mrb[0].mxu0 %vm423_vm0, %v658_v2  ;;  %v639_v12 = vmul.f32 %v8279_v31, %v619_v3  ;;  %v7984_v3 = vmov 0.0  }
 0x16d   : > { %v591_v7 = vadd.f32 1e-05, %v575_v37  ;;  %v7372_v8 = vpop.eup %7371  ;;  %v565_v9 = vpop.xlane.xlu1 %564  ;;  %v666_v13 = vadd.f32 %v8285_v39, %v646_v4  ;;  %v627_v14 = vmul.f32 %v7370_v5, %v8156_v55  ;;  %904 = vst.msk [vmem:[#allocation3] sm:$0xff] %vm903_vm2, %v7984_v3  ;;  %905 = vst.msk [vmem:[#allocation3 + $0x8] sm:$0xff] %vm903_vm2, %v7984_v3 }
 0x16e   : > { %v544_v45 = vpop.xlane.xlu0 %543  ;;  %7381 = vrsqrt.f32 %v598_v6  ;;  %v583_v15 = vmul.f32 0.03125, %v565_v9  ;;  %v620_v54 = vmul.f32 %v7372_v8, %v8165_v0  ;;  %v659_v19 = vadd.f32 %v8285_v39, %v639_v12  ;;  %906 = vst.msk [vmem:[#allocation3 + $0x10] sm:$0xff] %vm903_vm2, %v7984_v3  ;;  %907 = vst.msk [vmem:[#allocation3 + $0x18] sm:$0xff] %vm903_vm2, %v7984_v3 }
 0x16f   : > { %v576_v18 = vmul.f32 0.03125, %v544_v45  ;;  %7383 = vrsqrt.f32 %v591_v7  ;;  %7037 = vmatmul.mubr.msk.f32.vlgmr.msra.gmra.mrb[0].mxu1 %vm423_vm0, %v666_v13  ;;  %v647_v22 = vmul.f32 %v8279_v31, %v627_v14  ;;  %908 = vst.msk [vmem:[#allocation3 + $0x20] sm:$0xff] %vm903_vm2, %v7984_v3  ;;  %909 = vst.msk [vmem:[#allocation3 + $0x28] sm:$0xff] %vm903_vm2, %v7984_v3 }
 0x170   : > { %v7374_v16 = vpop.eup %7373  ;;  %v599_v26 = vadd.f32 1e-05, %v583_v15  ;;  %v640_v30 = vmul.f32 %v8279_v31, %v620_v54  ;;  %7027 = vmatprep.mubr.msk.f32.mxu0 %vm423_vm0, %v659_v19  ;;  %910 = vst.msk [vmem:[#allocation3 + $0x30] sm:$0xff] %vm903_vm2, %v7984_v3  ;;  %911 = vst.msk [vmem:[#allocation3 + $0x38] sm:$0xff] %vm903_vm2, %v7984_v3 }
 0x171   : > { %v592_v27 = vadd.f32 1e-05, %v576_v18  ;;  %v7376_v32 = vpop.eup %7375  ;;  %v568_v55 = vpop.xlane.xlu1 %567  ;;  %v667_v33 = vadd.f32 %v8285_v39, %v647_v22  ;;  %v628_v0 = vmul.f32 %v7374_v16, %v8168_v1  ;;  %912 = vst.msk [vmem:[#allocation3 + $0x40] sm:$0xff] %vm903_vm2, %v7984_v3  ;;  %913 = vst.msk [vmem:[#allocation3 + $0x48] sm:$0xff] %vm903_vm2, %v7984_v3 }
 0x172   : > { %7385 = vrsqrt.f32 %v599_v26  ;;  %v584_v34 = vmul.f32 0.03125, %v568_v55  ;;  %v660_v20 = vadd.f32 %v8285_v39, %v640_v30  ;;  %v621_v38 = vmul.f32 %v7376_v32, %v8177_v10  ;;  %914 = vst.msk [vmem:[#allocation3 + $0x50] sm:$0xff] %vm903_vm2, %v7984_v3  ;;  %915 = vst.msk [vmem:[#allocation3 + $0x58] sm:$0xff] %vm903_vm2, %v7984_v3 }
 0x173   : > { %7387 = vrsqrt.f32 %v592_v27  ;;  %7039 = vmatprep.mubr.msk.f32.mxu1 %vm423_vm0, %v667_v33  ;;  %v648_v40 = vmul.f32 %v8279_v31, %v628_v0  ;;  %916 = vst.msk [vmem:[#allocation3 + $0x60] sm:$0xff] %vm903_vm2, %v7984_v3  ;;  %917 = vst.msk [vmem:[#allocation3 + $0x68] sm:$0xff] %vm903_vm2, %v7984_v3 }
 0x174   : > { %v7378_v41 = vpop.eup %7377  ;;  %v600_v42 = vadd.f32 1e-05, %v584_v34  ;;  %7028 = vmatmul.mubr.msk.f32.gmra.mrb[2].mxu0 %vm423_vm0, %v660_v20  ;;  %v641_v43 = vmul.f32 %v8279_v31, %v621_v38  ;;  %918 = vst.msk [vmem:[#allocation3 + $0x70] sm:$0xff] %vm903_vm2, %v7984_v3  ;;  %919 = vst.msk [vmem:[#allocation3 + $0x78] sm:$0xff] %vm903_vm2, %v7984_v3 }
 0x175   : > { %v7380_v46 = vpop.eup %7379  ;;  %v668_v1 = vadd.f32 %v8285_v39, %v648_v40  ;;  %v629_v24 = vmul.f32 %v7378_v41, %v8180_v11 }
 0x176   : > { %7389 = vrsqrt.f32 %v600_v42  ;;  %v661_v25 = vadd.f32 %v8285_v39, %v641_v43  ;;  %v622_v10 = vmul.f32 %v7380_v46, %v8189_v23 }
 0x177   : > { %7040 = vmatmul.mubr.msk.f32.gmra.mrb[2].mxu1 %vm423_vm0, %v668_v1  ;;  %v649_v47 = vmul.f32 %v8279_v31, %v629_v24 }
 0x178   : > { %v7382_v36 = vpop.eup %7381  ;;  %7030 = vmatprep.mubr.msk.f32.mxu0 %vm423_vm0, %v661_v25  ;;  %v642_v48 = vmul.f32 %v8279_v31, %v622_v10 }
 0x179   : > { %v7384_v51 = vpop.eup %7383  ;;  %v669_v53 = vadd.f32 %v8285_v39, %v649_v47  ;;  %v630_v56 = vmul.f32 %v7382_v36, %v8192_v17 }
 0x17a   : > { %v662_v11 = vadd.f32 %v8285_v39, %v642_v48  ;;  %v623_v28 = vmul.f32 %v7384_v51, %v8201_v35 }
 0x17b   : > { %7042 = vmatprep.mubr.msk.f32.mxu1 %vm423_vm0, %v669_v53  ;;  %v650_v23 = vmul.f32 %v8279_v31, %v630_v56 }
 0x17c   : > { %v7386_v29 = vpop.eup %7385  ;;  %7031 = vmatmul.mubr.msk.f32.gmra.mrb[4].mxu0 %vm423_vm0, %v662_v11  ;;  %v643_v57 = vmul.f32 %v8279_v31, %v623_v28 }
 0x17d   : > { %v7388_v58 = vpop.eup %7387  ;;  %v670_v59 = vadd.f32 %v8285_v39, %v650_v23  ;;  %v631_v60 = vmul.f32 %v7386_v29, %v8204_v21 }
 0x17e   : > { %v663_v17 = vadd.f32 %v8285_v39, %v643_v57  ;;  %v624_v61 = vmul.f32 %v7388_v58, %v8219_v49 }
 0x17f   : > { %7043 = vmatmul.mubr.msk.f32.gmra.mrb[4].mxu1 %vm423_vm0, %v670_v59  ;;  %v651_v35 = vmul.f32 %v8279_v31, %v631_v60 }
 0x180   : > { %v7390_v44 = vpop.eup %7389  ;;  %7033 = vmatprep.mubr.msk.f32.mxu0 %vm423_vm0, %v663_v17  ;;  %v644_v62 = vmul.f32 %v8279_v31, %v624_v61 }
 0x181   : > { %v671_v63 = vadd.f32 %v8285_v39, %v651_v35  ;;  %v632_v37 = vmul.f32 %v7390_v44, %v8222_v50  ;;  %v6175_v50 = vld [vmem:[%s11098_s5 + $0x4] ss:$0 sm:$0xff] }
 0x182   : > { %v664_v21 = vadd.f32 %v8285_v39, %v644_v62 }
 0x183   : > { %7045 = vmatprep.mubr.msk.f32.mxu1 %vm423_vm0, %v671_v63  ;;  %v652_v2 = vmul.f32 %v8279_v31, %v632_v37 }
 0x184   : > { %7034 = vmatmul.mubr.msk.f32.gmra.mrb[6].mxu0 %vm423_vm0, %v664_v21 }
 0x185   : > { %v672_v49 = vadd.f32 %v8285_v39, %v652_v2 }
 0x187   : > { %7046 = vmatmul.mubr.msk.f32.gmra.mrb[6].mxu1 %vm423_vm0, %v672_v49 }
 0x23f   : > { %v7026_v4 = vpop.f32.mrb[0].mxu0 }
 0x240   : > { %v814_v5 = vadd.f32 %v7026_v4, %v6175_v50  ;;  %v808_v6 = vpop.f32.mrb[1].mxu0 }
 0x241   : > { %v809_v7 = vadd.f32 %v6175_v50, %v808_v6 }
 0x242   : > { %v7038_v8 = vpop.f32.mrb[0].mxu1 }
 0x243   : > { %v887_v9 = vpack.c.bf16 %v814_v5, %v809_v7  ;;  %v854_v45 = vadd.f32 %v7038_v8, %v6175_v50  ;;  %v848_v12 = vpop.f32.mrb[1].mxu1 }
 0x244   : > { %v849_v13 = vadd.f32 %v6175_v50, %v848_v12 }
 0x245   : > { %895 = vst.msk [vmem:[#allocation2] sm:$0xff] %vm423_vm0, %v887_v9 }
 0x246   : > { %v891_v14 = vpack.c.bf16 %v854_v45, %v849_v13 }
 0x247   : > { %v7029_v15 = vpop.f32.mrb[2].mxu0 }
 0x248   : > { %899 = vst.msk [vmem:[#allocation2 + $0x20] sm:$0xff] %vm423_vm0, %v891_v14  ;;  %v824_v18 = vadd.f32 %v7029_v15, %v6175_v50  ;;  %v818_v54 = vpop.f32.mrb[3].mxu0 }
 0x249   : > { %v819_v19 = vadd.f32 %v6175_v50, %v818_v54 }
 0x24a   : > { %v7041_v22 = vpop.f32.mrb[2].mxu1 }
 0x24b   : > { %v888_v16 = vpack.c.bf16 %v824_v18, %v819_v19  ;;  %v864_v26 = vadd.f32 %v7041_v22, %v6175_v50  ;;  %v858_v27 = vpop.f32.mrb[3].mxu1 }
 0x24c   : > { %v859_v30 = vadd.f32 %v6175_v50, %v858_v27 }
 0x24d   : > { %896 = vst.msk [vmem:[#allocation2 + $0x8] sm:$0xff] %vm423_vm0, %v888_v16 }
 0x24e   : > { %v892_v32 = vpack.c.bf16 %v864_v26, %v859_v30 }
 0x24f   : > { %v7032_v55 = vpop.f32.mrb[4].mxu0 }
 0x250   : > { %900 = vst.msk [vmem:[#allocation2 + $0x28] sm:$0xff] %vm423_vm0, %v892_v32  ;;  %v834_v33 = vadd.f32 %v7032_v55, %v6175_v50  ;;  %v828_v0 = vpop.f32.mrb[5].mxu0 }
 0x251   : > { %v829_v34 = vadd.f32 %v6175_v50, %v828_v0 }
 0x252   : > { %v7044_v20 = vpop.f32.mrb[4].mxu1 }
 0x253   : > { %v889_v38 = vpack.c.bf16 %v834_v33, %v829_v34  ;;  %v874_v40 = vadd.f32 %v7044_v20, %v6175_v50  ;;  %v868_v41 = vpop.f32.mrb[5].mxu1 }
 0x254   : > { %v869_v42 = vadd.f32 %v6175_v50, %v868_v41 }
 0x255   : > { %897 = vst.msk [vmem:[#allocation2 + $0x10] sm:$0xff] %vm423_vm0, %v889_v38 }
 0x256   : > { %v893_v43 = vpack.c.bf16 %v874_v40, %v869_v42 }
 0x257   : > { %v7035_v46 = vpop.f32.mrb[6].mxu0 }
 0x258   : > { %901 = vst.msk [vmem:[#allocation2 + $0x30] sm:$0xff] %vm423_vm0, %v893_v43  ;;  %v844_v1 = vadd.f32 %v7035_v46, %v6175_v50  ;;  %v838_v24 = vpop.f32.mrb[7].mxu0 }
 0x259   : > { %v839_v25 = vadd.f32 %v6175_v50, %v838_v24 }
 0x25a   : > { %v7047_v10 = vpop.f32.mrb[6].mxu1  ;;  %931 = sbr.rel (%p6197_p4) target bundleno = 2122 (0x84a), region = 44 }
 0x25b   : > { %v890_v47 = vpack.c.bf16 %v844_v1, %v839_v25  ;;  %v884_v36 = vadd.f32 %v7047_v10, %v6175_v50  ;;  %v878_v48 = vpop.f32.mrb[7].mxu1 }
 0x25c   : > { %v879_v51 = vadd.f32 %v6175_v50, %v878_v48 }
 0x25d   : > { %898 = vst.msk [vmem:[#allocation2 + $0x18] sm:$0xff] %vm423_vm0, %v890_v47 }
 0x25e   : > { %v894_v53 = vpack.c.bf16 %v884_v36, %v879_v51 }
 0x260   : > { %902 = vst.msk [vmem:[#allocation2 + $0x38] sm:$0xff] %vm423_vm0, %v894_v53 }
 0x261   : > { %v8382_v56 = vld [vmem:[%s8269_s12] sm:$0xff]   ;;  %v8385_v11 = vld [vmem:[%s8269_s12 + $0x8] sm:$0xff]   ;;  %v8392_v58 = vld [vmem:[%s8269_s12 + $0x10] sm:$0xff]   ;;  %vm1841_vm3 = vcmask 64512   ;;  %s7985_s27 = smov 120   ;;  %s7986_s28 = smov 112  }
 0x262   : > { %v6448_v28 = vunpack.c.l.bf16 %v8382_v56  ;;  %v6452_v23 = vunpack.c.l.bf16 %v8385_v11  ;;  %v6449_v29 = vunpack.c.h.bf16 %v8382_v56  ;;  %v6453_v57 = vunpack.c.h.bf16 %v8385_v11  ;;  %v8409_v62 = vld [vmem:[%s8269_s12 + $0x18] sm:$0xff]   ;;  %v8420_v49 = vld [vmem:[%s8269_s12 + $0x20] sm:$0xff]   ;;  %v8431_v6 = vld [vmem:[%s8269_s12 + $0x28] sm:$0xff]   ;;  %s7987_s29 = smov 104   ;;  %s7988_s0 = smov 96  }
 0x263   : > { %v6456_v35 = vunpack.c.l.bf16 %v8392_v58  ;;  %v6457_v44 = vunpack.c.h.bf16 %v8392_v58  ;;  %v6460_v21 = vunpack.c.l.bf16 %v8409_v62  ;;  %v6461_v2 = vunpack.c.h.bf16 %v8409_v62  ;;  %v8442_v12 = vld [vmem:[%s8269_s12 + $0x30] sm:$0xff]   ;;  %v8453_v54 = vld [vmem:[%s8269_s12 + $0x38] sm:$0xff]   ;;  %v8464_v27 = vld [vmem:[%s8269_s12 + $0x40] sm:$0xff]   ;;  %s7989_s1 = smov 87   ;;  %s7990_s9 = smov 78  }
 0x264   : > { %v997_v59 = vsel %vm423_vm0, %v6448_v28, 0.0  ;;  %v1003_v60 = vsel %vm423_vm0, %v6452_v23, 0.0  ;;  %v1000_v17 = vsel %vm423_vm0, %v6449_v29, 0.0  ;;  %v1006_v61 = vsel %vm423_vm0, %v6453_v57, 0.0  ;;  %v8475_v0 = vld [vmem:[%s8269_s12 + $0x48] sm:$0xff]   ;;  %v8486_v41 = vld [vmem:[%s8269_s12 + $0x50] sm:$0xff]  }
 0x265   : > { %998 = vadd.xlane.f32.xlu0 %v997_v59  ;;  %1004 = vadd.xlane.f32.xlu1 %v1003_v60  ;;  %v1009_v63 = vsel %vm423_vm0, %v6456_v35, 0.0  ;;  %v1012_v37 = vsel %vm423_vm0, %v6457_v44, 0.0  ;;  %v1015_v3 = vsel %vm423_vm0, %v6460_v21, 0.0  ;;  %v1018_v50 = vsel %vm423_vm0, %v6461_v2, 0.0  ;;  %v8497_v24 = vld [vmem:[%s8269_s12 + $0x58] sm:$0xff]   ;;  %v8508_v48 = vld [vmem:[%s8269_s12 + $0x60] sm:$0xff]  }
 0x266   : > { %v6464_v4 = vunpack.c.l.bf16 %v8420_v49  ;;  %v6465_v5 = vunpack.c.h.bf16 %v8420_v49  ;;  %v6468_v9 = vunpack.c.l.bf16 %v8431_v6  ;;  %v6469_v45 = vunpack.c.h.bf16 %v8431_v6  ;;  %s7991_s10 = smov 69   ;;  %s7993_s11 = smov 18  }
 0x267   : > { %v6472_v15 = vunpack.c.l.bf16 %v8442_v12  ;;  %v6473_v18 = vunpack.c.h.bf16 %v8442_v12  ;;  %v6476_v16 = vunpack.c.l.bf16 %v8453_v54  ;;  %v6477_v26 = vunpack.c.h.bf16 %v8453_v54 }
 0x268   : > { %v1021_v7 = vsel %vm423_vm0, %v6464_v4, 0.0  ;;  %v1024_v8 = vsel %vm423_vm0, %v6465_v5, 0.0  ;;  %v1027_v13 = vsel %vm423_vm0, %v6468_v9, 0.0  ;;  %v1030_v14 = vsel %vm423_vm0, %v6469_v45, 0.0 }
 0x269   : > { %1001 = vadd.xlane.f32.xlu0 %v1000_v17  ;;  %1007 = vadd.xlane.f32.xlu1 %v1006_v61  ;;  %v1033_v19 = vsel %vm423_vm0, %v6472_v15, 0.0  ;;  %v1036_v22 = vsel %vm423_vm0, %v6473_v18, 0.0  ;;  %v1039_v30 = vsel %vm423_vm0, %v6476_v16, 0.0  ;;  %v1042_v32 = vsel %vm423_vm0, %v6477_v26, 0.0  ;;  %v8519_v17 = vld [vmem:[%s8269_s12 + $0x68] sm:$0xff]  }
 0x26a   : > { %v6480_v55 = vunpack.c.l.bf16 %v8464_v27  ;;  %v6481_v33 = vunpack.c.h.bf16 %v8464_v27  ;;  %v6484_v38 = vunpack.c.l.bf16 %v8475_v0  ;;  %v6485_v40 = vunpack.c.h.bf16 %v8475_v0 }
 0x26b   : > { %v6488_v46 = vunpack.c.l.bf16 %v8486_v41  ;;  %v6489_v1 = vunpack.c.h.bf16 %v8486_v41  ;;  %v6492_v47 = vunpack.c.l.bf16 %v8497_v24  ;;  %v6493_v36 = vunpack.c.h.bf16 %v8497_v24 }
 0x26c   : > { %v1045_v34 = vsel %vm423_vm0, %v6480_v55, 0.0  ;;  %v1048_v20 = vsel %vm423_vm0, %v6481_v33, 0.0  ;;  %v1051_v42 = vsel %vm423_vm0, %v6484_v38, 0.0  ;;  %v1054_v43 = vsel %vm423_vm0, %v6485_v40, 0.0 }
 0x26d   : > { %1010 = vadd.xlane.f32.xlu0 %v1009_v63  ;;  %1013 = vadd.xlane.f32.xlu1 %v1012_v37  ;;  %v1057_v25 = vsel %vm423_vm0, %v6488_v46, 0.0  ;;  %v1060_v10 = vsel %vm423_vm0, %v6489_v1, 0.0  ;;  %v1063_v51 = vsel %vm423_vm0, %v6492_v47, 0.0  ;;  %v1066_v53 = vsel %vm423_vm0, %v6493_v36, 0.0 }
 0x26e   : > { %v6496_v59 = vunpack.c.l.bf16 %v8508_v48  ;;  %v6497_v60 = vunpack.c.h.bf16 %v8508_v48  ;;  %v6500_v37 = vunpack.c.l.bf16 %v8519_v17  ;;  %vm4242_vm4 = vcmask 72704  }
 0x26f   : > { %vm4259_vm5 = vcmask 146432   ;;  %vm4276_vm6 = vcmask 220160  }
 0x270   : > { %v1069_v61 = vsel %vm423_vm0, %v6496_v59, 0.0  ;;  %v1072_v63 = vsel %vm423_vm0, %v6497_v60, 0.0 }
 0x271   : > { %1016 = vadd.xlane.f32.xlu0 %v1015_v3  ;;  %1019 = vadd.xlane.f32.xlu1 %v1018_v50  ;;  %v6501_v3 = vunpack.c.h.bf16 %v8519_v17  ;;  %v8530_v50 = vld [vmem:[%s8269_s12 + $0x70] sm:$0xff]  }
 0x275   : > { %1022 = vadd.xlane.f32.xlu0 %v1021_v7  ;;  %1025 = vadd.xlane.f32.xlu1 %v1024_v8  ;;  %v1075_v7 = vsel %vm423_vm0, %v6500_v37, 0.0  ;;  %v1078_v8 = vsel %vm423_vm0, %v6501_v3, 0.0 }
 0x279   : > { %1028 = vadd.xlane.f32.xlu0 %v1027_v13  ;;  %1031 = vadd.xlane.f32.xlu1 %v1030_v14  ;;  %v6504_v13 = vunpack.c.l.bf16 %v8530_v50  ;;  %v6505_v14 = vunpack.c.h.bf16 %v8530_v50 }
 0x27d   : > { %1034 = vadd.xlane.f32.xlu0 %v1033_v19  ;;  %1037 = vadd.xlane.f32.xlu1 %v1036_v22  ;;  %v8541_v19 = vld [vmem:[%s8269_s12 + $0x78] sm:$0xff]   ;;  %v1081_v22 = vsel %vm423_vm0, %v6504_v13, 0.0  ;;  %s7994_s12 = smov 27  }
 0x281   : > { %1040 = vadd.xlane.f32.xlu0 %v1039_v30  ;;  %1043 = vadd.xlane.f32.xlu1 %v1042_v32  ;;  %v1084_v30 = vsel %vm423_vm0, %v6505_v14, 0.0  ;;  %v6508_v32 = vunpack.c.l.bf16 %v8541_v19 }
 0x285   : > { %1046 = vadd.xlane.f32.xlu0 %v1045_v34  ;;  %1049 = vadd.xlane.f32.xlu1 %v1048_v20  ;;  %v11101_v34 = vunpack.c.h.bf16 %v8541_v19  ;;  %v1087_v20 = vsel %vm423_vm0, %v6508_v32, 0.0 }
 0x289   : > { %1052 = vadd.xlane.f32.xlu0 %v1051_v42  ;;  %1055 = vadd.xlane.f32.xlu1 %v1054_v43  ;;  %v1090_v42 = vsel %vm423_vm0, %v11101_v34, 0.0  ;;  %v1502_v43 = vld [vmem:[%s11098_s5 + $0x29] sm:$0xff] }
 0x28d   : > { %1058 = vadd.xlane.f32.xlu0 %v1057_v25  ;;  %1061 = vadd.xlane.f32.xlu1 %v1060_v10  ;;  %v1503_v25 = vld [vmem:[%s11098_s5 + $0x31] sm:$0xff]  ;;  %v1504_v10 = vld [vmem:[%s11098_s5 + $0x39] sm:$0xff] }
 0x291   : > { %1064 = vadd.xlane.f32.xlu0 %v1063_v51  ;;  %1067 = vadd.xlane.f32.xlu1 %v1066_v53  ;;  %v1511_v51 = vpack.c.bf16 %v1503_v25, %v1502_v43  ;;  %v1505_v53 = vld [vmem:[%s11098_s5 + $0x41] sm:$0xff] }
 0x293   : > { %7278 = vmatprep.subr.msk.bf16.mxu0 %vm423_vm0, %v1511_v51 }
 0x295   : > { %1070 = vadd.xlane.f32.xlu0 %v1069_v61  ;;  %1073 = vadd.xlane.f32.xlu1 %v1072_v63  ;;  %v8569_v61 = vpack.c.bf16 %v1505_v53, %v1504_v10  ;;  %v1570_v63 = vsel %vm423_vm0, %v1511_v51, 0 }
 0x296   : > { %7049 = vmatpush3.bf16.xpose.msra.mxu0 %v1570_v63 }
 0x297   : > { %7279 = vmatprep.subr.msk.bf16.mxu0 %vm423_vm0, %v8569_v61 }
 0x299   : > { %1076 = vadd.xlane.f32.xlu0 %v1075_v7  ;;  %1079 = vadd.xlane.f32.xlu1 %v1078_v8 }
 0x29d   : > { %1082 = vadd.xlane.f32.xlu0 %v1081_v22  ;;  %1085 = vadd.xlane.f32.xlu1 %v1084_v30 }
 0x2a1   : > { %1088 = vadd.xlane.f32.xlu0 %v1087_v20  ;;  %1091 = vadd.xlane.f32.xlu1 %v1090_v42 }
 0x2f2   : > { %v999_v7 = vpop.xlane.xlu0 %998  ;;  %v1005_v8 = vpop.xlane.xlu1 %1004 }
 0x2f3   : > { %v1094_v22 = vmul.f32 0.03125, %v999_v7  ;;  %v1096_v30 = vmul.f32 0.03125, %v1005_v8 }
 0x2f5   : > { %v8577_v20 = vsub.f32 %v6448_v28, %v1094_v22  ;;  %v8581_v42 = vsub.f32 %v6452_v23, %v1096_v30 }
 0x2f6   : > { %v1002_v43 = vpop.xlane.xlu0 %1001  ;;  %v1008_v25 = vpop.xlane.xlu1 %1007 }
 0x2f7   : > { %v1095_v10 = vmul.f32 0.03125, %v1002_v43  ;;  %v1097_v51 = vmul.f32 0.03125, %v1008_v25  ;;  %v1158_v53 = vmul.f32 %v8577_v20, %v8577_v20  ;;  %v1160_v63 = vmul.f32 %v8581_v42, %v8581_v42 }
 0x2f9   : > { %v1190_v7 = vsel %vm423_vm0, %v1158_v53, 0.0  ;;  %v8590_v28 = vsub.f32 %v6449_v29, %v1095_v10  ;;  %v8594_v23 = vsub.f32 %v6453_v57, %v1097_v51  ;;  %v1196_v30 = vsel %vm423_vm0, %v1160_v63, 0.0 }
 0x2fa   : > { %1191 = vadd.xlane.f32.xlu0 %v1190_v7  ;;  %v1011_v8 = vpop.xlane.xlu0 %1010  ;;  %v1014_v22 = vpop.xlane.xlu1 %1013 }
 0x2fb   : > { %v1098_v43 = vmul.f32 0.03125, %v1011_v8  ;;  %v1099_v25 = vmul.f32 0.03125, %v1014_v22  ;;  %v1159_v34 = vmul.f32 %v8590_v28, %v8590_v28  ;;  %v1161_v53 = vmul.f32 %v8594_v23, %v8594_v23 }
 0x2fd   : > { %v1193_v56 = vsel %vm423_vm0, %v1159_v34, 0.0  ;;  %v8604_v11 = vsub.f32 %v6456_v35, %v1098_v43  ;;  %v8608_v29 = vsub.f32 %v6457_v44, %v1099_v25  ;;  %v1199_v51 = vsel %vm423_vm0, %v1161_v53, 0.0 }
 0x2fe   : > { %1197 = vadd.xlane.f32.xlu0 %v1196_v30  ;;  %1194 = vadd.xlane.f32.xlu1 %v1193_v56  ;;  %v1017_v57 = vpop.xlane.xlu0 %1016  ;;  %v1020_v10 = vpop.xlane.xlu1 %1019 }
 0x2ff   : > { %v1100_v63 = vmul.f32 0.03125, %v1017_v57  ;;  %v1101_v7 = vmul.f32 0.03125, %v1020_v10  ;;  %v1162_v8 = vmul.f32 %v8604_v11, %v8604_v11  ;;  %v1163_v34 = vmul.f32 %v8608_v29, %v8608_v29 }
 0x301   : > { %v1202_v35 = vsel %vm423_vm0, %v1162_v8, 0.0  ;;  %v8618_v58 = vsub.f32 %v6460_v21, %v1100_v63  ;;  %v8622_v44 = vsub.f32 %v6461_v2, %v1101_v7  ;;  %v1205_v43 = vsel %vm423_vm0, %v1163_v34, 0.0 }
 0x302   : > { %1200 = vadd.xlane.f32.xlu1 %v1199_v51  ;;  %1203 = vadd.xlane.f32.xlu0 %v1202_v35  ;;  %v1023_v22 = vpop.xlane.xlu0 %1022  ;;  %v1026_v30 = vpop.xlane.xlu1 %1025 }
 0x303   : > { %v1102_v25 = vmul.f32 0.03125, %v1023_v22  ;;  %v1103_v53 = vmul.f32 0.03125, %v1026_v30  ;;  %v1164_v56 = vmul.f32 %v8618_v58, %v8618_v58  ;;  %v1165_v57 = vmul.f32 %v8622_v44, %v8622_v44 }
 0x305   : > { %v1208_v21 = vsel %vm423_vm0, %v1164_v56, 0.0  ;;  %v8632_v62 = vsub.f32 %v6464_v4, %v1102_v25  ;;  %v8636_v2 = vsub.f32 %v6465_v5, %v1103_v53  ;;  %v1211_v63 = vsel %vm423_vm0, %v1165_v57, 0.0 }
 0x306   : > { %1206 = vadd.xlane.f32.xlu1 %v1205_v43  ;;  %1209 = vadd.xlane.f32.xlu0 %v1208_v21  ;;  %v1029_v10 = vpop.xlane.xlu0 %1028  ;;  %v1032_v51 = vpop.xlane.xlu1 %1031  ;;  %v1573_v4 = vsel %vm423_vm0, %v8569_v61, 0  ;;  %v1506_v21 = vld [vmem:[%s11098_s5 + $0x49] sm:$0xff] }
 0x307   : > { %v1104_v7 = vmul.f32 0.03125, %v1029_v10  ;;  %v1105_v8 = vmul.f32 0.03125, %v1032_v51  ;;  %v1166_v34 = vmul.f32 %v8632_v62, %v8632_v62  ;;  %v1167_v35 = vmul.f32 %v8636_v2, %v8636_v2  ;;  %7051 = vmatpush3.bf16.xpose.msra.mxu0 %v1573_v4  ;;  %v1507_v10 = vld [vmem:[%s11098_s5 + $0x51] sm:$0xff] }
 0x309   : > { %v1214_v49 = vsel %vm423_vm0, %v1166_v34, 0.0  ;;  %v8648_v5 = vsub.f32 %v6468_v9, %v1104_v7  ;;  %v8652_v22 = vsub.f32 %v6469_v45, %v1105_v8  ;;  %v1217_v25 = vsel %vm423_vm0, %v1167_v35, 0.0 }
 0x30a   : > { %1212 = vadd.xlane.f32.xlu1 %v1211_v63  ;;  %1215 = vadd.xlane.f32.xlu0 %v1214_v49  ;;  %v1035_v30 = vpop.xlane.xlu0 %1034  ;;  %v1038_v43 = vpop.xlane.xlu1 %1037 }
 0x30b   : > { %v1106_v53 = vmul.f32 0.03125, %v1035_v30  ;;  %v1107_v56 = vmul.f32 0.03125, %v1038_v43  ;;  %v1168_v61 = vmul.f32 %v8648_v5, %v8648_v5  ;;  %v1169_v9 = vmul.f32 %v8652_v22, %v8652_v22 }
 0x30d   : > { %v1220_v57 = vsel %vm423_vm0, %v1168_v61, 0.0  ;;  %v8662_v6 = vsub.f32 %v6472_v15, %v1106_v53  ;;  %v8666_v45 = vsub.f32 %v6473_v18, %v1107_v56  ;;  %v1223_v7 = vsel %vm423_vm0, %v1169_v9, 0.0 }
 0x30e   : > { %1218 = vadd.xlane.f32.xlu1 %v1217_v25  ;;  %1221 = vadd.xlane.f32.xlu0 %v1220_v57  ;;  %v1041_v51 = vpop.xlane.xlu0 %1040  ;;  %v1044_v63 = vpop.xlane.xlu1 %1043  ;;  %v1513_v15 = vpack.c.bf16 %v1507_v10, %v1506_v21  ;;  %v1508_v21 = vld [vmem:[%s11098_s5 + $0x59] sm:$0xff]  ;;  %v1509_v10 = vld [vmem:[%s11098_s5 + $0x61] sm:$0xff] }
 0x30f   : > { %v1108_v8 = vmul.f32 0.03125, %v1041_v51  ;;  %v1109_v34 = vmul.f32 0.03125, %v1044_v63  ;;  %v1170_v12 = vmul.f32 %v8662_v6, %v8662_v6  ;;  %v1171_v18 = vmul.f32 %v8666_v45, %v8666_v45 }
 0x310   : > { %7280 = vmatprep.subr.msk.bf16.mxu0 %vm423_vm0, %v1513_v15  ;;  %v1576_v35 = vsel %vm423_vm0, %v1513_v15, 0 }
 0x311   : > { %v1226_v4 = vsel %vm423_vm0, %v1170_v12, 0.0  ;;  %v8684_v49 = vsub.f32 %v6476_v16, %v1108_v8  ;;  %v8688_v30 = vsub.f32 %v6477_v26, %v1109_v34  ;;  %7053 = vmatpush3.bf16.xpose.msra.mxu0 %v1576_v35  ;;  %v1229_v53 = vsel %vm423_vm0, %v1171_v18, 0.0 }
 0x312   : > { %1224 = vadd.xlane.f32.xlu1 %v1223_v7  ;;  %1227 = vadd.xlane.f32.xlu0 %v1226_v4  ;;  %v1047_v43 = vpop.xlane.xlu0 %1046  ;;  %v1050_v25 = vpop.xlane.xlu1 %1049 }
 0x313   : > { %v1110_v56 = vmul.f32 0.03125, %v1047_v43  ;;  %v1111_v61 = vmul.f32 0.03125, %v1050_v25  ;;  %v1172_v9 = vmul.f32 %v8684_v49, %v8684_v49  ;;  %v1173_v16 = vmul.f32 %v8688_v30, %v8688_v30 }
 0x315   : > { %v1232_v57 = vsel %vm423_vm0, %v1172_v9, 0.0  ;;  %v8698_v54 = vsub.f32 %v6480_v55, %v1110_v56  ;;  %v8702_v26 = vsub.f32 %v6481_v33, %v1111_v61  ;;  %v1235_v7 = vsel %vm423_vm0, %v1173_v16, 0.0  ;;  %v1510_v16 = vld [vmem:[%s11098_s5 + $0x69] sm:$0xf] }
 0x316   : > { %1230 = vadd.xlane.f32.xlu1 %v1229_v53  ;;  %1233 = vadd.xlane.f32.xlu0 %v1232_v57  ;;  %v1053_v51 = vpop.xlane.xlu0 %1052  ;;  %v1056_v63 = vpop.xlane.xlu1 %1055  ;;  %v1514_v55 = vpack.c.bf16 %v1509_v10, %v1508_v21 }
 0x317   : > { %v1112_v15 = vmul.f32 0.03125, %v1053_v51  ;;  %v1113_v8 = vmul.f32 0.03125, %v1056_v63  ;;  %v1174_v27 = vmul.f32 %v8698_v54, %v8698_v54  ;;  %v1175_v33 = vmul.f32 %v8702_v26, %v8702_v26 }
 0x318   : > { %7281 = vmatprep.subr.msk.bf16.mxu0 %vm423_vm0, %v1514_v55  ;;  %v1579_v34 = vsel %vm423_vm0, %v1514_v55, 0  ;;  %v1515_v51 = vpack.c.bf16 %v1510_v16, %v1510_v16 }
 0x319   : > { %v1238_v12 = vsel %vm423_vm0, %v1174_v27, 0.0  ;;  %v8720_v18 = vsub.f32 %v6484_v38, %v1112_v15  ;;  %v8724_v35 = vsub.f32 %v6485_v40, %v1113_v8  ;;  %7055 = vmatpush3.bf16.xpose.msra.mxu0 %v1579_v34  ;;  %v1241_v25 = vsel %vm423_vm0, %v1175_v33, 0.0 }
 0x31a   : > { %1236 = vadd.xlane.f32.xlu1 %v1235_v7  ;;  %1239 = vadd.xlane.f32.xlu0 %v1238_v12  ;;  %v1059_v4 = vpop.xlane.xlu0 %1058  ;;  %v1062_v43 = vpop.xlane.xlu1 %1061 }
 0x31b   : > { %v1114_v53 = vmul.f32 0.03125, %v1059_v4  ;;  %v1115_v56 = vmul.f32 0.03125, %v1062_v43  ;;  %v1176_v61 = vmul.f32 %v8720_v18, %v8720_v18  ;;  %v1177_v38 = vmul.f32 %v8724_v35, %v8724_v35  ;;  %7282 = vmatprep.subr.msk.bf16.mxu0 %vm423_vm0, %v1515_v51 }
 0x31d   : > { %v1244_v9 = vsel %vm423_vm0, %v1176_v61, 0.0  ;;  %v8734_v0 = vsub.f32 %v6488_v46, %v1114_v53  ;;  %v8738_v40 = vsub.f32 %v6489_v1, %v1115_v56  ;;  %v1247_v10 = vsel %vm423_vm0, %v1177_v38, 0.0 }
 0x31e   : > { %1242 = vadd.xlane.f32.xlu1 %v1241_v25  ;;  %1245 = vadd.xlane.f32.xlu0 %v1244_v9  ;;  %v1065_v57 = vpop.xlane.xlu0 %1064  ;;  %v1068_v21 = vpop.xlane.xlu1 %1067  ;;  %v1582_v1 = vsel %vm423_vm0, %v1515_v51, 0 }
 0x31f   : > { %v1116_v63 = vmul.f32 0.03125, %v1065_v57  ;;  %v1117_v7 = vmul.f32 0.03125, %v1068_v21  ;;  %v1178_v46 = vmul.f32 %v8734_v0, %v8734_v0  ;;  %v1179_v41 = vmul.f32 %v8738_v40, %v8738_v40 }
 0x321   : > { %v1250_v55 = vsel %vm423_vm0, %v1178_v46, 0.0  ;;  %v8753_v15 = vsub.f32 %v6492_v47, %v1116_v63  ;;  %v8757_v8 = vsub.f32 %v6493_v36, %v1117_v7  ;;  %7057 = vmatpush3.bf16.xpose.msra.mxu0 %v1582_v1  ;;  %v1253_v34 = vsel %vm423_vm0, %v1179_v41, 0.0 }
 0x322   : > { %1248 = vadd.xlane.f32.xlu1 %v1247_v10  ;;  %1251 = vadd.xlane.f32.xlu0 %v1250_v55  ;;  %v1071_v27 = vpop.xlane.xlu0 %1070  ;;  %v1074_v33 = vpop.xlane.xlu1 %1073 }
 0x323   : > { %v1118_v12 = vmul.f32 0.03125, %v1071_v27  ;;  %v1119_v4 = vmul.f32 0.03125, %v1074_v33  ;;  %v1180_v43 = vmul.f32 %v8753_v15, %v8753_v15  ;;  %v1181_v47 = vmul.f32 %v8757_v8, %v8757_v8 }
 0x325   : > { %v1256_v25 = vsel %vm423_vm0, %v1180_v43, 0.0  ;;  %v8767_v24 = vsub.f32 %v6496_v59, %v1118_v12  ;;  %v8771_v36 = vsub.f32 %v6497_v60, %v1119_v4  ;;  %v1259_v61 = vsel %vm423_vm0, %v1181_v47, 0.0 }
 0x326   : > { %1254 = vadd.xlane.f32.xlu1 %v1253_v34  ;;  %1257 = vadd.xlane.f32.xlu0 %v1256_v25  ;;  %v1077_v53 = vpop.xlane.xlu0 %1076  ;;  %v1080_v56 = vpop.xlane.xlu1 %1079 }
 0x327   : > { %v1120_v38 = vmul.f32 0.03125, %v1077_v53  ;;  %v1121_v9 = vmul.f32 0.03125, %v1080_v56  ;;  %v1182_v16 = vmul.f32 %v8767_v24, %v8767_v24  ;;  %v1183_v57 = vmul.f32 %v8771_v36, %v8771_v36 }
 0x329   : > { %v1262_v59 = vsel %vm423_vm0, %v1182_v16, 0.0  ;;  %v8781_v48 = vsub.f32 %v6500_v37, %v1120_v38  ;;  %v8785_v60 = vsub.f32 %v6501_v3, %v1121_v9  ;;  %v1265_v51 = vsel %vm423_vm0, %v1183_v57, 0.0 }
 0x32a   : > { %1260 = vadd.xlane.f32.xlu1 %v1259_v61  ;;  %1263 = vadd.xlane.f32.xlu0 %v1262_v59  ;;  %v1083_v21 = vpop.xlane.xlu0 %1082  ;;  %v1086_v10 = vpop.xlane.xlu1 %1085 }
 0x32b   : > { %v1122_v63 = vmul.f32 0.03125, %v1083_v21  ;;  %v1123_v7 = vmul.f32 0.03125, %v1086_v10  ;;  %v1184_v46 = vmul.f32 %v8781_v48, %v8781_v48  ;;  %v1185_v41 = vmul.f32 %v8785_v60, %v8785_v60 }
 0x32d   : > { %v1268_v37 = vsel %vm423_vm0, %v1184_v46, 0.0  ;;  %v8795_v17 = vsub.f32 %v6504_v13, %v1122_v63  ;;  %v8799_v3 = vsub.f32 %v6505_v14, %v1123_v7  ;;  %v1271_v27 = vsel %vm423_vm0, %v1185_v41, 0.0 }
 0x32e   : > { %1266 = vadd.xlane.f32.xlu1 %v1265_v51  ;;  %1269 = vadd.xlane.f32.xlu0 %v1268_v37  ;;  %v1089_v1 = vpop.xlane.xlu0 %1088  ;;  %v1092_v55 = vpop.xlane.xlu1 %1091  ;;  %v11132_v14 = vunpack.c.h.bf16 %v8541_v19 }
 0x32f   : > { %v1124_v33 = vmul.f32 0.03125, %v1089_v1  ;;  %v1125_v34 = vmul.f32 0.03125, %v1092_v55  ;;  %v1186_v12 = vmul.f32 %v8795_v17, %v8795_v17  ;;  %v1187_v4 = vmul.f32 %v8799_v3, %v8799_v3 }
 0x331   : > { %v1274_v13 = vsel %vm423_vm0, %v1186_v12, 0.0  ;;  %v8809_v50 = vsub.f32 %v6508_v32, %v1124_v33  ;;  %v8813_v43 = vsub.f32 %v11132_v14, %v1125_v34  ;;  %v1277_v47 = vsel %vm423_vm0, %v1187_v4, 0.0 }
 0x332   : > { %1272 = vadd.xlane.f32.xlu1 %v1271_v27  ;;  %1275 = vadd.xlane.f32.xlu0 %v1274_v13 }
 0x333   : > { %v1188_v25 = vmul.f32 %v8809_v50, %v8809_v50  ;;  %v1189_v53 = vmul.f32 %v8813_v43, %v8813_v43 }
 0x335   : > { %v1280_v56 = vsel %vm423_vm0, %v1188_v25, 0.0  ;;  %v1283_v32 = vsel %vm423_vm0, %v1189_v53, 0.0 }
 0x336   : > { %1278 = vadd.xlane.f32.xlu1 %v1277_v47  ;;  %1281 = vadd.xlane.f32.xlu0 %v1280_v56 }
 0x33a   : > { %1284 = vadd.xlane.f32.xlu1 %v1283_v32 }
 0x387   : > { %v1192_v19 = vpop.xlane.xlu0 %1191 }
 0x388   : > { %v1286_v61 = vmul.f32 0.03125, %v1192_v19 }
 0x38a   : > { %v1318_v38 = vadd.f32 1e-05, %v1286_v61 }
 0x38b   : > { %v1195_v9 = vpop.xlane.xlu1 %1194  ;;  %v1198_v16 = vpop.xlane.xlu0 %1197 }
 0x38c   : > { %7391 = vrsqrt.f32 %v1318_v38  ;;  %v1287_v57 = vmul.f32 0.03125, %v1195_v9  ;;  %v1288_v59 = vmul.f32 0.03125, %v1198_v16 }
 0x38e   : > { %v1319_v21 = vadd.f32 1e-05, %v1287_v57  ;;  %v1320_v10 = vadd.f32 1e-05, %v1288_v59 }
 0x38f   : > { %v1201_v51 = vpop.xlane.xlu1 %1200  ;;  %v1204_v63 = vpop.xlane.xlu0 %1203 }
 0x390   : > { %7393 = vrsqrt.f32 %v1319_v21  ;;  %v1289_v7 = vmul.f32 0.03125, %v1201_v51  ;;  %v1290_v46 = vmul.f32 0.03125, %v1204_v63 }
 0x391   : > { %7395 = vrsqrt.f32 %v1320_v10 }
 0x392   : > { %v1321_v41 = vadd.f32 1e-05, %v1289_v7  ;;  %v1322_v37 = vadd.f32 1e-05, %v1290_v46 }
 0x393   : > { %v1207_v1 = vpop.xlane.xlu1 %1206  ;;  %v1210_v55 = vpop.xlane.xlu0 %1209 }
 0x394   : > { %7397 = vrsqrt.f32 %v1321_v41  ;;  %v1291_v27 = vmul.f32 0.03125, %v1207_v1  ;;  %v1292_v33 = vmul.f32 0.03125, %v1210_v55 }
 0x395   : > { %7399 = vrsqrt.f32 %v1322_v37 }
 0x396   : > { %v7392_v34 = vpop.eup %7391  ;;  %v1323_v12 = vadd.f32 1e-05, %v1291_v27  ;;  %v1324_v4 = vadd.f32 1e-05, %v1292_v33 }
 0x397   : > { %v1213_v13 = vpop.xlane.xlu1 %1212  ;;  %v1216_v14 = vpop.xlane.xlu0 %1215  ;;  %v1382_v47 = vmul.f32 %v7392_v34, %v8577_v20 }
 0x398   : > { %7401 = vrsqrt.f32 %v1323_v12  ;;  %v1293_v25 = vmul.f32 0.03125, %v1213_v13  ;;  %v1294_v53 = vmul.f32 0.03125, %v1216_v14 }
 0x399   : > { %7403 = vrsqrt.f32 %v1324_v4  ;;  %v1418_v57 = vmul.f32 %v8279_v31, %v1382_v47 }
 0x39a   : > { %v7394_v56 = vpop.eup %7393  ;;  %v1325_v32 = vadd.f32 1e-05, %v1293_v25  ;;  %v1326_v19 = vadd.f32 1e-05, %v1294_v53 }
 0x39b   : > { %v7396_v61 = vpop.eup %7395  ;;  %v1219_v38 = vpop.xlane.xlu1 %1218  ;;  %v1383_v16 = vmul.f32 %v7394_v56, %v8590_v28  ;;  %v1454_v1 = vadd.f32 %v8285_v39, %v1418_v57 }
 0x39c   : > { %v1222_v9 = vpop.xlane.xlu0 %1221  ;;  %7405 = vrsqrt.f32 %v1325_v32  ;;  %v1295_v59 = vmul.f32 0.03125, %v1219_v38  ;;  %v1384_v10 = vmul.f32 %v7396_v61, %v8581_v42 }
 0x39d   : > { %v1296_v21 = vmul.f32 0.03125, %v1222_v9  ;;  %7407 = vrsqrt.f32 %v1326_v19  ;;  %v1419_v20 = vmul.f32 %v8279_v31, %v1383_v16 }
 0x39e   : > { %v7398_v51 = vpop.eup %7397  ;;  %v1327_v63 = vadd.f32 1e-05, %v1295_v59  ;;  %v1420_v27 = vmul.f32 %v8279_v31, %v1384_v10 }
 0x39f   : > { %v1328_v7 = vadd.f32 1e-05, %v1296_v21  ;;  %v7400_v46 = vpop.eup %7399  ;;  %v1225_v41 = vpop.xlane.xlu1 %1224  ;;  %v1455_v28 = vadd.f32 %v8285_v39, %v1419_v20  ;;  %v1385_v55 = vmul.f32 %v7398_v51, %v8594_v23 }
 0x3a0   : > { %v1228_v37 = vpop.xlane.xlu0 %1227  ;;  %7409 = vrsqrt.f32 %v1327_v63  ;;  %v1297_v33 = vmul.f32 0.03125, %v1225_v41  ;;  %v1386_v4 = vmul.f32 %v7400_v46, %v8604_v11  ;;  %v1456_v23 = vadd.f32 %v8285_v39, %v1420_v27 }
 0x3a1   : > { %v1298_v42 = vmul.f32 0.03125, %v1228_v37  ;;  %7411 = vrsqrt.f32 %v1328_v7  ;;  %v1486_v34 = vpack.c.bf16 %v1455_v28, %v1454_v1  ;;  %v1421_v12 = vmul.f32 %v8279_v31, %v1385_v55 }
 0x3a2   : > { %v7402_v13 = vpop.eup %7401  ;;  %v1329_v14 = vadd.f32 1e-05, %v1297_v33  ;;  %v1422_v61 = vmul.f32 %v8279_v31, %v1386_v4 }
 0x3a3   : > { %v1330_v47 = vadd.f32 1e-05, %v1298_v42  ;;  %v7404_v25 = vpop.eup %7403  ;;  %v1231_v53 = vpop.xlane.xlu1 %1230  ;;  %7058 = vmatprep.mubr.msk.bf16.mxu0 %vm423_vm0, %v1486_v34  ;;  %v1457_v32 = vadd.f32 %v8285_v39, %v1421_v12  ;;  %v1387_v19 = vmul.f32 %v7402_v13, %v8608_v29 }
 0x3a4   : > { %v1234_v56 = vpop.xlane.xlu0 %1233  ;;  %7413 = vrsqrt.f32 %v1329_v14  ;;  %v1299_v38 = vmul.f32 0.03125, %v1231_v53  ;;  %v1388_v11 = vmul.f32 %v7404_v25, %v8618_v58  ;;  %v1458_v29 = vadd.f32 %v8285_v39, %v1422_v61 }
 0x3a5   : > { %v1300_v9 = vmul.f32 0.03125, %v1234_v56  ;;  %7415 = vrsqrt.f32 %v1330_v47  ;;  %v1487_v16 = vpack.c.bf16 %v1457_v32, %v1456_v23  ;;  %v1423_v57 = vmul.f32 %v8279_v31, %v1387_v19 }
 0x3a6   : > { %v7406_v59 = vpop.eup %7405  ;;  %v1331_v21 = vadd.f32 1e-05, %v1299_v38  ;;  %v1424_v58 = vmul.f32 %v8279_v31, %v1388_v11 }
 0x3a7   : > { %v1332_v10 = vadd.f32 1e-05, %v1300_v9  ;;  %v7408_v20 = vpop.eup %7407  ;;  %v1237_v51 = vpop.xlane.xlu1 %1236  ;;  %7059 = vmatmul.mubr.msk.bf16.vlgmr.msra.gmra.mrb[0].mxu0 %vm423_vm0, %v1487_v16  ;;  %v1459_v7 = vadd.f32 %v8285_v39, %v1423_v57  ;;  %v1389_v46 = vmul.f32 %v7406_v59, %v8622_v44 }
 0x3a8   : > { %v1240_v63 = vpop.xlane.xlu0 %1239  ;;  %7417 = vrsqrt.f32 %v1331_v21  ;;  %v1301_v41 = vmul.f32 0.03125, %v1237_v51  ;;  %v1390_v55 = vmul.f32 %v7408_v20, %v8632_v62  ;;  %v1460_v44 = vadd.f32 %v8285_v39, %v1424_v58 }
 0x3a9   : > { %v1302_v37 = vmul.f32 0.03125, %v1240_v63  ;;  %7419 = vrsqrt.f32 %v1332_v10  ;;  %v1488_v1 = vpack.c.bf16 %v1459_v7, %v1458_v29  ;;  %v1425_v28 = vmul.f32 %v8279_v31, %v1389_v46 }
 0x3aa   : > { %v7410_v27 = vpop.eup %7409  ;;  %v1333_v33 = vadd.f32 1e-05, %v1301_v41  ;;  %v1426_v47 = vmul.f32 %v8279_v31, %v1390_v55 }
 0x3ab   : > { %v1334_v42 = vadd.f32 1e-05, %v1302_v37  ;;  %v7412_v34 = vpop.eup %7411  ;;  %v1243_v12 = vpop.xlane.xlu1 %1242  ;;  %7062 = vmatprep.mubr.msk.bf16.mxu0 %vm423_vm0, %v1488_v1  ;;  %v1461_v13 = vadd.f32 %v8285_v39, %v1425_v28  ;;  %v1391_v14 = vmul.f32 %v7410_v27, %v8636_v2 }
 0x3ac   : > { %v1246_v4 = vpop.xlane.xlu0 %1245  ;;  %7421 = vrsqrt.f32 %v1333_v33  ;;  %v1303_v25 = vmul.f32 0.03125, %v1243_v12  ;;  %v1392_v62 = vmul.f32 %v7412_v34, %v8648_v5  ;;  %v1462_v2 = vadd.f32 %v8285_v39, %v1426_v47 }
 0x3ad   : > { %v1304_v53 = vmul.f32 0.03125, %v1246_v4  ;;  %7423 = vrsqrt.f32 %v1334_v42  ;;  %v1489_v56 = vpack.c.bf16 %v1461_v13, %v1460_v44  ;;  %v1427_v23 = vmul.f32 %v8279_v31, %v1391_v14 }
 0x3ae   : > { %v7414_v32 = vpop.eup %7413  ;;  %v1335_v19 = vadd.f32 1e-05, %v1303_v25  ;;  %v1428_v5 = vmul.f32 %v8279_v31, %v1392_v62 }
 0x3af   : > { %v1336_v61 = vadd.f32 1e-05, %v1304_v53  ;;  %v7416_v38 = vpop.eup %7415  ;;  %v1249_v9 = vpop.xlane.xlu1 %1248  ;;  %7063 = vmatmul.mubr.msk.bf16.gmra.mrb[4].mxu0 %vm423_vm0, %v1489_v56  ;;  %v1463_v16 = vadd.f32 %v8285_v39, %v1427_v23  ;;  %v1393_v57 = vmul.f32 %v7414_v32, %v8652_v22 }
 0x3b0   : > { %v1252_v11 = vpop.xlane.xlu0 %1251  ;;  %7425 = vrsqrt.f32 %v1335_v19  ;;  %v1305_v59 = vmul.f32 0.03125, %v1249_v9  ;;  %v1394_v51 = vmul.f32 %v7416_v38, %v8662_v6  ;;  %v1464_v22 = vadd.f32 %v8285_v39, %v1428_v5 }
 0x3b1   : > { %v1306_v21 = vmul.f32 0.03125, %v1252_v11  ;;  %7427 = vrsqrt.f32 %v1336_v61  ;;  %v1490_v10 = vpack.c.bf16 %v1463_v16, %v1462_v2  ;;  %v1429_v20 = vmul.f32 %v8279_v31, %v1393_v57 }
 0x3b2   : > { %v7418_v63 = vpop.eup %7417  ;;  %v1337_v29 = vadd.f32 1e-05, %v1305_v59  ;;  %v1430_v28 = vmul.f32 %v8279_v31, %v1394_v51 }
 0x3b3   : > { %v1338_v7 = vadd.f32 1e-05, %v1306_v21  ;;  %v7420_v46 = vpop.eup %7419  ;;  %v1255_v58 = vpop.xlane.xlu1 %1254  ;;  %7066 = vmatprep.mubr.msk.bf16.mxu0 %vm423_vm0, %v1490_v10  ;;  %v1465_v37 = vadd.f32 %v8285_v39, %v1429_v20  ;;  %v1395_v1 = vmul.f32 %v7418_v63, %v8666_v45 }
 0x3b4   : > { %v1258_v41 = vpop.xlane.xlu0 %1257  ;;  %7429 = vrsqrt.f32 %v1337_v29  ;;  %v1307_v55 = vmul.f32 0.03125, %v1255_v58  ;;  %v1396_v6 = vmul.f32 %v7420_v46, %v8684_v49  ;;  %v1466_v45 = vadd.f32 %v8285_v39, %v1430_v28 }
 0x3b5   : > { %v1308_v27 = vmul.f32 0.03125, %v1258_v41  ;;  %7431 = vrsqrt.f32 %v1338_v7  ;;  %v1491_v33 = vpack.c.bf16 %v1465_v37, %v1464_v22  ;;  %v1431_v42 = vmul.f32 %v8279_v31, %v1395_v1 }
 0x3b6   : > { %v7422_v34 = vpop.eup %7421  ;;  %v1339_v12 = vadd.f32 1e-05, %v1307_v55  ;;  %v1432_v49 = vmul.f32 %v8279_v31, %v1396_v6 }
 0x3b7   : > { %v1340_v4 = vadd.f32 1e-05, %v1308_v27  ;;  %v7424_v44 = vpop.eup %7423  ;;  %v1261_v13 = vpop.xlane.xlu1 %1260  ;;  %7067 = vmatmul.mubr.msk.bf16.gmra.mrb[8].mxu0 %vm423_vm0, %v1491_v33  ;;  %v1467_v47 = vadd.f32 %v8285_v39, %v1431_v42  ;;  %v1397_v25 = vmul.f32 %v7422_v34, %v8688_v30 }
 0x3b8   : > { %v1264_v14 = vpop.xlane.xlu0 %1263  ;;  %7433 = vrsqrt.f32 %v1339_v12  ;;  %v1309_v53 = vmul.f32 0.03125, %v1261_v13  ;;  %v1398_v32 = vmul.f32 %v7424_v44, %v8698_v54  ;;  %v1468_v30 = vadd.f32 %v8285_v39, %v1432_v49 }
 0x3b9   : > { %v1310_v62 = vmul.f32 0.03125, %v1264_v14  ;;  %7435 = vrsqrt.f32 %v1340_v4  ;;  %v1492_v56 = vpack.c.bf16 %v1467_v47, %v1466_v45  ;;  %v1433_v23 = vmul.f32 %v8279_v31, %v1397_v25 }
 0x3ba   : > { %v7426_v19 = vpop.eup %7425  ;;  %v1341_v61 = vadd.f32 1e-05, %v1309_v53  ;;  %v1434_v5 = vmul.f32 %v8279_v31, %v1398_v32 }
 0x3bb   : > { %v1342_v38 = vadd.f32 1e-05, %v1310_v62  ;;  %v7428_v9 = vpop.eup %7427  ;;  %v1267_v11 = vpop.xlane.xlu1 %1266  ;;  %7070 = vmatprep.mubr.msk.bf16.mxu0 %vm423_vm0, %v1492_v56  ;;  %v1469_v16 = vadd.f32 %v8285_v39, %v1433_v23  ;;  %v1399_v57 = vmul.f32 %v7426_v19, %v8702_v26 }
 0x3bc   : > { %v1270_v2 = vpop.xlane.xlu0 %1269  ;;  %7437 = vrsqrt.f32 %v1341_v61  ;;  %v1311_v59 = vmul.f32 0.03125, %v1267_v11  ;;  %v1400_v54 = vmul.f32 %v7428_v9, %v8720_v18  ;;  %v1470_v26 = vadd.f32 %v8285_v39, %v1434_v5 }
 0x3bd   : > { %v1312_v21 = vmul.f32 0.03125, %v1270_v2  ;;  %7439 = vrsqrt.f32 %v1342_v38  ;;  %v1493_v10 = vpack.c.bf16 %v1469_v16, %v1468_v30  ;;  %v1435_v20 = vmul.f32 %v8279_v31, %v1399_v57 }
 0x3be   : > { %v7430_v51 = vpop.eup %7429  ;;  %v1343_v63 = vadd.f32 1e-05, %v1311_v59  ;;  %v1436_v18 = vmul.f32 %v8279_v31, %v1400_v54 }
 0x3bf   : > { %v1344_v29 = vadd.f32 1e-05, %v1312_v21  ;;  %v7432_v7 = vpop.eup %7431  ;;  %v1273_v46 = vpop.xlane.xlu1 %1272  ;;  %7071 = vmatmul.mubr.msk.bf16.gmra.mrb[12].mxu0 %vm423_vm0, %v1493_v10  ;;  %v1471_v41 = vadd.f32 %v8285_v39, %v1435_v20  ;;  %v1401_v22 = vmul.f32 %v7430_v51, %v8724_v35 }
 0x3c0   : > { %v1276_v58 = vpop.xlane.xlu0 %1275  ;;  %7441 = vrsqrt.f32 %v1343_v63  ;;  %v1313_v37 = vmul.f32 0.03125, %v1273_v46  ;;  %v1402_v27 = vmul.f32 %v7432_v7, %v8734_v0  ;;  %v1472_v35 = vadd.f32 %v8285_v39, %v1436_v18 }
 0x3c1   : > { %v1314_v1 = vmul.f32 0.03125, %v1276_v58  ;;  %7443 = vrsqrt.f32 %v1344_v29  ;;  %v1494_v28 = vpack.c.bf16 %v1471_v41, %v1470_v26  ;;  %v1437_v55 = vmul.f32 %v8279_v31, %v1401_v22 }
 0x3c2   : > { %v7434_v6 = vpop.eup %7433  ;;  %v1345_v33 = vadd.f32 1e-05, %v1313_v37  ;;  %v1438_v14 = vmul.f32 %v8279_v31, %v1402_v27 }
 0x3c3   : > { %v1346_v42 = vadd.f32 1e-05, %v1314_v1  ;;  %v7436_v34 = vpop.eup %7435  ;;  %v1279_v12 = vpop.xlane.xlu1 %1278  ;;  %7074 = vmatprep.mubr.msk.bf16.mxu0 %vm423_vm0, %v1494_v28  ;;  %v1473_v44 = vadd.f32 %v8285_v39, %v1437_v55  ;;  %v1403_v13 = vmul.f32 %v7434_v6, %v8738_v40 }
 0x3c4   : > { %v1282_v4 = vpop.xlane.xlu0 %1281  ;;  %7445 = vrsqrt.f32 %v1345_v33  ;;  %v1315_v45 = vmul.f32 0.03125, %v1279_v12  ;;  %v1404_v0 = vmul.f32 %v7436_v34, %v8753_v15  ;;  %v1474_v40 = vadd.f32 %v8285_v39, %v1438_v14 }
 0x3c5   : > { %v1316_v47 = vmul.f32 0.03125, %v1282_v4  ;;  %7447 = vrsqrt.f32 %v1346_v42  ;;  %v1495_v25 = vpack.c.bf16 %v1473_v44, %v1472_v35  ;;  %v1439_v49 = vmul.f32 %v8279_v31, %v1403_v13  ;;  %v8934_v35 = vld [vmem:[#allocation2] sm:$0xff] }
 0x3c6   : > { %v7438_v53 = vpop.eup %7437  ;;  %v1347_v62 = vadd.f32 1e-05, %v1315_v45  ;;  %v1440_v38 = vmul.f32 %v8279_v31, %v1404_v0  ;;  %6584 = vmatprep.mubr.msk.bf16.mxu1 %vm1841_vm3, %v8934_v35 }
 0x3c7   : > { %v1348_v56 = vadd.f32 1e-05, %v1316_v47  ;;  %v7440_v23 = vpop.eup %7439  ;;  %v1285_v32 = vpop.xlane.xlu1 %1284  ;;  %7075 = vmatmul.mubr.msk.bf16.gmra.mrb[16].mxu0 %vm423_vm0, %v1495_v25  ;;  %v1475_v19 = vadd.f32 %v8285_v39, %v1439_v49  ;;  %v1405_v61 = vmul.f32 %v7438_v53, %v8757_v8 }
 0x3c8   : > { %7449 = vrsqrt.f32 %v1347_v62  ;;  %v1317_v15 = vmul.f32 0.03125, %v1285_v32  ;;  %v1406_v9 = vmul.f32 %v7440_v23, %v8767_v24  ;;  %v1476_v5 = vadd.f32 %v8285_v39, %v1440_v38 }
 0x3c9   : > { %7451 = vrsqrt.f32 %v1348_v56  ;;  %v1496_v11 = vpack.c.bf16 %v1475_v19, %v1474_v40  ;;  %v1441_v2 = vmul.f32 %v8279_v31, %v1405_v61 }
 0x3ca   : > { %v7442_v30 = vpop.eup %7441  ;;  %v1349_v16 = vadd.f32 1e-05, %v1317_v15  ;;  %v1442_v21 = vmul.f32 %v8279_v31, %v1406_v9 }
 0x3cb   : > { %v7444_v57 = vpop.eup %7443  ;;  %7078 = vmatprep.mubr.msk.bf16.mxu0 %vm423_vm0, %v1496_v11  ;;  %v1477_v59 = vadd.f32 %v8285_v39, %v1441_v2  ;;  %v1407_v8 = vmul.f32 %v7442_v30, %v8771_v36 }
 0x3cc   : > { %7453 = vrsqrt.f32 %v1349_v16  ;;  %v1408_v24 = vmul.f32 %v7444_v57, %v8781_v48  ;;  %v1478_v63 = vadd.f32 %v8285_v39, %v1442_v21 }
 0x3cd   : > { %v1497_v54 = vpack.c.bf16 %v1477_v59, %v1476_v5  ;;  %v1443_v10 = vmul.f32 %v8279_v31, %v1407_v8 }
 0x3ce   : > { %v7446_v20 = vpop.eup %7445  ;;  %v1444_v36 = vmul.f32 %v8279_v31, %v1408_v24 }
 0x3cf   : > { %v7448_v51 = vpop.eup %7447  ;;  %7079 = vmatmul.mubr.msk.bf16.gmra.mrb[20].mxu0 %vm423_vm0, %v1497_v54  ;;  %v1479_v29 = vadd.f32 %v8285_v39, %v1443_v10  ;;  %v1409_v7 = vmul.f32 %v7446_v20, %v8785_v60 }
 0x3d0   : > { %v1410_v46 = vmul.f32 %v7448_v51, %v8795_v17  ;;  %v1480_v22 = vadd.f32 %v8285_v39, %v1444_v36 }
 0x3d1   : > { %v1498_v58 = vpack.c.bf16 %v1479_v29, %v1478_v63  ;;  %v1445_v48 = vmul.f32 %v8279_v31, %v1409_v7 }
 0x3d2   : > { %v7450_v26 = vpop.eup %7449  ;;  %v1446_v1 = vmul.f32 %v8279_v31, %v1410_v46 }
 0x3d3   : > { %v7452_v41 = vpop.eup %7451  ;;  %7082 = vmatprep.mubr.msk.bf16.mxu0 %vm423_vm0, %v1498_v58  ;;  %v1481_v18 = vadd.f32 %v8285_v39, %v1445_v48  ;;  %v1411_v37 = vmul.f32 %v7450_v26, %v8799_v3 }
 0x3d4   : > { %v1412_v60 = vmul.f32 %v7452_v41, %v8809_v50  ;;  %v1482_v27 = vadd.f32 %v8285_v39, %v1446_v1 }
 0x3d5   : > { %v1499_v28 = vpack.c.bf16 %v1481_v18, %v1480_v22  ;;  %v1447_v17 = vmul.f32 %v8279_v31, %v1411_v37 }
 0x3d6   : > { %v7454_v55 = vpop.eup %7453  ;;  %v1448_v42 = vmul.f32 %v8279_v31, %v1412_v60 }
 0x3d7   : > { %7083 = vmatmul.mubr.msk.bf16.gmra.mrb[24].mxu0 %vm423_vm0, %v1499_v28  ;;  %v1483_v6 = vadd.f32 %v8285_v39, %v1447_v17  ;;  %v1413_v33 = vmul.f32 %v7454_v55, %v8813_v43 }
 0x3d8   : > { %v1484_v50 = vadd.f32 %v8285_v39, %v1448_v42 }
 0x3d9   : > { %v1500_v34 = vpack.c.bf16 %v1483_v6, %v1482_v27  ;;  %v1449_v3 = vmul.f32 %v8279_v31, %v1413_v33  ;;  %v8941_v31 = vld [vmem:[%s11098_s5 + $0x5] ss:$0 sm:$0xff] }
 0x3db   : > { %7086 = vmatprep.mubr.msk.bf16.mxu0 %vm423_vm0, %v1500_v34  ;;  %v1485_v12 = vadd.f32 %v8285_v39, %v1449_v3 }
 0x3dd   : > { %v1501_v4 = vpack.c.bf16 %v1485_v12, %v1484_v50 }
 0x3df   : > { %7087 = vmatmul.mubr.msk.bf16.gmra.mrb[28].mxu0 %vm423_vm0, %v1501_v4 }
 0x47a   : > { %v7060_v43 = vpop.f32.mrb[0].mxu0 }
 0x47b   : > { %v1618_v44 = vpop.f32.mrb[1].mxu0  ;;  %v1627_v14 = vadd.f32 %v7060_v43, %v8941_v31 }
 0x47c   : > { %v7061_v13 = vpop.f32.mrb[2].mxu0  ;;  %v1619_v47 = vadd.f32 %v8941_v31, %v1618_v44 }
 0x47d   : > { %v1630_v39 = vadd.f32 %v7061_v13, %v8941_v31  ;;  %v1621_v45 = vpop.f32.mrb[3].mxu0 }
 0x47e   : > { %v1622_v0 = vadd.f32 %v8941_v31, %v1621_v45 }
 0x47f   : > { %v8947_v25 = vpack.c.bf16 %v1630_v39, %v1627_v14  ;;  %v9025_v14 = vld [vmem:[#allocation2 + $0x10] sm:$0xff] }
 0x480   : > { %v8949_v49 = vpack.c.bf16 %v1622_v0, %v1619_v47 }
 0x481   : > { %v1870_v13 = vsel %vm1841_vm3, %v8947_v25, 0 }
 0x482   : > { %2388 = vrot.lane.b32.xlu0 %v8949_v49, %s7985_s27  ;;  %v7064_v53 = vpop.f32.mrb[4].mxu0  ;;  %v1867_v27 = vsel %vm1841_vm3, %v8949_v49, 0 }
 0x483   : > { %v1634_v62 = vpop.f32.mrb[5].mxu0  ;;  %v1643_v23 = vadd.f32 %v7064_v53, %v8941_v31 }
 0x484   : > { %v7065_v56 = vpop.f32.mrb[6].mxu0  ;;  %v1635_v19 = vadd.f32 %v8941_v31, %v1634_v62 }
 0x485   : > { %v1646_v32 = vadd.f32 %v7065_v56, %v8941_v31  ;;  %v1637_v40 = vpop.f32.mrb[7].mxu0 }
 0x486   : > { %v1638_v61 = vadd.f32 %v8941_v31, %v1637_v40 }
 0x487   : > { %v8957_v38 = vpack.c.bf16 %v1646_v32, %v1643_v23 }
 0x488   : > { %v8959_v15 = vpack.c.bf16 %v1638_v61, %v1635_v19 }
 0x48a   : > { %2392 = vrot.lane.b32.xlu0 %v8959_v15, %s7985_s27  ;;  %v7068_v9 = vpop.f32.mrb[8].mxu0  ;;  %v1873_v61 = vsel %vm1841_vm3, %v8959_v15, 0 }
 0x48b   : > { %v1650_v11 = vpop.f32.mrb[9].mxu0  ;;  %v1659_v30 = vadd.f32 %v7068_v9, %v8941_v31 }
 0x48c   : > { %v7069_v2 = vpop.f32.mrb[10].mxu0  ;;  %v1651_v5 = vadd.f32 %v8941_v31, %v1650_v11 }
 0x48d   : > { %v1662_v16 = vadd.f32 %v7069_v2, %v8941_v31  ;;  %v1653_v57 = vpop.f32.mrb[11].mxu0 }
 0x48e   : > { %v1654_v59 = vadd.f32 %v8941_v31, %v1653_v57  ;;  %2394 = vrot.lane.b32.xlu0 %v8957_v38, %s7985_s27 }
 0x48f   : > { %v8969_v8 = vpack.c.bf16 %v1662_v16, %v1659_v30 }
 0x490   : > { %v8971_v21 = vpack.c.bf16 %v1654_v59, %v1651_v5  ;;  %v9059_v5 = vld [vmem:[#allocation2 + $0x20] sm:$0xff] }
 0x492   : > { %2396 = vrot.lane.b32.xlu0 %v8971_v21, %s7985_s27  ;;  %v7072_v24 = vpop.f32.mrb[12].mxu0 }
 0x493   : > { %v1666_v54 = vpop.f32.mrb[13].mxu0  ;;  %v1675_v20 = vadd.f32 %v7072_v24, %v8941_v31  ;;  %v1879_v24 = vsel %vm1841_vm3, %v8971_v21, 0 }
 0x494   : > { %v7073_v10 = vpop.f32.mrb[14].mxu0  ;;  %v1667_v29 = vadd.f32 %v8941_v31, %v1666_v54  ;;  %v9081_v54 = vld [vmem:[#allocation2 + $0x30] sm:$0xff] }
 0x495   : > { %v1678_v51 = vadd.f32 %v7073_v10, %v8941_v31  ;;  %v1669_v63 = vpop.f32.mrb[15].mxu0  ;;  %v9089_v10 = vld [vmem:[#allocation2 + $0x8] sm:$0xff] }
 0x496   : > { %v1670_v7 = vadd.f32 %v8941_v31, %v1669_v63  ;;  %2398 = vrot.lane.b32.xlu0 %v8969_v8, %s7985_s27  ;;  %v9109_v63 = vld [vmem:[#allocation2 + $0x18] sm:$0xff] }
 0x497   : > { %v8981_v36 = vpack.c.bf16 %v1678_v51, %v1675_v20  ;;  %v1882_v20 = vsel %vm1841_vm3, %v8969_v8, 0 }
 0x498   : > { %v8983_v46 = vpack.c.bf16 %v1670_v7, %v1667_v29  ;;  %v1838_v7 = vld [vmem:[#allocation2 + $0x28] sm:$0xff] }
 0x499   : > { %v1888_v29 = vsel %vm1841_vm3, %v8981_v36, 0 }
 0x49a   : > { %2400 = vrot.lane.b32.xlu0 %v8983_v46, %s7985_s27  ;;  %v7076_v58 = vpop.f32.mrb[16].mxu0  ;;  %v1885_v51 = vsel %vm1841_vm3, %v8983_v46, 0 }
 0x49b   : > { %v1682_v48 = vpop.f32.mrb[17].mxu0  ;;  %v1691_v41 = vadd.f32 %v7076_v58, %v8941_v31  ;;  %v9142_v58 = vld [vmem:[#allocation2 + $0x38] sm:$0xff] }
 0x49c   : > { %v7077_v26 = vpop.f32.mrb[18].mxu0  ;;  %v1683_v37 = vadd.f32 %v8941_v31, %v1682_v48 }
 0x49d   : > { %v1694_v22 = vadd.f32 %v7077_v26, %v8941_v31  ;;  %v1685_v18 = vpop.f32.mrb[19].mxu0 }
 0x49e   : > { %v1686_v1 = vadd.f32 %v8941_v31, %v1685_v18  ;;  %2402 = vrot.lane.b32.xlu0 %v8981_v36, %s7985_s27 }
 0x49f   : > { %v8993_v60 = vpack.c.bf16 %v1694_v22, %v1691_v41 }
 0x4a0   : > { %v8995_v28 = vpack.c.bf16 %v1686_v1, %v1683_v37 }
 0x4a2   : > { %2372 = vrot.lane.b32.xlu0 %v8934_v35, %s7985_s27  ;;  %2404 = vrot.lane.b32.xlu1 %v8995_v28, %s7985_s27  ;;  %v7080_v17 = vpop.f32.mrb[20].mxu0 }
 0x4a3   : > { %7283 = vmatprep.subr.msk.bf16.mxu1 %vm1841_vm3, %v8995_v28  ;;  %v1698_v55 = vpop.f32.mrb[21].mxu0  ;;  %v1707_v33 = vadd.f32 %v7080_v17, %v8941_v31 }
 0x4a4   : > { %6569 = vmatpush3.bf16.xpose.msra.mxu1 %v1867_v27  ;;  %v7081_v6 = vpop.f32.mrb[22].mxu0  ;;  %v1699_v3 = vadd.f32 %v8941_v31, %v1698_v55 }
 0x4a5   : > { %v1710_v42 = vadd.f32 %v7081_v6, %v8941_v31  ;;  %7284 = vmatprep.subr.msk.bf16.mxu1 %vm1841_vm3, %v8993_v60  ;;  %v1701_v34 = vpop.f32.mrb[23].mxu0 }
 0x4a6   : > { %v1702_v50 = vadd.f32 %v8941_v31, %v1701_v34  ;;  %2958 = vrot.lane.b32.xlu0 %v8995_v28, %s7986_s28  ;;  %2390 = vrot.lane.b32.xlu1 %v8947_v25, %s7985_s27 }
 0x4a7   : > { %v9015_v12 = vpack.c.bf16 %v1710_v42, %v1707_v33 }
 0x4a8   : > { %v9017_v4 = vpack.c.bf16 %v1702_v50, %v1699_v3 }
 0x4aa   : > { %2944 = vrot.lane.b32.xlu0 %v8947_v25, %s7986_s28  ;;  %2406 = vrot.lane.b32.xlu1 %v8993_v60, %s7985_s27  ;;  %v7084_v43 = vpop.f32.mrb[24].mxu0 }
 0x4ab   : > { %v1714_v44 = vpop.f32.mrb[25].mxu0  ;;  %v1723_v45 = vadd.f32 %v7084_v43, %v8941_v31 }
 0x4ac   : > { %6571 = vmatpush3.bf16.xpose.msra.mxu1 %v1870_v13  ;;  %v7085_v39 = vpop.f32.mrb[26].mxu0  ;;  %v1715_v53 = vadd.f32 %v8941_v31, %v1714_v44 }
 0x4ad   : > { %v1726_v47 = vadd.f32 %v7085_v39, %v8941_v31  ;;  %7285 = vmatprep.subr.msk.bf16.mxu1 %vm1841_vm3, %v9017_v4  ;;  %v1717_v0 = vpop.f32.mrb[27].mxu0 }
 0x4ae   : > { %v1718_v62 = vadd.f32 %v8941_v31, %v1717_v0  ;;  %2376 = vrot.lane.b32.xlu0 %v9025_v14, %s7985_s27  ;;  %2408 = vrot.lane.b32.xlu1 %v9017_v4, %s7985_s27 }
 0x4af   : > { %v9037_v56 = vpack.c.bf16 %v1726_v47, %v1723_v45 }
 0x4b0   : > { %v9039_v23 = vpack.c.bf16 %v1718_v62, %v1715_v53 }
 0x4b2   : > { %2962 = vrot.lane.b32.xlu0 %v9017_v4, %s7986_s28  ;;  %2410 = vrot.lane.b32.xlu1 %v9015_v12, %s7985_s27  ;;  %v7088_v32 = vpop.f32.mrb[28].mxu0 }
 0x4b3   : > { %v1739_v40 = vadd.f32 %v7088_v32, %v8941_v31  ;;  %v1730_v19 = vpop.f32.mrb[29].mxu0 }
 0x4b4   : > { %6573 = vmatpush3.bf16.xpose.msra.mxu1 %v1873_v61  ;;  %v7089_v9 = vpop.f32.mrb[30].mxu0  ;;  %v1731_v30 = vadd.f32 %v8941_v31, %v1730_v19 }
 0x4b5   : > { %v1742_v11 = vadd.f32 %v7089_v9, %v8941_v31  ;;  %7286 = vmatprep.subr.msk.bf16.mxu1 %vm1841_vm3, %v9015_v12  ;;  %v1733_v2 = vpop.f32.mrb[31].mxu0 }
 0x4b6   : > { %v1734_v16 = vadd.f32 %v8941_v31, %v1733_v2  ;;  %2948 = vrot.lane.b32.xlu0 %v8957_v38, %s7986_s28  ;;  %2412 = vrot.lane.b32.xlu1 %v9039_v23, %s7985_s27  ;;  %v1876_v31 = vsel %vm1841_vm3, %v8957_v38, 0 }
 0x4b7   : > { %v9057_v57 = vpack.c.bf16 %v1742_v11, %v1739_v40 }
 0x4b8   : > { %v9061_v59 = vpack.c.bf16 %v1734_v16, %v1731_v30 }
 0x4ba   : > { %2380 = vrot.lane.b32.xlu0 %v9059_v5, %s7985_s27  ;;  %2414 = vrot.lane.b32.xlu1 %v9037_v56, %s7985_s27 }
 0x4bc   : > { %6575 = vmatpush3.bf16.xpose.msra.mxu1 %v1876_v31 }
 0x4bd   : > { %7287 = vmatprep.subr.msk.bf16.mxu1 %vm1841_vm3, %v9039_v23 }
 0x4be   : > { %2966 = vrot.lane.b32.xlu0 %v9039_v23, %s7986_s28  ;;  %2416 = vrot.lane.b32.xlu1 %v9061_v59, %s7985_s27 }
 0x4c2   : > { %2952 = vrot.lane.b32.xlu0 %v8969_v8, %s7986_s28  ;;  %2418 = vrot.lane.b32.xlu1 %v9057_v57, %s7985_s27 }
 0x4c4   : > { %6577 = vmatpush3.bf16.xpose.msra.mxu1 %v1879_v24 }
 0x4c5   : > { %7288 = vmatprep.subr.msk.bf16.mxu1 %vm1841_vm3, %v9037_v56 }
 0x4c6   : > { %2384 = vrot.lane.b32.xlu0 %v9081_v54, %s7985_s27  ;;  %2942 = vrot.lane.b32.xlu1 %v8949_v49, %s7986_s28 }
 0x4ca   : > { %2970 = vrot.lane.b32.xlu0 %v9061_v59, %s7986_s28  ;;  %2374 = vrot.lane.b32.xlu1 %v9089_v10, %s7985_s27 }
 0x4cc   : > { %6579 = vmatpush3.bf16.xpose.msra.mxu1 %v1882_v20 }
 0x4cd   : > { %7289 = vmatprep.subr.msk.bf16.mxu1 %vm1841_vm3, %v9061_v59 }
 0x4ce   : > { %2956 = vrot.lane.b32.xlu0 %v8981_v36, %s7986_s28  ;;  %2960 = vrot.lane.b32.xlu1 %v8993_v60, %s7986_s28 }
 0x4d2   : > { %2926 = vrot.lane.b32.xlu0 %v8934_v35, %s7986_s28  ;;  %2946 = vrot.lane.b32.xlu1 %v8959_v15, %s7986_s28 }
 0x4d4   : > { %6581 = vmatpush3.bf16.xpose.msra.mxu1 %v1885_v51 }
 0x4d5   : > { %7290 = vmatprep.subr.msk.bf16.mxu1 %vm1841_vm3, %v9057_v57 }
 0x4d6   : > { %3512 = vrot.lane.b32.xlu0 %v8995_v28, %s7987_s29  ;;  %2378 = vrot.lane.b32.xlu1 %v9109_v63, %s7985_s27 }
 0x4da   : > { %3498 = vrot.lane.b32.xlu0 %v8947_v25, %s7987_s29  ;;  %2964 = vrot.lane.b32.xlu1 %v9015_v12, %s7986_s28 }
 0x4dc   : > { %6583 = vmatpush3.bf16.xpose.msra.mxu1 %v1888_v29 }
 0x4de   : > { %2930 = vrot.lane.b32.xlu0 %v9025_v14, %s7986_s28  ;;  %2950 = vrot.lane.b32.xlu1 %v8971_v21, %s7986_s28 }
 0x4e2   : > { %3516 = vrot.lane.b32.xlu0 %v9017_v4, %s7987_s29  ;;  %2382 = vrot.lane.b32.xlu1 %v1838_v7, %s7985_s27 }
 0x4e3   : > { %6585 = vmatmul.mubr.msk.bf16.vlgmr.msra.gmra.mrb[0].mxu1 %vm1841_vm3, %v8934_v35 }
 0x4e4   : > { %6586 = vmatprep.mubr.msk.bf16.mxu1 %vm1841_vm3, %v9089_v10 }
 0x4e6   : > { %3502 = vrot.lane.b32.xlu0 %v8957_v38, %s7987_s29  ;;  %2968 = vrot.lane.b32.xlu1 %v9037_v56, %s7986_s28 }
 0x4ea   : > { %2934 = vrot.lane.b32.xlu0 %v9059_v5, %s7986_s28  ;;  %2954 = vrot.lane.b32.xlu1 %v8983_v46, %s7986_s28 }
 0x4eb   : > { %6587 = vmatmul.mubr.msk.bf16.gmra.mrb[4].mxu1 %vm1841_vm3, %v9089_v10 }
 0x4ec   : > { %6588 = vmatprep.mubr.msk.bf16.mxu1 %vm1841_vm3, %v9025_v14 }
 0x4ee   : > { %3520 = vrot.lane.b32.xlu0 %v9039_v23, %s7987_s29  ;;  %2386 = vrot.lane.b32.xlu1 %v9142_v58, %s7985_s27 }
 0x4f2   : > { %3506 = vrot.lane.b32.xlu0 %v8969_v8, %s7987_s29  ;;  %2972 = vrot.lane.b32.xlu1 %v9057_v57, %s7986_s28 }
 0x4f3   : > { %6589 = vmatmul.mubr.msk.bf16.gmra.mrb[8].mxu1 %vm1841_vm3, %v9025_v14 }
 0x4f4   : > { %6590 = vmatprep.mubr.msk.bf16.mxu1 %vm1841_vm3, %v9109_v63  ;;  %v2389_v48 = vpop.permute.xlu0 %2388 }
 0x4f5   : > { %v2445_v55 = vsel %vm1841_vm3, %v2389_v48, 0 }
 0x4f6   : > { %2938 = vrot.lane.b32.xlu0 %v9081_v54, %s7986_s28  ;;  %3496 = vrot.lane.b32.xlu1 %v8949_v49, %s7987_s29 }
 0x4fa   : > { %3524 = vrot.lane.b32.xlu0 %v9061_v59, %s7987_s29  ;;  %2928 = vrot.lane.b32.xlu1 %v9089_v10, %s7986_s28 }
 0x4fb   : > { %6591 = vmatmul.mubr.msk.bf16.gmra.mrb[12].mxu1 %vm1841_vm3, %v9109_v63 }
 0x4fc   : > { %v2393_v26 = vpop.permute.xlu0 %2392  ;;  %6592 = vmatprep.mubr.msk.bf16.mxu1 %vm1841_vm3, %v9059_v5 }
 0x4fd   : > { %v2451_v13 = vsel %vm1841_vm3, %v2393_v26, 0 }
 0x4fe   : > { %3510 = vrot.lane.b32.xlu0 %v8981_v36, %s7987_s29  ;;  %3514 = vrot.lane.b32.xlu1 %v8993_v60, %s7987_s29 }
 0x500   : > { %v2395_v41 = vpop.permute.xlu0 %2394 }
 0x501   : > { %v2454_v0 = vsel %vm1841_vm3, %v2395_v41, 0 }
 0x502   : > { %3480 = vrot.lane.b32.xlu0 %v8934_v35, %s7987_s29  ;;  %3500 = vrot.lane.b32.xlu1 %v8959_v15, %s7987_s29 }
 0x503   : > { %6593 = vmatmul.mubr.msk.bf16.gmra.mrb[16].mxu1 %vm1841_vm3, %v9059_v5 }
 0x504   : > { %v9182_v22 = vpop.permute.xlu0 %2396  ;;  %6594 = vmatprep.mubr.msk.bf16.mxu1 %vm1841_vm3, %v1838_v7 }
 0x505   : > { %v2457_v19 = vsel %vm1841_vm3, %v9182_v22, 0 }
 0x506   : > { %3484 = vrot.lane.b32.xlu0 %v9025_v14, %s7987_s29  ;;  %2932 = vrot.lane.b32.xlu1 %v9109_v63, %s7986_s28 }
 0x508   : > { %v9189_v18 = vpop.permute.xlu0 %2398 }
 0x509   : > { %v2460_v30 = vsel %vm1841_vm3, %v9189_v18, 0 }
 0x50a   : > { %2235 = vrot.lane.b32.xlu0 %v8995_v28, %s7988_s0  ;;  %3518 = vrot.lane.b32.xlu1 %v9015_v12, %s7987_s29 }
 0x50b   : > { %6595 = vmatmul.mubr.msk.bf16.gmra.mrb[20].mxu1 %vm1841_vm3, %v1838_v7 }
 0x50c   : > { %v9196_v35 = vpop.permute.xlu0 %2400  ;;  %6596 = vmatprep.mubr.msk.bf16.mxu1 %vm1841_vm3, %v9081_v54 }
 0x50e   : > { %2237 = vrot.lane.b32.xlu0 %v8993_v60, %s7988_s0  ;;  %3504 = vrot.lane.b32.xlu1 %v8971_v21, %s7987_s29 }
 0x510   : > { %v9204_v37 = vpop.permute.xlu0 %2402 }
 0x512   : > { %2221 = vrot.lane.b32.xlu0 %v8947_v25, %s7988_s0  ;;  %2936 = vrot.lane.b32.xlu1 %v1838_v7, %s7986_s28 }
 0x513   : > { %6597 = vmatmul.mubr.msk.bf16.gmra.mrb[24].mxu1 %vm1841_vm3, %v9081_v54 }
 0x514   : > { %v2405_v1 = vpop.permute.xlu1 %2404  ;;  %v9211_v17 = vpop.permute.xlu0 %2372  ;;  %6598 = vmatprep.mubr.msk.bf16.mxu1 %vm1841_vm3, %v9142_v58 }
 0x515   : > { %7291 = vmatprep.subr.msk.bf16.mxu1 %vm1841_vm3, %v2405_v1 }
 0x516   : > { %2223 = vrot.lane.b32.xlu0 %v8959_v15, %s7988_s0  ;;  %3522 = vrot.lane.b32.xlu1 %v9037_v56, %s7987_s29 }
 0x517   : > { %6665 = vmatpush3.bf16.xpose.msra.mxu1 %v2445_v55 }
 0x518   : > { %v2391_v27 = vpop.permute.xlu1 %2390  ;;  %v9221_v6 = vpop.permute.xlu0 %2958 }
 0x519   : > { %v2448_v34 = vsel %vm1841_vm3, %v2391_v27, 0 }
 0x51a   : > { %3490 = vrot.lane.b32.xlu0 %v1838_v7, %s7987_s29  ;;  %3508 = vrot.lane.b32.xlu1 %v8983_v46, %s7987_s29  ;;  %v2466_v7 = vsel %vm1841_vm3, %v9204_v37, 0 }
 0x51b   : > { %6599 = vmatmul.mubr.msk.bf16.gmra.mrb[28].mxu1 %vm1841_vm3, %v9142_v58 }
 0x51c   : > { %v2407_v33 = vpop.permute.xlu1 %2406  ;;  %v9228_v42 = vpop.permute.xlu0 %2944  ;;  %6680 = vmatprep.mubr.msk.bf16.mxu1 %vm1841_vm3, %v9211_v17 }
 0x51d   : > { %7292 = vmatprep.subr.msk.bf16.mxu1 %vm1841_vm3, %v2407_v33  ;;  %v3002_v1 = vsel %vm1841_vm3, %v9228_v42, 0 }
 0x51e   : > { %2243 = vrot.lane.b32.xlu0 %v9039_v23, %s7988_s0  ;;  %2940 = vrot.lane.b32.xlu1 %v9142_v58, %s7986_s28 }
 0x51f   : > { %6667 = vmatpush3.bf16.xpose.msra.mxu1 %v2448_v34 }
 0x520   : > { %v2409_v3 = vpop.permute.xlu1 %2408  ;;  %v9238_v50 = vpop.permute.xlu0 %2376 }
 0x521   : > { %7293 = vmatprep.subr.msk.bf16.mxu1 %vm1841_vm3, %v2409_v3 }
 0x522   : > { %2245 = vrot.lane.b32.xlu0 %v9037_v56, %s7988_s0  ;;  %3526 = vrot.lane.b32.xlu1 %v9057_v57, %s7987_s29 }
 0x524   : > { %v2411_v43 = vpop.permute.xlu1 %2410  ;;  %v9245_v44 = vpop.permute.xlu0 %2962 }
 0x526   : > { %2229 = vrot.lane.b32.xlu0 %v8969_v8, %s7988_s0  ;;  %3482 = vrot.lane.b32.xlu1 %v9089_v10, %s7987_s29  ;;  %v2463_v10 = vsel %vm1841_vm3, %v9196_v35, 0 }
 0x527   : > { %6669 = vmatpush3.bf16.xpose.msra.mxu1 %v2451_v13 }
 0x528   : > { %7294 = vmatprep.subr.msk.bf16.mxu1 %vm1841_vm3, %v2411_v43  ;;  %v2413_v14 = vpop.permute.xlu1 %2412  ;;  %v9253_v39 = vpop.permute.xlu0 %2948 }
 0x529   : > { %v3008_v43 = vsel %vm1841_vm3, %v9253_v39, 0 }
 0x52a   : > { %2231 = vrot.lane.b32.xlu0 %v8983_v46, %s7988_s0  ;;  %3486 = vrot.lane.b32.xlu1 %v9109_v63, %s7987_s29 }
 0x52c   : > { %v2415_v45 = vpop.permute.xlu1 %2414  ;;  %v9259_v47 = vpop.permute.xlu0 %2380 }
 0x52e   : > { %3494 = vrot.lane.b32.xlu0 %v9142_v58, %s7987_s29  ;;  %2219 = vrot.lane.b32.xlu1 %v8949_v49, %s7988_s0 }
 0x52f   : > { %6671 = vmatpush3.bf16.xpose.msra.mxu1 %v2454_v0 }
 0x530   : > { %7295 = vmatprep.subr.msk.bf16.mxu1 %vm1841_vm3, %v2413_v14  ;;  %v2417_v53 = vpop.permute.xlu1 %2416  ;;  %v9267_v62 = vpop.permute.xlu0 %2966 }
 0x532   : > { %2797 = vrot.lane.b32.xlu0 %v8995_v28, %s7989_s1  ;;  %3488 = vrot.lane.b32.xlu1 %v9059_v5, %s7987_s29 }
 0x534   : > { %v2419_v32 = vpop.permute.xlu1 %2418  ;;  %v9273_v40 = vpop.permute.xlu0 %2952 }
 0x536   : > { %2799 = vrot.lane.b32.xlu0 %v8993_v60, %s7989_s1  ;;  %2239 = vrot.lane.b32.xlu1 %v9017_v4, %s7988_s0 }
 0x537   : > { %6673 = vmatpush3.bf16.xpose.msra.mxu1 %v2457_v19 }
 0x538   : > { %7296 = vmatprep.subr.msk.bf16.mxu1 %vm1841_vm3, %v2415_v45  ;;  %v2943_v61 = vpop.permute.xlu1 %2942  ;;  %v9282_v9 = vpop.permute.xlu0 %2384 }
 0x539   : > { %v2999_v41 = vsel %vm1841_vm3, %v2943_v61, 0 }
 0x53a   : > { %2801 = vrot.lane.b32.xlu0 %v9017_v4, %s7989_s1  ;;  %2241 = vrot.lane.b32.xlu1 %v9015_v12, %s7988_s0 }
 0x53c   : > { %v2375_v11 = vpop.permute.xlu1 %2374  ;;  %v9288_v2 = vpop.permute.xlu0 %2970 }
 0x53e   : > { %2803 = vrot.lane.b32.xlu0 %v9015_v12, %s7989_s1  ;;  %2225 = vrot.lane.b32.xlu1 %v8957_v38, %s7988_s0 }
 0x53f   : > { %6675 = vmatpush3.bf16.xpose.msra.mxu1 %v2460_v30 }
 0x540   : > { %7297 = vmatprep.subr.msk.bf16.mxu1 %vm1841_vm3, %v2417_v53  ;;  %v2961_v16 = vpop.permute.xlu1 %2960  ;;  %v9297_v5 = vpop.permute.xlu0 %2956 }
 0x542   : > { %2805 = vrot.lane.b32.xlu0 %v9039_v23, %s7989_s1  ;;  %2227 = vrot.lane.b32.xlu1 %v8971_v21, %s7988_s0 }
 0x544   : > { %v2947_v31 = vpop.permute.xlu1 %2946  ;;  %v9303_v24 = vpop.permute.xlu0 %2926 }
 0x545   : > { %v3005_v33 = vsel %vm1841_vm3, %v2947_v31, 0 }
 0x546   : > { %2807 = vrot.lane.b32.xlu0 %v9037_v56, %s7989_s1  ;;  %3492 = vrot.lane.b32.xlu1 %v9081_v54, %s7987_s29 }
 0x547   : > { %6677 = vmatpush3.bf16.xpose.msra.mxu1 %v2463_v10 }
 0x548   : > { %7298 = vmatprep.subr.msk.bf16.mxu1 %vm1841_vm3, %v2419_v32  ;;  %v2379_v20 = vpop.permute.xlu1 %2378  ;;  %v9312_v51 = vpop.permute.xlu0 %3512 }
 0x54a   : > { %2247 = vrot.lane.b32.xlu1 %v9061_v59, %s7988_s0  ;;  %2809 = vrot.lane.b32.xlu0 %v9061_v59, %s7989_s1 }
 0x54c   : > { %v2965_v63 = vpop.permute.xlu1 %2964  ;;  %v9318_v29 = vpop.permute.xlu0 %3498 }
 0x54e   : > { %2249 = vrot.lane.b32.xlu1 %v9057_v57, %s7988_s0  ;;  %2811 = vrot.lane.b32.xlu0 %v9057_v57, %s7989_s1 }
 0x54f   : > { %6679 = vmatpush3.bf16.xpose.msra.mxu1 %v2466_v7 }
 0x550   : > { %7299 = vmatprep.subr.msk.bf16.mxu1 %vm1841_vm3, %v9221_v6  ;;  %v2951_v54 = vpop.permute.xlu1 %2950  ;;  %v9328_v58 = vpop.permute.xlu0 %2930 }
 0x551   : > { %v3011_v45 = vsel %vm1841_vm3, %v2951_v54, 0 }
 0x552   : > { %2233 = vrot.lane.b32.xlu1 %v8981_v36, %s7988_s0  ;;  %3351 = vrot.lane.b32.xlu0 %v8995_v28, %s7990_s9 }
 0x554   : > { %v9334_v48 = vpop.permute.xlu1 %2382  ;;  %v9336_v26 = vpop.permute.xlu0 %3516 }
 0x556   : > { %6681 = vmatmul.mubr.msk.bf16.vlgmr.msra.gmra.mrb[32].mxu1 %vm1841_vm3, %v9211_v17  ;;  %2781 = vrot.lane.b32.xlu1 %v8949_v49, %s7989_s1 }
 0x557   : > { %3353 = vrot.lane.b32.xlu0 %v8993_v60, %s7990_s9  ;;  %6761 = vmatpush3.bf16.xpose.msra.mxu1 %v2999_v41 }
 0x558   : > { %7300 = vmatprep.subr.msk.bf16.mxu1 %vm1841_vm3, %v2961_v16  ;;  %v2969_v22 = vpop.permute.xlu1 %2968  ;;  %v9346_v18 = vpop.permute.xlu0 %3502  ;;  %6682 = vmatprep.mubr.msk.bf16.mxu1 %vm1841_vm3, %v2375_v11 }
 0x55a   : > { %2783 = vrot.lane.b32.xlu1 %v8947_v25, %s7989_s1 }
 0x55b   : > { %3355 = vrot.lane.b32.xlu0 %v9017_v4, %s7990_s9 }
 0x55c   : > { %v9353_v35 = vpop.permute.xlu1 %2954  ;;  %v9355_v37 = vpop.permute.xlu0 %2934 }
 0x55e   : > { %6683 = vmatmul.mubr.msk.bf16.gmra.mrb[36].mxu1 %vm1841_vm3, %v2375_v11  ;;  %2785 = vrot.lane.b32.xlu1 %v8959_v15, %s7989_s1 }
 0x55f   : > { %3357 = vrot.lane.b32.xlu0 %v9015_v12, %s7990_s9  ;;  %6763 = vmatpush3.bf16.xpose.msra.mxu1 %v3002_v1 }
 0x560   : > { %7301 = vmatprep.subr.msk.bf16.mxu1 %vm1841_vm3, %v9245_v44  ;;  %v9366_v17 = vpop.permute.xlu1 %2386  ;;  %v9368_v55 = vpop.permute.xlu0 %3520  ;;  %6684 = vmatprep.mubr.msk.bf16.mxu1 %vm1841_vm3, %v9238_v50 }
 0x562   : > { %2787 = vrot.lane.b32.xlu1 %v8957_v38, %s7989_s1 }
 0x563   : > { %3359 = vrot.lane.b32.xlu0 %v9039_v23, %s7990_s9 }
 0x564   : > { %v2973_v27 = vpop.permute.xlu1 %2972  ;;  %v9376_v6 = vpop.permute.xlu0 %3506 }
 0x566   : > { %6685 = vmatmul.mubr.msk.bf16.gmra.mrb[40].mxu1 %vm1841_vm3, %v9238_v50  ;;  %2789 = vrot.lane.b32.xlu1 %v8971_v21, %s7989_s1 }
 0x567   : > { %3361 = vrot.lane.b32.xlu0 %v9037_v56, %s7990_s9  ;;  %6765 = vmatpush3.bf16.xpose.msra.mxu1 %v3005_v33 }
 0x568   : > { %7302 = vmatprep.subr.msk.bf16.mxu1 %vm1841_vm3, %v2965_v63  ;;  %v9386_v42 = vpop.permute.xlu1 %3496  ;;  %v9388_v34 = vpop.permute.xlu0 %2938  ;;  %6686 = vmatprep.mubr.msk.bf16.mxu1 %vm1841_vm3, %v2379_v20 }
 0x569   : > { %v3553_v16 = vsel %vm1841_vm3, %v9386_v42, 0  ;;  %v9582_v42 = vld [vmem:[%s8274_s19] sm:$0xff] }
 0x56a   : > { %2791 = vrot.lane.b32.xlu1 %v8969_v8, %s7989_s1 }
 0x56b   : > { %3363 = vrot.lane.b32.xlu0 %v9061_v59, %s7990_s9 }
 0x56c   : > { %v9395_v3 = vpop.permute.xlu1 %2928  ;;  %v9397_v50 = vpop.permute.xlu0 %3524 }
 0x56e   : > { %6687 = vmatmul.mubr.msk.bf16.gmra.mrb[44].mxu1 %vm1841_vm3, %v2379_v20  ;;  %2793 = vrot.lane.b32.xlu1 %v8983_v46, %s7989_s1 }
 0x56f   : > { %3365 = vrot.lane.b32.xlu0 %v9057_v57, %s7990_s9  ;;  %6767 = vmatpush3.bf16.xpose.msra.mxu1 %v3008_v43 }
 0x570   : > { %7303 = vmatprep.subr.msk.bf16.mxu1 %vm1841_vm3, %v9267_v62  ;;  %v9408_v44 = vpop.permute.xlu1 %3514  ;;  %v9410_v13 = vpop.permute.xlu0 %3510  ;;  %6688 = vmatprep.mubr.msk.bf16.mxu1 %vm1841_vm3, %v9259_v47 }
 0x572   : > { %2795 = vrot.lane.b32.xlu1 %v8981_v36, %s7989_s1 }
 0x573   : > { %3905 = vrot.lane.b32.xlu0 %v8995_v28, %s7991_s10 }
 0x574   : > { %v9418_v14 = vpop.permute.xlu1 %3500  ;;  %v9420_v39 = vpop.permute.xlu0 %3480 }
 0x576   : > { %6689 = vmatmul.mubr.msk.bf16.gmra.mrb[48].mxu1 %vm1841_vm3, %v9259_v47  ;;  %3335 = vrot.lane.b32.xlu1 %v8949_v49, %s7990_s9 }
 0x577   : > { %3907 = vrot.lane.b32.xlu0 %v8993_v60, %s7991_s10  ;;  %6769 = vmatpush3.bf16.xpose.msra.mxu1 %v3011_v45  ;;  %v3014_v60 = vsel %vm1841_vm3, %v9273_v40, 0 }
 0x578   : > { %7304 = vmatprep.subr.msk.bf16.mxu1 %vm1841_vm3, %v2969_v22  ;;  %v9430_v0 = vpop.permute.xlu1 %2932  ;;  %v9432_v28 = vpop.permute.xlu0 %3484  ;;  %6690 = vmatprep.mubr.msk.bf16.mxu1 %vm1841_vm3, %v9334_v48 }
 0x57a   : > { %3337 = vrot.lane.b32.xlu1 %v8947_v25, %s7990_s9 }
 0x57b   : > { %3909 = vrot.lane.b32.xlu0 %v9017_v4, %s7991_s10 }
 0x57c   : > { %v9440_v47 = vpop.permute.xlu1 %3518  ;;  %v2236_v53 = vpop.permute.xlu0 %2235 }
 0x57d   : > { %6600 = vmatprep.subr.bf16.mxu0 %v2236_v53 }
 0x57e   : > { %6691 = vmatmul.mubr.msk.bf16.gmra.mrb[52].mxu1 %vm1841_vm3, %v9334_v48  ;;  %3339 = vrot.lane.b32.xlu1 %v8959_v15, %s7990_s9 }
 0x57f   : > { %3911 = vrot.lane.b32.xlu0 %v9015_v12, %s7991_s10  ;;  %6771 = vmatpush3.bf16.xpose.msra.mxu1 %v3014_v60  ;;  %v3017_v12 = vsel %vm1841_vm3, %v9353_v35, 0 }
 0x580   : > { %7305 = vmatprep.subr.msk.bf16.mxu1 %vm1841_vm3, %v9288_v2  ;;  %v9452_v4 = vpop.permute.xlu1 %3504  ;;  %v2238_v62 = vpop.permute.xlu0 %2237  ;;  %6692 = vmatprep.mubr.msk.bf16.mxu1 %vm1841_vm3, %v9282_v9 }
 0x582   : > { %3341 = vrot.lane.b32.xlu1 %v8957_v38, %s7990_s9 }
 0x583   : > { %3913 = vrot.lane.b32.xlu0 %v9039_v23, %s7991_s10 }
 0x584   : > { %v9460_v32 = vpop.permute.xlu1 %2936  ;;  %v2222_v40 = vpop.permute.xlu0 %2221 }
 0x586   : > { %6693 = vmatmul.mubr.msk.bf16.gmra.mrb[56].mxu1 %vm1841_vm3, %v9282_v9  ;;  %3343 = vrot.lane.b32.xlu1 %v8971_v21, %s7990_s9 }
 0x587   : > { %3915 = vrot.lane.b32.xlu0 %v9037_v56, %s7991_s10  ;;  %6773 = vmatpush3.bf16.xpose.msra.mxu1 %v3017_v12  ;;  %v3020_v56 = vsel %vm1841_vm3, %v9297_v5, 0 }
 0x588   : > { %7306 = vmatprep.subr.msk.bf16.mxu1 %vm1841_vm3, %v2973_v27  ;;  %v9471_v19 = vpop.permute.xlu1 %3522  ;;  %v2224_v23 = vpop.permute.xlu0 %2223  ;;  %6694 = vmatprep.mubr.msk.bf16.mxu1 %vm1841_vm3, %v9366_v17 }
 0x58a   : > { %3345 = vrot.lane.b32.xlu1 %v8969_v8, %s7990_s9 }
 0x58b   : > { %3917 = vrot.lane.b32.xlu0 %v9061_v59, %s7991_s10 }
 0x58c   : > { %v9479_v61 = vpop.permute.xlu1 %3508  ;;  %v9481_v9 = vpop.permute.xlu0 %3490 }
 0x58e   : > { %6695 = vmatmul.mubr.msk.bf16.gmra.mrb[60].mxu1 %vm1841_vm3, %v9366_v17  ;;  %3347 = vrot.lane.b32.xlu1 %v8983_v46, %s7990_s9 }
 0x58f   : > { %3919 = vrot.lane.b32.xlu0 %v9057_v57, %s7991_s10  ;;  %6775 = vmatpush3.bf16.xpose.msra.mxu1 %v3020_v56 }
 0x590   : > { %7307 = vmatprep.subr.msk.bf16.mxu1 %vm1841_vm3, %v9312_v51  ;;  %v9493_v59 = vpop.permute.xlu1 %2940  ;;  %6776 = vmatprep.mubr.msk.bf16.mxu1 %vm1841_vm3, %v9303_v24  ;;  %v2244_v11 = vpop.permute.xlu0 %2243 }
 0x592   : > { %3349 = vrot.lane.b32.xlu1 %v8981_v36, %s7990_s9 }
 0x594   : > { %v9499_v2 = vpop.permute.xlu1 %3526  ;;  %v2246_v30 = vpop.permute.xlu0 %2245 }
 0x596   : > { %6777 = vmatmul.mubr.msk.bf16.vlgmr.msra.gmra.mrb[64].mxu1 %vm1841_vm3, %v9303_v24  ;;  %3889 = vrot.lane.b32.xlu1 %v8949_v49, %s7991_s10  ;;  %v3556_v49 = vsel %vm1841_vm3, %v9318_v29, 0 }
 0x597   : > { %6778 = vmatprep.mubr.msk.bf16.mxu1 %vm1841_vm3, %v9395_v3  ;;  %6857 = vmatpush3.bf16.xpose.msra.mxu1 %v3553_v16 }
 0x598   : > { %7308 = vmatprep.subr.msk.bf16.mxu1 %vm1841_vm3, %v9408_v44  ;;  %v9511_v57 = vpop.permute.xlu1 %3482  ;;  %v2230_v5 = vpop.permute.xlu0 %2229 }
 0x59a   : > { %3891 = vrot.lane.b32.xlu1 %v8947_v25, %s7991_s10 }
 0x59c   : > { %v9515_v31 = vpop.permute.xlu1 %3486  ;;  %v9517_v10 = vpop.permute.xlu0 %2231 }
 0x59e   : > { %6779 = vmatmul.mubr.msk.bf16.gmra.mrb[68].mxu1 %vm1841_vm3, %v9395_v3  ;;  %3893 = vrot.lane.b32.xlu1 %v8959_v15, %s7991_s10  ;;  %v3559_v15 = vsel %vm1841_vm3, %v9418_v14, 0  ;;  %v9585_v14 = vld [vmem:[%s8274_s19 + $0x8] sm:$0xff] }
 0x59f   : > { %6780 = vmatprep.mubr.msk.bf16.mxu1 %vm1841_vm3, %v9328_v58  ;;  %6859 = vmatpush3.bf16.xpose.msra.mxu1 %v3556_v49  ;;  %v1770_v60 = vunpack.c.0.s8 %v9585_v14 }
 0x5a0   : > { %7309 = vmatprep.subr.msk.bf16.mxu1 %vm1841_vm3, %v9336_v26  ;;  %v2220_v25 = vpop.permute.xlu1 %2219  ;;  %v9529_v24 = vpop.permute.xlu0 %3494 }
 0x5a1   : > { %6601 = vmatpush3.bf16.msra.mxu0 %v2220_v25  ;;  %v9606_v49 = vcvt.s32.f32 %v1770_v60  ;;  %v1776_v60 = vunpack.c.3.s8 %v9585_v14 }
 0x5a2   : > { %3895 = vrot.lane.b32.xlu1 %v8957_v38, %s7991_s10  ;;  %6602 = vmatprep.subr.bf16.mxu0 %v2238_v62 }
 0x5a4   : > { %v9533_v20 = vpop.permute.xlu1 %3488  ;;  %v9535_v51 = vpop.permute.xlu0 %2797 }
 0x5a5   : > { %6603 = vmatpush3.bf16.msra.mxu0 %v2222_v40  ;;  %v1771_v40 = vunpack.c.1.s8 %v9582_v42 }
 0x5a6   : > { %6781 = vmatmul.mubr.msk.bf16.gmra.mrb[72].mxu1 %vm1841_vm3, %v9328_v58  ;;  %3897 = vrot.lane.b32.xlu1 %v8971_v21, %s7991_s10  ;;  %v3562_v21 = vsel %vm1841_vm3, %v9346_v18, 0 }
 0x5a7   : > { %6782 = vmatprep.mubr.msk.bf16.mxu1 %vm1841_vm3, %v9430_v0  ;;  %6861 = vmatpush3.bf16.xpose.msra.mxu1 %v3559_v15 }
 0x5a8   : > { %7310 = vmatprep.subr.msk.bf16.mxu1 %vm1841_vm3, %v9440_v47  ;;  %v2240_v38 = vpop.permute.xlu1 %2239  ;;  %v9547_v63 = vpop.permute.xlu0 %2799  ;;  %v1769_v47 = vunpack.c.0.s8 %v9582_v42 }
 0x5a9   : > { %6604 = vmatprep.subr.bf16.mxu0 %v2240_v38 }
 0x5aa   : > { %3899 = vrot.lane.b32.xlu1 %v8969_v8, %s7991_s10  ;;  %6605 = vmatpush3.bf16.msra.mxu0 %v2224_v23  ;;  %v1772_v23 = vunpack.c.1.s8 %v9585_v14  ;;  %v9604_v16 = vcvt.s32.f32 %v1769_v47 }
 0x5ac   : > { %v2242_v29 = vpop.permute.xlu1 %2241  ;;  %v9551_v7 = vpop.permute.xlu0 %2801 }
 0x5ad   : > { %6606 = vmatprep.subr.bf16.mxu0 %v2242_v29 }
 0x5ae   : > { %6783 = vmatmul.mubr.msk.bf16.gmra.mrb[76].mxu1 %vm1841_vm3, %v9430_v0  ;;  %3901 = vrot.lane.b32.xlu1 %v8983_v46, %s7991_s10  ;;  %v3565_v46 = vsel %vm1841_vm3, %v9452_v4, 0  ;;  %v3568_v0 = vsel %vm1841_vm3, %v9376_v6, 0 }
 0x5af   : > { %6784 = vmatprep.mubr.msk.bf16.mxu1 %vm1841_vm3, %v9355_v37  ;;  %6863 = vmatpush3.bf16.xpose.msra.mxu1 %v3562_v21 }
 0x5b0   : > { %7311 = vmatprep.subr.msk.bf16.mxu1 %vm1841_vm3, %v9368_v55  ;;  %v2226_v8 = vpop.permute.xlu1 %2225  ;;  %v9563_v54 = vpop.permute.xlu0 %2803 }
 0x5b1   : > { %6607 = vmatpush3.bf16.msra.mxu0 %v2226_v8  ;;  %v9612_v8 = vcvt.s32.f32 %v1772_v23 }
 0x5b2   : > { %3903 = vrot.lane.b32.xlu1 %v8981_v36, %s7991_s10  ;;  %6608 = vmatprep.subr.bf16.mxu0 %v2244_v11 }
 0x5b4   : > { %v2228_v58 = vpop.permute.xlu1 %2227  ;;  %v9567_v48 = vpop.permute.xlu0 %2805 }
 0x5b5   : > { %6609 = vmatpush3.bf16.msra.mxu0 %v2228_v58 }
 0x5b6   : > { %v1948_v26 = vpop.f32.mrb[0].mxu1  ;;  %6785 = vmatmul.mubr.msk.bf16.gmra.mrb[80].mxu1 %vm1841_vm3, %v9355_v37  ;;  %6610 = vmatprep.subr.bf16.mxu0 %v2246_v30 }
 0x5b7   : > { %v6223_v41 = vclamps-f32 %v1948_v26, 5.0  ;;  %v1950_v22 = vpop.f32.mrb[1].mxu1  ;;  %6786 = vmatprep.mubr.msk.bf16.mxu1 %vm1841_vm3, %v9460_v32  ;;  %6865 = vmatpush3.bf16.xpose.msra.mxu1 %v3565_v46  ;;  %v3571_v46 = vsel %vm1841_vm3, %v9479_v61, 0 }
 0x5b8   : > { %v6224_v36 = vclamps-f32 %v1950_v22, 5.0  ;;  %v1952_v18 = vpop.f32.mrb[2].mxu1  ;;  %7312 = vmatprep.subr.msk.bf16.mxu1 %vm1841_vm3, %v9471_v19  ;;  %v9577_v35 = vpop.permute.xlu1 %3492  ;;  %v1773_v22 = vunpack.c.2.s8 %v9582_v42 }
 0x5b9   : > { %v2091_v1 = vmul.f32 1.442695, %v6223_v41  ;;  %v6225_v17 = vclamps-f32 %v1952_v18, 5.0  ;;  %v1954_v55 = vpop.f32.mrb[3].mxu1  ;;  %v9579_v37 = vpop.permute.xlu0 %2807  ;;  %6611 = vmatpush3.bf16.msra.mxu0 %v2230_v5 }
 0x5ba   : > { %v2093_v27 = vmul.f32 1.442695, %v6224_v36  ;;  %v6226_v33 = vclamps-f32 %v1954_v55, 5.0 }
 0x5bb   : > { %7455 = vpow2.f32 %v2091_v1  ;;  %v2095_v3 = vmul.f32 1.442695, %v6225_v17  ;;  %v1774_v17 = vunpack.c.2.s8 %v9585_v14 }
 0x5bc   : > { %7457 = vpow2.f32 %v2093_v27  ;;  %v2097_v43 = vmul.f32 1.442695, %v6226_v33  ;;  %v2248_v44 = vpop.permute.xlu1 %2247 }
 0x5bd   : > { %7459 = vpow2.f32 %v2095_v3  ;;  %v9587_v45 = vpop.permute.xlu0 %2809  ;;  %6612 = vmatprep.subr.bf16.mxu0 %v2248_v44  ;;  %v1775_v3 = vunpack.c.3.s8 %v9582_v42  ;;  %v9638_v42 = vld [vmem:[%s8274_s19 + $0x10] sm:$0xff] }
 0x5be   : > { %7461 = vpow2.f32 %v2097_v43  ;;  %6787 = vmatmul.mubr.msk.bf16.gmra.mrb[84].mxu1 %vm1841_vm3, %v9460_v32  ;;  %6613 = vmatpush3.bf16.msra.mxu0 %v9517_v10  ;;  %v1958_v53 = vpop.f32.mrb[4].mxu1 }
 0x5bf   : > { %6788 = vmatprep.mubr.msk.bf16.mxu1 %vm1841_vm3, %v9388_v34  ;;  %6867 = vmatpush3.bf16.xpose.msra.mxu1 %v3568_v0  ;;  %v6227_v4 = vclamps-f32 %v1958_v53, 5.0  ;;  %v1960_v62 = vpop.f32.mrb[5].mxu1 }
 0x5c0   : > { %7313 = vmatprep.subr.msk.bf16.mxu1 %vm1841_vm3, %v9397_v50  ;;  %v2250_v6 = vpop.permute.xlu1 %2249  ;;  %v6228_v12 = vclamps-f32 %v1960_v62, 5.0  ;;  %v1962_v19 = vpop.f32.mrb[6].mxu1  ;;  %v9608_v50 = vcvt.s32.f32 %v1771_v40 }
 0x5c1   : > { %v9601_v32 = vpop.permute.xlu0 %2811  ;;  %6614 = vmatprep.subr.bf16.mxu0 %v2250_v6  ;;  %v2099_v56 = vmul.f32 1.442695, %v6227_v4  ;;  %v6229_v11 = vclamps-f32 %v1962_v19, 5.0  ;;  %v1964_v30 = vpop.f32.mrb[7].mxu1  ;;  %v9635_v19 = vcvt.s32.f32 %v1774_v17  ;;  %v1779_v17 = vunpack.c.1.s8 %v9638_v42 }
 0x5c2   : > { %v2101_v5 = vmul.f32 1.442695, %v6228_v12  ;;  %v6230_v10 = vclamps-f32 %v1964_v30, 5.0  ;;  %v9643_v30 = vld [vmem:[%s8274_s19 + $0x18] sm:$0xff] }
 0x5c3   : > { %7463 = vpow2.f32 %v2099_v56  ;;  %v2103_v25 = vmul.f32 1.442695, %v6229_v11  ;;  %v9640_v11 = vcvt.s32.f32 %v1775_v3  ;;  %v1780_v3 = vunpack.c.1.s8 %v9643_v30 }
 0x5c4   : > { %v2234_v15 = vpop.permute.xlu1 %2233  ;;  %7465 = vpow2.f32 %v2101_v5  ;;  %v2105_v38 = vmul.f32 1.442695, %v6230_v10  ;;  %v9647_v10 = vcvt.s32.f32 %v1776_v60 }
 0x5c5   : > { %v7456_v29 = vpop.eup %7455  ;;  %v9610_v21 = vpop.permute.xlu0 %3351  ;;  %6615 = vmatpush3.bf16.msra.mxu0 %v2234_v15  ;;  %7467 = vpow2.f32 %v2103_v25  ;;  %v3574_v15 = vsel %vm1841_vm3, %v9410_v13, 0 }
 0x5c6   : > { %v7458_v58 = vpop.eup %7457  ;;  %v2155_v26 = vmul.f32 %v7456_v29, %v9604_v16  ;;  %6789 = vmatmul.mubr.msk.bf16.gmra.mrb[88].mxu1 %vm1841_vm3, %v9388_v34  ;;  %6696 = vmatprep.subr.bf16.mxu0 %v9535_v51  ;;  %7469 = vpow2.f32 %v2105_v38  ;;  %v1968_v41 = vpop.f32.mrb[8].mxu1 }
 0x5c7   : > { %v7460_v36 = vpop.eup %7459  ;;  %6790 = vmatprep.mubr.msk.bf16.mxu1 %vm1841_vm3, %v9493_v59  ;;  %6869 = vmatpush3.bf16.xpose.msra.mxu1 %v3571_v46  ;;  %v2156_v18 = vmul.f32 %v7458_v58, %v9606_v49  ;;  %v6231_v1 = vclamps-f32 %v1968_v41, 5.0  ;;  %v1970_v61 = vpop.f32.mrb[9].mxu1  ;;  %v1777_v58 = vunpack.c.0.s8 %v9638_v42 }
 0x5c8   : > { %v7462_v55 = vpop.eup %7461  ;;  %v2157_v34 = vmul.f32 %v7460_v36, %v9608_v50  ;;  %7314 = vmatprep.subr.msk.bf16.mxu1 %vm1841_vm3, %v9499_v2  ;;  %v2782_v51 = vpop.permute.xlu1 %2781  ;;  %v6232_v27 = vclamps-f32 %v1970_v61, 5.0  ;;  %v9633_v2 = vcvt.s32.f32 %v1773_v22  ;;  %v1778_v36 = vunpack.c.0.s8 %v9643_v30 }
 0x5c9   : > { %v1972_v33 = vpop.f32.mrb[10].mxu1  ;;  %v9629_v43 = vpop.permute.xlu0 %3353  ;;  %v2158_v44 = vmul.f32 %v7462_v55, %v9612_v8  ;;  %v2107_v0 = vmul.f32 1.442695, %v6231_v1 }
 0x5ca   : > { %v6233_v47 = vclamps-f32 %v1972_v33, 5.0  ;;  %v1974_v53 = vpop.f32.mrb[11].mxu1  ;;  %v2187_v4 = vpack.c.bf16 %v2157_v34, %v2155_v26  ;;  %v2109_v62 = vmul.f32 1.442695, %v6232_v27 }
 0x5cb   : > { %v6234_v40 = vclamps-f32 %v1974_v53, 5.0  ;;  %v2188_v6 = vpack.c.bf16 %v2158_v44, %v2156_v18  ;;  %7471 = vpow2.f32 %v2107_v0 }
 0x5cc   : > { %v2111_v12 = vmul.f32 1.442695, %v6233_v47  ;;  %v2784_v23 = vpop.permute.xlu1 %2783  ;;  %7473 = vpow2.f32 %v2109_v62  ;;  %v9666_v47 = vcvt.s32.f32 %v1777_v58 }
 0x5cd   : > { %v2113_v56 = vmul.f32 1.442695, %v6234_v40  ;;  %v7464_v14 = vpop.eup %7463  ;;  %2299 = vmatprep.mubr.bf16.mxu0 %v2188_v6  ;;  %v9645_v5 = vpop.permute.xlu0 %3355  ;;  %v9671_v6 = vcvt.s32.f32 %v1779_v17 }
 0x5ce   : > { %7475 = vpow2.f32 %v2111_v12  ;;  %v7466_v25 = vpop.eup %7465  ;;  %2300 = vmatmul.mubr.bf16.vlgmr.msra.gmra.mrb[32].mxu0 %v2187_v4  ;;  %6791 = vmatmul.mubr.msk.bf16.gmra.mrb[92].mxu1 %vm1841_vm3, %v9493_v59  ;;  %v1978_v38 = vpop.f32.mrb[12].mxu1  ;;  %v2159_v29 = vmul.f32 %v7464_v14, %v9633_v2  ;;  %v9668_v4 = vcvt.s32.f32 %v1778_v36  ;;  %v9675_v14 = vcvt.s32.f32 %v1780_v3 }
 0x5cf   : > { %7477 = vpow2.f32 %v2113_v56  ;;  %v7468_v46 = vpop.eup %7467  ;;  %6697 = vmatpush3.bf16.msra.mxu0 %v2782_v51  ;;  %6871 = vmatpush3.bf16.xpose.msra.mxu1 %v3574_v15  ;;  %v6235_v26 = vclamps-f32 %v1978_v38, 5.0  ;;  %v1980_v41 = vpop.f32.mrb[13].mxu1  ;;  %v2160_v22 = vmul.f32 %v7466_v25, %v9635_v19  ;;  %v1781_v15 = vunpack.c.2.s8 %v9638_v42 }
 0x5d0   : > { %v7470_v13 = vpop.eup %7469  ;;  %6698 = vmatprep.subr.bf16.mxu0 %v9547_v63  ;;  %6872 = vmatprep.mubr.msk.bf16.mxu1 %vm1841_vm3, %v9420_v39  ;;  %v2786_v59 = vpop.permute.xlu1 %2785  ;;  %v6236_v18 = vclamps-f32 %v1980_v41, 5.0  ;;  %v2161_v61 = vmul.f32 %v7468_v46, %v9640_v11 }
 0x5d1   : > { %v1982_v1 = vpop.f32.mrb[14].mxu1  ;;  %v9662_v55 = vpop.permute.xlu0 %3357  ;;  %v2115_v34 = vmul.f32 1.442695, %v6235_v26  ;;  %v2162_v33 = vmul.f32 %v7470_v13, %v9647_v10  ;;  %v1782_v26 = vunpack.c.2.s8 %v9643_v30  ;;  %v9692_v3 = vcvt.s32.f32 %v1781_v15 }
 0x5d2   : > { %v6237_v51 = vclamps-f32 %v1982_v1, 5.0  ;;  %v1984_v27 = vpop.f32.mrb[15].mxu1  ;;  %v2117_v63 = vmul.f32 1.442695, %v6236_v18  ;;  %v2189_v0 = vpack.c.bf16 %v2161_v61, %v2159_v29  ;;  %v1783_v18 = vunpack.c.3.s8 %v9638_v42 }
 0x5d3   : > { %v6238_v44 = vclamps-f32 %v1984_v27, 5.0  ;;  %6699 = vmatpush3.bf16.msra.mxu0 %v2784_v23  ;;  %7479 = vpow2.f32 %v2115_v34  ;;  %v2190_v60 = vpack.c.bf16 %v2162_v33, %v2160_v22 }
 0x5d4   : > { %v2119_v53 = vmul.f32 1.442695, %v6237_v51  ;;  %6700 = vmatprep.subr.bf16.mxu0 %v9551_v7  ;;  %v2788_v62 = vpop.permute.xlu1 %2787  ;;  %7481 = vpow2.f32 %v2117_v63  ;;  %v1784_v51 = vunpack.c.3.s8 %v9643_v30  ;;  %v9700_v30 = vcvt.s32.f32 %v1783_v18 }
 0x5d5   : > { %v2121_v40 = vmul.f32 1.442695, %v6238_v44  ;;  %v7472_v12 = vpop.eup %7471  ;;  %v9673_v56 = vpop.permute.xlu0 %3359  ;;  %2307 = vmatprep.mubr.bf16.mxu0 %v2190_v60  ;;  %v9694_v44 = vcvt.s32.f32 %v1782_v26 }
 0x5d6   : > { %7483 = vpow2.f32 %v2119_v53  ;;  %v7474_v23 = vpop.eup %7473  ;;  %6873 = vmatmul.mubr.msk.bf16.vlgmr.msra.gmra.mrb[96].mxu1 %vm1841_vm3, %v9420_v39  ;;  %v1988_v25 = vpop.f32.mrb[16].mxu1  ;;  %2308 = vmatmul.mubr.bf16.gmra.mrb[36].mxu0 %v2189_v0  ;;  %v2163_v7 = vmul.f32 %v7472_v12, %v9666_v47  ;;  %v9697_v0 = vld [vmem:[%s8274_s19 + $0x20] sm:$0xff] }
 0x5d7   : > { %7485 = vpow2.f32 %v2121_v40  ;;  %6701 = vmatpush3.bf16.msra.mxu0 %v2786_v59  ;;  %6874 = vmatprep.mubr.msk.bf16.mxu1 %vm1841_vm3, %v9511_v57  ;;  %v6239_v29 = vclamps-f32 %v1988_v25, 5.0  ;;  %v1990_v58 = vpop.f32.mrb[17].mxu1  ;;  %v2164_v46 = vmul.f32 %v7474_v23, %v9668_v4  ;;  %v9703_v40 = vld [vmem:[%s8274_s19 + $0x28] sm:$0xff]  ;;  %v1785_v15 = vunpack.c.0.s8 %v9697_v0 }
 0x5d8   : > { %v7476_v38 = vpop.eup %7475  ;;  %6702 = vmatprep.subr.bf16.mxu0 %v9563_v54  ;;  %v2790_v39 = vpop.permute.xlu1 %2789  ;;  %v6240_v22 = vclamps-f32 %v1990_v58, 5.0  ;;  %v1786_v26 = vunpack.c.0.s8 %v9703_v40  ;;  %v1787_v18 = vunpack.c.1.s8 %v9697_v0 }
 0x5d9   : > { %v7478_v41 = vpop.eup %7477  ;;  %v1992_v36 = vpop.f32.mrb[18].mxu1  ;;  %v2165_v13 = vmul.f32 %v7476_v38, %v9671_v6  ;;  %v2123_v1 = vmul.f32 1.442695, %v6239_v29 }
 0x5da   : > { %v9688_v59 = vpop.permute.xlu0 %3361  ;;  %v6241_v61 = vclamps-f32 %v1992_v36, 5.0  ;;  %v1994_v17 = vpop.f32.mrb[19].mxu1  ;;  %v2166_v34 = vmul.f32 %v7478_v41, %v9675_v14  ;;  %v2125_v27 = vmul.f32 1.442695, %v6240_v22 }
 0x5db   : > { %v6242_v54 = vclamps-f32 %v1994_v17, 5.0  ;;  %v2191_v33 = vpack.c.bf16 %v2165_v13, %v2163_v7  ;;  %6703 = vmatpush3.bf16.msra.mxu0 %v2788_v62  ;;  %7487 = vpow2.f32 %v2123_v1  ;;  %v9707_v62 = vcvt.s32.f32 %v1784_v51 }
 0x5dc   : > { %v2127_v63 = vmul.f32 1.442695, %v6241_v61  ;;  %v2192_v42 = vpack.c.bf16 %v2166_v34, %v2164_v46  ;;  %6704 = vmatprep.subr.bf16.mxu0 %v9567_v48  ;;  %v2792_v53 = vpop.permute.xlu1 %2791  ;;  %7489 = vpow2.f32 %v2125_v27  ;;  %v1788_v51 = vunpack.c.1.s8 %v9703_v40 }
 0x5dd   : > { %v2129_v60 = vmul.f32 1.442695, %v6242_v54  ;;  %v7480_v12 = vpop.eup %7479 }
 0x5de   : > { %v9705_v23 = vpop.permute.xlu0 %3363  ;;  %7491 = vpow2.f32 %v2127_v63  ;;  %2315 = vmatprep.mubr.bf16.mxu0 %v2192_v42  ;;  %v7482_v25 = vpop.eup %7481  ;;  %6875 = vmatmul.mubr.msk.bf16.gmra.mrb[100].mxu1 %vm1841_vm3, %v9511_v57  ;;  %v2167_v7 = vmul.f32 %v7480_v12, %v9692_v3 }
 0x5df   : > { %7493 = vpow2.f32 %v2129_v60  ;;  %v1998_v48 = vpop.f32.mrb[20].mxu1  ;;  %2316 = vmatmul.mubr.bf16.gmra.mrb[40].mxu0 %v2191_v33  ;;  %6876 = vmatprep.mubr.msk.bf16.mxu1 %vm1841_vm3, %v9432_v28  ;;  %v2168_v46 = vmul.f32 %v7482_v25, %v9694_v44  ;;  %v9726_v60 = vcvt.s32.f32 %v1786_v26 }
 0x5e0   : > { %v7484_v38 = vpop.eup %7483  ;;  %6705 = vmatpush3.bf16.msra.mxu0 %v2790_v39  ;;  %v6243_v29 = vclamps-f32 %v1998_v48, 5.0  ;;  %v2000_v58 = vpop.f32.mrb[21].mxu1  ;;  %v9729_v48 = vcvt.s32.f32 %v1787_v18 }
 0x5e1   : > { %v7486_v41 = vpop.eup %7485  ;;  %6706 = vmatprep.subr.bf16.mxu0 %v9579_v37  ;;  %v2794_v57 = vpop.permute.xlu1 %2793  ;;  %v6244_v22 = vclamps-f32 %v2000_v58, 5.0  ;;  %v2169_v13 = vmul.f32 %v7484_v38, %v9700_v30  ;;  %v9724_v37 = vcvt.s32.f32 %v1785_v15  ;;  %v1789_v58 = vunpack.c.2.s8 %v9697_v0 }
 0x5e2   : > { %v2002_v36 = vpop.f32.mrb[22].mxu1  ;;  %v9720_v39 = vpop.permute.xlu0 %3365  ;;  %v2131_v1 = vmul.f32 1.442695, %v6243_v29  ;;  %v2170_v34 = vmul.f32 %v7486_v41, %v9707_v62 }
 0x5e3   : > { %v6245_v61 = vclamps-f32 %v2002_v36, 5.0  ;;  %v2004_v17 = vpop.f32.mrb[23].mxu1  ;;  %v2133_v27 = vmul.f32 1.442695, %v6244_v22  ;;  %v2193_v33 = vpack.c.bf16 %v2169_v13, %v2167_v7  ;;  %v9733_v7 = vcvt.s32.f32 %v1788_v51 }
 0x5e4   : > { %v6246_v54 = vclamps-f32 %v2004_v17, 5.0  ;;  %6707 = vmatpush3.bf16.msra.mxu0 %v2792_v53  ;;  %7495 = vpow2.f32 %v2131_v1  ;;  %v2194_v42 = vpack.c.bf16 %v2170_v34, %v2168_v46  ;;  %v1790_v36 = vunpack.c.2.s8 %v9703_v40 }
 0x5e5   : > { %v2135_v63 = vmul.f32 1.442695, %v6245_v61  ;;  %6708 = vmatprep.subr.bf16.mxu0 %v9587_v45  ;;  %v2796_v12 = vpop.permute.xlu1 %2795  ;;  %7497 = vpow2.f32 %v2133_v27  ;;  %v7488_v38 = vpop.eup %7487 }
 0x5e6   : > { %v2137_v25 = vmul.f32 1.442695, %v6246_v54  ;;  %v9731_v29 = vpop.permute.xlu0 %3905  ;;  %2323 = vmatprep.mubr.bf16.mxu0 %v2194_v42  ;;  %v7490_v53 = vpop.eup %7489  ;;  %6877 = vmatmul.mubr.msk.bf16.gmra.mrb[104].mxu1 %vm1841_vm3, %v9432_v28  ;;  %v2171_v15 = vmul.f32 %v7488_v38, %v9724_v37  ;;  %v1792_v54 = vunpack.c.3.s8 %v9703_v40 }
 0x5e7   : > { %7499 = vpow2.f32 %v2135_v63  ;;  %7258 = vmatprep.subr.bf16.mxu1 %v9731_v29  ;;  %v2008_v45 = vpop.f32.mrb[24].mxu1  ;;  %6878 = vmatprep.mubr.msk.bf16.mxu1 %vm1841_vm3, %v9515_v31  ;;  %v2172_v22 = vmul.f32 %v7490_v53, %v9726_v60  ;;  %v9753_v53 = vcvt.s32.f32 %v1790_v36 }
 0x5e8   : > { %7501 = vpow2.f32 %v2137_v25  ;;  %v7492_v46 = vpop.eup %7491  ;;  %6709 = vmatpush3.bf16.msra.mxu0 %v2794_v57  ;;  %v6247_v26 = vclamps-f32 %v2008_v45, 5.0  ;;  %v2010_v41 = vpop.f32.mrb[25].mxu1  ;;  %v1791_v57 = vunpack.c.3.s8 %v9697_v0  ;;  %v9751_v25 = vcvt.s32.f32 %v1789_v58  ;;  %v9756_v0 = vld [vmem:[%s8274_s19 + $0x30] sm:$0xff] }
 0x5e9   : > { %v7494_v28 = vpop.eup %7493  ;;  %6710 = vmatprep.subr.bf16.mxu0 %v9601_v32  ;;  %v9745_v13 = vpop.permute.xlu1 %3335  ;;  %2324 = vmatmul.mubr.bf16.gmra.mrb[44].mxu0 %v2193_v33  ;;  %v6248_v18 = vclamps-f32 %v2010_v41, 5.0  ;;  %v2173_v61 = vmul.f32 %v7492_v46, %v9729_v48  ;;  %11133 = vst [vmem:[#allocation9_spill] sm:$0xff] %v9753_v53 }
 0x5ea   : > { %v2012_v1 = vpop.f32.mrb[26].mxu1  ;;  %v2139_v17 = vmul.f32 1.442695, %v6247_v26  ;;  %v2174_v27 = vmul.f32 %v7494_v28, %v9733_v7  ;;  %v9761_v46 = vcvt.s32.f32 %v1791_v57  ;;  %v9764_v26 = vld [vmem:[%s8274_s19 + $0x38] sm:$0xff]  ;;  %s7992_s19 = smov 9  }
 0x5eb   : > { %v6249_v34 = vclamps-f32 %v2012_v1, 5.0  ;;  %v2014_v51 = vpop.f32.mrb[27].mxu1  ;;  %v2141_v63 = vmul.f32 1.442695, %v6248_v18  ;;  %v2195_v42 = vpack.c.bf16 %v2173_v61, %v2171_v15  ;;  %v1794_v61 = vunpack.c.0.s8 %v9764_v26 }
 0x5ec   : > { %v6250_v32 = vclamps-f32 %v2014_v51, 5.0  ;;  %6711 = vmatpush3.bf16.msra.mxu0 %v2796_v12  ;;  %7503 = vpow2.f32 %v2139_v17  ;;  %v2196_v38 = vpack.c.bf16 %v2174_v27, %v2172_v22  ;;  %v9766_v12 = vcvt.s32.f32 %v1792_v54 }
 0x5ed   : > { %v2143_v33 = vmul.f32 1.442695, %v6249_v34  ;;  %6792 = vmatprep.subr.bf16.mxu0 %v9610_v21  ;;  %v9759_v45 = vpop.permute.xlu1 %3337  ;;  %7505 = vpow2.f32 %v2141_v63  ;;  %v1793_v22 = vunpack.c.0.s8 %v9756_v0  ;;  %v1795_v27 = vunpack.c.1.s8 %v9756_v0 }
 0x5ee   : > { %v2145_v40 = vmul.f32 1.442695, %v6250_v32  ;;  %v7496_v15 = vpop.eup %7495  ;;  %2331 = vmatprep.mubr.bf16.mxu0 %v2196_v38  ;;  %6879 = vmatmul.mubr.msk.bf16.gmra.mrb[108].mxu1 %vm1841_vm3, %v9515_v31  ;;  %v2018_v41 = vpop.f32.mrb[28].mxu1  ;;  %v1796_v38 = vunpack.c.1.s8 %v9764_v26  ;;  %v9784_v52 = vcvt.s32.f32 %v1794_v61 }
 0x5ef   : > { %7507 = vpow2.f32 %v2143_v33  ;;  %v7498_v58 = vpop.eup %7497  ;;  %v2175_v21 = vmul.f32 %v7496_v15, %v9751_v25  ;;  %6880 = vmatprep.mubr.msk.bf16.mxu1 %vm1841_vm3, %v9533_v20  ;;  %v6251_v28 = vclamps-f32 %v2018_v41, 5.0  ;;  %v2020_v18 = vpop.f32.mrb[29].mxu1  ;;  %v9782_v41 = vcvt.s32.f32 %v1793_v22 }
 0x5f0   : > { %7509 = vpow2.f32 %v2145_v40  ;;  %v2176_v1 = vmul.f32 %v7498_v58, %v9753_v53  ;;  %v6252_v31 = vclamps-f32 %v2020_v18, 5.0  ;;  %v2022_v34 = vpop.f32.mrb[30].mxu1  ;;  %v1797_v22 = vunpack.c.2.s8 %v9756_v0 }
 0x5f1   : > { %v7500_v36 = vpop.eup %7499  ;;  %v9776_v17 = vpop.permute.xlu1 %3339  ;;  %2332 = vmatmul.mubr.bf16.gmra.mrb[48].mxu0 %v2195_v42  ;;  %v2147_v54 = vmul.f32 1.442695, %v6251_v28  ;;  %v6253_v63 = vclamps-f32 %v2022_v34, 5.0  ;;  %v9788_v34 = vcvt.s32.f32 %v1795_v27 }
 0x5f2   : > { %v7502_v57 = vpop.eup %7501  ;;  %v2177_v51 = vmul.f32 %v7500_v36, %v9761_v46  ;;  %v2024_v32 = vpop.f32.mrb[31].mxu1  ;;  %v2149_v40 = vmul.f32 1.442695, %v6252_v31 }
 0x5f3   : > { %v2178_v33 = vmul.f32 %v7502_v57, %v9766_v12  ;;  %v6254_v15 = vclamps-f32 %v2024_v32, 5.0  ;;  %7511 = vpow2.f32 %v2147_v54  ;;  %v2151_v42 = vmul.f32 1.442695, %v6253_v63 }
 0x5f4   : > { %v2197_v58 = vpack.c.bf16 %v2177_v51, %v2175_v21  ;;  %7513 = vpow2.f32 %v2149_v40  ;;  %v9790_v57 = vcvt.s32.f32 %v1796_v38  ;;  %v1798_v51 = vunpack.c.2.s8 %v9764_v26 }
 0x5f5   : > { %v2198_v18 = vpack.c.bf16 %v2178_v33, %v2176_v1  ;;  %v9786_v36 = vpop.permute.xlu1 %3341  ;;  %v2153_v28 = vmul.f32 1.442695, %v6254_v15  ;;  %7515 = vpow2.f32 %v2151_v42  ;;  %v1800_v32 = vunpack.c.3.s8 %v9764_v26 }
 0x5f6   : > { %v7504_v53 = vpop.eup %7503  ;;  %6881 = vmatmul.mubr.msk.bf16.gmra.mrb[112].mxu1 %vm1841_vm3, %v9533_v20  ;;  %v1799_v20 = vunpack.c.3.s8 %v9756_v0  ;;  %v9806_v38 = vcvt.s32.f32 %v1797_v22  ;;  %v9808_v15 = vcvt.s32.f32 %v1798_v51 }
 0x5f7   : > { %2339 = vmatprep.mubr.bf16.mxu0 %v2198_v18  ;;  %v7506_v31 = vpop.eup %7505  ;;  %7517 = vpow2.f32 %v2153_v28  ;;  %v2179_v21 = vmul.f32 %v7504_v53, %v9782_v41  ;;  %6882 = vmatprep.mubr.msk.bf16.mxu1 %vm1841_vm3, %v9481_v9 }
 0x5f8   : > { %v2180_v61 = vmul.f32 %v7506_v31, %v9784_v52  ;;  %11134 = vst [vmem:[#allocation10_spill] sm:$0xff] %v9806_v38  ;;  %11135 = vst [vmem:[#allocation11_spill] sm:$0xff] %v9808_v15  ;;  %v9812_v18 = vcvt.s32.f32 %v1799_v20  ;;  %v9816_v31 = vcvt.s32.f32 %v1800_v32 }
 0x5f9   : > { %v7508_v1 = vpop.eup %7507  ;;  %v9800_v54 = vpop.permute.xlu1 %3343  ;;  %2340 = vmatmul.mubr.bf16.gmra.mrb[52].mxu0 %v2197_v58 }
 0x5fa   : > { %v7510_v27 = vpop.eup %7509  ;;  %v2181_v63 = vmul.f32 %v7508_v1, %v9788_v34  ;;  %11136 = vst [vmem:[#allocation12_spill] sm:$0xff] %v9812_v18  ;;  %v9814_v58 = vpop.permute.xlu0 %3907  ;;  %11138 = vst [vmem:[#allocation14_spill] sm:$0xff] %v9816_v31 }
 0x5fb   : > { %v2182_v53 = vmul.f32 %v7510_v27, %v9790_v57  ;;  %11137 = vst [vmem:[#allocation13_spill] sm:$0xff] %v9814_v58 }
 0x5fc   : > { %v2199_v33 = vpack.c.bf16 %v2181_v63, %v2179_v21 }
 0x5fd   : > { %v2200_v40 = vpack.c.bf16 %v2182_v53, %v2180_v61  ;;  %v9810_v42 = vpop.permute.xlu1 %3345  ;;  %v7512_v28 = vpop.eup %7511 }
 0x5fe   : > { %v7514_v0 = vpop.eup %7513  ;;  %6883 = vmatmul.mubr.msk.bf16.gmra.mrb[116].mxu1 %vm1841_vm3, %v9481_v9  ;;  %v2183_v26 = vmul.f32 %v7512_v28, %v9806_v38  ;;  %v9828_v20 = vpop.permute.xlu0 %3909 }
 0x5ff   : > { %2347 = vmatprep.mubr.bf16.mxu0 %v2200_v40  ;;  %v7516_v21 = vpop.eup %7515  ;;  %6884 = vmatprep.mubr.msk.bf16.mxu1 %vm1841_vm3, %v9577_v35  ;;  %v2184_v22 = vmul.f32 %v7514_v0, %v9808_v15  ;;  %11139 = vst [vmem:[#allocation15_spill] sm:$0xff] %v9828_v20 }
 0x600   : > { %v2185_v51 = vmul.f32 %v7516_v21, %v9812_v18 }
 0x601   : > { %v7518_v1 = vpop.eup %7517  ;;  %v9824_v61 = vpop.permute.xlu1 %3347  ;;  %2348 = vmatmul.mubr.bf16.gmra.mrb[56].mxu0 %v2199_v33 }
 0x602   : > { %v2186_v27 = vmul.f32 %v7518_v1, %v9816_v31  ;;  %v2201_v63 = vpack.c.bf16 %v2185_v51, %v2183_v26  ;;  %v9838_v33 = vpop.permute.xlu0 %3911 }
 0x603   : > { %11141 = vst [vmem:[#allocation17_spill] sm:$0xff] %v9838_v33 }
 0x604   : > { %v2202_v9 = vpack.c.bf16 %v2186_v27, %v2184_v22 }
 0x605   : > { %v9830_v53 = vpop.permute.xlu1 %3349 }
 0x606   : > { %2355 = vmatprep.mubr.bf16.mxu0 %v2202_v9  ;;  %6885 = vmatmul.mubr.msk.bf16.gmra.mrb[120].mxu1 %vm1841_vm3, %v9577_v35  ;;  %v9848_v35 = vpop.permute.xlu0 %3913 }
 0x607   : > { %6886 = vmatprep.mubr.msk.bf16.mxu1 %vm1841_vm3, %v9529_v24  ;;  %11143 = vst [vmem:[#allocation19_spill] sm:$0xff] %v9848_v35 }
 0x609   : > { %v9836_v32 = vpop.permute.xlu1 %3889  ;;  %2356 = vmatmul.mubr.bf16.gmra.mrb[60].mxu0 %v2201_v63 }
 0x60a   : > { %11140 = vst [vmem:[#allocation16_spill] sm:$0xff] %v9836_v32  ;;  %7266 = vmatpush3.bf16.msra.mxu1 %v9836_v32  ;;  %v9856_v26 = vpop.permute.xlu0 %3915 }
 0x60b   : > { %7259 = vmatprep.subr.bf16.mxu1 %v9814_v58  ;;  %11146 = vst [vmem:[#allocation22_spill] sm:$0xff] %v9856_v26 }
 0x60d   : > { %v9842_v40 = vpop.permute.xlu1 %3891 }
 0x60e   : > { %11142 = vst [vmem:[#allocation18_spill] sm:$0xff] %v9842_v40  ;;  %7267 = vmatpush3.bf16.msra.mxu1 %v9842_v40 }
 0x60f   : > { %6887 = vmatmul.mubr.msk.bf16.gmra.mrb[124].mxu1 %vm1841_vm3, %v9529_v24  ;;  %7260 = vmatprep.subr.bf16.mxu1 %v9828_v20  ;;  %v9864_v24 = vpop.permute.xlu0 %3917 }
 0x610   : > { %11148 = vst [vmem:[#allocation24_spill] sm:$0xff] %v9864_v24 }
 0x611   : > { %v9850_v28 = vpop.permute.xlu1 %3893 }
 0x612   : > { %11144 = vst [vmem:[#allocation20_spill] sm:$0xff] %v9850_v28  ;;  %7268 = vmatpush3.bf16.msra.mxu1 %v9850_v28 }
 0x613   : > { %7261 = vmatprep.subr.bf16.mxu1 %v9838_v33  ;;  %v9872_v51 = vpop.permute.xlu0 %3919 }
 0x614   : > { %11151 = vst [vmem:[#allocation27_spill] sm:$0xff] %v9872_v51 }
 0x615   : > { %v9854_v0 = vpop.permute.xlu1 %3895 }
 0x616   : > { %11145 = vst [vmem:[#allocation21_spill] sm:$0xff] %v9854_v0  ;;  %7269 = vmatpush3.bf16.msra.mxu1 %v9854_v0 }
 0x617   : > { %7262 = vmatprep.subr.bf16.mxu1 %v9848_v35 }
 0x619   : > { %v9860_v21 = vpop.permute.xlu1 %3897 }
 0x61a   : > { %11147 = vst [vmem:[#allocation23_spill] sm:$0xff] %v9860_v21  ;;  %7270 = vmatpush3.bf16.msra.mxu1 %v9860_v21 }
 0x61b   : > { %7263 = vmatprep.subr.bf16.mxu1 %v9856_v26 }
 0x61d   : > { %v9866_v22 = vpop.permute.xlu1 %3899 }
 0x61e   : > { %11149 = vst [vmem:[#allocation25_spill] sm:$0xff] %v9866_v22  ;;  %7271 = vmatpush3.bf16.msra.mxu1 %v9866_v22 }
 0x61f   : > { %7264 = vmatprep.subr.bf16.mxu1 %v9864_v24 }
 0x621   : > { %v9870_v1 = vpop.permute.xlu1 %3901 }
 0x622   : > { %11150 = vst [vmem:[#allocation26_spill] sm:$0xff] %v9870_v1  ;;  %7272 = vmatpush3.bf16.msra.mxu1 %v9870_v1 }
 0x623   : > { %7265 = vmatprep.subr.bf16.mxu1 %v9872_v51 }
 0x625   : > { %v9876_v27 = vpop.permute.xlu1 %3903 }
 0x626   : > { %11152 = vst [vmem:[#allocation28_spill] sm:$0xff] %v9876_v27  ;;  %7273 = vmatpush3.bf16.msra.mxu1 %v9876_v27 }
 0x629   : > { %v2526_v63 = vpop.f32.mrb[32].mxu1 }
 0x62a   : > { %v6263_v9 = vclamps-f32 %v2526_v63, 5.0  ;;  %v2528_v26 = vpop.f32.mrb[33].mxu1 }
 0x62b   : > { %v6264_v21 = vclamps-f32 %v2528_v26, 5.0  ;;  %v2530_v35 = vpop.f32.mrb[34].mxu1 }
 0x62c   : > { %v2669_v22 = vmul.f32 1.442695, %v6263_v9  ;;  %v6265_v0 = vclamps-f32 %v2530_v35, 5.0  ;;  %v2532_v24 = vpop.f32.mrb[35].mxu1 }
 0x62d   : > { %v2671_v33 = vmul.f32 1.442695, %v6264_v21  ;;  %v6266_v28 = vclamps-f32 %v2532_v24, 5.0 }
 0x62e   : > { %7519 = vpow2.f32 %v2669_v22  ;;  %v2673_v20 = vmul.f32 1.442695, %v6265_v0 }
 0x62f   : > { %7521 = vpow2.f32 %v2671_v33  ;;  %v2675_v1 = vmul.f32 1.442695, %v6266_v28 }
 0x630   : > { %7523 = vpow2.f32 %v2673_v20 }
 0x631   : > { %7525 = vpow2.f32 %v2675_v1  ;;  %v2536_v51 = vpop.f32.mrb[36].mxu1 }
 0x632   : > { %v6267_v40 = vclamps-f32 %v2536_v51, 5.0  ;;  %v2538_v58 = vpop.f32.mrb[37].mxu1 }
 0x633   : > { %v6268_v27 = vclamps-f32 %v2538_v58, 5.0  ;;  %v2540_v32 = vpop.f32.mrb[38].mxu1 }
 0x634   : > { %v2677_v63 = vmul.f32 1.442695, %v6267_v40  ;;  %v6269_v31 = vclamps-f32 %v2540_v32, 5.0  ;;  %v2542_v26 = vpop.f32.mrb[39].mxu1 }
 0x635   : > { %v2679_v15 = vmul.f32 1.442695, %v6268_v27  ;;  %v6270_v9 = vclamps-f32 %v2542_v26, 5.0 }
 0x636   : > { %7527 = vpow2.f32 %v2677_v63  ;;  %v2681_v35 = vmul.f32 1.442695, %v6269_v31 }
 0x637   : > { %7529 = vpow2.f32 %v2679_v15  ;;  %v2683_v21 = vmul.f32 1.442695, %v6270_v9 }
 0x638   : > { %v7520_v24 = vpop.eup %7519  ;;  %7531 = vpow2.f32 %v2681_v35 }
 0x639   : > { %v7522_v33 = vpop.eup %7521  ;;  %7533 = vpow2.f32 %v2683_v21  ;;  %v2546_v20 = vpop.f32.mrb[40].mxu1  ;;  %v2733_v58 = vmul.f32 %v7520_v24, %v9604_v16 }
 0x63a   : > { %v7524_v28 = vpop.eup %7523  ;;  %v6271_v0 = vclamps-f32 %v2546_v20, 5.0  ;;  %v2548_v22 = vpop.f32.mrb[41].mxu1  ;;  %v2734_v15 = vmul.f32 %v7522_v33, %v9606_v49 }
 0x63b   : > { %v7526_v1 = vpop.eup %7525  ;;  %v2735_v32 = vmul.f32 %v7524_v28, %v9608_v50  ;;  %v6272_v40 = vclamps-f32 %v2548_v22, 5.0  ;;  %v2550_v51 = vpop.f32.mrb[42].mxu1 }
 0x63c   : > { %v2685_v27 = vmul.f32 1.442695, %v6271_v0  ;;  %v6273_v63 = vclamps-f32 %v2550_v51, 5.0  ;;  %v2552_v31 = vpop.f32.mrb[43].mxu1  ;;  %v2736_v26 = vmul.f32 %v7526_v1, %v9612_v8 }
 0x63d   : > { %v2687_v9 = vmul.f32 1.442695, %v6272_v40  ;;  %v6274_v35 = vclamps-f32 %v2552_v31, 5.0  ;;  %v2765_v21 = vpack.c.bf16 %v2735_v32, %v2733_v58 }
 0x63e   : > { %7535 = vpow2.f32 %v2685_v27  ;;  %v2689_v20 = vmul.f32 1.442695, %v6273_v63  ;;  %v2766_v18 = vpack.c.bf16 %v2736_v26, %v2734_v15 }
 0x63f   : > { %7537 = vpow2.f32 %v2687_v9  ;;  %v2691_v38 = vmul.f32 1.442695, %v6274_v35 }
 0x640   : > { %v7528_v24 = vpop.eup %7527  ;;  %7539 = vpow2.f32 %v2689_v20  ;;  %2861 = vmatprep.mubr.bf16.mxu0 %v2766_v18 }
 0x641   : > { %v7530_v28 = vpop.eup %7529  ;;  %7541 = vpow2.f32 %v2691_v38  ;;  %v2556_v0 = vpop.f32.mrb[44].mxu1  ;;  %2862 = vmatmul.mubr.bf16.vlgmr.msra.gmra.mrb[64].mxu0 %v2765_v21  ;;  %v2737_v32 = vmul.f32 %v7528_v24, %v9633_v2 }
 0x642   : > { %v7532_v22 = vpop.eup %7531  ;;  %v6275_v51 = vclamps-f32 %v2556_v0, 5.0  ;;  %6793 = vmatpush3.bf16.msra.mxu0 %v9745_v13  ;;  %v2558_v33 = vpop.f32.mrb[45].mxu1  ;;  %v2738_v38 = vmul.f32 %v7530_v28, %v9635_v19 }
 0x643   : > { %v7534_v1 = vpop.eup %7533  ;;  %v6276_v40 = vclamps-f32 %v2558_v33, 5.0  ;;  %6794 = vmatprep.subr.bf16.mxu0 %v9629_v43  ;;  %v2560_v58 = vpop.f32.mrb[46].mxu1  ;;  %v2739_v27 = vmul.f32 %v7532_v22, %v9640_v11 }
 0x644   : > { %v2693_v63 = vmul.f32 1.442695, %v6275_v51  ;;  %v6277_v18 = vclamps-f32 %v2560_v58, 5.0  ;;  %v2562_v31 = vpop.f32.mrb[47].mxu1  ;;  %v2740_v15 = vmul.f32 %v7534_v1, %v9647_v10 }
 0x645   : > { %v2695_v26 = vmul.f32 1.442695, %v6276_v40  ;;  %v6278_v9 = vclamps-f32 %v2562_v31, 5.0  ;;  %v2767_v13 = vpack.c.bf16 %v2739_v27, %v2737_v32 }
 0x646   : > { %7543 = vpow2.f32 %v2693_v63  ;;  %v2697_v35 = vmul.f32 1.442695, %v6277_v18  ;;  %6795 = vmatpush3.bf16.msra.mxu0 %v9759_v45  ;;  %v2768_v43 = vpack.c.bf16 %v2740_v15, %v2738_v38 }
 0x647   : > { %7545 = vpow2.f32 %v2695_v26  ;;  %v2699_v21 = vmul.f32 1.442695, %v6278_v9  ;;  %6796 = vmatprep.subr.bf16.mxu0 %v9645_v5 }
 0x648   : > { %v7536_v20 = vpop.eup %7535  ;;  %7547 = vpow2.f32 %v2697_v35  ;;  %2869 = vmatprep.mubr.bf16.mxu0 %v2768_v43 }
 0x649   : > { %v7538_v24 = vpop.eup %7537  ;;  %7549 = vpow2.f32 %v2699_v21  ;;  %v2566_v28 = vpop.f32.mrb[48].mxu1  ;;  %2870 = vmatmul.mubr.bf16.gmra.mrb[68].mxu0 %v2767_v13  ;;  %v2741_v40 = vmul.f32 %v7536_v20, %v9666_v47 }
 0x64a   : > { %v7540_v0 = vpop.eup %7539  ;;  %v6279_v22 = vclamps-f32 %v2566_v28, 5.0  ;;  %6797 = vmatpush3.bf16.msra.mxu0 %v9776_v17  ;;  %v2568_v51 = vpop.f32.mrb[49].mxu1  ;;  %v2742_v63 = vmul.f32 %v7538_v24, %v9668_v4 }
 0x64b   : > { %v7542_v33 = vpop.eup %7541  ;;  %v6280_v1 = vclamps-f32 %v2568_v51, 5.0  ;;  %6798 = vmatprep.subr.bf16.mxu0 %v9662_v55  ;;  %v2570_v45 = vpop.f32.mrb[50].mxu1  ;;  %v2743_v5 = vmul.f32 %v7540_v0, %v9671_v6 }
 0x64c   : > { %v2701_v58 = vmul.f32 1.442695, %v6279_v22  ;;  %v6281_v32 = vclamps-f32 %v2570_v45, 5.0  ;;  %v2572_v27 = vpop.f32.mrb[51].mxu1  ;;  %v2744_v18 = vmul.f32 %v7542_v33, %v9675_v14 }
 0x64d   : > { %v2703_v31 = vmul.f32 1.442695, %v6280_v1  ;;  %v6282_v38 = vclamps-f32 %v2572_v27, 5.0  ;;  %v2769_v17 = vpack.c.bf16 %v2743_v5, %v2741_v40 }
 0x64e   : > { %7551 = vpow2.f32 %v2701_v58  ;;  %v2705_v15 = vmul.f32 1.442695, %v6281_v32  ;;  %6799 = vmatpush3.bf16.msra.mxu0 %v9786_v36  ;;  %v2770_v55 = vpack.c.bf16 %v2744_v18, %v2742_v63 }
 0x64f   : > { %7553 = vpow2.f32 %v2703_v31  ;;  %v2707_v26 = vmul.f32 1.442695, %v6282_v38  ;;  %6800 = vmatprep.subr.bf16.mxu0 %v9673_v56 }
 0x650   : > { %v7544_v9 = vpop.eup %7543  ;;  %7555 = vpow2.f32 %v2705_v15  ;;  %2877 = vmatprep.mubr.bf16.mxu0 %v2770_v55 }
 0x651   : > { %v7546_v13 = vpop.eup %7545  ;;  %7557 = vpow2.f32 %v2707_v26  ;;  %v2576_v35 = vpop.f32.mrb[52].mxu1  ;;  %2878 = vmatmul.mubr.bf16.gmra.mrb[72].mxu0 %v2769_v17  ;;  %v2745_v0 = vmul.f32 %v7544_v9, %v9692_v3 }
 0x652   : > { %v7548_v43 = vpop.eup %7547  ;;  %v6283_v21 = vclamps-f32 %v2576_v35, 5.0  ;;  %6801 = vmatpush3.bf16.msra.mxu0 %v9800_v54  ;;  %v2578_v20 = vpop.f32.mrb[53].mxu1  ;;  %v2746_v1 = vmul.f32 %v7546_v13, %v9694_v44 }
 0x653   : > { %v7550_v24 = vpop.eup %7549  ;;  %v6284_v28 = vclamps-f32 %v2578_v20, 5.0  ;;  %6802 = vmatprep.subr.bf16.mxu0 %v9688_v59  ;;  %v2580_v36 = vpop.f32.mrb[54].mxu1  ;;  %v2747_v56 = vmul.f32 %v7548_v43, %v9700_v30 }
 0x654   : > { %v2709_v22 = vmul.f32 1.442695, %v6283_v21  ;;  %v6285_v51 = vclamps-f32 %v2580_v36, 5.0  ;;  %v2582_v33 = vpop.f32.mrb[55].mxu1  ;;  %v2748_v45 = vmul.f32 %v7550_v24, %v9707_v62 }
 0x655   : > { %v2711_v40 = vmul.f32 1.442695, %v6284_v28  ;;  %v6286_v5 = vclamps-f32 %v2582_v33, 5.0  ;;  %v2771_v54 = vpack.c.bf16 %v2747_v56, %v2745_v0 }
 0x656   : > { %7559 = vpow2.f32 %v2709_v22  ;;  %v2713_v58 = vmul.f32 1.442695, %v6285_v51  ;;  %6803 = vmatpush3.bf16.msra.mxu0 %v9810_v42  ;;  %v2772_v59 = vpack.c.bf16 %v2748_v45, %v2746_v1 }
 0x657   : > { %7561 = vpow2.f32 %v2711_v40  ;;  %v2715_v32 = vmul.f32 1.442695, %v6286_v5  ;;  %6804 = vmatprep.subr.bf16.mxu0 %v9705_v23 }
 0x658   : > { %v7552_v27 = vpop.eup %7551  ;;  %7563 = vpow2.f32 %v2713_v58  ;;  %2885 = vmatprep.mubr.bf16.mxu0 %v2772_v59 }
 0x659   : > { %v7554_v63 = vpop.eup %7553  ;;  %7565 = vpow2.f32 %v2715_v32  ;;  %v2586_v18 = vpop.f32.mrb[56].mxu1  ;;  %2886 = vmatmul.mubr.bf16.gmra.mrb[76].mxu0 %v2771_v54  ;;  %v2749_v26 = vmul.f32 %v7552_v27, %v9724_v37  ;;  %v11153_v32 = vld [vmem:[#allocation9_spill] sm:$0xff] }
 0x65a   : > { %v7556_v31 = vpop.eup %7555  ;;  %v6287_v38 = vclamps-f32 %v2586_v18, 5.0  ;;  %6805 = vmatpush3.bf16.msra.mxu0 %v9824_v61  ;;  %v2588_v17 = vpop.f32.mrb[57].mxu1  ;;  %v2750_v43 = vmul.f32 %v7554_v63, %v9726_v60 }
 0x65b   : > { %v7558_v15 = vpop.eup %7557  ;;  %v6288_v55 = vclamps-f32 %v2588_v17, 5.0  ;;  %6806 = vmatprep.subr.bf16.mxu0 %v9720_v39  ;;  %v2590_v42 = vpop.f32.mrb[58].mxu1  ;;  %v2751_v23 = vmul.f32 %v7556_v31, %v9729_v48 }
 0x65c   : > { %v2717_v9 = vmul.f32 1.442695, %v6287_v38  ;;  %v6289_v13 = vclamps-f32 %v2590_v42, 5.0  ;;  %v2592_v35 = vpop.f32.mrb[59].mxu1  ;;  %v2752_v21 = vmul.f32 %v7558_v15, %v9733_v7 }
 0x65d   : > { %v2719_v20 = vmul.f32 1.442695, %v6288_v55  ;;  %v6290_v24 = vclamps-f32 %v2592_v35, 5.0  ;;  %v2773_v61 = vpack.c.bf16 %v2751_v23, %v2749_v26 }
 0x65e   : > { %7567 = vpow2.f32 %v2717_v9  ;;  %v2721_v28 = vmul.f32 1.442695, %v6289_v13  ;;  %6807 = vmatpush3.bf16.msra.mxu0 %v9830_v53  ;;  %v2774_v39 = vpack.c.bf16 %v2752_v21, %v2750_v43 }
 0x65f   : > { %7569 = vpow2.f32 %v2719_v20  ;;  %v2723_v36 = vmul.f32 1.442695, %v6290_v24  ;;  %6888 = vmatprep.subr.bf16.mxu0 %v9731_v29 }
 0x660   : > { %v7560_v0 = vpop.eup %7559  ;;  %7571 = vpow2.f32 %v2721_v28  ;;  %2893 = vmatprep.mubr.bf16.mxu0 %v2774_v39 }
 0x661   : > { %v7562_v56 = vpop.eup %7561  ;;  %7573 = vpow2.f32 %v2723_v36  ;;  %v2596_v22 = vpop.f32.mrb[60].mxu1  ;;  %2894 = vmatmul.mubr.bf16.gmra.mrb[80].mxu0 %v2773_v61  ;;  %v2753_v53 = vmul.f32 %v7560_v0, %v9751_v25 }
 0x662   : > { %v7564_v51 = vpop.eup %7563  ;;  %v6291_v33 = vclamps-f32 %v2596_v22, 5.0  ;;  %v2598_v1 = vpop.f32.mrb[61].mxu1  ;;  %v2754_v27 = vmul.f32 %v7562_v56, %v11153_v32 }
 0x663   : > { %v7566_v45 = vpop.eup %7565  ;;  %v6292_v40 = vclamps-f32 %v2598_v1, 5.0  ;;  %v2600_v5 = vpop.f32.mrb[62].mxu1  ;;  %v2755_v54 = vmul.f32 %v7564_v51, %v9761_v46 }
 0x664   : > { %v2725_v58 = vmul.f32 1.442695, %v6291_v33  ;;  %v6293_v59 = vclamps-f32 %v2600_v5, 5.0  ;;  %v2602_v29 = vpop.f32.mrb[63].mxu1  ;;  %v2756_v63 = vmul.f32 %v7566_v45, %v9766_v12 }
 0x665   : > { %v2727_v18 = vmul.f32 1.442695, %v6292_v40  ;;  %v6294_v31 = vclamps-f32 %v2602_v29, 5.0  ;;  %v2775_v38 = vpack.c.bf16 %v2755_v54, %v2753_v53 }
 0x666   : > { %7575 = vpow2.f32 %v2725_v58  ;;  %v2729_v17 = vmul.f32 1.442695, %v6293_v59  ;;  %v2776_v15 = vpack.c.bf16 %v2756_v63, %v2754_v27 }
 0x667   : > { %7577 = vpow2.f32 %v2727_v18  ;;  %v2731_v55 = vmul.f32 1.442695, %v6294_v31  ;;  %v11154_v31 = vld [vmem:[#allocation10_spill] sm:$0xff] }
 0x668   : > { %v7568_v42 = vpop.eup %7567  ;;  %7579 = vpow2.f32 %v2729_v17  ;;  %2901 = vmatprep.mubr.bf16.mxu0 %v2776_v15  ;;  %v11155_v17 = vld [vmem:[#allocation12_spill] sm:$0xff] }
 0x669   : > { %v7570_v26 = vpop.eup %7569  ;;  %7581 = vpow2.f32 %v2731_v55  ;;  %2902 = vmatmul.mubr.bf16.gmra.mrb[84].mxu0 %v2775_v38  ;;  %v3080_v23 = vpop.f32.mrb[64].mxu1  ;;  %v2757_v24 = vmul.f32 %v7568_v42, %v9782_v41 }
 0x66a   : > { %v7572_v9 = vpop.eup %7571  ;;  %v6303_v13 = vclamps-f32 %v3080_v23, 5.0  ;;  %v3082_v35 = vpop.f32.mrb[65].mxu1  ;;  %v2758_v0 = vmul.f32 %v7570_v26, %v9784_v52  ;;  %v11156_v23 = vld [vmem:[#allocation11_spill] sm:$0xff] }
 0x66b   : > { %v7574_v43 = vpop.eup %7573  ;;  %v6304_v21 = vclamps-f32 %v3082_v35, 5.0  ;;  %v3084_v20 = vpop.f32.mrb[66].mxu1  ;;  %v2759_v61 = vmul.f32 %v7572_v9, %v9788_v34 }
 0x66c   : > { %v3223_v28 = vmul.f32 1.442695, %v6303_v13  ;;  %v6305_v39 = vclamps-f32 %v3084_v20, 5.0  ;;  %v3086_v36 = vpop.f32.mrb[67].mxu1  ;;  %v2760_v56 = vmul.f32 %v7574_v43, %v9790_v57  ;;  %v11157_v13 = vld [vmem:[#allocation14_spill] sm:$0xff] }
 0x66d   : > { %v3225_v22 = vmul.f32 1.442695, %v6304_v21  ;;  %v6306_v51 = vclamps-f32 %v3086_v36, 5.0  ;;  %v2777_v33 = vpack.c.bf16 %v2759_v61, %v2757_v24 }
 0x66e   : > { %7583 = vpow2.f32 %v3223_v28  ;;  %v3227_v1 = vmul.f32 1.442695, %v6305_v39  ;;  %v2778_v45 = vpack.c.bf16 %v2760_v56, %v2758_v0 }
 0x66f   : > { %7585 = vpow2.f32 %v3225_v22  ;;  %v3229_v40 = vmul.f32 1.442695, %v6306_v51 }
 0x670   : > { %v7576_v5 = vpop.eup %7575  ;;  %7587 = vpow2.f32 %v3227_v1  ;;  %2909 = vmatprep.mubr.bf16.mxu0 %v2778_v45 }
 0x671   : > { %v7578_v53 = vpop.eup %7577  ;;  %7589 = vpow2.f32 %v3229_v40  ;;  %2910 = vmatmul.mubr.bf16.gmra.mrb[88].mxu0 %v2777_v33  ;;  %v3090_v54 = vpop.f32.mrb[68].mxu1  ;;  %v2761_v38 = vmul.f32 %v7576_v5, %v11154_v31 }
 0x672   : > { %v7580_v58 = vpop.eup %7579  ;;  %v6307_v59 = vclamps-f32 %v3090_v54, 5.0  ;;  %v3092_v29 = vpop.f32.mrb[69].mxu1  ;;  %v2762_v9 = vmul.f32 %v7578_v53, %v11156_v23 }
 0x673   : > { %v7582_v27 = vpop.eup %7581  ;;  %v6308_v63 = vclamps-f32 %v3092_v29, 5.0  ;;  %v3094_v18 = vpop.f32.mrb[70].mxu1  ;;  %v2763_v15 = vmul.f32 %v7580_v58, %v11155_v17 }
 0x674   : > { %v3231_v55 = vmul.f32 1.442695, %v6307_v59  ;;  %v6309_v42 = vclamps-f32 %v3094_v18, 5.0  ;;  %v3096_v26 = vpop.f32.mrb[71].mxu1  ;;  %v2764_v35 = vmul.f32 %v7582_v27, %v11157_v13 }
 0x675   : > { %v3233_v43 = vmul.f32 1.442695, %v6308_v63  ;;  %v6310_v21 = vclamps-f32 %v3096_v26, 5.0  ;;  %v2779_v20 = vpack.c.bf16 %v2763_v15, %v2761_v38 }
 0x676   : > { %7591 = vpow2.f32 %v3231_v55  ;;  %v3235_v24 = vmul.f32 1.442695, %v6309_v42  ;;  %v2780_v61 = vpack.c.bf16 %v2764_v35, %v2762_v9 }
 0x677   : > { %7593 = vpow2.f32 %v3233_v43  ;;  %v3237_v28 = vmul.f32 1.442695, %v6310_v21  ;;  %v11158_v21 = vld [vmem:[#allocation16_spill] sm:$0xff] }
 0x678   : > { %v7584_v39 = vpop.eup %7583  ;;  %7595 = vpow2.f32 %v3235_v24  ;;  %2917 = vmatprep.mubr.bf16.mxu0 %v2780_v61 }
 0x679   : > { %v7586_v36 = vpop.eup %7585  ;;  %7597 = vpow2.f32 %v3237_v28  ;;  %2918 = vmatmul.mubr.bf16.gmra.mrb[92].mxu0 %v2779_v20  ;;  %v3100_v0 = vpop.f32.mrb[72].mxu1  ;;  %v3287_v1 = vmul.f32 %v7584_v39, %v9604_v16  ;;  %v11159_v28 = vld [vmem:[#allocation13_spill] sm:$0xff] }
 0x67a   : > { %v7588_v56 = vpop.eup %7587  ;;  %v6311_v22 = vclamps-f32 %v3100_v0, 5.0  ;;  %v3102_v51 = vpop.f32.mrb[73].mxu1  ;;  %v3288_v59 = vmul.f32 %v7586_v36, %v9606_v49 }
 0x67b   : > { %v7590_v33 = vpop.eup %7589  ;;  %v3289_v45 = vmul.f32 %v7588_v56, %v9608_v50  ;;  %v6312_v40 = vclamps-f32 %v3102_v51, 5.0  ;;  %v3104_v5 = vpop.f32.mrb[74].mxu1 }
 0x67c   : > { %v3239_v53 = vmul.f32 1.442695, %v6311_v22  ;;  %v6313_v54 = vclamps-f32 %v3104_v5, 5.0  ;;  %v3106_v58 = vpop.f32.mrb[75].mxu1  ;;  %v3290_v29 = vmul.f32 %v7590_v33, %v9612_v8 }
 0x67d   : > { %v3241_v27 = vmul.f32 1.442695, %v6312_v40  ;;  %v6314_v63 = vclamps-f32 %v3106_v58, 5.0  ;;  %v3319_v18 = vpack.c.bf16 %v3289_v45, %v3287_v1 }
 0x67e   : > { %7599 = vpow2.f32 %v3239_v53  ;;  %v3243_v38 = vmul.f32 1.442695, %v6313_v54  ;;  %v3320_v15 = vpack.c.bf16 %v3290_v29, %v3288_v59  ;;  %v11160_v54 = vld [vmem:[#allocation18_spill] sm:$0xff]  ;;  %v11161_v29 = vld [vmem:[#allocation15_spill] sm:$0xff] }
 0x67f   : > { %7601 = vpow2.f32 %v3241_v27  ;;  %v3245_v55 = vmul.f32 1.442695, %v6314_v63 }
 0x680   : > { %v7592_v42 = vpop.eup %7591  ;;  %7603 = vpow2.f32 %v3243_v38  ;;  %3415 = vmatprep.mubr.bf16.mxu0 %v3320_v15 }
 0x681   : > { %v7594_v26 = vpop.eup %7593  ;;  %7605 = vpow2.f32 %v3245_v55  ;;  %v3110_v9 = vpop.f32.mrb[76].mxu1  ;;  %3416 = vmatmul.mubr.bf16.vlgmr.msra.gmra.mrb[96].mxu0 %v3319_v18  ;;  %v3291_v36 = vmul.f32 %v7592_v42, %v9633_v2  ;;  %v11162_v55 = vld [vmem:[#allocation20_spill] sm:$0xff] }
 0x682   : > { %v7596_v35 = vpop.eup %7595  ;;  %v6315_v43 = vclamps-f32 %v3110_v9, 5.0  ;;  %6889 = vmatpush3.bf16.msra.mxu0 %v11158_v21  ;;  %v3112_v20 = vpop.f32.mrb[77].mxu1  ;;  %v3292_v33 = vmul.f32 %v7594_v26, %v9635_v19 }
 0x683   : > { %v7598_v24 = vpop.eup %7597  ;;  %v6316_v61 = vclamps-f32 %v3112_v20, 5.0  ;;  %6890 = vmatprep.subr.bf16.mxu0 %v11159_v28  ;;  %v3114_v39 = vpop.f32.mrb[78].mxu1  ;;  %v3293_v0 = vmul.f32 %v7596_v35, %v9640_v11  ;;  %v11163_v35 = vld [vmem:[#allocation17_spill] sm:$0xff] }
 0x684   : > { %v3247_v56 = vmul.f32 1.442695, %v6315_v43  ;;  %v6317_v22 = vclamps-f32 %v3114_v39, 5.0  ;;  %v3116_v51 = vpop.f32.mrb[79].mxu1  ;;  %v3294_v1 = vmul.f32 %v7598_v24, %v9647_v10 }
 0x685   : > { %v3249_v45 = vmul.f32 1.442695, %v6316_v61  ;;  %v6318_v40 = vclamps-f32 %v3116_v51, 5.0  ;;  %v3321_v5 = vpack.c.bf16 %v3293_v0, %v3291_v36 }
 0x686   : > { %7607 = vpow2.f32 %v3247_v56  ;;  %v3251_v53 = vmul.f32 1.442695, %v6317_v22  ;;  %6891 = vmatpush3.bf16.msra.mxu0 %v11160_v54  ;;  %v3322_v58 = vpack.c.bf16 %v3294_v1, %v3292_v33  ;;  %v11164_v33 = vld [vmem:[#allocation21_spill] sm:$0xff] }
 0x687   : > { %7609 = vpow2.f32 %v3249_v45  ;;  %v3253_v59 = vmul.f32 1.442695, %v6318_v40  ;;  %6892 = vmatprep.subr.bf16.mxu0 %v11161_v29  ;;  %v11165_v40 = vld [vmem:[#allocation19_spill] sm:$0xff] }
 0x688   : > { %v7600_v27 = vpop.eup %7599  ;;  %7611 = vpow2.f32 %v3251_v53  ;;  %3423 = vmatprep.mubr.bf16.mxu0 %v3322_v58  ;;  %v11166_v29 = vld [vmem:[#allocation23_spill] sm:$0xff] }
 0x689   : > { %v7602_v63 = vpop.eup %7601  ;;  %7613 = vpow2.f32 %v3253_v59  ;;  %v3120_v18 = vpop.f32.mrb[80].mxu1  ;;  %3424 = vmatmul.mubr.bf16.gmra.mrb[100].mxu0 %v3321_v5  ;;  %v3295_v21 = vmul.f32 %v7600_v27, %v9666_v47 }
 0x68a   : > { %v7604_v38 = vpop.eup %7603  ;;  %v6319_v15 = vclamps-f32 %v3120_v18, 5.0  ;;  %6893 = vmatpush3.bf16.msra.mxu0 %v11162_v55  ;;  %v3122_v42 = vpop.f32.mrb[81].mxu1  ;;  %v3296_v39 = vmul.f32 %v7602_v63, %v9668_v4 }
 0x68b   : > { %v7606_v26 = vpop.eup %7605  ;;  %v6320_v9 = vclamps-f32 %v3122_v42, 5.0  ;;  %6894 = vmatprep.subr.bf16.mxu0 %v11163_v35  ;;  %v3124_v43 = vpop.f32.mrb[82].mxu1  ;;  %v3297_v20 = vmul.f32 %v7604_v38, %v9671_v6  ;;  %v11167_v38 = vld [vmem:[#allocation22_spill] sm:$0xff] }
 0x68c   : > { %v3255_v24 = vmul.f32 1.442695, %v6319_v15  ;;  %v6321_v61 = vclamps-f32 %v3124_v43, 5.0  ;;  %v3126_v28 = vpop.f32.mrb[83].mxu1  ;;  %v3298_v36 = vmul.f32 %v7606_v26, %v9675_v14 }
 0x68d   : > { %v3257_v0 = vmul.f32 1.442695, %v6320_v9  ;;  %v6322_v56 = vclamps-f32 %v3126_v28, 5.0  ;;  %v3323_v22 = vpack.c.bf16 %v3297_v20, %v3295_v21 }
 0x68e   : > { %7615 = vpow2.f32 %v3255_v24  ;;  %v3259_v51 = vmul.f32 1.442695, %v6321_v61  ;;  %6895 = vmatpush3.bf16.msra.mxu0 %v11164_v33  ;;  %v3324_v1 = vpack.c.bf16 %v3298_v36, %v3296_v39  ;;  %v11168_v39 = vld [vmem:[#allocation25_spill] sm:$0xff] }
 0x68f   : > { %7617 = vpow2.f32 %v3257_v0  ;;  %v3261_v45 = vmul.f32 1.442695, %v6322_v56  ;;  %6896 = vmatprep.subr.bf16.mxu0 %v11165_v40  ;;  %v11169_v56 = vld [vmem:[#allocation24_spill] sm:$0xff]  ;;  %v11170_v40 = vld [vmem:[#allocation26_spill] sm:$0xff] }
 0x690   : > { %v7608_v5 = vpop.eup %7607  ;;  %7619 = vpow2.f32 %v3259_v51  ;;  %3431 = vmatprep.mubr.bf16.mxu0 %v3324_v1 }
 0x691   : > { %v7610_v53 = vpop.eup %7609  ;;  %7621 = vpow2.f32 %v3261_v45  ;;  %v3130_v54 = vpop.f32.mrb[84].mxu1  ;;  %3432 = vmatmul.mubr.bf16.gmra.mrb[104].mxu0 %v3323_v22  ;;  %v3299_v55 = vmul.f32 %v7608_v5, %v9692_v3 }
 0x692   : > { %v7612_v58 = vpop.eup %7611  ;;  %v6323_v59 = vclamps-f32 %v3130_v54, 5.0  ;;  %6897 = vmatpush3.bf16.msra.mxu0 %v11166_v29  ;;  %v3132_v27 = vpop.f32.mrb[85].mxu1  ;;  %v3300_v43 = vmul.f32 %v7610_v53, %v9694_v44 }
 0x693   : > { %v7614_v63 = vpop.eup %7613  ;;  %v6324_v18 = vclamps-f32 %v3132_v27, 5.0  ;;  %6898 = vmatprep.subr.bf16.mxu0 %v11167_v38  ;;  %v3134_v15 = vpop.f32.mrb[86].mxu1  ;;  %v3301_v42 = vmul.f32 %v7612_v58, %v9700_v30  ;;  %v11171_v58 = vld [vmem:[#allocation27_spill] sm:$0xff] }
 0x694   : > { %v3263_v26 = vmul.f32 1.442695, %v6323_v59  ;;  %v6325_v9 = vclamps-f32 %v3134_v15, 5.0  ;;  %v3136_v35 = vpop.f32.mrb[87].mxu1  ;;  %v3302_v21 = vmul.f32 %v7614_v63, %v9707_v62 }
 0x695   : > { %v3265_v20 = vmul.f32 1.442695, %v6324_v18  ;;  %v6326_v24 = vclamps-f32 %v3136_v35, 5.0  ;;  %v3325_v61 = vpack.c.bf16 %v3301_v42, %v3299_v55 }
 0x696   : > { %7623 = vpow2.f32 %v3263_v26  ;;  %v3267_v28 = vmul.f32 1.442695, %v6325_v9  ;;  %6899 = vmatpush3.bf16.msra.mxu0 %v11168_v39  ;;  %v3326_v36 = vpack.c.bf16 %v3302_v21, %v3300_v43  ;;  %v11172_v43 = vld [vmem:[#allocation28_spill] sm:$0xff] }
 0x697   : > { %7625 = vpow2.f32 %v3265_v20  ;;  %v3269_v0 = vmul.f32 1.442695, %v6326_v24  ;;  %6900 = vmatprep.subr.bf16.mxu0 %v11169_v56 }
 0x698   : > { %v7616_v22 = vpop.eup %7615  ;;  %7627 = vpow2.f32 %v3267_v28  ;;  %3439 = vmatprep.mubr.bf16.mxu0 %v3326_v36 }
 0x699   : > { %v7618_v51 = vpop.eup %7617  ;;  %7629 = vpow2.f32 %v3269_v0  ;;  %v3140_v33 = vpop.f32.mrb[88].mxu1  ;;  %3440 = vmatmul.mubr.bf16.gmra.mrb[108].mxu0 %v3325_v61  ;;  %v3303_v29 = vmul.f32 %v7616_v22, %v9724_v37 }
 0x69a   : > { %v7620_v1 = vpop.eup %7619  ;;  %v6327_v45 = vclamps-f32 %v3140_v33, 5.0  ;;  %6901 = vmatpush3.bf16.msra.mxu0 %v11170_v40  ;;  %v3142_v5 = vpop.f32.mrb[89].mxu1  ;;  %v3304_v15 = vmul.f32 %v7618_v51, %v9726_v60 }
 0x69b   : > { %v7622_v53 = vpop.eup %7621  ;;  %v6328_v54 = vclamps-f32 %v3142_v5, 5.0  ;;  %6902 = vmatprep.subr.bf16.mxu0 %v11171_v58  ;;  %v3144_v59 = vpop.f32.mrb[90].mxu1  ;;  %v3305_v27 = vmul.f32 %v7620_v1, %v9729_v48 }
 0x69c   : > { %v3271_v63 = vmul.f32 1.442695, %v6327_v45  ;;  %v6329_v18 = vclamps-f32 %v3144_v59, 5.0  ;;  %v3146_v38 = vpop.f32.mrb[91].mxu1  ;;  %v3306_v55 = vmul.f32 %v7622_v53, %v9733_v7 }
 0x69d   : > { %v3273_v42 = vmul.f32 1.442695, %v6328_v54  ;;  %v6330_v26 = vclamps-f32 %v3146_v38, 5.0  ;;  %v3327_v9 = vpack.c.bf16 %v3305_v27, %v3303_v29 }
 0x69e   : > { %7631 = vpow2.f32 %v3271_v63  ;;  %v3275_v35 = vmul.f32 1.442695, %v6329_v18  ;;  %6903 = vmatpush3.bf16.msra.mxu0 %v11172_v43  ;;  %v3328_v21 = vpack.c.bf16 %v3306_v55, %v3304_v15 }
 0x69f   : > { %7633 = vpow2.f32 %v3273_v42  ;;  %v3277_v20 = vmul.f32 1.442695, %v6330_v26 }
 0x6a0   : > { %v7624_v24 = vpop.eup %7623  ;;  %7635 = vpow2.f32 %v3275_v35  ;;  %3447 = vmatprep.mubr.bf16.mxu0 %v3328_v21 }
 0x6a1   : > { %v7626_v61 = vpop.eup %7625  ;;  %7637 = vpow2.f32 %v3277_v20  ;;  %v3150_v28 = vpop.f32.mrb[92].mxu1  ;;  %3448 = vmatmul.mubr.bf16.gmra.mrb[112].mxu0 %v3327_v9  ;;  %v3307_v45 = vmul.f32 %v7624_v24, %v9751_v25 }
 0x6a2   : > { %v6616_v39 = vpop.f32.mrb[32].mxu0  ;;  %v7628_v36 = vpop.eup %7627  ;;  %v6331_v0 = vclamps-f32 %v3150_v28, 5.0  ;;  %v3308_v29 = vmul.f32 %v7626_v61, %v11153_v32 }
 0x6a3   : > { %v3152_v56 = vpop.f32.mrb[93].mxu1  ;;  %v6617_v22 = vpop.f32.mrb[33].mxu0  ;;  %v3309_v40 = vmul.f32 %v7628_v36, %v9761_v46 }
 0x6a4   : > { %v7630_v51 = vpop.eup %7629  ;;  %v6332_v33 = vclamps-f32 %v3152_v56, 5.0  ;;  %v3154_v1 = vpop.f32.mrb[94].mxu1  ;;  %v9964_v5 = vadd.f32 %v6617_v22, %v6616_v39  ;;  %v3279_v54 = vmul.f32 1.442695, %v6331_v0 }
 0x6a5   : > { %v6619_v53 = vpop.f32.mrb[34].mxu0  ;;  %v6333_v58 = vclamps-f32 %v3154_v1, 5.0  ;;  %v3156_v59 = vpop.f32.mrb[95].mxu1  ;;  %v3310_v27 = vmul.f32 %v7630_v51, %v9766_v12  ;;  %v3329_v15 = vpack.c.bf16 %v3309_v40, %v3307_v45 }
 0x6a6   : > { %v6620_v63 = vpop.f32.mrb[35].mxu0  ;;  %v3281_v18 = vmul.f32 1.442695, %v6332_v33  ;;  %v6334_v38 = vclamps-f32 %v3156_v59, 5.0  ;;  %7639 = vpow2.f32 %v3279_v54 }
 0x6a7   : > { %v9968_v55 = vadd.f32 %v6620_v63, %v6619_v53  ;;  %v3283_v42 = vmul.f32 1.442695, %v6333_v58  ;;  %v3330_v26 = vpack.c.bf16 %v3310_v27, %v3308_v29 }
 0x6a8   : > { %7641 = vpow2.f32 %v3281_v18  ;;  %v3285_v9 = vmul.f32 1.442695, %v6334_v38  ;;  %v7632_v35 = vpop.eup %7631 }
 0x6a9   : > { %7643 = vpow2.f32 %v3283_v42  ;;  %3455 = vmatprep.mubr.bf16.mxu0 %v3330_v26  ;;  %v7634_v43 = vpop.eup %7633  ;;  %v3634_v21 = vpop.f32.mrb[96].mxu1  ;;  %v3311_v22 = vmul.f32 %v7632_v35, %v9782_v41 }
 0x6aa   : > { %7645 = vpow2.f32 %v3285_v9  ;;  %3456 = vmatmul.mubr.bf16.gmra.mrb[116].mxu0 %v3329_v15  ;;  %v6622_v20 = vpop.f32.mrb[36].mxu0  ;;  %v7636_v24 = vpop.eup %7635  ;;  %v6343_v61 = vclamps-f32 %v3634_v21, 5.0  ;;  %v3312_v54 = vmul.f32 %v7634_v43, %v9784_v52 }
 0x6ab   : > { %v3636_v28 = vpop.f32.mrb[97].mxu1  ;;  %v6623_v39 = vpop.f32.mrb[37].mxu0  ;;  %v3313_v51 = vmul.f32 %v7636_v24, %v9788_v34 }
 0x6ac   : > { %v7638_v36 = vpop.eup %7637  ;;  %v6344_v0 = vclamps-f32 %v3636_v28, 5.0  ;;  %v3638_v56 = vpop.f32.mrb[98].mxu1  ;;  %v9972_v33 = vadd.f32 %v6623_v39, %v6622_v20  ;;  %v3777_v45 = vmul.f32 1.442695, %v6343_v61 }
 0x6ad   : > { %v6625_v1 = vpop.f32.mrb[38].mxu0  ;;  %v6345_v40 = vclamps-f32 %v3638_v56, 5.0  ;;  %v3640_v53 = vpop.f32.mrb[99].mxu1  ;;  %v3314_v58 = vmul.f32 %v7638_v36, %v9790_v57  ;;  %v3331_v63 = vpack.c.bf16 %v3313_v51, %v3311_v22 }
 0x6ae   : > { %v6626_v59 = vpop.f32.mrb[39].mxu0  ;;  %v3779_v29 = vmul.f32 1.442695, %v6344_v0  ;;  %v6346_v27 = vclamps-f32 %v3640_v53, 5.0  ;;  %7647 = vpow2.f32 %v3777_v45 }
 0x6af   : > { %v9976_v18 = vadd.f32 %v6626_v59, %v6625_v1  ;;  %v3781_v38 = vmul.f32 1.442695, %v6345_v40  ;;  %v3332_v15 = vpack.c.bf16 %v3314_v58, %v3312_v54 }
 0x6b0   : > { %7649 = vpow2.f32 %v3779_v29  ;;  %v3783_v42 = vmul.f32 1.442695, %v6346_v27  ;;  %v7640_v26 = vpop.eup %7639 }
 0x6b1   : > { %7651 = vpow2.f32 %v3781_v38  ;;  %3463 = vmatprep.mubr.bf16.mxu0 %v3332_v15  ;;  %v3644_v35 = vpop.f32.mrb[100].mxu1  ;;  %v3315_v0 = vmul.f32 %v7640_v26, %v11154_v31 }
 0x6b2   : > { %v7642_v9 = vpop.eup %7641  ;;  %7653 = vpow2.f32 %v3783_v42  ;;  %3464 = vmatmul.mubr.bf16.gmra.mrb[120].mxu0 %v3331_v63  ;;  %v6628_v43 = vpop.f32.mrb[40].mxu0  ;;  %v6347_v20 = vclamps-f32 %v3644_v35, 5.0 }
 0x6b3   : > { %v7644_v21 = vpop.eup %7643  ;;  %v3646_v24 = vpop.f32.mrb[101].mxu1  ;;  %v3316_v53 = vmul.f32 %v7642_v9, %v11156_v23 }
 0x6b4   : > { %v6629_v61 = vpop.f32.mrb[41].mxu0  ;;  %v7646_v28 = vpop.eup %7645  ;;  %v6348_v39 = vclamps-f32 %v3646_v24, 5.0  ;;  %v3317_v56 = vmul.f32 %v7644_v21, %v11155_v17  ;;  %v3785_v1 = vmul.f32 1.442695, %v6347_v20 }
 0x6b5   : > { %v3648_v36 = vpop.f32.mrb[102].mxu1  ;;  %v9980_v22 = vadd.f32 %v6629_v61, %v6628_v43  ;;  %v6631_v51 = vpop.f32.mrb[42].mxu0  ;;  %v3318_v54 = vmul.f32 %v7646_v28, %v11157_v13 }
 0x6b6   : > { %v6349_v45 = vclamps-f32 %v3648_v36, 5.0  ;;  %v3650_v40 = vpop.f32.mrb[103].mxu1  ;;  %v6632_v58 = vpop.f32.mrb[43].mxu0  ;;  %v3787_v59 = vmul.f32 1.442695, %v6348_v39  ;;  %v3333_v27 = vpack.c.bf16 %v3317_v56, %v3315_v0  ;;  %7655 = vpow2.f32 %v3785_v1 }
 0x6b7   : > { %v6350_v29 = vclamps-f32 %v3650_v40, 5.0  ;;  %v9984_v63 = vadd.f32 %v6632_v58, %v6631_v51  ;;  %v3334_v15 = vpack.c.bf16 %v3318_v54, %v3316_v53 }
 0x6b8   : > { %v3789_v38 = vmul.f32 1.442695, %v6349_v45  ;;  %7657 = vpow2.f32 %v3787_v59  ;;  %v7648_v26 = vpop.eup %7647 }
 0x6b9   : > { %v3791_v42 = vmul.f32 1.442695, %v6350_v29  ;;  %3471 = vmatprep.mubr.bf16.mxu0 %v3334_v15  ;;  %v3654_v9 = vpop.f32.mrb[104].mxu1  ;;  %v3841_v61 = vmul.f32 %v7648_v26, %v9604_v16 }
 0x6ba   : > { %7659 = vpow2.f32 %v3789_v38  ;;  %v7650_v35 = vpop.eup %7649  ;;  %3472 = vmatmul.mubr.bf16.gmra.mrb[124].mxu0 %v3333_v27  ;;  %v6351_v21 = vclamps-f32 %v3654_v9, 5.0  ;;  %v3656_v20 = vpop.f32.mrb[105].mxu1 }
 0x6bb   : > { %7661 = vpow2.f32 %v3791_v42  ;;  %v7652_v43 = vpop.eup %7651  ;;  %v6352_v39 = vclamps-f32 %v3656_v20, 5.0  ;;  %v3658_v36 = vpop.f32.mrb[106].mxu1  ;;  %v3842_v45 = vmul.f32 %v7650_v35, %v9606_v49 }
 0x6bc   : > { %v7654_v24 = vpop.eup %7653  ;;  %v3843_v28 = vmul.f32 %v7652_v43, %v9608_v50  ;;  %v6634_v0 = vpop.f32.mrb[44].mxu0  ;;  %v3793_v56 = vmul.f32 1.442695, %v6351_v21  ;;  %v6353_v51 = vclamps-f32 %v3658_v36, 5.0 }
 0x6bd   : > { %v3660_v1 = vpop.f32.mrb[107].mxu1  ;;  %v3844_v40 = vmul.f32 %v7654_v24, %v9612_v8  ;;  %v6635_v53 = vpop.f32.mrb[45].mxu0  ;;  %v3795_v54 = vmul.f32 1.442695, %v6352_v39 }
 0x6be   : > { %v6354_v58 = vclamps-f32 %v3660_v1, 5.0  ;;  %v3873_v59 = vpack.c.bf16 %v3843_v28, %v3841_v61  ;;  %v9990_v29 = vadd.f32 %v6635_v53, %v6634_v0  ;;  %v6637_v27 = vpop.f32.mrb[46].mxu0  ;;  %7663 = vpow2.f32 %v3793_v56 }
 0x6bf   : > { %v3797_v16 = vmul.f32 1.442695, %v6353_v51  ;;  %v3874_v50 = vpack.c.bf16 %v3844_v40, %v3842_v45  ;;  %v6638_v38 = vpop.f32.mrb[47].mxu0  ;;  %7665 = vpow2.f32 %v3795_v54 }
 0x6c0   : > { %v3799_v15 = vmul.f32 1.442695, %v6354_v58  ;;  %v9992_v42 = vadd.f32 %v6638_v38, %v6637_v27  ;;  %v7656_v26 = vpop.eup %7655 }
 0x6c1   : > { %7667 = vpow2.f32 %v3797_v16  ;;  %3969 = vmatprep.mubr.bf16.mxu0 %v3874_v50  ;;  %v3664_v8 = vpop.f32.mrb[108].mxu1  ;;  %v3845_v61 = vmul.f32 %v7656_v26, %v9633_v2 }
 0x6c2   : > { %v7658_v49 = vpop.eup %7657  ;;  %7669 = vpow2.f32 %v3799_v15  ;;  %3970 = vmatmul.mubr.bf16.vlgmr.msra.gmra.mrb[128].mxu0 %v3873_v59  ;;  %v6355_v9 = vclamps-f32 %v3664_v8, 5.0  ;;  %v3666_v43 = vpop.f32.mrb[109].mxu1 }
 0x6c3   : > { %v6356_v20 = vclamps-f32 %v3666_v43, 5.0  ;;  %v3668_v24 = vpop.f32.mrb[110].mxu1  ;;  %v3846_v51 = vmul.f32 %v7658_v49, %v9635_v19 }
 0x6c4   : > { %v7660_v35 = vpop.eup %7659  ;;  %v6640_v39 = vpop.f32.mrb[48].mxu0  ;;  %v3801_v36 = vmul.f32 1.442695, %v6355_v9  ;;  %v6357_v0 = vclamps-f32 %v3668_v24, 5.0 }
 0x6c5   : > { %v7662_v21 = vpop.eup %7661  ;;  %v3847_v28 = vmul.f32 %v7660_v35, %v9640_v11  ;;  %v3670_v56 = vpop.f32.mrb[111].mxu1  ;;  %v3803_v40 = vmul.f32 1.442695, %v6356_v20 }
 0x6c6   : > { %v3848_v1 = vmul.f32 %v7662_v21, %v9647_v10  ;;  %v6641_v45 = vpop.f32.mrb[49].mxu0  ;;  %v6358_v53 = vclamps-f32 %v3670_v56, 5.0  ;;  %7671 = vpow2.f32 %v3801_v36  ;;  %v3805_v27 = vmul.f32 1.442695, %v6357_v0 }
 0x6c7   : > { %v3875_v54 = vpack.c.bf16 %v3847_v28, %v3845_v61  ;;  %v9998_v58 = vadd.f32 %v6641_v45, %v6640_v39  ;;  %v6643_v59 = vpop.f32.mrb[50].mxu0  ;;  %7673 = vpow2.f32 %v3803_v40 }
 0x6c8   : > { %v3876_v2 = vpack.c.bf16 %v3848_v1, %v3846_v51  ;;  %v6644_v16 = vpop.f32.mrb[51].mxu0  ;;  %v3807_v11 = vmul.f32 1.442695, %v6358_v53  ;;  %v7664_v38 = vpop.eup %7663  ;;  %7675 = vpow2.f32 %v3805_v27 }
 0x6c9   : > { %v10000_v50 = vadd.f32 %v6644_v16, %v6643_v59  ;;  %v7666_v19 = vpop.eup %7665  ;;  %v3674_v10 = vpop.f32.mrb[112].mxu1  ;;  %v3849_v43 = vmul.f32 %v7664_v38, %v9666_v47 }
 0x6ca   : > { %3977 = vmatprep.mubr.bf16.mxu0 %v3876_v2  ;;  %7677 = vpow2.f32 %v3807_v11  ;;  %v6359_v26 = vclamps-f32 %v3674_v10, 5.0  ;;  %v3676_v49 = vpop.f32.mrb[113].mxu1  ;;  %v3850_v39 = vmul.f32 %v7666_v19, %v9668_v4 }
 0x6cb   : > { %3978 = vmatmul.mubr.bf16.gmra.mrb[132].mxu0 %v3875_v54  ;;  %v7668_v15 = vpop.eup %7667  ;;  %v6360_v35 = vclamps-f32 %v3676_v49, 5.0  ;;  %v3678_v9 = vpop.f32.mrb[114].mxu1 }
 0x6cc   : > { %v7670_v8 = vpop.eup %7669  ;;  %v3851_v21 = vmul.f32 %v7668_v15, %v9671_v6  ;;  %v6646_v20 = vpop.f32.mrb[52].mxu0  ;;  %v3809_v24 = vmul.f32 1.442695, %v6359_v26  ;;  %v6361_v61 = vclamps-f32 %v3678_v9, 5.0 }
 0x6cd   : > { %v3680_v28 = vpop.f32.mrb[115].mxu1  ;;  %v3852_v36 = vmul.f32 %v7670_v8, %v9675_v14  ;;  %v6647_v0 = vpop.f32.mrb[53].mxu0  ;;  %v3811_v56 = vmul.f32 1.442695, %v6360_v35 }
 0x6ce   : > { %v6362_v51 = vclamps-f32 %v3680_v28, 5.0  ;;  %v3877_v1 = vpack.c.bf16 %v3851_v21, %v3849_v43  ;;  %v10006_v45 = vadd.f32 %v6647_v0, %v6646_v20  ;;  %v6649_v40 = vpop.f32.mrb[54].mxu0  ;;  %7679 = vpow2.f32 %v3809_v24 }
 0x6cf   : > { %v3813_v53 = vmul.f32 1.442695, %v6361_v61  ;;  %v3878_v47 = vpack.c.bf16 %v3852_v36, %v3850_v39  ;;  %v6650_v54 = vpop.f32.mrb[55].mxu0  ;;  %7681 = vpow2.f32 %v3811_v56 }
 0x6d0   : > { %v3815_v6 = vmul.f32 1.442695, %v6362_v51  ;;  %v10008_v59 = vadd.f32 %v6650_v54, %v6649_v40  ;;  %v7672_v27 = vpop.eup %7671 }
 0x6d1   : > { %7683 = vpow2.f32 %v3813_v53  ;;  %3985 = vmatprep.mubr.bf16.mxu0 %v3878_v47  ;;  %v7674_v4 = vpop.eup %7673  ;;  %v3684_v14 = vpop.f32.mrb[116].mxu1  ;;  %v3853_v15 = vmul.f32 %v7672_v27, %v9692_v3 }
 0x6d2   : > { %7685 = vpow2.f32 %v3815_v6  ;;  %v7676_v2 = vpop.eup %7675  ;;  %v6363_v16 = vclamps-f32 %v3684_v14, 5.0  ;;  %v3686_v11 = vpop.f32.mrb[117].mxu1  ;;  %v3854_v43 = vmul.f32 %v7674_v4, %v9694_v44 }
 0x6d3   : > { %3986 = vmatmul.mubr.bf16.gmra.mrb[136].mxu0 %v3877_v1  ;;  %v6364_v19 = vclamps-f32 %v3686_v11, 5.0  ;;  %v3688_v10 = vpop.f32.mrb[118].mxu1  ;;  %v3855_v26 = vmul.f32 %v7676_v2, %v9700_v30 }
 0x6d4   : > { %v7678_v38 = vpop.eup %7677  ;;  %v6652_v49 = vpop.f32.mrb[56].mxu0  ;;  %v3817_v8 = vmul.f32 1.442695, %v6363_v16  ;;  %v6365_v35 = vclamps-f32 %v3688_v10, 5.0 }
 0x6d5   : > { %v3690_v9 = vpop.f32.mrb[119].mxu1  ;;  %v3856_v21 = vmul.f32 %v7678_v38, %v9707_v62  ;;  %v6653_v20 = vpop.f32.mrb[57].mxu0  ;;  %v3819_v24 = vmul.f32 1.442695, %v6364_v19  ;;  %v3879_v28 = vpack.c.bf16 %v3855_v26, %v3853_v15 }
 0x6d6   : > { %v6366_v61 = vclamps-f32 %v3690_v9, 5.0  ;;  %v10014_v39 = vadd.f32 %v6653_v20, %v6652_v49  ;;  %v6655_v36 = vpop.f32.mrb[58].mxu0  ;;  %7687 = vpow2.f32 %v3817_v8  ;;  %v3821_v0 = vmul.f32 1.442695, %v6365_v35 }
 0x6d7   : > { %v3880_v3 = vpack.c.bf16 %v3856_v21, %v3854_v43  ;;  %v6656_v56 = vpop.f32.mrb[59].mxu0  ;;  %7689 = vpow2.f32 %v3819_v24 }
 0x6d8   : > { %v3823_v30 = vmul.f32 1.442695, %v6366_v61  ;;  %v10016_v51 = vadd.f32 %v6656_v56, %v6655_v36  ;;  %v7680_v1 = vpop.eup %7679  ;;  %7691 = vpow2.f32 %v3821_v0 }
 0x6d9   : > { %3993 = vmatprep.mubr.bf16.mxu0 %v3880_v3  ;;  %v7682_v44 = vpop.eup %7681  ;;  %v3694_v62 = vpop.f32.mrb[120].mxu1  ;;  %v3857_v4 = vmul.f32 %v7680_v1, %v9724_v37 }
 0x6da   : > { %7693 = vpow2.f32 %v3823_v30  ;;  %v6367_v53 = vclamps-f32 %v3694_v62, 5.0  ;;  %v3696_v47 = vpop.f32.mrb[121].mxu1  ;;  %v3858_v19 = vmul.f32 %v7682_v44, %v9726_v60 }
 0x6db   : > { %3994 = vmatmul.mubr.bf16.gmra.mrb[140].mxu0 %v3879_v28  ;;  %v7684_v40 = vpop.eup %7683  ;;  %v6368_v6 = vclamps-f32 %v3696_v47, 5.0  ;;  %v3698_v27 = vpop.f32.mrb[122].mxu1 }
 0x6dc   : > { %v7686_v54 = vpop.eup %7685  ;;  %v3859_v14 = vmul.f32 %v7684_v40, %v9729_v48  ;;  %v6658_v2 = vpop.f32.mrb[60].mxu0  ;;  %v3825_v16 = vmul.f32 1.442695, %v6367_v53  ;;  %v6369_v11 = vclamps-f32 %v3698_v27, 5.0 }
 0x6dd   : > { %v3700_v38 = vpop.f32.mrb[123].mxu1  ;;  %v3860_v10 = vmul.f32 %v7686_v54, %v9733_v7  ;;  %v6659_v15 = vpop.f32.mrb[61].mxu0  ;;  %v3827_v26 = vmul.f32 1.442695, %v6368_v6 }
 0x6de   : > { %v6370_v49 = vclamps-f32 %v3700_v38, 5.0  ;;  %v3881_v8 = vpack.c.bf16 %v3859_v14, %v3857_v4  ;;  %v10022_v35 = vadd.f32 %v6659_v15, %v6658_v2  ;;  %v6661_v9 = vpop.f32.mrb[62].mxu0  ;;  %7695 = vpow2.f32 %v3825_v16 }
 0x6df   : > { %v3829_v43 = vmul.f32 1.442695, %v6369_v11  ;;  %v3882_v37 = vpack.c.bf16 %v3860_v10, %v3858_v19  ;;  %v6662_v21 = vpop.f32.mrb[63].mxu0  ;;  %7697 = vpow2.f32 %v3827_v26 }
 0x6e0   : > { %v3831_v48 = vmul.f32 1.442695, %v6370_v49  ;;  %v10024_v20 = vadd.f32 %v6662_v21, %v6661_v9  ;;  %v7688_v24 = vpop.eup %7687 }
 0x6e1   : > { %7699 = vpow2.f32 %v3829_v43  ;;  %4001 = vmatprep.mubr.bf16.mxu0 %v3882_v37  ;;  %v7690_v60 = vpop.eup %7689  ;;  %v3861_v30 = vmul.f32 %v7688_v24, %v9751_v25 }
 0x6e2   : > { %7701 = vpow2.f32 %v3831_v48  ;;  %v3704_v7 = vpop.f32.mrb[124].mxu1  ;;  %v7692_v61 = vpop.eup %7691  ;;  %v3862_v53 = vmul.f32 %v7690_v60, %v11153_v32 }
 0x6e3   : > { %4002 = vmatmul.mubr.bf16.gmra.mrb[144].mxu0 %v3881_v8  ;;  %v6371_v28 = vclamps-f32 %v3704_v7, 5.0  ;;  %v3706_v36 = vpop.f32.mrb[125].mxu1  ;;  %v3863_v1 = vmul.f32 %v7692_v61, %v9761_v46 }
 0x6e4   : > { %v7694_v0 = vpop.eup %7693  ;;  %v6372_v3 = vclamps-f32 %v3706_v36, 5.0  ;;  %v3708_v56 = vpop.f32.mrb[126].mxu1 }
 0x6e5   : > { %v3833_v44 = vmul.f32 1.442695, %v6371_v28  ;;  %v6373_v62 = vclamps-f32 %v3708_v56, 5.0  ;;  %v3710_v40 = vpop.f32.mrb[127].mxu1  ;;  %v3864_v47 = vmul.f32 %v7694_v0, %v9766_v12  ;;  %v3883_v27 = vpack.c.bf16 %v3863_v1, %v3861_v30 }
 0x6e6   : > { %v3835_v54 = vmul.f32 1.442695, %v6372_v3  ;;  %v6374_v6 = vclamps-f32 %v3710_v40, 5.0 }
 0x6e7   : > { %7703 = vpow2.f32 %v3833_v44  ;;  %v3837_v4 = vmul.f32 1.442695, %v6373_v62  ;;  %v3884_v14 = vpack.c.bf16 %v3864_v47, %v3862_v53 }
 0x6e8   : > { %7705 = vpow2.f32 %v3835_v54  ;;  %v3839_v2 = vmul.f32 1.442695, %v6374_v6  ;;  %v7696_v16 = vpop.eup %7695 }
 0x6e9   : > { %7707 = vpow2.f32 %v3837_v4  ;;  %4009 = vmatprep.mubr.bf16.mxu0 %v3884_v14  ;;  %v7698_v25 = vpop.eup %7697  ;;  %v3865_v32 = vmul.f32 %v7696_v16, %v9782_v41 }
 0x6ea   : > { %7709 = vpow2.f32 %v3839_v2  ;;  %v3866_v38 = vmul.f32 %v7698_v25, %v9784_v52 }
 0x6eb   : > { %4010 = vmatmul.mubr.bf16.gmra.mrb[148].mxu0 %v3883_v27  ;;  %v7700_v46 = vpop.eup %7699 }
 0x6ec   : > { %v7702_v11 = vpop.eup %7701  ;;  %v3867_v12 = vmul.f32 %v7700_v46, %v9788_v34 }
 0x6ed   : > { %v3868_v19 = vmul.f32 %v7702_v11, %v9790_v57 }
 0x6ee   : > { %v3885_v10 = vpack.c.bf16 %v3867_v12, %v3865_v32 }
 0x6ef   : > { %v3886_v15 = vpack.c.bf16 %v3868_v19, %v3866_v38 }
 0x6f1   : > { %v7704_v26 = vpop.eup %7703  ;;  %4017 = vmatprep.mubr.bf16.mxu1 %v3886_v15 }
 0x6f2   : > { %v7706_v49 = vpop.eup %7705  ;;  %4018 = vmatmul.mubr.bf16.vlgmr.msra.gmra.mrb[128].mxu1 %v3885_v10  ;;  %v3869_v43 = vmul.f32 %v7704_v26, %v11154_v31 }
 0x6f3   : > { %v7708_v8 = vpop.eup %7707  ;;  %v3870_v41 = vmul.f32 %v7706_v49, %v11156_v23 }
 0x6f4   : > { %v7710_v9 = vpop.eup %7709  ;;  %v3871_v37 = vmul.f32 %v7708_v8, %v11155_v17 }
 0x6f5   : > { %v3872_v34 = vmul.f32 %v7710_v9, %v11157_v13 }
 0x6f6   : > { %v3887_v21 = vpack.c.bf16 %v3871_v37, %v3869_v43 }
 0x6f7   : > { %v3888_v52 = vpack.c.bf16 %v3872_v34, %v3870_v41 }
 0x6f9   : > { %4025 = vmatprep.mubr.bf16.mxu1 %v3888_v52 }
 0x6fa   : > { %4026 = vmatmul.mubr.bf16.gmra.mrb[132].mxu1 %v3887_v21 }
 0x714   : > { %v6712_v57 = vpop.f32.mrb[64].mxu0 }
 0x715   : > { %v6713_v48 = vpop.f32.mrb[65].mxu0 }
 0x716   : > { %v6714_v24 = vadd.f32 %v6713_v48, %v6712_v57  ;;  %v6715_v60 = vpop.f32.mrb[66].mxu0 }
 0x717   : > { %v6716_v7 = vpop.f32.mrb[67].mxu0 }
 0x718   : > { %v6717_v61 = vadd.f32 %v6716_v7, %v6715_v60  ;;  %4066 = vrot.lane.b32.xlu0 %v6714_v24, %s7992_s19 }
 0x71a   : > { %4068 = vrot.lane.b32.xlu1 %v6717_v61, %s7992_s19 }
 0x71c   : > { %v6718_v31 = vpop.f32.mrb[68].mxu0 }
 0x71d   : > { %v6719_v17 = vpop.f32.mrb[69].mxu0 }
 0x71e   : > { %v6720_v23 = vadd.f32 %v6719_v17, %v6718_v31  ;;  %v6721_v28 = vpop.f32.mrb[70].mxu0 }
 0x71f   : > { %v6722_v13 = vpop.f32.mrb[71].mxu0 }
 0x720   : > { %v6723_v36 = vadd.f32 %v6722_v13, %v6721_v28  ;;  %4070 = vrot.lane.b32.xlu0 %v6720_v23, %s7992_s19 }
 0x722   : > { %4072 = vrot.lane.b32.xlu1 %v6723_v36, %s7992_s19 }
 0x724   : > { %v6724_v0 = vpop.f32.mrb[72].mxu0 }
 0x725   : > { %v6725_v3 = vpop.f32.mrb[73].mxu0 }
 0x726   : > { %v6726_v56 = vadd.f32 %v6725_v3, %v6724_v0  ;;  %v6727_v30 = vpop.f32.mrb[74].mxu0 }
 0x727   : > { %v6728_v1 = vpop.f32.mrb[75].mxu0 }
 0x728   : > { %v6729_v44 = vadd.f32 %v6728_v1, %v6727_v30  ;;  %4074 = vrot.lane.b32.xlu0 %v6726_v56, %s7992_s19 }
 0x72a   : > { %4076 = vrot.lane.b32.xlu1 %v6729_v44, %s7992_s19 }
 0x72c   : > { %v6730_v62 = vpop.f32.mrb[76].mxu0 }
 0x72d   : > { %v6731_v40 = vpop.f32.mrb[77].mxu0 }
 0x72e   : > { %v6732_v53 = vadd.f32 %v6731_v40, %v6730_v62  ;;  %v6733_v47 = vpop.f32.mrb[78].mxu0 }
 0x72f   : > { %v6734_v54 = vpop.f32.mrb[79].mxu0 }
 0x730   : > { %v6735_v6 = vadd.f32 %v6734_v54, %v6733_v47  ;;  %4078 = vrot.lane.b32.xlu0 %v6732_v53, %s7992_s19 }
 0x732   : > { %4080 = vrot.lane.b32.xlu1 %v6735_v6, %s7992_s19 }
 0x734   : > { %v6736_v27 = vpop.f32.mrb[80].mxu0 }
 0x735   : > { %v6737_v4 = vpop.f32.mrb[81].mxu0 }
 0x736   : > { %v6738_v14 = vadd.f32 %v6737_v4, %v6736_v27  ;;  %v6739_v2 = vpop.f32.mrb[82].mxu0 }
 0x737   : > { %v6740_v16 = vpop.f32.mrb[83].mxu0 }
 0x738   : > { %v6741_v25 = vadd.f32 %v6740_v16, %v6739_v2  ;;  %4082 = vrot.lane.b32.xlu0 %v6738_v14, %s7992_s19 }
 0x73a   : > { %4084 = vrot.lane.b32.xlu1 %v6741_v25, %s7992_s19 }
 0x73c   : > { %v6742_v46 = vpop.f32.mrb[84].mxu0 }
 0x73d   : > { %v6743_v11 = vpop.f32.mrb[85].mxu0 }
 0x73e   : > { %v6744_v32 = vadd.f32 %v6743_v11, %v6742_v46  ;;  %v6745_v12 = vpop.f32.mrb[86].mxu0 }
 0x73f   : > { %v6746_v38 = vpop.f32.mrb[87].mxu0 }
 0x740   : > { %v6747_v19 = vadd.f32 %v6746_v38, %v6745_v12  ;;  %4086 = vrot.lane.b32.xlu0 %v6744_v32, %s7992_s19 }
 0x742   : > { %4088 = vrot.lane.b32.xlu1 %v6747_v19, %s7992_s19 }
 0x744   : > { %v6748_v10 = vpop.f32.mrb[88].mxu0 }
 0x745   : > { %v6749_v15 = vpop.f32.mrb[89].mxu0 }
 0x746   : > { %v6750_v26 = vadd.f32 %v6749_v15, %v6748_v10  ;;  %v6751_v49 = vpop.f32.mrb[90].mxu0 }
 0x747   : > { %v6752_v8 = vpop.f32.mrb[91].mxu0 }
 0x748   : > { %v6753_v9 = vadd.f32 %v6752_v8, %v6751_v49  ;;  %4090 = vrot.lane.b32.xlu0 %v6750_v26, %s7992_s19 }
 0x74a   : > { %4092 = vrot.lane.b32.xlu1 %v6753_v9, %s7992_s19 }
 0x74c   : > { %v6754_v43 = vpop.f32.mrb[92].mxu0 }
 0x74d   : > { %v6755_v37 = vpop.f32.mrb[93].mxu0 }
 0x74e   : > { %v6756_v41 = vadd.f32 %v6755_v37, %v6754_v43  ;;  %v6757_v34 = vpop.f32.mrb[94].mxu0 }
 0x74f   : > { %v6758_v21 = vpop.f32.mrb[95].mxu0 }
 0x750   : > { %v6759_v52 = vadd.f32 %v6758_v21, %v6757_v34  ;;  %4094 = vrot.lane.b32.xlu0 %v6756_v41, %s7992_s19 }
 0x752   : > { %4096 = vrot.lane.b32.xlu1 %v6759_v52, %s7992_s19 }
 0x754   : > { %v6808_v57 = vpop.f32.mrb[96].mxu0 }
 0x755   : > { %v6809_v48 = vpop.f32.mrb[97].mxu0 }
 0x756   : > { %v6810_v24 = vadd.f32 %v6809_v48, %v6808_v57  ;;  %v6811_v60 = vpop.f32.mrb[98].mxu0 }
 0x757   : > { %v6812_v7 = vpop.f32.mrb[99].mxu0 }
 0x758   : > { %v6813_v61 = vadd.f32 %v6812_v7, %v6811_v60  ;;  %4130 = vrot.lane.b32.xlu0 %v6810_v24, %s7993_s11 }
 0x75a   : > { %4132 = vrot.lane.b32.xlu1 %v6813_v61, %s7993_s11 }
 0x75c   : > { %v6814_v31 = vpop.f32.mrb[100].mxu0 }
 0x75d   : > { %v6815_v17 = vpop.f32.mrb[101].mxu0 }
 0x75e   : > { %v6816_v23 = vadd.f32 %v6815_v17, %v6814_v31  ;;  %v6817_v28 = vpop.f32.mrb[102].mxu0 }
 0x75f   : > { %v6818_v13 = vpop.f32.mrb[103].mxu0 }
 0x760   : > { %v6819_v36 = vadd.f32 %v6818_v13, %v6817_v28  ;;  %4134 = vrot.lane.b32.xlu0 %v6816_v23, %s7993_s11 }
 0x762   : > { %4136 = vrot.lane.b32.xlu1 %v6819_v36, %s7993_s11 }
 0x764   : > { %v6820_v0 = vpop.f32.mrb[104].mxu0 }
 0x765   : > { %v6821_v3 = vpop.f32.mrb[105].mxu0 }
 0x766   : > { %v6822_v56 = vadd.f32 %v6821_v3, %v6820_v0  ;;  %v6823_v30 = vpop.f32.mrb[106].mxu0 }
 0x767   : > { %v6824_v1 = vpop.f32.mrb[107].mxu0 }
 0x768   : > { %v6825_v44 = vadd.f32 %v6824_v1, %v6823_v30  ;;  %4138 = vrot.lane.b32.xlu0 %v6822_v56, %s7993_s11 }
 0x76a   : > { %4140 = vrot.lane.b32.xlu1 %v6825_v44, %s7993_s11 }
 0x76c   : > { %v6826_v62 = vpop.f32.mrb[108].mxu0 }
 0x76d   : > { %v6827_v40 = vpop.f32.mrb[109].mxu0 }
 0x76e   : > { %v6828_v53 = vadd.f32 %v6827_v40, %v6826_v62  ;;  %v6829_v47 = vpop.f32.mrb[110].mxu0 }
 0x76f   : > { %v6830_v54 = vpop.f32.mrb[111].mxu0 }
 0x770   : > { %v6831_v6 = vadd.f32 %v6830_v54, %v6829_v47  ;;  %4142 = vrot.lane.b32.xlu0 %v6828_v53, %s7993_s11 }
 0x772   : > { %4144 = vrot.lane.b32.xlu1 %v6831_v6, %s7993_s11 }
 0x774   : > { %v6832_v27 = vpop.f32.mrb[112].mxu0 }
 0x775   : > { %v6833_v4 = vpop.f32.mrb[113].mxu0 }
 0x776   : > { %v6834_v14 = vadd.f32 %v6833_v4, %v6832_v27  ;;  %v6835_v2 = vpop.f32.mrb[114].mxu0 }
 0x777   : > { %v6836_v16 = vpop.f32.mrb[115].mxu0 }
 0x778   : > { %v6837_v25 = vadd.f32 %v6836_v16, %v6835_v2  ;;  %4146 = vrot.lane.b32.xlu0 %v6834_v14, %s7993_s11 }
 0x77a   : > { %4148 = vrot.lane.b32.xlu1 %v6837_v25, %s7993_s11 }
 0x77d   : > { %v6838_v46 = vpop.f32.mrb[116].mxu0 }
 0x77e   : > { %v6839_v11 = vpop.f32.mrb[117].mxu0 }
 0x77f   : > { %v6840_v32 = vadd.f32 %v6839_v11, %v6838_v46  ;;  %v6841_v12 = vpop.f32.mrb[118].mxu0 }
 0x780   : > { %v6842_v38 = vpop.f32.mrb[119].mxu0 }
 0x781   : > { %v6843_v19 = vadd.f32 %v6842_v38, %v6841_v12  ;;  %4150 = vrot.lane.b32.xlu0 %v6840_v32, %s7993_s11 }
 0x783   : > { %4152 = vrot.lane.b32.xlu1 %v6843_v19, %s7993_s11 }
 0x785   : > { %v6844_v10 = vpop.f32.mrb[120].mxu0 }
 0x786   : > { %v6845_v15 = vpop.f32.mrb[121].mxu0 }
 0x787   : > { %v6846_v26 = vadd.f32 %v6845_v15, %v6844_v10  ;;  %v6847_v49 = vpop.f32.mrb[122].mxu0 }
 0x788   : > { %v6848_v8 = vpop.f32.mrb[123].mxu0 }
 0x789   : > { %v6849_v9 = vadd.f32 %v6848_v8, %v6847_v49  ;;  %4154 = vrot.lane.b32.xlu0 %v6846_v26, %s7993_s11 }
 0x78a   : > { %v10068_v41 = vpop.permute.xlu0 %4066 }
 0x78b   : > { %4156 = vrot.lane.b32.xlu1 %v6849_v9, %s7993_s11 }
 0x78c   : > { %v10070_v57 = vpop.permute.xlu1 %4068 }
 0x78d   : > { %v6850_v43 = vpop.f32.mrb[124].mxu0 }
 0x78e   : > { %v6851_v37 = vpop.f32.mrb[125].mxu0 }
 0x78f   : > { %v6852_v34 = vadd.f32 %v6851_v37, %v6850_v43  ;;  %v6853_v21 = vpop.f32.mrb[126].mxu0 }
 0x790   : > { %v6854_v52 = vpop.f32.mrb[127].mxu0 }
 0x791   : > { %v6855_v48 = vadd.f32 %v6854_v52, %v6853_v21  ;;  %4158 = vrot.lane.b32.xlu0 %v6852_v34, %s7993_s11 }
 0x792   : > { %v4071_v24 = vpop.permute.xlu0 %4070 }
 0x793   : > { %4160 = vrot.lane.b32.xlu1 %v6855_v48, %s7993_s11  ;;  %v10076_v60 = vsel %vm4242_vm4, %v9972_v33, %v4071_v24 }
 0x794   : > { %v4073_v7 = vpop.permute.xlu1 %4072 }
 0x795   : > { %v6904_v61 = vpop.f32.mrb[128].mxu0  ;;  %v10080_v31 = vsel %vm4242_vm4, %v9976_v18, %v4073_v7 }
 0x796   : > { %v6905_v17 = vpop.f32.mrb[129].mxu0 }
 0x797   : > { %v6906_v23 = vadd.f32 %v6905_v17, %v6904_v61  ;;  %v6907_v28 = vpop.f32.mrb[130].mxu0 }
 0x798   : > { %v6908_v13 = vpop.f32.mrb[131].mxu0 }
 0x799   : > { %v6909_v36 = vadd.f32 %v6908_v13, %v6907_v28  ;;  %4194 = vrot.lane.b32.xlu0 %v6906_v23, %s7994_s12 }
 0x79a   : > { %v4075_v0 = vpop.permute.xlu0 %4074 }
 0x79b   : > { %4196 = vrot.lane.b32.xlu1 %v6909_v36, %s7994_s12  ;;  %v10086_v33 = vsel %vm4242_vm4, %v9980_v22, %v4075_v0 }
 0x79c   : > { %v4077_v3 = vpop.permute.xlu1 %4076 }
 0x79d   : > { %v10090_v18 = vsel %vm4242_vm4, %v9984_v63, %v4077_v3 }
 0x79e   : > { %v6910_v56 = vpop.f32.mrb[132].mxu0 }
 0x79f   : > { %v6911_v30 = vpop.f32.mrb[133].mxu0 }
 0x7a0   : > { %v6912_v1 = vadd.f32 %v6911_v30, %v6910_v56  ;;  %v6913_v44 = vpop.f32.mrb[134].mxu0 }
 0x7a1   : > { %v6914_v62 = vpop.f32.mrb[135].mxu0 }
 0x7a2   : > { %v6915_v40 = vadd.f32 %v6914_v62, %v6913_v44  ;;  %4198 = vrot.lane.b32.xlu0 %v6912_v1, %s7994_s12  ;;  %v4079_v53 = vpop.permute.xlu0 %4078 }
 0x7a3   : > { %v10096_v22 = vsel %vm4242_vm4, %v9990_v29, %v4079_v53 }
 0x7a4   : > { %4200 = vrot.lane.b32.xlu1 %v6915_v40, %s7994_s12  ;;  %v4081_v47 = vpop.permute.xlu1 %4080 }
 0x7a5   : > { %v10100_v63 = vsel %vm4242_vm4, %v9992_v42, %v4081_v47 }
 0x7a6   : > { %v6916_v54 = vpop.f32.mrb[136].mxu0 }
 0x7a7   : > { %v6917_v6 = vpop.f32.mrb[137].mxu0 }
 0x7a8   : > { %v6918_v27 = vadd.f32 %v6917_v6, %v6916_v54  ;;  %v6919_v4 = vpop.f32.mrb[138].mxu0 }
 0x7a9   : > { %v6920_v14 = vpop.f32.mrb[139].mxu0 }
 0x7aa   : > { %v6921_v2 = vadd.f32 %v6920_v14, %v6919_v4  ;;  %4202 = vrot.lane.b32.xlu0 %v6918_v27, %s7994_s12  ;;  %v4083_v16 = vpop.permute.xlu0 %4082 }
 0x7ab   : > { %v10106_v29 = vsel %vm4242_vm4, %v9998_v58, %v4083_v16 }
 0x7ac   : > { %4204 = vrot.lane.b32.xlu1 %v6921_v2, %s7994_s12  ;;  %v4085_v25 = vpop.permute.xlu1 %4084 }
 0x7ad   : > { %v10110_v42 = vsel %vm4242_vm4, %v10000_v50, %v4085_v25 }
 0x7ae   : > { %v6922_v46 = vpop.f32.mrb[140].mxu0 }
 0x7af   : > { %v6923_v11 = vpop.f32.mrb[141].mxu0 }
 0x7b0   : > { %v6924_v32 = vadd.f32 %v6923_v11, %v6922_v46  ;;  %v6925_v12 = vpop.f32.mrb[142].mxu0 }
 0x7b1   : > { %v6926_v38 = vpop.f32.mrb[143].mxu0 }
 0x7b2   : > { %v6927_v19 = vadd.f32 %v6926_v38, %v6925_v12  ;;  %4206 = vrot.lane.b32.xlu0 %v6924_v32, %s7994_s12  ;;  %v4087_v10 = vpop.permute.xlu0 %4086 }
 0x7b3   : > { %v10116_v58 = vsel %vm4242_vm4, %v10006_v45, %v4087_v10  ;;  %v4243_v10 = vsel %vm4242_vm4, %v9964_v5, %v10068_v41  ;;  %v4036_v41 = vld [vmem:[#allocation3 + $0x10] sm:$0xff] }
 0x7b4   : > { %4208 = vrot.lane.b32.xlu1 %v6927_v19, %s7994_s12  ;;  %v4089_v15 = vpop.permute.xlu1 %4088 }
 0x7b5   : > { %v10120_v50 = vsel %vm4242_vm4, %v10008_v59, %v4089_v15  ;;  %v4034_v15 = vld [vmem:[#allocation3] sm:$0xff] }
 0x7b6   : > { %v6928_v26 = vpop.f32.mrb[144].mxu0 }
 0x7b7   : > { %v6929_v49 = vpop.f32.mrb[145].mxu0 }
 0x7b8   : > { %v6930_v8 = vadd.f32 %v6929_v49, %v6928_v26  ;;  %v6931_v9 = vpop.f32.mrb[146].mxu0 }
 0x7b9   : > { %v6932_v43 = vpop.f32.mrb[147].mxu0 }
 0x7ba   : > { %v6933_v37 = vadd.f32 %v6932_v43, %v6931_v9  ;;  %4210 = vrot.lane.b32.xlu0 %v6930_v8, %s7994_s12  ;;  %v4091_v34 = vpop.permute.xlu0 %4090  ;;  %v4244_v8 = vsel %vm4242_vm4, %v9968_v55, %v10070_v57  ;;  %v4035_v43 = vld [vmem:[#allocation3 + $0x8] sm:$0xff]  ;;  %v4037_v57 = vld [vmem:[#allocation3 + $0x18] sm:$0xff] }
 0x7bb   : > { %v10126_v45 = vsel %vm4242_vm4, %v10014_v39, %v4091_v34 }
 0x7bc   : > { %4212 = vrot.lane.b32.xlu1 %v6933_v37, %s7994_s12  ;;  %v4093_v21 = vpop.permute.xlu1 %4092 }
 0x7bd   : > { %v10130_v59 = vsel %vm4242_vm4, %v10016_v51, %v4093_v21 }
 0x7be   : > { %v6934_v52 = vpop.f32.mrb[148].mxu0 }
 0x7bf   : > { %v6935_v48 = vpop.f32.mrb[149].mxu0 }
 0x7c0   : > { %v6936_v24 = vadd.f32 %v6935_v48, %v6934_v52  ;;  %v6937_v7 = vpop.f32.mrb[150].mxu0 }
 0x7c1   : > { %v6938_v61 = vpop.f32.mrb[151].mxu0 }
 0x7c2   : > { %v6939_v17 = vadd.f32 %v6938_v61, %v6937_v7  ;;  %4214 = vrot.lane.b32.xlu0 %v6936_v24, %s7994_s12  ;;  %v4095_v23 = vpop.permute.xlu0 %4094 }
 0x7c3   : > { %v10136_v39 = vsel %vm4242_vm4, %v10022_v35, %v4095_v23 }
 0x7c4   : > { %4216 = vrot.lane.b32.xlu1 %v6939_v17, %s7994_s12  ;;  %v4097_v28 = vpop.permute.xlu1 %4096 }
 0x7c5   : > { %v6940_v13 = vpop.f32.mrb[128].mxu1  ;;  %v10140_v51 = vsel %vm4242_vm4, %v10024_v20, %v4097_v28 }
 0x7c6   : > { %v6941_v36 = vpop.f32.mrb[129].mxu1 }
 0x7c7   : > { %v6942_v0 = vadd.f32 %v6941_v36, %v6940_v13  ;;  %v6943_v3 = vpop.f32.mrb[130].mxu1  ;;  %v4038_v13 = vld [vmem:[#allocation3 + $0x20] sm:$0xff] }
 0x7c8   : > { %v6944_v56 = vpop.f32.mrb[131].mxu1 }
 0x7c9   : > { %v6945_v30 = vadd.f32 %v6944_v56, %v6943_v3  ;;  %4218 = vrot.lane.b32.xlu0 %v6942_v0, %s7994_s12  ;;  %v4039_v3 = vld [vmem:[#allocation3 + $0x28] sm:$0xff] }
 0x7ca   : > { %v4131_v20 = vpop.permute.xlu0 %4130 }
 0x7cb   : > { %4220 = vrot.lane.b32.xlu1 %v6945_v30, %s7994_s12  ;;  %v4260_v26 = vsel %vm4259_vm5, %v4243_v10, %v4131_v20  ;;  %v4043_v10 = vld [vmem:[#allocation3 + $0x48] sm:$0xff] }
 0x7cc   : > { %v4133_v47 = vpop.permute.xlu1 %4132 }
 0x7cd   : > { %v6946_v1 = vpop.f32.mrb[132].mxu1  ;;  %v4261_v37 = vsel %vm4259_vm5, %v4244_v8, %v4133_v47  ;;  %v4044_v8 = vld [vmem:[#allocation3 + $0x50] sm:$0xff] }
 0x7ce   : > { %v6947_v44 = vpop.f32.mrb[133].mxu1 }
 0x7cf   : > { %v6948_v62 = vadd.f32 %v6947_v44, %v6946_v1  ;;  %v6949_v35 = vpop.f32.mrb[134].mxu1 }
 0x7d0   : > { %v6950_v40 = vpop.f32.mrb[135].mxu1 }
 0x7d1   : > { %v6951_v53 = vadd.f32 %v6950_v40, %v6949_v35  ;;  %4222 = vrot.lane.b32.xlu0 %v6948_v62, %s7994_s12  ;;  %v4040_v62 = vld [vmem:[#allocation3 + $0x30] sm:$0xff] }
 0x7d2   : > { %v4135_v54 = vpop.permute.xlu0 %4134 }
 0x7d3   : > { %4224 = vrot.lane.b32.xlu1 %v6951_v53, %s7994_s12  ;;  %v4262_v48 = vsel %vm4259_vm5, %v10076_v60, %v4135_v54  ;;  %v4041_v53 = vld [vmem:[#allocation3 + $0x38] sm:$0xff] }
 0x7d4   : > { %v4137_v6 = vpop.permute.xlu1 %4136 }
 0x7d5   : > { %v4263_v7 = vsel %vm4259_vm5, %v10080_v31, %v4137_v6 }
 0x7da   : > { %v4139_v27 = vpop.permute.xlu0 %4138 }
 0x7db   : > { %v4264_v60 = vsel %vm4259_vm5, %v10086_v33, %v4139_v27  ;;  %v4042_v27 = vld [vmem:[#allocation3 + $0x40] sm:$0xff] }
 0x7dc   : > { %v4141_v4 = vpop.permute.xlu1 %4140 }
 0x7dd   : > { %v4265_v31 = vsel %vm4259_vm5, %v10090_v18, %v4141_v4 }
 0x7e2   : > { %v4143_v14 = vpop.permute.xlu0 %4142 }
 0x7e3   : > { %v4266_v33 = vsel %vm4259_vm5, %v10096_v22, %v4143_v14 }
 0x7e4   : > { %v4145_v2 = vpop.permute.xlu1 %4144 }
 0x7e5   : > { %v4267_v18 = vsel %vm4259_vm5, %v10100_v63, %v4145_v2 }
 0x7ea   : > { %v4147_v16 = vpop.permute.xlu0 %4146 }
 0x7eb   : > { %v4268_v22 = vsel %vm4259_vm5, %v10106_v29, %v4147_v16 }
 0x7ec   : > { %v10146_v25 = vpop.permute.xlu1 %4148 }
 0x7ed   : > { %v4269_v63 = vsel %vm4259_vm5, %v10110_v42, %v10146_v25 }
 0x7f3   : > { %v10148_v46 = vpop.permute.xlu0 %4150 }
 0x7f4   : > { %v4270_v29 = vsel %vm4259_vm5, %v10116_v58, %v10148_v46 }
 0x7f5   : > { %v10150_v11 = vpop.permute.xlu1 %4152 }
 0x7f6   : > { %v4271_v42 = vsel %vm4259_vm5, %v10120_v50, %v10150_v11 }
 0x7fb   : > { %v10152_v32 = vpop.permute.xlu0 %4154 }
 0x7fc   : > { %v4272_v58 = vsel %vm4259_vm5, %v10126_v45, %v10152_v32 }
 0x7fd   : > { %v10154_v12 = vpop.permute.xlu1 %4156 }
 0x7fe   : > { %v4273_v50 = vsel %vm4259_vm5, %v10130_v59, %v10154_v12 }
 0x803   : > { %v10156_v38 = vpop.permute.xlu0 %4158 }
 0x804   : > { %v4274_v45 = vsel %vm4259_vm5, %v10136_v39, %v10156_v38 }
 0x805   : > { %v10158_v19 = vpop.permute.xlu1 %4160 }
 0x806   : > { %v4275_v59 = vsel %vm4259_vm5, %v10140_v51, %v10158_v19 }
 0x80b   : > { %v4195_v49 = vpop.permute.xlu0 %4194 }
 0x80c   : > { %v4277_v9 = vsel %vm4276_vm6, %v4260_v26, %v4195_v49 }
 0x80d   : > { %v4293_v34 = vadd.f32 %v4277_v9, %v4034_v15  ;;  %v4197_v21 = vpop.permute.xlu1 %4196 }
 0x80e   : > { %v4278_v52 = vsel %vm4276_vm6, %v4261_v37, %v4197_v21 }
 0x80f   : > { %4310 = vst.msk [vmem:[#allocation3] sm:$0xff] %vm903_vm2, %v4293_v34  ;;  %v4294_v5 = vadd.f32 %v4278_v52, %v4035_v43  ;;  %v4045_v43 = vld [vmem:[#allocation3 + $0x58] sm:$0xff]  ;;  %v4046_v52 = vld [vmem:[#allocation3 + $0x60] sm:$0xff] }
 0x811   : > { %4311 = vst.msk [vmem:[#allocation3 + $0x8] sm:$0xff] %vm903_vm2, %v4294_v5 }
 0x814   : > { %v4199_v24 = vpop.permute.xlu0 %4198 }
 0x815   : > { %v4279_v55 = vsel %vm4276_vm6, %v4262_v48, %v4199_v24 }
 0x816   : > { %v4295_v61 = vadd.f32 %v4279_v55, %v4036_v41  ;;  %v4201_v17 = vpop.permute.xlu1 %4200  ;;  %v4047_v41 = vld [vmem:[#allocation3 + $0x68] sm:$0xff] }
 0x817   : > { %v4280_v23 = vsel %vm4276_vm6, %v4263_v7, %v4201_v17 }
 0x818   : > { %4312 = vst.msk [vmem:[#allocation3 + $0x10] sm:$0xff] %vm903_vm2, %v4295_v61  ;;  %v4296_v28 = vadd.f32 %v4280_v23, %v4037_v57  ;;  %v4048_v57 = vld [vmem:[#allocation3 + $0x70] sm:$0xff]  ;;  %v4049_v61 = vld [vmem:[#allocation3 + $0x78] sm:$0xff] }
 0x81a   : > { %4313 = vst.msk [vmem:[#allocation3 + $0x18] sm:$0xff] %vm903_vm2, %v4296_v28 }
 0x81c   : > { %v4203_v36 = vpop.permute.xlu0 %4202 }
 0x81d   : > { %v4281_v0 = vsel %vm4276_vm6, %v4264_v60, %v4203_v36 }
 0x81e   : > { %v4297_v56 = vadd.f32 %v4281_v0, %v4038_v13  ;;  %v4205_v30 = vpop.permute.xlu1 %4204 }
 0x81f   : > { %v4282_v1 = vsel %vm4276_vm6, %v4265_v31, %v4205_v30 }
 0x820   : > { %4314 = vst.msk [vmem:[#allocation3 + $0x20] sm:$0xff] %vm903_vm2, %v4297_v56  ;;  %v4298_v44 = vadd.f32 %v4282_v1, %v4039_v3 }
 0x822   : > { %4315 = vst.msk [vmem:[#allocation3 + $0x28] sm:$0xff] %vm903_vm2, %v4298_v44 }
 0x824   : > { %v4207_v35 = vpop.permute.xlu0 %4206 }
 0x825   : > { %v4283_v40 = vsel %vm4276_vm6, %v4266_v33, %v4207_v35 }
 0x826   : > { %v4299_v20 = vadd.f32 %v4283_v40, %v4040_v62  ;;  %v4209_v47 = vpop.permute.xlu1 %4208 }
 0x827   : > { %v4284_v54 = vsel %vm4276_vm6, %v4267_v18, %v4209_v47 }
 0x828   : > { %4316 = vst.msk [vmem:[#allocation3 + $0x30] sm:$0xff] %vm903_vm2, %v4299_v20  ;;  %v4300_v6 = vadd.f32 %v4284_v54, %v4041_v53 }
 0x82a   : > { %4317 = vst.msk [vmem:[#allocation3 + $0x38] sm:$0xff] %vm903_vm2, %v4300_v6 }
 0x82c   : > { %v4211_v4 = vpop.permute.xlu0 %4210 }
 0x82d   : > { %v4285_v14 = vsel %vm4276_vm6, %v4268_v22, %v4211_v4 }
 0x82e   : > { %v4301_v2 = vadd.f32 %v4285_v14, %v4042_v27  ;;  %v4213_v15 = vpop.permute.xlu1 %4212 }
 0x82f   : > { %v4286_v26 = vsel %vm4276_vm6, %v4269_v63, %v4213_v15 }
 0x830   : > { %4318 = vst.msk [vmem:[#allocation3 + $0x40] sm:$0xff] %vm903_vm2, %v4301_v2  ;;  %v4302_v49 = vadd.f32 %v4286_v26, %v4043_v10 }
 0x832   : > { %4319 = vst.msk [vmem:[#allocation3 + $0x48] sm:$0xff] %vm903_vm2, %v4302_v49 }
 0x834   : > { %v4215_v16 = vpop.permute.xlu0 %4214 }
 0x835   : > { %v4287_v9 = vsel %vm4276_vm6, %v4270_v29, %v4215_v16 }
 0x836   : > { %v4303_v25 = vadd.f32 %v4287_v9, %v4044_v8  ;;  %v4217_v37 = vpop.permute.xlu1 %4216 }
 0x837   : > { %v4288_v34 = vsel %vm4276_vm6, %v4271_v42, %v4217_v37 }
 0x838   : > { %4320 = vst.msk [vmem:[#allocation3 + $0x50] sm:$0xff] %vm903_vm2, %v4303_v25  ;;  %v4304_v21 = vadd.f32 %v4288_v34, %v4045_v43 }
 0x83a   : > { %4321 = vst.msk [vmem:[#allocation3 + $0x58] sm:$0xff] %vm903_vm2, %v4304_v21 }
 0x83b   : > { %v4219_v46 = vpop.permute.xlu0 %4218 }
 0x83c   : > { %v4289_v5 = vsel %vm4276_vm6, %v4272_v58, %v4219_v46 }
 0x83d   : > { %v4305_v11 = vadd.f32 %v4289_v5, %v4046_v52  ;;  %v4221_v48 = vpop.permute.xlu1 %4220 }
 0x83e   : > { %v4290_v24 = vsel %vm4276_vm6, %v4273_v50, %v4221_v48 }
 0x83f   : > { %4322 = vst.msk [vmem:[#allocation3 + $0x60] sm:$0xff] %vm903_vm2, %v4305_v11  ;;  %v4306_v55 = vadd.f32 %v4290_v24, %v4047_v41 }
 0x841   : > { %4323 = vst.msk [vmem:[#allocation3 + $0x68] sm:$0xff] %vm903_vm2, %v4306_v55 }
 0x843   : > { %v4223_v32 = vpop.permute.xlu0 %4222 }
 0x844   : > { %v4291_v7 = vsel %vm4276_vm6, %v4274_v45, %v4223_v32 }
 0x845   : > { %v4307_v12 = vadd.f32 %v4291_v7, %v4048_v57  ;;  %v4225_v17 = vpop.permute.xlu1 %4224 }
 0x846   : > { %v4292_v23 = vsel %vm4276_vm6, %v4275_v59, %v4225_v17 }
 0x847   : > { %4324 = vst.msk [vmem:[#allocation3 + $0x70] sm:$0xff] %vm903_vm2, %v4307_v12  ;;  %v4308_v28 = vadd.f32 %v4292_v23, %v4049_v61 }
 0x849   : > { %4325 = vst.msk [vmem:[#allocation3 + $0x78] sm:$0xff] %vm903_vm2, %v4308_v28 }
 0x84a PF: > { %v10235_v13 = vld [vmem:[#allocation3] sm:$0xff]  ;;  %v10237_v39 = vld [vmem:[#allocation3 + $0x8] sm:$0xff]  ;;  %v7995_v38 = vmov 26   ;;  %v7996_v60 = vmov 17   ;;  %v10249_v36 = vld [vmem:[#allocation3 + $0x18] sm:$0xff]  ;;  %v7997_v56 = vmov 35  }
 0x84b   : > { %7712 = vset.pattern.permute.xlu1 %v7995_v38  ;;  %7711 = vset.pattern.permute.xlu0 %v7996_v60  ;;  %v10242_v51 = vmax.f32 %v10235_v13, 1e-30  ;;  %v10247_v19 = vmax.f32 %v10237_v39, 1e-30  ;;  %v10254_v0 = vmax.f32 %v10249_v36, 1e-30 }
 0x84c   : > { %v10256_v3 = vld [vmem:[#allocation3 + $0x28] sm:$0xff]  ;;  %v10258_v31 = vld [vmem:[#allocation3 + $0x10] sm:$0xff]  ;;  %v10266_v1 = vld [vmem:[#allocation3 + $0x38] sm:$0xff]  ;;  %v7998_v29 = vmov 8   ;;  %s7999_s14 = smov 126   ;;  %s8000_s22 = smov 127  }
 0x84d   : > { %4570 = vperm.xlu1 %7712, %v10242_v51   ;;  %4474 = vperm.xlu0 %7711, %v10242_v51   ;;  %v10263_v30 = vmax.f32 %v10256_v3, 1e-30  ;;  %v10269_v44 = vmax.f32 %v10258_v31, 1e-30  ;;  %v10273_v62 = vmax.f32 %v10266_v1, 1e-30 }
 0x84e   : > { %v10276_v33 = vld [vmem:[#allocation3 + $0x48] sm:$0xff]  ;;  %v10283_v40 = vld [vmem:[#allocation3 + $0x58] sm:$0xff]  ;;  %v10300_v54 = vld [vmem:[#allocation3 + $0x20] sm:$0xff]  ;;  %s8001_s26 = smov 125   ;;  %vm4953_vm7 = vcmask 64512   ;;  %vm4970_vm8 = vcmask 130048  }
 0x84f   : > { %v10281_v35 = vmax.f32 %v10276_v33, 1e-30  ;;  %v10289_v53 = vmax.f32 %v10283_v40, 1e-30  ;;  %v10291_v18 = vld [vmem:[#allocation3 + $0x68] sm:$0xff]  ;;  %v10316_v22 = vld [vmem:[#allocation3 + $0x30] sm:$0xff] }
 0x850   : > { %v10296_v20 = vmax.f32 %v10291_v18, 1e-30  ;;  %v10298_v47 = vld [vmem:[#allocation3 + $0x78] sm:$0xff]  ;;  %v4349_v27 = vmax.f32 %v10300_v54, 1e-30  ;;  %v10320_v14 = vld [vmem:[#allocation3 + $0x40] sm:$0xff] }
 0x851   : > { %4574 = vperm.xlu1 %7712, %v10247_v19   ;;  %4478 = vperm.xlu0 %7711, %v10247_v19   ;;  %v10306_v6 = vmax.f32 %v10298_v47, 1e-30  ;;  %v4351_v4 = vmax.f32 %v10316_v22, 1e-30  ;;  %v4353_v10 = vmax.f32 %v10320_v14, 1e-30 }
 0x852   : > { %v10324_v63 = vld [vmem:[#allocation3 + $0x50] sm:$0xff]  ;;  %v10328_v15 = vld [vmem:[#allocation3 + $0x60] sm:$0xff]  ;;  %vm4987_vm9 = vcmask 195584   ;;  %vm5821_vm10 = vcmask 523264  }
 0x853   : > { %v4355_v2 = vmax.f32 %v10324_v63, 1e-30  ;;  %v10332_v26 = vmax.f32 %v10328_v15, 1e-30  ;;  %v10334_v49 = vld [vmem:[#allocation3 + $0x70] sm:$0xff]  ;;  %vm7243_vm11 = vmpackc.low %vm5821_vm10, %vm5821_vm10 }
 0x854   : > { %v10339_v8 = vmax.f32 %v10334_v49, 1e-30  ;;  %v5004_v61 = vld [vmem:[%s11098_s5 + $0x6d] sm:$0xff]  ;;  %v5005_v59 = vld [vmem:[%s11098_s5 + $0x75] sm:$0xff] }
 0x855   : > { %7713 = vset.pattern.permute.xlu1 %v7997_v56  ;;  %4486 = vperm.xlu0 %7711, %v10254_v0   ;;  %v7206_v12 = vpack.c.bf16 %v5005_v59, %v5004_v61 }
 0x856   : > { %4670 = vperm.xlu1 %7713, %v10247_v19  }
 0x857   : > { %7208 = vmatprep.subr.msk.bf16.mxu0 %vm8227_vm1, %v7206_v12 }
 0x858   : > { %7211 = vmatpush3.bf16.xpose.msk.msra.mxu0 %vm8227_vm1, %v7206_v12 }
 0x859   : > { %4494 = vperm.xlu0 %7711, %v10263_v30  }
 0x85a   : > { %7714 = vset.pattern.permute.xlu1 %v7996_v60 }
 0x85b   : > { %4482 = vperm.xlu1 %7714, %v10269_v44  }
 0x85d   : > { %4502 = vperm.xlu0 %7711, %v10273_v62  }
 0x85f   : > { %7715 = vset.pattern.permute.xlu1 %v7995_v38 }
 0x860   : > { %4578 = vperm.xlu1 %7715, %v10269_v44  }
 0x861   : > { %4510 = vperm.xlu0 %7711, %v10281_v35  }
 0x864   : > { %4582 = vperm.xlu1 %7715, %v10254_v0  }
 0x865   : > { %4518 = vperm.xlu0 %7711, %v10289_v53  }
 0x868   : > { %7716 = vset.pattern.permute.xlu1 %v7997_v56 }
 0x869   : > { %4678 = vperm.xlu1 %7716, %v10254_v0   ;;  %4526 = vperm.xlu0 %7711, %v10296_v20  }
 0x86d   : > { %7717 = vset.pattern.permute.xlu1 %v7996_v60  ;;  %4534 = vperm.xlu0 %7711, %v10306_v6  }
 0x86e   : > { %4490 = vperm.xlu1 %7717, %v4349_v27  }
 0x871   : > { %7733 = vset.pattern.permute.xlu0 %v7997_v56 }
 0x872   : > { %7718 = vset.pattern.permute.xlu1 %v7995_v38  ;;  %4666 = vperm.xlu0 %7733, %v10242_v51  }
 0x873   : > { %4586 = vperm.xlu1 %7718, %v4349_v27  }
 0x876   : > { %4674 = vperm.xlu0 %7733, %v10269_v44  }
 0x877   : > { %4590 = vperm.xlu1 %7718, %v10263_v30  }
 0x87a   : > { %4682 = vperm.xlu0 %7733, %v4349_v27  }
 0x87b   : > { %7719 = vset.pattern.permute.xlu1 %v7997_v56 }
 0x87c   : > { %4686 = vperm.xlu1 %7719, %v10263_v30  }
 0x87e   : > { %4690 = vperm.xlu0 %7733, %v4351_v4  }
 0x880   : > { %7720 = vset.pattern.permute.xlu1 %v7996_v60 }
 0x881   : > { %4498 = vperm.xlu1 %7720, %v4351_v4  }
 0x882   : > { %4698 = vperm.xlu0 %7733, %v4353_v10  }
 0x885   : > { %7721 = vset.pattern.permute.xlu1 %v7995_v38 }
 0x886   : > { %4594 = vperm.xlu1 %7721, %v4351_v4   ;;  %4706 = vperm.xlu0 %7733, %v4355_v2  }
 0x88a   : > { %4598 = vperm.xlu1 %7721, %v10273_v62   ;;  %4714 = vperm.xlu0 %7733, %v10332_v26  }
 0x88e   : > { %7722 = vset.pattern.permute.xlu1 %v7997_v56  ;;  %4722 = vperm.xlu0 %7733, %v10339_v8  }
 0x88f   : > { %4694 = vperm.xlu1 %7722, %v10273_v62  }
 0x892   : > { %7737 = vset.pattern.permute.xlu0 %v7998_v29 }
 0x893   : > { %7723 = vset.pattern.permute.xlu1 %v7996_v60  ;;  %4368 = vperm.xlu0 %7737, %v10247_v19  }
 0x894   : > { %4506 = vperm.xlu1 %7723, %v4353_v10  }
 0x897   : > { %4383 = vperm.xlu0 %7737, %v4349_v27  }
 0x898   : > { %7724 = vset.pattern.permute.xlu1 %v7995_v38 }
 0x899   : > { %4602 = vperm.xlu1 %7724, %v4353_v10  }
 0x89b   : > { %4393 = vperm.xlu0 %7737, %v4351_v4  }
 0x89d   : > { %4606 = vperm.xlu1 %7724, %v10281_v35  }
 0x89f   : > { %4403 = vperm.xlu0 %7737, %v4353_v10  }
 0x8a1   : > { %7725 = vset.pattern.permute.xlu1 %v7997_v56 }
 0x8a2   : > { %4702 = vperm.xlu1 %7725, %v10281_v35  }
 0x8a3   : > { %4413 = vperm.xlu0 %7737, %v4355_v2  }
 0x8a6   : > { %7726 = vset.pattern.permute.xlu1 %v7996_v60 }
 0x8a7   : > { %4514 = vperm.xlu1 %7726, %v4355_v2   ;;  %4418 = vperm.xlu0 %7737, %v10289_v53  }
 0x8ab   : > { %7727 = vset.pattern.permute.xlu1 %v7995_v38 }
 0x8ac   : > { %4610 = vperm.xlu1 %7727, %v4355_v2  }
 0x8b0   : > { %4614 = vperm.xlu1 %7727, %v10289_v53  }
 0x8b4   : > { %7728 = vset.pattern.permute.xlu1 %v7997_v56 }
 0x8b5   : > { %4710 = vperm.xlu1 %7728, %v10289_v53  }
 0x8b9   : > { %7729 = vset.pattern.permute.xlu1 %v7996_v60 }
 0x8ba   : > { %4522 = vperm.xlu1 %7729, %v10332_v26  }
 0x8be   : > { %7730 = vset.pattern.permute.xlu1 %v7995_v38 }
 0x8bf   : > { %4618 = vperm.xlu1 %7730, %v10332_v26  }
 0x8c3   : > { %4622 = vperm.xlu1 %7730, %v10296_v20  }
 0x8c7   : > { %7731 = vset.pattern.permute.xlu1 %v7997_v56 }
 0x8c8   : > { %4718 = vperm.xlu1 %7731, %v10296_v20  }
 0x8cc   : > { %7732 = vset.pattern.permute.xlu1 %v7996_v60  ;;  %v4571_v16 = vpop.permute.xlu1 %4570  ;;  %v4475_v9 = vpop.permute.xlu0 %4474 }
 0x8cd   : > { %7739 = vrcp.f32 %v4571_v16  ;;  %4530 = vperm.xlu1 %7732, %v10339_v8  }
 0x8ce   : > { %7741 = vrcp.f32 %v4475_v9 }
 0x8d0   : > { %v4575_v43 = vpop.permute.xlu1 %4574  ;;  %v4479_v42 = vpop.permute.xlu0 %4478 }
 0x8d1   : > { %7734 = vset.pattern.permute.xlu1 %v7995_v38  ;;  %7743 = vrcp.f32 %v4479_v42 }
 0x8d2   : > { %4626 = vperm.xlu1 %7734, %v10339_v8   ;;  %7745 = vrcp.f32 %v4575_v43 }
 0x8d4   : > { %v4487_v25 = vpop.permute.xlu0 %4486 }
 0x8d5   : > { %v4671_v37 = vpop.permute.xlu1 %4670 }
 0x8d6   : > { %4630 = vperm.xlu1 %7734, %v10306_v6  }
 0x8d7   : > { %v7740_v34 = vpop.eup %7739 }
 0x8d8   : > { %v10368_v21 = vpop.permute.xlu0 %4494  ;;  %v4634_v52 = vmul.f32 %v7740_v34, %v10235_v13  ;;  %v7742_v7 = vpop.eup %7741 }
 0x8d9   : > { %v4538_v23 = vmul.f32 %v7742_v7, %v10235_v13 }
 0x8da   : > { %7735 = vset.pattern.permute.xlu1 %v7997_v56  ;;  %v4483_v58 = vpop.permute.xlu1 %4482  ;;  %4841 = vrot.lane.b32.xlu0 %v4634_v52, %s7999_s14 }
 0x8db   : > { %4726 = vperm.xlu1 %7735, %v10306_v6   ;;  %v7744_v38 = vpop.eup %7743 }
 0x8dc   : > { %v10374_v46 = vpop.permute.xlu0 %4502  ;;  %v4540_v60 = vmul.f32 %v7744_v38, %v10237_v39 }
 0x8df   : > { %7736 = vset.pattern.permute.xlu1 %v7998_v29  ;;  %v4579_v5 = vpop.permute.xlu1 %4578 }
 0x8e0   : > { %4363 = vperm.xlu1 %7736, %v10242_v51   ;;  %v10377_v41 = vpop.permute.xlu0 %4510  ;;  %v7746_v51 = vpop.eup %7745 }
 0x8e1   : > { %v4636_v27 = vmul.f32 %v7746_v51, %v10237_v39 }
 0x8e3   : > { %v4583_v50 = vpop.permute.xlu1 %4582 }
 0x8e4   : > { %4373 = vperm.xlu1 %7736, %v10269_v44   ;;  %v10380_v11 = vpop.permute.xlu0 %4518 }
 0x8e8   : > { %4378 = vperm.xlu1 %7736, %v10254_v0   ;;  %v4679_v48 = vpop.permute.xlu1 %4678  ;;  %v10383_v24 = vpop.permute.xlu0 %4526  ;;  %v5006_v0 = vld [vmem:[%s11098_s5 + $0x7d] sm:$0xff] }
 0x8ec   : > { %4388 = vperm.xlu1 %7736, %v10263_v30   ;;  %v10386_v55 = vpop.permute.xlu0 %4534  ;;  %v5007_v30 = vld [vmem:[%s11098_s5 + $0x85] sm:$0xff] }
 0x8ed   : > { %v4491_v57 = vpop.permute.xlu1 %4490 }
 0x8f0   : > { %4398 = vperm.xlu1 %7736, %v10273_v62   ;;  %v7212_v62 = vpack.c.bf16 %v5007_v30, %v5006_v0 }
 0x8f1   : > { %v4667_v45 = vpop.permute.xlu0 %4666 }
 0x8f2   : > { %7747 = vrcp.f32 %v4667_v45  ;;  %v4587_v32 = vpop.permute.xlu1 %4586  ;;  %7214 = vmatprep.subr.msk.bf16.mxu0 %vm8227_vm1, %v7212_v62 }
 0x8f3   : > { %7749 = vrcp.f32 %v4671_v37  ;;  %7217 = vmatpush3.bf16.xpose.msk.msra.mxu0 %vm8227_vm1, %v7212_v62 }
 0x8f4   : > { %4408 = vperm.xlu1 %7736, %v10281_v35   ;;  %7751 = vrcp.f32 %v4483_v58 }
 0x8f5   : > { %7753 = vrcp.f32 %v4579_v5  ;;  %v4675_v35 = vpop.permute.xlu0 %4674 }
 0x8f6   : > { %v4591_v17 = vpop.permute.xlu1 %4590  ;;  %7755 = vrcp.f32 %v4487_v25 }
 0x8f7   : > { %7757 = vrcp.f32 %v4675_v35 }
 0x8f8   : > { %4777 = vrot.lane.b32.xlu1 %v4538_v23, %s8000_s22  ;;  %7759 = vrcp.f32 %v4583_v50 }
 0x8f9   : > { %7761 = vrcp.f32 %v4679_v48  ;;  %v4683_v58 = vpop.permute.xlu0 %4682 }
 0x8fa   : > { %7763 = vrcp.f32 %v4491_v57 }
 0x8fb   : > { %v4687_v19 = vpop.permute.xlu1 %4686  ;;  %7765 = vrcp.f32 %v4587_v32 }
 0x8fc   : > { %v7748_v44 = vpop.eup %7747  ;;  %4779 = vrot.lane.b32.xlu1 %v4540_v60, %s8000_s22  ;;  %7767 = vrcp.f32 %v10368_v21 }
 0x8fd   : > { %v4730_v53 = vmul.f32 %v7748_v44, %v10235_v13  ;;  %v7750_v4 = vpop.eup %7749  ;;  %7769 = vrcp.f32 %v4683_v58  ;;  %v4691_v12 = vpop.permute.xlu0 %4690 }
 0x8fe   : > { %v4732_v2 = vmul.f32 %v7750_v4, %v10237_v39  ;;  %v7752_v29 = vpop.eup %7751  ;;  %7771 = vrcp.f32 %v4591_v17 }
 0x8ff   : > { %4905 = vrot.lane.b32.xlu0 %v4730_v53, %s8001_s26  ;;  %v7754_v9 = vpop.eup %7753  ;;  %v4542_v43 = vmul.f32 %v7752_v29, %v10258_v31 }
 0x900   : > { %v4499_v10 = vpop.permute.xlu1 %4498  ;;  %4843 = vrot.lane.b32.xlu1 %v4636_v27, %s7999_s14  ;;  %v7756_v42 = vpop.eup %7755  ;;  %v4638_v37 = vmul.f32 %v7754_v9, %v10258_v31 }
 0x901   : > { %v7758_v34 = vpop.eup %7757  ;;  %v4544_v52 = vmul.f32 %v7756_v42, %v10249_v36  ;;  %7773 = vrcp.f32 %v4499_v10  ;;  %v4699_v35 = vpop.permute.xlu0 %4698 }
 0x902   : > { %7775 = vrcp.f32 %v4687_v19 }
 0x903   : > { %4423 = vperm.xlu0 %7737, %v10332_v26   ;;  %v7760_v26 = vpop.eup %7759 }
 0x904   : > { %4907 = vrot.lane.b32.xlu1 %v4732_v2, %s8001_s26  ;;  %v4640_v50 = vmul.f32 %v7760_v26, %v10249_v36  ;;  %v7762_v48 = vpop.eup %7761 }
 0x905   : > { %v4595_v16 = vpop.permute.xlu1 %4594  ;;  %v4736_v57 = vmul.f32 %v7762_v48, %v10249_v36  ;;  %v7764_v45 = vpop.eup %7763 }
 0x906   : > { %v7766_v21 = vpop.eup %7765  ;;  %v4546_v7 = vmul.f32 %v7764_v45, %v10300_v54  ;;  %7777 = vrcp.f32 %v4595_v16  ;;  %v4707_v26 = vpop.permute.xlu0 %4706 }
 0x907   : > { %4428 = vperm.xlu0 %7737, %v10296_v20   ;;  %v4734_v20 = vmul.f32 %v7758_v34, %v10258_v31  ;;  %v7768_v61 = vpop.eup %7767  ;;  %7779 = vrcp.f32 %v10374_v46  ;;  %v4642_v17 = vmul.f32 %v7766_v21, %v10300_v54 }
 0x908   : > { %4781 = vrot.lane.b32.xlu1 %v4542_v43, %s8000_s22  ;;  %v4548_v23 = vmul.f32 %v7768_v61, %v10256_v3  ;;  %7781 = vrcp.f32 %v4691_v12 }
 0x909   : > { %v4599_v25 = vpop.permute.xlu1 %4598 }
 0x90a   : > { %7783 = vrcp.f32 %v4599_v25 }
 0x90b   : > { %4845 = vrot.lane.b32.xlu0 %v4638_v37, %s7999_s14 }
 0x90c   : > { %4783 = vrot.lane.b32.xlu1 %v4544_v52, %s8000_s22 }
 0x90e   : > { %v4695_v5 = vpop.permute.xlu1 %4694 }
 0x90f   : > { %4909 = vrot.lane.b32.xlu0 %v4734_v20, %s8001_s26 }
 0x910   : > { %4847 = vrot.lane.b32.xlu1 %v4640_v50, %s7999_s14 }
 0x913   : > { %v4507_v32 = vpop.permute.xlu1 %4506  ;;  %4433 = vperm.xlu0 %7737, %v10339_v8   ;;  %v7770_v8 = vpop.eup %7769 }
 0x914   : > { %4911 = vrot.lane.b32.xlu1 %v4736_v57, %s8001_s26  ;;  %v7772_v38 = vpop.eup %7771  ;;  %7785 = vrcp.f32 %v4507_v32 }
 0x915   : > { %v7774_v51 = vpop.eup %7773  ;;  %v4644_v46 = vmul.f32 %v7772_v38, %v10256_v3  ;;  %7787 = vrcp.f32 %v4695_v5 }
 0x916   : > { %v7776_v19 = vpop.eup %7775  ;;  %v4550_v30 = vmul.f32 %v7774_v51, %v10316_v22 }
 0x917   : > { %4438 = vperm.xlu0 %7737, %v10306_v6   ;;  %v4738_v6 = vmul.f32 %v7770_v8, %v10300_v54  ;;  %v7778_v44 = vpop.eup %7777  ;;  %v4740_v62 = vmul.f32 %v7776_v19, %v10256_v3 }
 0x918   : > { %v4603_v59 = vpop.permute.xlu1 %4602  ;;  %4785 = vrot.lane.b32.xlu1 %v4546_v7, %s8000_s22  ;;  %v4646_v53 = vmul.f32 %v7778_v44, %v10316_v22 }
 0x919   : > { %7789 = vrcp.f32 %v4603_v59 }
 0x91a   : > { %7791 = vrcp.f32 %v10377_v41 }
 0x91b   : > { %4849 = vrot.lane.b32.xlu0 %v4642_v17, %s7999_s14  ;;  %7793 = vrcp.f32 %v4699_v35 }
 0x91c   : > { %v4607_v60 = vpop.permute.xlu1 %4606  ;;  %4787 = vrot.lane.b32.xlu1 %v4548_v23, %s8000_s22  ;;  %7738 = vset.pattern.permute.xlu0 %v7997_v56  ;;  %v7780_v56 = vpop.eup %7779 }
 0x91d   : > { %v7782_v27 = vpop.eup %7781  ;;  %v4552_v10 = vmul.f32 %v7780_v56, %v10266_v1  ;;  %7795 = vrcp.f32 %v4607_v60  ;;  %v4715_v23 = vpop.permute.xlu0 %4714 }
 0x91e   : > { %v7784_v2 = vpop.eup %7783  ;;  %v4742_v29 = vmul.f32 %v7782_v27, %v10316_v22 }
 0x91f   : > { %4913 = vrot.lane.b32.xlu0 %v4738_v6, %s8001_s26  ;;  %v7786_v16 = vpop.eup %7785  ;;  %v4648_v9 = vmul.f32 %v7784_v2, %v10266_v1 }
 0x920   : > { %4851 = vrot.lane.b32.xlu1 %v4644_v46, %s7999_s14  ;;  %v7788_v41 = vpop.eup %7787  ;;  %v4554_v42 = vmul.f32 %v7786_v16, %v10320_v14 }
 0x921   : > { %v4703_v0 = vpop.permute.xlu1 %4702  ;;  %v4744_v37 = vmul.f32 %v7788_v41, %v10266_v1 }
 0x923   : > { %4789 = vrot.lane.b32.xlu0 %v4550_v30, %s8000_s22  ;;  %v7790_v25 = vpop.eup %7789 }
 0x924   : > { %4915 = vrot.lane.b32.xlu1 %v4740_v62, %s8001_s26  ;;  %v7792_v34 = vpop.eup %7791  ;;  %v4650_v58 = vmul.f32 %v7790_v25, %v10320_v14 }
 0x925   : > { %v7794_v20 = vpop.eup %7793  ;;  %v4556_v5 = vmul.f32 %v7792_v34, %v10276_v33 }
 0x926   : > { %v4515_v4 = vpop.permute.xlu1 %4514  ;;  %v4746_v57 = vmul.f32 %v7794_v20, %v10320_v14 }
 0x927   : > { %4853 = vrot.lane.b32.xlu0 %v4646_v53, %s7999_s14  ;;  %7797 = vrcp.f32 %v4515_v4  ;;  %v7796_v50 = vpop.eup %7795 }
 0x928   : > { %4791 = vrot.lane.b32.xlu1 %v4552_v10, %s8000_s22  ;;  %7799 = vrcp.f32 %v4703_v0  ;;  %v4652_v32 = vmul.f32 %v7796_v50, %v10276_v33 }
 0x92b   : > { %v4611_v43 = vpop.permute.xlu1 %4610  ;;  %4917 = vrot.lane.b32.xlu0 %v4742_v29, %s8001_s26  ;;  %v4723_v29 = vpop.permute.xlu0 %4722 }
 0x92c   : > { %4855 = vrot.lane.b32.xlu1 %v4648_v9, %s7999_s14  ;;  %7801 = vrcp.f32 %v4611_v43 }
 0x92d   : > { %7803 = vrcp.f32 %v10380_v11 }
 0x92e   : > { %7805 = vrcp.f32 %v4707_v26 }
 0x92f   : > { %v4615_v52 = vpop.permute.xlu1 %4614  ;;  %4793 = vrot.lane.b32.xlu0 %v4554_v42, %s8000_s22 }
 0x930   : > { %4919 = vrot.lane.b32.xlu1 %v4744_v37, %s8001_s26  ;;  %7807 = vrcp.f32 %v4615_v52 }
 0x931   : > { %v7798_v45 = vpop.eup %7797 }
 0x932   : > { %v7800_v11 = vpop.eup %7799  ;;  %v4558_v7 = vmul.f32 %v7798_v45, %v10324_v63 }
 0x933   : > { %4857 = vrot.lane.b32.xlu0 %v4650_v58, %s7999_s14  ;;  %v4748_v59 = vmul.f32 %v7800_v11, %v10276_v33 }
 0x934   : > { %v4711_v48 = vpop.permute.xlu1 %4710  ;;  %4795 = vrot.lane.b32.xlu1 %v4556_v5, %s8000_s22 }
 0x935   : > { %7809 = vrcp.f32 %v4711_v48 }
 0x936   : > { %v7802_v61 = vpop.eup %7801 }
 0x937   : > { %4921 = vrot.lane.b32.xlu0 %v4746_v57, %s8001_s26  ;;  %v7804_v12 = vpop.eup %7803  ;;  %v4654_v17 = vmul.f32 %v7802_v61, %v10324_v63 }
 0x938   : > { %4859 = vrot.lane.b32.xlu1 %v4652_v32, %s7999_s14  ;;  %v7806_v8 = vpop.eup %7805  ;;  %v4560_v60 = vmul.f32 %v7804_v12, %v10283_v40 }
 0x939   : > { %v4523_v21 = vpop.permute.xlu1 %4522  ;;  %v4750_v51 = vmul.f32 %v7806_v8, %v10324_v63 }
 0x93a   : > { %7811 = vrcp.f32 %v4523_v21  ;;  %v7808_v6 = vpop.eup %7807 }
 0x93b   : > { %4797 = vrot.lane.b32.xlu0 %v4558_v7, %s8000_s22  ;;  %7813 = vrcp.f32 %v10383_v24  ;;  %v4656_v19 = vmul.f32 %v7808_v6, %v10283_v40 }
 0x93c   : > { %4923 = vrot.lane.b32.xlu1 %v4748_v59, %s8001_s26 }
 0x93e   : > { %v4619_v38 = vpop.permute.xlu1 %4618 }
 0x93f   : > { %7815 = vrcp.f32 %v4619_v38  ;;  %4861 = vrot.lane.b32.xlu0 %v4654_v17, %s7999_s14  ;;  %v7810_v24 = vpop.eup %7809 }
 0x940   : > { %4799 = vrot.lane.b32.xlu1 %v4560_v60, %s8000_s22  ;;  %7817 = vrcp.f32 %v4715_v23  ;;  %v4752_v44 = vmul.f32 %v7810_v24, %v10283_v40 }
 0x942   : > { %v4623_v46 = vpop.permute.xlu1 %4622 }
 0x943   : > { %7819 = vrcp.f32 %v4623_v46  ;;  %4925 = vrot.lane.b32.xlu0 %v4750_v51, %s8001_s26 }
 0x944   : > { %v7812_v0 = vpop.eup %7811  ;;  %4863 = vrot.lane.b32.xlu1 %v4656_v19, %s7999_s14 }
 0x945   : > { %v4562_v30 = vmul.f32 %v7812_v0, %v10328_v15  ;;  %v7814_v62 = vpop.eup %7813 }
 0x946   : > { %v4564_v53 = vmul.f32 %v7814_v62, %v10291_v18 }
 0x947   : > { %v4719_v56 = vpop.permute.xlu1 %4718  ;;  %4801 = vrot.lane.b32.xlu0 %v4562_v30, %s8000_s22 }
 0x948   : > { %7821 = vrcp.f32 %v4719_v56  ;;  %4927 = vrot.lane.b32.xlu1 %v4752_v44, %s8001_s26 }
 0x949   : > { %v7816_v35 = vpop.eup %7815  ;;  %7823 = vrcp.f32 %v10386_v55  ;;  %v4369_v55 = vpop.permute.xlu0 %4368 }
 0x94a   : > { %v4658_v27 = vmul.f32 %v7816_v35, %v10328_v15  ;;  %v7818_v4 = vpop.eup %7817 }
 0x94b   : > { %v4754_v9 = vmul.f32 %v7818_v4, %v10328_v15 }
 0x94c   : > { %v4531_v10 = vpop.permute.xlu1 %4530  ;;  %4803 = vrot.lane.b32.xlu1 %v4564_v53, %s8000_s22  ;;  %4865 = vrot.lane.b32.xlu0 %v4658_v27, %s7999_s14 }
 0x94d   : > { %v7820_v2 = vpop.eup %7819  ;;  %7825 = vrcp.f32 %v4531_v10  ;;  %v10503_v52 = vpop.permute.xlu0 %4383 }
 0x94e   : > { %v4660_v16 = vmul.f32 %v7820_v2, %v10291_v18 }
 0x950   : > { %4867 = vrot.lane.b32.xlu1 %v4660_v16, %s7999_s14  ;;  %4929 = vrot.lane.b32.xlu0 %v4754_v9, %s8001_s26 }
 0x951   : > { %v4627_v41 = vpop.permute.xlu1 %4626  ;;  %v10509_v50 = vpop.permute.xlu0 %4393 }
 0x952   : > { %v7822_v43 = vpop.eup %7821  ;;  %7827 = vrcp.f32 %v4627_v41 }
 0x953   : > { %v4756_v42 = vmul.f32 %v7822_v43, %v10291_v18  ;;  %v7824_v25 = vpop.eup %7823  ;;  %7829 = vrcp.f32 %v4723_v29 }
 0x954   : > { %v4568_v26 = vmul.f32 %v7824_v25, %v10298_v47 }
 0x955   : > { %v4631_v37 = vpop.permute.xlu1 %4630  ;;  %4931 = vrot.lane.b32.xlu1 %v4756_v42, %s8001_s26  ;;  %v10515_v7 = vpop.permute.xlu0 %4403 }
 0x956   : > { %7831 = vrcp.f32 %v4631_v37 }
 0x957   : > { %v7826_v34 = vpop.eup %7825 }
 0x958   : > { %v4566_v58 = vmul.f32 %v7826_v34, %v10334_v49 }
 0x959   : > { %4807 = vrot.lane.b32.xlu1 %v4568_v26, %s8000_s22  ;;  %v10521_v8 = vpop.permute.xlu0 %4413 }
 0x95a   : > { %v4727_v20 = vpop.permute.xlu1 %4726  ;;  %4805 = vrot.lane.b32.xlu0 %v4566_v58, %s8000_s22 }
 0x95b   : > { %7833 = vrcp.f32 %v4727_v20 }
 0x95c   : > { %v7828_v5 = vpop.eup %7827 }
 0x95d   : > { %v4662_v48 = vmul.f32 %v7828_v5, %v10334_v49  ;;  %v7830_v57 = vpop.eup %7829  ;;  %v10523_v38 = vpop.permute.xlu0 %4418 }
 0x95e   : > { %v4758_v21 = vmul.f32 %v7830_v57, %v10334_v49 }
 0x95f   : > { %v4364_v45 = vpop.permute.xlu1 %4363  ;;  %4869 = vrot.lane.b32.xlu0 %v4662_v48, %s7999_s14 }
 0x960   : > { %v7832_v32 = vpop.eup %7831  ;;  %7835 = vrcp.f32 %v4364_v45 }
 0x961   : > { %v4664_v11 = vmul.f32 %v7832_v32, %v10298_v47  ;;  %7837 = vrcp.f32 %v4369_v55  ;;  %v4842_v46 = vpop.permute.xlu0 %4841 }
 0x963   : > { %v4374_v61 = vpop.permute.xlu1 %4373  ;;  %4871 = vrot.lane.b32.xlu1 %v4664_v11, %s7999_s14  ;;  %4933 = vrot.lane.b32.xlu0 %v4758_v21, %s8001_s26 }
 0x964   : > { %7839 = vrcp.f32 %v4374_v61 }
 0x965   : > { %v7834_v59 = vpop.eup %7833 }
 0x966   : > { %v4760_v12 = vmul.f32 %v7834_v59, %v10298_v47 }
 0x967   : > { %v4379_v17 = vpop.permute.xlu1 %4378 }
 0x968   : > { %4935 = vrot.lane.b32.xlu1 %v4760_v12, %s8001_s26  ;;  %7841 = vrcp.f32 %v4379_v17 }
 0x969   : > { %7843 = vrcp.f32 %v10503_v52 }
 0x96a   : > { %v7836_v6 = vpop.eup %7835 }
 0x96b   : > { %v4389_v23 = vpop.permute.xlu1 %4388  ;;  %v4442_v19 = vmul.f32 %v7836_v6, %v10235_v13  ;;  %v7838_v56 = vpop.eup %7837 }
 0x96c   : > { %v4444_v53 = vmul.f32 %v7838_v56, %v10237_v39  ;;  %7845 = vrcp.f32 %v4389_v23 }
 0x96d   : > { %7847 = vrcp.f32 %v10509_v50 }
 0x96e   : > { %v7840_v9 = vpop.eup %7839 }
 0x96f   : > { %v4399_v60 = vpop.permute.xlu1 %4398  ;;  %v4446_v41 = vmul.f32 %v7840_v9, %v10258_v31 }
 0x970   : > { %7849 = vrcp.f32 %v4399_v60 }
 0x971   : > { %v4906_v0 = vpop.permute.xlu0 %4905  ;;  %7851 = vrcp.f32 %v10515_v7 }
 0x972   : > { %v7842_v43 = vpop.eup %7841 }
 0x973   : > { %v10525_v51 = vpop.permute.xlu1 %4408  ;;  %v4448_v58 = vmul.f32 %v7842_v43, %v10249_v36  ;;  %v7844_v32 = vpop.eup %7843 }
 0x974   : > { %v4450_v11 = vmul.f32 %v7844_v32, %v10300_v54  ;;  %7853 = vrcp.f32 %v10525_v51 }
 0x975   : > { %7855 = vrcp.f32 %v10521_v8 }
 0x976   : > { %v7846_v61 = vpop.eup %7845  ;;  %7857 = vrcp.f32 %v10523_v38 }
 0x977   : > { %v4778_v47 = vpop.permute.xlu1 %4777 }
 0x978   : > { %v4954_v24 = vsel %vm4953_vm7, %v4442_v19, %v4778_v47 }
 0x979   : > { %v4971_v30 = vsel %vm4970_vm8, %v4954_v24, %v4842_v46  ;;  %v4452_v46 = vmul.f32 %v7846_v61, %v10256_v3  ;;  %v7848_v24 = vpop.eup %7847 }
 0x97a   : > { %v4988_v44 = vsel %vm4987_vm9, %v4971_v30, %v4906_v0  ;;  %v4454_v30 = vmul.f32 %v7848_v24, %v10316_v22  ;;  %v7850_v3 = vpop.eup %7849 }
 0x97b   : > { %v4780_v62 = vpop.permute.xlu1 %4779  ;;  %7098 = vmatprep.mubr.msk.f32.mxu0 %vm423_vm0, %v4988_v44 }
 0x97c   : > { %v4955_v13 = vsel %vm4953_vm7, %v4444_v53, %v4780_v62 }
 0x97f   : > { %v4844_v35 = vpop.permute.xlu1 %4843 }
 0x980   : > { %v4972_v4 = vsel %vm4970_vm8, %v4955_v13, %v4844_v35 }
 0x982   : > { %v10534_v27 = vpop.permute.xlu0 %4423 }
 0x983   : > { %v4908_v10 = vpop.permute.xlu1 %4907  ;;  %7859 = vrcp.f32 %v10534_v27 }
 0x984   : > { %v4989_v2 = vsel %vm4987_vm9, %v4972_v4, %v4908_v10  ;;  %v4456_v4 = vmul.f32 %v7850_v3, %v10266_v1 }
 0x985   : > { %7099 = vmatmul.mubr.msk.f32.vlgmr.msra.gmra.mrb[0].mxu0 %vm423_vm0, %v4989_v2 }
 0x986   : > { %v10539_v29 = vpop.permute.xlu0 %4428 }
 0x987   : > { %v4782_v16 = vpop.permute.xlu1 %4781  ;;  %7861 = vrcp.f32 %v10539_v29 }
 0x988   : > { %v4956_v42 = vsel %vm4953_vm7, %v4446_v41, %v4782_v16  ;;  %v7852_v16 = vpop.eup %7851 }
 0x989   : > { %v7854_v1 = vpop.eup %7853 }
 0x98a   : > { %v4846_v55 = vpop.permute.xlu0 %4845 }
 0x98b   : > { %v4784_v39 = vpop.permute.xlu1 %4783  ;;  %v4973_v25 = vsel %vm4970_vm8, %v4956_v42, %v4846_v55  ;;  %v4458_v55 = vmul.f32 %v7852_v16, %v10320_v14 }
 0x98c   : > { %v4957_v20 = vsel %vm4953_vm7, %v4448_v58, %v4784_v39 }
 0x98e   : > { %v4910_v37 = vpop.permute.xlu0 %4909 }
 0x98f   : > { %v4848_v34 = vpop.permute.xlu1 %4847  ;;  %v4990_v26 = vsel %vm4987_vm9, %v4973_v25, %v4910_v37 }
 0x990   : > { %7101 = vmatprep.mubr.msk.f32.mxu0 %vm423_vm0, %v4990_v26  ;;  %v4974_v31 = vsel %vm4970_vm8, %v4957_v20, %v4848_v34  ;;  %v4460_v34 = vmul.f32 %v7854_v1, %v10276_v33  ;;  %v7856_v20 = vpop.eup %7855 }
 0x991   : > { %v7858_v33 = vpop.eup %7857 }
 0x992   : > { %v10549_v5 = vpop.permute.xlu0 %4433  ;;  %v4464_v61 = vmul.f32 %v7858_v33, %v10283_v40 }
 0x993   : > { %v4912_v48 = vpop.permute.xlu1 %4911  ;;  %7863 = vrcp.f32 %v10549_v5 }
 0x994   : > { %v4991_v52 = vsel %vm4987_vm9, %v4974_v31, %v4912_v48  ;;  %v4462_v48 = vmul.f32 %v7856_v20, %v10324_v63 }
 0x995   : > { %7102 = vmatmul.mubr.msk.f32.gmra.mrb[2].mxu0 %vm423_vm0, %v4991_v52 }
 0x996   : > { %v10554_v57 = vpop.permute.xlu0 %4438 }
 0x997   : > { %v4786_v45 = vpop.permute.xlu1 %4785  ;;  %7865 = vrcp.f32 %v10554_v57 }
 0x998   : > { %v4958_v59 = vsel %vm4953_vm7, %v4450_v11, %v4786_v45 }
 0x99a   : > { %v4850_v36 = vpop.permute.xlu0 %4849 }
 0x99b   : > { %v4788_v21 = vpop.permute.xlu1 %4787  ;;  %v4975_v12 = vsel %vm4970_vm8, %v4958_v59, %v4850_v36 }
 0x99c   : > { %v4959_v50 = vsel %vm4953_vm7, %v4452_v46, %v4788_v21 }
 0x99e   : > { %v4914_v17 = vpop.permute.xlu0 %4913 }
 0x99f   : > { %v4852_v23 = vpop.permute.xlu1 %4851  ;;  %v4992_v6 = vsel %vm4987_vm9, %v4975_v12, %v4914_v17  ;;  %v7860_v17 = vpop.eup %7859 }
 0x9a0   : > { %7104 = vmatprep.mubr.msk.f32.mxu0 %vm423_vm0, %v4992_v6  ;;  %v4976_v54 = vsel %vm4970_vm8, %v4959_v50, %v4852_v23  ;;  %v4466_v6 = vmul.f32 %v7860_v17, %v10328_v15  ;;  %v7862_v40 = vpop.eup %7861 }
 0x9a2   : > { %v4790_v19 = vpop.permute.xlu0 %4789 }
 0x9a3   : > { %v4916_v47 = vpop.permute.xlu1 %4915  ;;  %v4960_v62 = vsel %vm4953_vm7, %v4454_v30, %v4790_v19 }
 0x9a4   : > { %v4993_v0 = vsel %vm4987_vm9, %v4976_v54, %v4916_v47 }
 0x9a5   : > { %7105 = vmatmul.mubr.msk.f32.gmra.mrb[4].mxu0 %vm423_vm0, %v4993_v0  ;;  %v4468_v0 = vmul.f32 %v7862_v40, %v10291_v18  ;;  %v5225_v40 = vld [vmem:[%s8067_s13 + $0x30] sm:$0xff] }
 0x9a6   : > { %v4854_v60 = vpop.permute.xlu0 %4853 }
 0x9a7   : > { %v4792_v44 = vpop.permute.xlu1 %4791  ;;  %v4977_v56 = vsel %vm4970_vm8, %v4960_v62, %v4854_v60 }
 0x9a8   : > { %v4961_v7 = vsel %vm4953_vm7, %v4456_v4, %v4792_v44  ;;  %v7864_v44 = vpop.eup %7863 }
 0x9a9   : > { %v4470_v57 = vmul.f32 %v7864_v44, %v10334_v49 }
 0x9aa   : > { %v4918_v35 = vpop.permute.xlu0 %4917 }
 0x9ab   : > { %v4856_v53 = vpop.permute.xlu1 %4855  ;;  %v4994_v13 = vsel %vm4987_vm9, %v4977_v56, %v4918_v35  ;;  %v7866_v35 = vpop.eup %7865 }
 0x9ac   : > { %7107 = vmatprep.mubr.msk.f32.mxu0 %vm423_vm0, %v4994_v13  ;;  %v4978_v22 = vsel %vm4970_vm8, %v4961_v7, %v4856_v53 }
 0x9ae   : > { %v4794_v10 = vpop.permute.xlu0 %4793 }
 0x9af   : > { %v4920_v2 = vpop.permute.xlu1 %4919  ;;  %v4962_v39 = vsel %vm4953_vm7, %v4458_v55, %v4794_v10  ;;  %v7931_v10 = vld [vmem:[#allocation3 + $0x78] sm:$0xff] }
 0x9b0   : > { %v4995_v9 = vsel %vm4987_vm9, %v4978_v22, %v4920_v2  ;;  %v4472_v22 = vmul.f32 %v7931_v10, %v7866_v35 }
 0x9b1   : > { %7108 = vmatmul.mubr.msk.f32.gmra.mrb[6].mxu0 %vm423_vm0, %v4995_v9 }
 0x9b2   : > { %v4858_v51 = vpop.permute.xlu0 %4857 }
 0x9b3   : > { %v4796_v41 = vpop.permute.xlu1 %4795  ;;  %v4979_v43 = vsel %vm4970_vm8, %v4962_v39, %v4858_v51  ;;  %v10627_v51 = vld [vmem:[%s11098_s5 + $0x6] ss:$0 sm:$0xff] }
 0x9b4   : > { %v4963_v8 = vsel %vm4953_vm7, %v4460_v34, %v4796_v41  ;;  %v5220_v41 = vld [vmem:[%s8067_s13 + $0x8] sm:$0xff] }
 0x9b6   : > { %v4922_v42 = vpop.permute.xlu0 %4921 }
 0x9b7   : > { %v4860_v25 = vpop.permute.xlu1 %4859  ;;  %v4996_v37 = vsel %vm4987_vm9, %v4979_v43, %v4922_v42  ;;  %v5219_v43 = vld [vmem:[%s8067_s13] sm:$0xff] }
 0x9b8   : > { %7110 = vmatprep.mubr.msk.f32.mxu0 %vm423_vm0, %v4996_v37  ;;  %v4980_v14 = vsel %vm4970_vm8, %v4963_v8, %v4860_v25 }
 0x9ba   : > { %v4798_v26 = vpop.permute.xlu0 %4797 }
 0x9bb   : > { %v4924_v58 = vpop.permute.xlu1 %4923  ;;  %v4964_v45 = vsel %vm4953_vm7, %v4462_v48, %v4798_v26 }
 0x9bc   : > { %v4997_v31 = vsel %vm4987_vm9, %v4980_v14, %v4924_v58  ;;  %v5221_v58 = vld [vmem:[%s8067_s13 + $0x10] sm:$0xff] }
 0x9bd   : > { %7111 = vmatmul.mubr.msk.f32.gmra.mrb[8].mxu0 %vm423_vm0, %v4997_v31 }
 0x9be   : > { %v4862_v38 = vpop.permute.xlu0 %4861 }
 0x9bf   : > { %v4800_v52 = vpop.permute.xlu1 %4799  ;;  %v4981_v32 = vsel %vm4970_vm8, %v4964_v45, %v4862_v38  ;;  %v5222_v38 = vld [vmem:[%s8067_s13 + $0x18] sm:$0xff] }
 0x9c0   : > { %v4965_v27 = vsel %vm4953_vm7, %v4464_v61, %v4800_v52  ;;  %v5223_v61 = vld [vmem:[%s8067_s13 + $0x20] sm:$0xff] }
 0x9c2   : > { %v4926_v36 = vpop.permute.xlu0 %4925 }
 0x9c3   : > { %v4864_v11 = vpop.permute.xlu1 %4863  ;;  %v4998_v21 = vsel %vm4987_vm9, %v4981_v32, %v4926_v36  ;;  %v5224_v36 = vld [vmem:[%s8067_s13 + $0x28] sm:$0xff] }
 0x9c4   : > { %7113 = vmatprep.mubr.msk.f32.mxu0 %vm423_vm0, %v4998_v21  ;;  %v4982_v63 = vsel %vm4970_vm8, %v4965_v27, %v4864_v11 }
 0x9c6   : > { %v4802_v59 = vpop.permute.xlu0 %4801 }
 0x9c7   : > { %v4928_v12 = vpop.permute.xlu1 %4927  ;;  %v4966_v50 = vsel %vm4953_vm7, %v4466_v6, %v4802_v59 }
 0x9c8   : > { %v4999_v23 = vsel %vm4987_vm9, %v4982_v63, %v4928_v12 }
 0x9c9   : > { %7114 = vmatmul.mubr.msk.f32.gmra.mrb[10].mxu0 %vm423_vm0, %v4999_v23 }
 0x9ca   : > { %v4866_v29 = vpop.permute.xlu0 %4865 }
 0x9cb   : > { %v4804_v46 = vpop.permute.xlu1 %4803  ;;  %v4983_v19 = vsel %vm4970_vm8, %v4966_v50, %v4866_v29  ;;  %v5226_v29 = vld [vmem:[%s8067_s13 + $0x38] sm:$0xff] }
 0x9cc   : > { %v4967_v5 = vsel %vm4953_vm7, %v4468_v0, %v4804_v46 }
 0x9ce   : > { %v4930_v54 = vpop.permute.xlu0 %4929 }
 0x9cf   : > { %v4868_v47 = vpop.permute.xlu1 %4867  ;;  %v5000_v24 = vsel %vm4987_vm9, %v4983_v19, %v4930_v54 }
 0x9d0   : > { %7116 = vmatprep.mubr.msk.f32.mxu0 %vm423_vm0, %v5000_v24  ;;  %v4984_v15 = vsel %vm4970_vm8, %v4967_v5, %v4868_v47  ;;  %v5228_v5 = vld [vmem:[%s8067_s13 + $0x48] sm:$0xff] }
 0x9d2   : > { %v4806_v60 = vpop.permute.xlu0 %4805 }
 0x9d3   : > { %v4932_v30 = vpop.permute.xlu1 %4931  ;;  %v4968_v18 = vsel %vm4953_vm7, %v4470_v57, %v4806_v60 }
 0x9d4   : > { %v5001_v3 = vsel %vm4987_vm9, %v4984_v15, %v4932_v30  ;;  %v5227_v30 = vld [vmem:[%s8067_s13 + $0x40] sm:$0xff] }
 0x9d5   : > { %7117 = vmatmul.mubr.msk.f32.gmra.mrb[12].mxu0 %vm423_vm0, %v5001_v3 }
 0x9d6   : > { %v4870_v62 = vpop.permute.xlu0 %4869 }
 0x9d7   : > { %v4808_v56 = vpop.permute.xlu1 %4807  ;;  %v4985_v53 = vsel %vm4970_vm8, %v4968_v18, %v4870_v62  ;;  %v5230_v18 = vld [vmem:[%s8067_s13 + $0x58] sm:$0xff] }
 0x9d8   : > { %v4969_v2 = vsel %vm4953_vm7, %v4472_v22, %v4808_v56 }
 0x9da   : > { %v4934_v13 = vpop.permute.xlu0 %4933 }
 0x9db   : > { %v4872_v4 = vpop.permute.xlu1 %4871  ;;  %v5002_v7 = vsel %vm4987_vm9, %v4985_v53, %v4934_v13 }
 0x9dc   : > { %7119 = vmatprep.mubr.msk.f32.mxu0 %vm423_vm0, %v5002_v7  ;;  %v4986_v49 = vsel %vm4970_vm8, %v4969_v2, %v4872_v4  ;;  %v5229_v4 = vld [vmem:[%s8067_s13 + $0x50] sm:$0xff] }
 0x9df   : > { %v4936_v16 = vpop.permute.xlu1 %4935 }
 0x9e0   : > { %v5003_v9 = vsel %vm4987_vm9, %v4986_v49, %v4936_v16 }
 0x9e1   : > { %7120 = vmatmul.mubr.msk.f32.gmra.mrb[14].mxu0 %vm423_vm0, %v5003_v9  ;;  %v5232_v9 = vld [vmem:[%s8067_s13 + $0x68] sm:$0xff] }
 0xa58   : > { %v7100_v55 = vpop.f32.mrb[0].mxu0 }
 0xa59   : > { %v5146_v1 = vadd.f32 %v7100_v55, %v10627_v51  ;;  %v5140_v39 = vpop.f32.mrb[1].mxu0 }
 0xa5a   : > { %v5141_v42 = vadd.f32 %v10627_v51, %v5140_v39 }
 0xa5b   : > { %v10633_v25 = vadd.f32 %v5220_v41, %v5146_v1  ;;  %v5231_v1 = vld [vmem:[%s8067_s13 + $0x60] sm:$0xff] }
 0xa5c   : > { %v10635_v37 = vadd.f32 %v5219_v43, %v5141_v42 }
 0xa5d   : > { %v5256_v34 = vsel %vm423_vm0, %v10633_v25, 0.0 }
 0xa5e   : > { %5257 = vadd.xlane.f32.xlu1 %v5256_v34  ;;  %v5253_v8 = vsel %vm423_vm0, %v10635_v37, 0.0 }
 0xa5f   : > { %5254 = vadd.xlane.f32.xlu0 %v5253_v8 }
 0xa68   : > { %v7103_v26 = vpop.f32.mrb[2].mxu0 }
 0xa69   : > { %v5150_v14 = vpop.f32.mrb[3].mxu0  ;;  %v5156_v20 = vadd.f32 %v7103_v26, %v10627_v51 }
 0xa6a   : > { %v5151_v31 = vadd.f32 %v10627_v51, %v5150_v14  ;;  %v5234_v14 = vld [vmem:[%s8067_s13 + $0x78] sm:$0xff] }
 0xa6b   : > { %v10647_v52 = vadd.f32 %v5222_v38, %v5156_v20 }
 0xa6c   : > { %v10645_v48 = vadd.f32 %v5221_v58, %v5151_v31  ;;  %v5233_v31 = vld [vmem:[%s8067_s13 + $0x70] sm:$0xff] }
 0xa6d   : > { %v5262_v45 = vsel %vm423_vm0, %v10647_v52, 0.0 }
 0xa6e   : > { %v5259_v33 = vsel %vm423_vm0, %v10645_v48, 0.0 }
 0xa6f   : > { %5260 = vadd.xlane.f32.xlu0 %v5259_v33 }
 0xa73   : > { %5263 = vadd.xlane.f32.xlu0 %v5262_v45 }
 0xa78   : > { %v7106_v32 = vpop.f32.mrb[4].mxu0 }
 0xa79   : > { %v5166_v11 = vadd.f32 %v7106_v32, %v10627_v51  ;;  %v5160_v21 = vpop.f32.mrb[5].mxu0 }
 0xa7a   : > { %v5161_v27 = vadd.f32 %v10627_v51, %v5160_v21  ;;  %v5504_v21 = vld [vmem:[%s11098_s5 + $0x9d] sm:$0xff] }
 0xa7b   : > { %v10657_v59 = vadd.f32 %v5224_v36, %v5166_v11  ;;  %v5502_v11 = vld [vmem:[%s11098_s5 + $0x8d] sm:$0xff] }
 0xa7c   : > { %v10659_v63 = vadd.f32 %v5223_v61, %v5161_v27  ;;  %v5505_v27 = vld [vmem:[%s11098_s5 + $0xa5] sm:$0xff] }
 0xa7d   : > { %v5268_v12 = vsel %vm423_vm0, %v10657_v59, 0.0 }
 0xa7e   : > { %5269 = vadd.xlane.f32.xlu0 %v5268_v12  ;;  %v5265_v17 = vsel %vm423_vm0, %v10659_v63, 0.0  ;;  %v7224_v12 = vpack.c.bf16 %v5505_v27, %v5504_v21 }
 0xa7f   : > { %5266 = vadd.xlane.f32.xlu1 %v5265_v17 }
 0xa84   : > { %v7109_v23 = vpop.f32.mrb[6].mxu0 }
 0xa85   : > { %v5176_v6 = vadd.f32 %v7109_v23, %v10627_v51  ;;  %v5170_v46 = vpop.f32.mrb[7].mxu0 }
 0xa86   : > { %v5171_v50 = vadd.f32 %v10627_v51, %v5170_v46 }
 0xa87   : > { %v10669_v19 = vadd.f32 %v5226_v29, %v5176_v6 }
 0xa88   : > { %v10671_v54 = vadd.f32 %v5225_v40, %v5171_v50 }
 0xa89   : > { %v5274_v47 = vsel %vm423_vm0, %v10669_v19, 0.0 }
 0xa8a   : > { %5275 = vadd.xlane.f32.xlu0 %v5274_v47  ;;  %v5271_v24 = vsel %vm423_vm0, %v10671_v54, 0.0 }
 0xa8b   : > { %5272 = vadd.xlane.f32.xlu1 %v5271_v24 }
 0xa90   : > { %v7112_v0 = vpop.f32.mrb[8].mxu0 }
 0xa91   : > { %v5186_v60 = vadd.f32 %v7112_v0, %v10627_v51  ;;  %v5180_v15 = vpop.f32.mrb[9].mxu0 }
 0xa92   : > { %v5181_v44 = vadd.f32 %v10627_v51, %v5180_v15 }
 0xa93   : > { %v10681_v3 = vadd.f32 %v5228_v5, %v5186_v60 }
 0xa94   : > { %v10683_v62 = vadd.f32 %v5227_v30, %v5181_v44 }
 0xa95   : > { %v5280_v57 = vsel %vm423_vm0, %v10681_v3, 0.0 }
 0xa96   : > { %5281 = vadd.xlane.f32.xlu0 %v5280_v57  ;;  %v5277_v56 = vsel %vm423_vm0, %v10683_v62, 0.0 }
 0xa97   : > { %5278 = vadd.xlane.f32.xlu1 %v5277_v56 }
 0xa9c   : > { %v7115_v35 = vpop.f32.mrb[10].mxu0 }
 0xa9d   : > { %v5196_v53 = vadd.f32 %v7115_v35, %v10627_v51  ;;  %v5190_v13 = vpop.f32.mrb[11].mxu0  ;;  %v5506_v35 = vld [vmem:[%s11098_s5 + $0xad] sm:$0xff] }
 0xa9e   : > { %v5191_v7 = vadd.f32 %v10627_v51, %v5190_v13  ;;  %v5509_v13 = vld [vmem:[%s11098_s5 + $0xc5] sm:$0xff] }
 0xa9f   : > { %v10693_v10 = vadd.f32 %v5230_v18, %v5196_v53  ;;  %v5508_v18 = vld [vmem:[%s11098_s5 + $0xbd] sm:$0xff] }
 0xaa0   : > { %v10695_v22 = vadd.f32 %v5229_v4, %v5191_v7  ;;  %v7236_v4 = vpack.c.bf16 %v5509_v13, %v5508_v18 }
 0xaa1   : > { %v5286_v2 = vsel %vm423_vm0, %v10693_v10, 0.0 }
 0xaa2   : > { %5287 = vadd.xlane.f32.xlu0 %v5286_v2  ;;  %v5283_v49 = vsel %vm423_vm0, %v10695_v22, 0.0 }
 0xaa3   : > { %5284 = vadd.xlane.f32.xlu1 %v5283_v49 }
 0xaa8   : > { %v7118_v16 = vpop.f32.mrb[12].mxu0 }
 0xaa9   : > { %v5206_v55 = vadd.f32 %v7118_v16, %v10627_v51  ;;  %v5200_v41 = vpop.f32.mrb[13].mxu0 }
 0xaaa   : > { %v5201_v39 = vadd.f32 %v10627_v51, %v5200_v41 }
 0xaab   : > { %v10705_v43 = vadd.f32 %v5232_v9, %v5206_v55 }
 0xaac   : > { %v10707_v42 = vadd.f32 %v5231_v1, %v5201_v39 }
 0xaad   : > { %v5292_v34 = vsel %vm423_vm0, %v10705_v43, 0.0 }
 0xaae   : > { %5293 = vadd.xlane.f32.xlu0 %v5292_v34  ;;  %v5289_v8 = vsel %vm423_vm0, %v10707_v42, 0.0 }
 0xaaf   : > { %5290 = vadd.xlane.f32.xlu1 %v5289_v8 }
 0xab4   : > { %v7121_v26 = vpop.f32.mrb[14].mxu0 }
 0xab5   : > { %v5216_v58 = vadd.f32 %v7121_v26, %v10627_v51  ;;  %v5210_v20 = vpop.f32.mrb[15].mxu0 }
 0xab6   : > { %v5211_v38 = vadd.f32 %v10627_v51, %v5210_v20  ;;  %v5503_v51 = vld [vmem:[%s11098_s5 + $0x95] sm:$0xff] }
 0xab7   : > { %v10717_v33 = vadd.f32 %v5234_v14, %v5216_v58  ;;  %v7218_v61 = vpack.c.bf16 %v5503_v51, %v5502_v11 }
 0xab8   : > { %v10719_v45 = vadd.f32 %v5233_v31, %v5211_v38 }
 0xab9   : > { %v5298_v32 = vsel %vm423_vm0, %v10717_v33, 0.0  ;;  %7220 = vmatprep.subr.msk.bf16.mxu1 %vm8227_vm1, %v7218_v61 }
 0xaba   : > { %5299 = vadd.xlane.f32.xlu0 %v5298_v32  ;;  %v5295_v36 = vsel %vm423_vm0, %v10719_v45, 0.0  ;;  %7223 = vmatpush3.bf16.xpose.msk.msra.mxu1 %vm8227_vm1, %v7218_v61 }
 0xabb   : > { %5296 = vadd.xlane.f32.xlu1 %v5295_v36  ;;  %7226 = vmatprep.subr.msk.bf16.mxu1 %vm8227_vm1, %v7224_v12 }
 0xac2   : > { %7229 = vmatpush3.bf16.xpose.msk.msra.mxu1 %vm8227_vm1, %v7224_v12 }
 0xaeb   : > { %v5258_v17 = vpop.xlane.xlu1 %5257 }
 0xaec   : > { %v5303_v23 = vmul.f32 0.03125, %v5258_v17  ;;  %v5255_v29 = vpop.xlane.xlu0 %5254 }
 0xaed   : > { %v5302_v6 = vmul.f32 0.03125, %v5255_v29 }
 0xaee   : > { %v10746_v46 = vsub.f32 %v10633_v25, %v5303_v23 }
 0xaef   : > { %v10749_v40 = vsub.f32 %v10635_v37, %v5302_v6 }
 0xaf0   : > { %v5335_v50 = vmul.f32 %v10746_v46, %v10746_v46 }
 0xaf1   : > { %v5334_v47 = vmul.f32 %v10749_v40, %v10749_v40 }
 0xaf2   : > { %v5353_v24 = vsel %vm423_vm0, %v5335_v50, 0.0 }
 0xaf3   : > { %5354 = vadd.xlane.f32.xlu0 %v5353_v24  ;;  %v5350_v0 = vsel %vm423_vm0, %v5334_v47, 0.0 }
 0xaf4   : > { %5351 = vadd.xlane.f32.xlu1 %v5350_v0 }
 0xafc   : > { %v5261_v5 = vpop.xlane.xlu0 %5260 }
 0xafd   : > { %v5304_v60 = vmul.f32 0.03125, %v5261_v5 }
 0xaff   : > { %v10758_v25 = vsub.f32 %v10645_v48, %v5304_v60  ;;  %v5507_v48 = vld [vmem:[%s11098_s5 + $0xb5] sm:$0xff] }
 0xb00   : > { %v5264_v15 = vpop.xlane.xlu0 %5263  ;;  %v7230_v53 = vpack.c.bf16 %v5507_v48, %v5506_v35 }
 0xb01   : > { %v5305_v37 = vmul.f32 0.03125, %v5264_v15  ;;  %v5336_v30 = vmul.f32 %v10758_v25, %v10758_v25 }
 0xb02   : > { %7232 = vmatprep.subr.msk.bf16.mxu1 %vm8227_vm1, %v7230_v53 }
 0xb03   : > { %v10763_v44 = vsub.f32 %v10647_v52, %v5305_v37  ;;  %v5356_v57 = vsel %vm423_vm0, %v5336_v30, 0.0  ;;  %7235 = vmatpush3.bf16.xpose.msk.msra.mxu1 %vm8227_vm1, %v7230_v53 }
 0xb04   : > { %5357 = vadd.xlane.f32.xlu1 %v5356_v57  ;;  %7238 = vmatprep.subr.msk.bf16.mxu1 %vm8227_vm1, %v7236_v4 }
 0xb05   : > { %v5337_v56 = vmul.f32 %v10763_v44, %v10763_v44 }
 0xb07   : > { %v5359_v52 = vsel %vm423_vm0, %v5337_v56, 0.0 }
 0xb08   : > { %5360 = vadd.xlane.f32.xlu0 %v5359_v52 }
 0xb0b   : > { %v5270_v7 = vpop.xlane.xlu0 %5269  ;;  %7241 = vmatpush3.bf16.xpose.msk.msra.mxu1 %vm8227_vm1, %v7236_v4 }
 0xb0c   : > { %v5307_v2 = vmul.f32 0.03125, %v5270_v7  ;;  %v5267_v49 = vpop.xlane.xlu1 %5266 }
 0xb0d   : > { %v5306_v16 = vmul.f32 0.03125, %v5267_v49 }
 0xb0e   : > { %v10788_v9 = vsub.f32 %v10657_v59, %v5307_v2 }
 0xb0f   : > { %v10791_v55 = vsub.f32 %v10659_v63, %v5306_v16 }
 0xb10   : > { %v5339_v41 = vmul.f32 %v10788_v9, %v10788_v9 }
 0xb11   : > { %v5338_v1 = vmul.f32 %v10791_v55, %v10791_v55 }
 0xb12   : > { %v5365_v39 = vsel %vm423_vm0, %v5339_v41, 0.0 }
 0xb13   : > { %5366 = vadd.xlane.f32.xlu0 %v5365_v39  ;;  %v5362_v34 = vsel %vm423_vm0, %v5338_v1, 0.0 }
 0xb14   : > { %5363 = vadd.xlane.f32.xlu1 %v5362_v34  ;;  %v10864_v34 = vld [vmem:[%s11098_s5 + $0x2] ss:$0 sm:$0xff] }
 0xb17   : > { %v5276_v59 = vpop.xlane.xlu0 %5275 }
 0xb18   : > { %v5309_v8 = vmul.f32 0.03125, %v5276_v59  ;;  %v5273_v26 = vpop.xlane.xlu1 %5272 }
 0xb19   : > { %v5308_v63 = vmul.f32 0.03125, %v5273_v26 }
 0xb1a   : > { %v10802_v14 = vsub.f32 %v10669_v19, %v5309_v8 }
 0xb1b   : > { %v10805_v58 = vsub.f32 %v10671_v54, %v5308_v63 }
 0xb1c   : > { %v5341_v20 = vmul.f32 %v10802_v14, %v10802_v14 }
 0xb1d   : > { %v5340_v28 = vmul.f32 %v10805_v58, %v10805_v58 }
 0xb1e   : > { %v5371_v31 = vsel %vm423_vm0, %v5341_v20, 0.0 }
 0xb1f   : > { %5372 = vadd.xlane.f32.xlu0 %v5371_v31  ;;  %v5368_v38 = vsel %vm423_vm0, %v5340_v28, 0.0  ;;  %v10871_v28 = vld [vmem:[%s11098_s5 + $0x3] ss:$0 sm:$0xff] }
 0xb20   : > { %5369 = vadd.xlane.f32.xlu1 %v5368_v38 }
 0xb23   : > { %v5282_v32 = vpop.xlane.xlu0 %5281 }
 0xb24   : > { %v5311_v36 = vmul.f32 0.03125, %v5282_v32  ;;  %v5279_v11 = vpop.xlane.xlu1 %5278 }
 0xb25   : > { %v5310_v19 = vmul.f32 0.03125, %v5279_v11 }
 0xb26   : > { %v10814_v51 = vsub.f32 %v10681_v3, %v5311_v36 }
 0xb27   : > { %v10817_v54 = vsub.f32 %v10683_v62, %v5310_v19 }
 0xb28   : > { %v5343_v21 = vmul.f32 %v10814_v51, %v10814_v51 }
 0xb29   : > { %v5342_v61 = vmul.f32 %v10817_v54, %v10817_v54 }
 0xb2a   : > { %v5377_v27 = vsel %vm423_vm0, %v5343_v21, 0.0 }
 0xb2b   : > { %5378 = vadd.xlane.f32.xlu0 %v5377_v27  ;;  %v5374_v12 = vsel %vm423_vm0, %v5342_v61, 0.0 }
 0xb2c   : > { %5375 = vadd.xlane.f32.xlu1 %v5374_v12 }
 0xb2f   : > { %v5288_v17 = vpop.xlane.xlu0 %5287 }
 0xb30   : > { %v5313_v23 = vmul.f32 0.03125, %v5288_v17  ;;  %v5285_v29 = vpop.xlane.xlu1 %5284 }
 0xb31   : > { %v5312_v3 = vmul.f32 0.03125, %v5285_v29 }
 0xb32   : > { %v10826_v6 = vsub.f32 %v10693_v10, %v5313_v23 }
 0xb33   : > { %v10829_v62 = vsub.f32 %v10695_v22, %v5312_v3 }
 0xb34   : > { %v5345_v50 = vmul.f32 %v10826_v6, %v10826_v6 }
 0xb35   : > { %v5344_v47 = vmul.f32 %v10829_v62, %v10829_v62 }
 0xb36   : > { %v5383_v24 = vsel %vm423_vm0, %v5345_v50, 0.0 }
 0xb37   : > { %5384 = vadd.xlane.f32.xlu0 %v5383_v24  ;;  %v5380_v0 = vsel %vm423_vm0, %v5344_v47, 0.0 }
 0xb38   : > { %5381 = vadd.xlane.f32.xlu1 %v5380_v0 }
 0xb3b   : > { %v5294_v5 = vpop.xlane.xlu0 %5293 }
 0xb3c   : > { %v5315_v60 = vmul.f32 0.03125, %v5294_v5  ;;  %v5291_v15 = vpop.xlane.xlu1 %5290 }
 0xb3d   : > { %v5314_v10 = vmul.f32 0.03125, %v5291_v15 }
 0xb3e   : > { %v10838_v37 = vsub.f32 %v10705_v43, %v5315_v60 }
 0xb3f   : > { %v10841_v22 = vsub.f32 %v10707_v42, %v5314_v10 }
 0xb40   : > { %v5347_v30 = vmul.f32 %v10838_v37, %v10838_v37 }
 0xb41   : > { %v5346_v57 = vmul.f32 %v10841_v22, %v10841_v22 }
 0xb42   : > { %v5389_v56 = vsel %vm423_vm0, %v5347_v30, 0.0 }
 0xb43   : > { %5390 = vadd.xlane.f32.xlu0 %v5389_v56  ;;  %v5386_v35 = vsel %vm423_vm0, %v5346_v57, 0.0 }
 0xb44   : > { %5387 = vadd.xlane.f32.xlu1 %v5386_v35 }
 0xb47   : > { %v5300_v48 = vpop.xlane.xlu0 %5299 }
 0xb48   : > { %v5317_v18 = vmul.f32 0.03125, %v5300_v48  ;;  %v5297_v52 = vpop.xlane.xlu1 %5296 }
 0xb49   : > { %v5316_v43 = vmul.f32 0.03125, %v5297_v52 }
 0xb4a   : > { %v10850_v53 = vsub.f32 %v10717_v33, %v5317_v18 }
 0xb4b   : > { %v10853_v42 = vsub.f32 %v10719_v45, %v5316_v43 }
 0xb4c   : > { %v5349_v13 = vmul.f32 %v10850_v53, %v10850_v53 }
 0xb4d   : > { %v5348_v4 = vmul.f32 %v10853_v42, %v10853_v42 }
 0xb4e   : > { %v5395_v7 = vsel %vm423_vm0, %v5349_v13, 0.0 }
 0xb4f   : > { %5396 = vadd.xlane.f32.xlu0 %v5395_v7  ;;  %v5392_v2 = vsel %vm423_vm0, %v5348_v4, 0.0 }
 0xb50   : > { %5393 = vadd.xlane.f32.xlu1 %v5392_v2 }
 0xb80   : > { %v5355_v49 = vpop.xlane.xlu0 %5354 }
 0xb81   : > { %v5399_v16 = vmul.f32 0.03125, %v5355_v49  ;;  %v5352_v41 = vpop.xlane.xlu1 %5351 }
 0xb82   : > { %v5398_v33 = vmul.f32 0.03125, %v5352_v41 }
 0xb83   : > { %v5415_v1 = vadd.f32 1e-05, %v5399_v16 }
 0xb84   : > { %v5414_v39 = vadd.f32 1e-05, %v5398_v33 }
 0xb85   : > { %7867 = vrsqrt.f32 %v5415_v1 }
 0xb86   : > { %7869 = vrsqrt.f32 %v5414_v39 }
 0xb8f   : > { %v7868_v45 = vpop.eup %7867 }
 0xb90   : > { %v7870_v59 = vpop.eup %7869  ;;  %v5447_v8 = vmul.f32 %v7868_v45, %v10746_v46 }
 0xb91   : > { %v5358_v26 = vpop.xlane.xlu1 %5357  ;;  %v5446_v63 = vmul.f32 %v7870_v59, %v10749_v40 }
 0xb92   : > { %v5400_v20 = vmul.f32 0.03125, %v5358_v26  ;;  %v5467_v31 = vmul.f32 %v10864_v34, %v5447_v8 }
 0xb93   : > { %v5466_v38 = vmul.f32 %v10864_v34, %v5446_v63 }
 0xb94   : > { %v5416_v32 = vadd.f32 1e-05, %v5400_v20  ;;  %v10879_v19 = vadd.f32 %v10871_v28, %v5467_v31 }
 0xb95   : > { %v5361_v36 = vpop.xlane.xlu0 %5360  ;;  %v10876_v11 = vadd.f32 %v10871_v28, %v5466_v38 }
 0xb96   : > { %7871 = vrsqrt.f32 %v5416_v32  ;;  %v5401_v46 = vmul.f32 0.03125, %v5361_v36 }
 0xb97   : > { %7138 = vmatprep.mubr.msk.f32.mxu1 %vm423_vm0, %v10876_v11 }
 0xb98   : > { %v5417_v40 = vadd.f32 1e-05, %v5401_v46  ;;  %7139 = vmatmul.mubr.msk.f32.vlgmr.msra.gmra.mrb[0].mxu1 %vm423_vm0, %v10879_v19 }
 0xb9a   : > { %7873 = vrsqrt.f32 %v5417_v40 }
 0xba0   : > { %v7872_v21 = vpop.eup %7871  ;;  %v5367_v61 = vpop.xlane.xlu0 %5366 }
 0xba1   : > { %v5403_v27 = vmul.f32 0.03125, %v5367_v61  ;;  %v5364_v12 = vpop.xlane.xlu1 %5363  ;;  %v5448_v17 = vmul.f32 %v7872_v21, %v10758_v25 }
 0xba2   : > { %v5402_v23 = vmul.f32 0.03125, %v5364_v12 }
 0xba3   : > { %v5419_v29 = vadd.f32 1e-05, %v5403_v27  ;;  %v5468_v3 = vmul.f32 %v10864_v34, %v5448_v17 }
 0xba4   : > { %v7874_v50 = vpop.eup %7873  ;;  %v5418_v47 = vadd.f32 1e-05, %v5402_v23 }
 0xba5   : > { %7875 = vrsqrt.f32 %v5419_v29  ;;  %v10888_v24 = vadd.f32 %v10871_v28, %v5468_v3  ;;  %v5449_v0 = vmul.f32 %v7874_v50, %v10763_v44 }
 0xba6   : > { %7877 = vrsqrt.f32 %v5418_v47 }
 0xba7   : > { %7141 = vmatprep.mubr.msk.f32.mxu1 %vm423_vm0, %v10888_v24  ;;  %v5469_v5 = vmul.f32 %v10864_v34, %v5449_v0 }
 0xba9   : > { %v10895_v25 = vadd.f32 %v10871_v28, %v5469_v5 }
 0xbab   : > { %7142 = vmatmul.mubr.msk.f32.gmra.mrb[2].mxu1 %vm423_vm0, %v10895_v25 }
 0xbac   : > { %v5373_v60 = vpop.xlane.xlu0 %5372 }
 0xbad   : > { %v5405_v15 = vmul.f32 0.03125, %v5373_v60  ;;  %v5370_v10 = vpop.xlane.xlu1 %5369 }
 0xbae   : > { %v5404_v30 = vmul.f32 0.03125, %v5370_v10 }
 0xbaf   : > { %v7876_v57 = vpop.eup %7875  ;;  %v5421_v56 = vadd.f32 1e-05, %v5405_v15 }
 0xbb0   : > { %v7878_v35 = vpop.eup %7877  ;;  %v5420_v44 = vadd.f32 1e-05, %v5404_v30  ;;  %v5451_v48 = vmul.f32 %v7876_v57, %v10788_v9 }
 0xbb1   : > { %7879 = vrsqrt.f32 %v5421_v56  ;;  %v5450_v18 = vmul.f32 %v7878_v35, %v10791_v55 }
 0xbb2   : > { %7881 = vrsqrt.f32 %v5420_v44  ;;  %v5471_v52 = vmul.f32 %v10864_v34, %v5451_v48 }
 0xbb3   : > { %v5470_v43 = vmul.f32 %v10864_v34, %v5450_v18 }
 0xbb4   : > { %v10907_v4 = vadd.f32 %v10871_v28, %v5471_v52 }
 0xbb5   : > { %v10904_v13 = vadd.f32 %v10871_v28, %v5470_v43 }
 0xbb7   : > { %7144 = vmatprep.mubr.msk.f32.mxu1 %vm423_vm0, %v10904_v13 }
 0xbb8   : > { %7145 = vmatmul.mubr.msk.f32.gmra.mrb[4].mxu1 %vm423_vm0, %v10907_v4  ;;  %v5379_v9 = vpop.xlane.xlu0 %5378 }
 0xbb9   : > { %v5407_v7 = vmul.f32 0.03125, %v5379_v9  ;;  %v5376_v55 = vpop.xlane.xlu1 %5375 }
 0xbba   : > { %v5406_v2 = vmul.f32 0.03125, %v5376_v55 }
 0xbbb   : > { %v7880_v49 = vpop.eup %7879  ;;  %v5423_v16 = vadd.f32 1e-05, %v5407_v7 }
 0xbbc   : > { %v7882_v41 = vpop.eup %7881  ;;  %v5422_v33 = vadd.f32 1e-05, %v5406_v2  ;;  %v5453_v1 = vmul.f32 %v7880_v49, %v10802_v14 }
 0xbbd   : > { %7883 = vrsqrt.f32 %v5423_v16  ;;  %v5452_v39 = vmul.f32 %v7882_v41, %v10805_v58 }
 0xbbe   : > { %7885 = vrsqrt.f32 %v5422_v33  ;;  %v5473_v45 = vmul.f32 %v10864_v34, %v5453_v1  ;;  %v5812_v1 = vld [vmem:[%s11098_s5 + $0xcd] sm:$0xff] }
 0xbbf   : > { %v5472_v59 = vmul.f32 %v10864_v34, %v5452_v39  ;;  %v5813_v39 = vld [vmem:[%s11098_s5 + $0xd5] sm:$0xff] }
 0xbc0   : > { %v10921_v26 = vadd.f32 %v10871_v28, %v5473_v45  ;;  %v7242_v45 = vpack.c.bf16 %v5813_v39, %v5812_v1 }
 0xbc1   : > { %v10918_v8 = vadd.f32 %v10871_v28, %v5472_v59 }
 0xbc2   : > { %7244 = vmatprep.subr.msk.bf16.mxu0 %vm7243_vm11, %v7242_v45  ;;  %7274 = vmatprep.subr.msk.bf16.mxu1 %vm7243_vm11, %v7242_v45 }
 0xbc3   : > { %7147 = vmatprep.mubr.msk.f32.mxu1 %vm423_vm0, %v10918_v8  ;;  %7247 = vmatpush3.bf16.xpose.msk.msra.mxu0 %vm7243_vm11, %v7242_v45 }
 0xbc4   : > { %7148 = vmatmul.mubr.msk.f32.gmra.mrb[6].mxu1 %vm423_vm0, %v10921_v26  ;;  %v5385_v14 = vpop.xlane.xlu0 %5384 }
 0xbc5   : > { %v5409_v63 = vmul.f32 0.03125, %v5385_v14  ;;  %v5382_v58 = vpop.xlane.xlu1 %5381  ;;  %7276 = vmatpush3.bf16.xpose.msk.msra.mxu1 %vm7243_vm11, %v7242_v45  ;;  %v11000_v14 = vld [vmem:[%s11098_s5 + $0x7] ss:$0 sm:$0xff] }
 0xbc6   : > { %v5408_v20 = vmul.f32 0.03125, %v5382_v58 }
 0xbc7   : > { %v7884_v31 = vpop.eup %7883  ;;  %v5425_v38 = vadd.f32 1e-05, %v5409_v63 }
 0xbc8   : > { %v7886_v32 = vpop.eup %7885  ;;  %v5424_v36 = vadd.f32 1e-05, %v5408_v20  ;;  %v5455_v46 = vmul.f32 %v7884_v31, %v10814_v51 }
 0xbc9   : > { %7887 = vrsqrt.f32 %v5425_v38  ;;  %v5454_v40 = vmul.f32 %v7886_v32, %v10817_v54 }
 0xbca   : > { %7889 = vrsqrt.f32 %v5424_v36  ;;  %v5475_v21 = vmul.f32 %v10864_v34, %v5455_v46 }
 0xbcb   : > { %v5474_v61 = vmul.f32 %v10864_v34, %v5454_v40 }
 0xbcc   : > { %v10935_v12 = vadd.f32 %v10871_v28, %v5475_v21 }
 0xbcd   : > { %v10932_v27 = vadd.f32 %v10871_v28, %v5474_v61 }
 0xbcf   : > { %7150 = vmatprep.mubr.msk.f32.mxu1 %vm423_vm0, %v10932_v27 }
 0xbd0   : > { %7151 = vmatmul.mubr.msk.f32.gmra.mrb[8].mxu1 %vm423_vm0, %v10935_v12  ;;  %v5391_v51 = vpop.xlane.xlu0 %5390 }
 0xbd1   : > { %v5411_v17 = vmul.f32 0.03125, %v5391_v51  ;;  %v5388_v54 = vpop.xlane.xlu1 %5387 }
 0xbd2   : > { %v5410_v23 = vmul.f32 0.03125, %v5388_v54 }
 0xbd3   : > { %v7888_v29 = vpop.eup %7887  ;;  %v5427_v3 = vadd.f32 1e-05, %v5411_v17 }
 0xbd4   : > { %v7890_v50 = vpop.eup %7889  ;;  %v5426_v47 = vadd.f32 1e-05, %v5410_v23  ;;  %v5457_v0 = vmul.f32 %v7888_v29, %v10826_v6 }
 0xbd5   : > { %7891 = vrsqrt.f32 %v5427_v3  ;;  %v5456_v5 = vmul.f32 %v7890_v50, %v10829_v62 }
 0xbd6   : > { %7893 = vrsqrt.f32 %v5426_v47  ;;  %v5477_v60 = vmul.f32 %v10864_v34, %v5457_v0 }
 0xbd7   : > { %v5476_v15 = vmul.f32 %v10864_v34, %v5456_v5 }
 0xbd8   : > { %v10949_v30 = vadd.f32 %v10871_v28, %v5477_v60 }
 0xbd9   : > { %v10946_v10 = vadd.f32 %v10871_v28, %v5476_v15 }
 0xbdb   : > { %7153 = vmatprep.mubr.msk.f32.mxu1 %vm423_vm0, %v10946_v10 }
 0xbdc   : > { %7154 = vmatmul.mubr.msk.f32.gmra.mrb[10].mxu1 %vm423_vm0, %v10949_v30  ;;  %v5397_v6 = vpop.xlane.xlu0 %5396 }
 0xbdd   : > { %v5413_v57 = vmul.f32 0.03125, %v5397_v6  ;;  %v5394_v62 = vpop.xlane.xlu1 %5393 }
 0xbde   : > { %v5412_v56 = vmul.f32 0.03125, %v5394_v62 }
 0xbdf   : > { %v7892_v35 = vpop.eup %7891  ;;  %v5429_v44 = vadd.f32 1e-05, %v5413_v57 }
 0xbe0   : > { %v7894_v48 = vpop.eup %7893  ;;  %v5428_v18 = vadd.f32 1e-05, %v5412_v56  ;;  %v5459_v52 = vmul.f32 %v7892_v35, %v10838_v37 }
 0xbe1   : > { %7895 = vrsqrt.f32 %v5429_v44  ;;  %v5458_v43 = vmul.f32 %v7894_v48, %v10841_v22 }
 0xbe2   : > { %7897 = vrsqrt.f32 %v5428_v18  ;;  %v5479_v9 = vmul.f32 %v10864_v34, %v5459_v52 }
 0xbe3   : > { %v5478_v7 = vmul.f32 %v10864_v34, %v5458_v43 }
 0xbe4   : > { %v10963_v2 = vadd.f32 %v10871_v28, %v5479_v9 }
 0xbe5   : > { %v10960_v55 = vadd.f32 %v10871_v28, %v5478_v7 }
 0xbe7   : > { %7156 = vmatprep.mubr.msk.f32.mxu1 %vm423_vm0, %v10960_v55 }
 0xbe8   : > { %7157 = vmatmul.mubr.msk.f32.gmra.mrb[12].mxu1 %vm423_vm0, %v10963_v2 }
 0xbeb   : > { %v7896_v37 = vpop.eup %7895 }
 0xbec   : > { %v7898_v49 = vpop.eup %7897  ;;  %v5461_v22 = vmul.f32 %v7896_v37, %v10850_v53 }
 0xbed   : > { %v5460_v16 = vmul.f32 %v7898_v49, %v10853_v42  ;;  %v5814_v42 = vld [vmem:[%s11098_s5 + $0xdd] sm:$0xff] }
 0xbee   : > { %v5481_v41 = vmul.f32 %v10864_v34, %v5461_v22 }
 0xbef   : > { %v5480_v33 = vmul.f32 %v10864_v34, %v5460_v16  ;;  %v5815_v34 = vld [vmem:[%s11098_s5 + $0xe5] sm:$0xff] }
 0xbf0   : > { %v10985_v53 = vadd.f32 %v10871_v28, %v5481_v41 }
 0xbf1   : > { %v10980_v59 = vadd.f32 %v10871_v28, %v5480_v33  ;;  %v7248_v28 = vpack.c.bf16 %v5815_v34, %v5814_v42 }
 0xbf3   : > { %7159 = vmatprep.mubr.msk.f32.mxu1 %vm423_vm0, %v10980_v59  ;;  %7250 = vmatprep.subr.msk.bf16.mxu0 %vm7243_vm11, %v7248_v28 }
 0xbf4   : > { %7160 = vmatmul.mubr.msk.f32.gmra.mrb[14].mxu1 %vm423_vm0, %v10985_v53  ;;  %7275 = vmatprep.subr.msk.bf16.mxu1 %vm7243_vm11, %v7248_v28 }
 0xbf5   : > { %7253 = vmatpush3.bf16.xpose.msk.msra.mxu0 %vm7243_vm11, %v7248_v28  ;;  %7277 = vmatpush3.bf16.xpose.msk.msra.mxu1 %vm7243_vm11, %v7248_v28 }
 0xc6b   : > { %v7140_v63 = vpop.f32.mrb[0].mxu1 }
 0xc6c   : > { %v5659_v58 = vadd.f32 %v7140_v63, %v11000_v14  ;;  %v5653_v20 = vpop.f32.mrb[1].mxu1 }
 0xc6d   : > { %v5654_v31 = vadd.f32 %v11000_v14, %v5653_v20 }
 0xc6e   : > { %v5749_v38 = vmul.f32 0.70710677, %v5659_v58  ;;  %v5733_v51 = vmul.f32 0.5, %v5659_v58 }
 0xc6f   : > { %v5748_v32 = vmul.f32 0.70710677, %v5654_v31  ;;  %v5732_v21 = vmul.f32 0.5, %v5654_v31 }
 0xc70   : > { %7899 = verf.f32 %v5749_v38 }
 0xc71   : > { %7901 = verf.f32 %v5748_v32 }
 0xc7a   : > { %v7900_v36 = vpop.eup %7899 }
 0xc7b   : > { %v7902_v46 = vpop.eup %7901  ;;  %v5781_v40 = vadd.f32 1.0, %v7900_v36 }
 0xc7c   : > { %v5780_v61 = vadd.f32 1.0, %v7902_v46 }
 0xc7d   : > { %v5797_v23 = vmul.f32 %v5781_v40, %v5733_v51 }
 0xc7e   : > { %v5796_v17 = vmul.f32 %v5780_v61, %v5732_v21  ;;  %v7143_v54 = vpop.f32.mrb[2].mxu1 }
 0xc7f   : > { %v5669_v29 = vadd.f32 %v7143_v54, %v11000_v14  ;;  %v5663_v3 = vpop.f32.mrb[3].mxu1 }
 0xc80   : > { %v5664_v50 = vadd.f32 %v11000_v14, %v5663_v3  ;;  %7170 = vmatprep.mubr.msk.f32.mxu0 %vm5821_vm10, %v5796_v17 }
 0xc81   : > { %v5751_v47 = vmul.f32 0.70710677, %v5669_v29  ;;  %7171 = vmatmul.mubr.msk.f32.vlgmr.msra.gmra.mrb[16].mxu0 %vm5821_vm10, %v5797_v23  ;;  %v5735_v52 = vmul.f32 0.5, %v5669_v29 }
 0xc82   : > { %v5750_v0 = vmul.f32 0.70710677, %v5664_v50  ;;  %v5734_v44 = vmul.f32 0.5, %v5664_v50 }
 0xc83   : > { %7903 = verf.f32 %v5751_v47 }
 0xc84   : > { %7905 = verf.f32 %v5750_v0 }
 0xc8b   : > { %v7146_v5 = vpop.f32.mrb[4].mxu1 }
 0xc8c   : > { %v5679_v60 = vadd.f32 %v7146_v5, %v11000_v14  ;;  %v5673_v15 = vpop.f32.mrb[5].mxu1 }
 0xc8d   : > { %v7904_v6 = vpop.eup %7903  ;;  %v5674_v57 = vadd.f32 %v11000_v14, %v5673_v15 }
 0xc8e   : > { %v7906_v62 = vpop.eup %7905  ;;  %v5783_v56 = vadd.f32 1.0, %v7904_v6  ;;  %v5753_v35 = vmul.f32 0.70710677, %v5679_v60  ;;  %v5737_v34 = vmul.f32 0.5, %v5679_v60 }
 0xc8f   : > { %v5782_v48 = vadd.f32 1.0, %v7906_v62  ;;  %v5752_v18 = vmul.f32 0.70710677, %v5674_v57  ;;  %v5736_v45 = vmul.f32 0.5, %v5674_v57 }
 0xc90   : > { %7907 = verf.f32 %v5753_v35  ;;  %v5799_v9 = vmul.f32 %v5783_v56, %v5735_v52 }
 0xc91   : > { %v5798_v43 = vmul.f32 %v5782_v48, %v5734_v44  ;;  %7909 = verf.f32 %v5752_v18 }
 0xc93   : > { %7173 = vmatprep.mubr.msk.f32.mxu0 %vm5821_vm10, %v5798_v43 }
 0xc94   : > { %7174 = vmatmul.mubr.msk.f32.gmra.mrb[18].mxu0 %vm5821_vm10, %v5799_v9 }
 0xc97   : > { %v7149_v7 = vpop.f32.mrb[6].mxu1 }
 0xc98   : > { %v5689_v37 = vadd.f32 %v7149_v7, %v11000_v14  ;;  %v5683_v49 = vpop.f32.mrb[7].mxu1 }
 0xc99   : > { %v5684_v22 = vadd.f32 %v11000_v14, %v5683_v49 }
 0xc9a   : > { %v7908_v16 = vpop.eup %7907  ;;  %v5755_v41 = vmul.f32 0.70710677, %v5689_v37  ;;  %v5739_v17 = vmul.f32 0.5, %v5689_v37 }
 0xc9b   : > { %v7910_v33 = vpop.eup %7909  ;;  %v5785_v1 = vadd.f32 1.0, %v7908_v16  ;;  %v5754_v39 = vmul.f32 0.70710677, %v5684_v22  ;;  %v5738_v61 = vmul.f32 0.5, %v5684_v22 }
 0xc9c   : > { %v5784_v42 = vadd.f32 1.0, %v7910_v33  ;;  %7911 = verf.f32 %v5755_v41 }
 0xc9d   : > { %7913 = verf.f32 %v5754_v39  ;;  %v5801_v63 = vmul.f32 %v5785_v1, %v5737_v34 }
 0xc9e   : > { %v5800_v28 = vmul.f32 %v5784_v42, %v5736_v45 }
 0xca0   : > { %7176 = vmatprep.mubr.msk.f32.mxu0 %vm5821_vm10, %v5800_v28 }
 0xca1   : > { %7177 = vmatmul.mubr.msk.f32.gmra.mrb[20].mxu0 %vm5821_vm10, %v5801_v63 }
 0xca3   : > { %v7152_v58 = vpop.f32.mrb[8].mxu1 }
 0xca4   : > { %v5699_v20 = vadd.f32 %v7152_v58, %v11000_v14  ;;  %v5693_v31 = vpop.f32.mrb[9].mxu1 }
 0xca5   : > { %v5694_v38 = vadd.f32 %v11000_v14, %v5693_v31 }
 0xca6   : > { %v7912_v32 = vpop.eup %7911  ;;  %v5757_v36 = vmul.f32 0.70710677, %v5699_v20  ;;  %v5741_v56 = vmul.f32 0.5, %v5699_v20 }
 0xca7   : > { %v7914_v46 = vpop.eup %7913  ;;  %v5787_v40 = vadd.f32 1.0, %v7912_v32  ;;  %v5756_v21 = vmul.f32 0.70710677, %v5694_v38  ;;  %v5740_v57 = vmul.f32 0.5, %v5694_v38 }
 0xca8   : > { %v5786_v51 = vadd.f32 1.0, %v7914_v46  ;;  %7915 = verf.f32 %v5757_v36 }
 0xca9   : > { %7917 = verf.f32 %v5756_v21  ;;  %v5803_v23 = vmul.f32 %v5787_v40, %v5739_v17 }
 0xcaa   : > { %v5802_v54 = vmul.f32 %v5786_v51, %v5738_v61 }
 0xcac   : > { %7179 = vmatprep.mubr.msk.f32.mxu0 %vm5821_vm10, %v5802_v54 }
 0xcad   : > { %7180 = vmatmul.mubr.msk.f32.gmra.mrb[22].mxu0 %vm5821_vm10, %v5803_v23 }
 0xcaf   : > { %v7155_v29 = vpop.f32.mrb[10].mxu1 }
 0xcb0   : > { %v5709_v3 = vadd.f32 %v7155_v29, %v11000_v14  ;;  %v5703_v50 = vpop.f32.mrb[11].mxu1 }
 0xcb1   : > { %v5704_v47 = vadd.f32 %v11000_v14, %v5703_v50  ;;  %v6423_v50 = vld [vmem:[%s11098_s5 + $0x8] ss:$0 sm:$0xff] }
 0xcb2   : > { %v7916_v0 = vpop.eup %7915  ;;  %v5759_v5 = vmul.f32 0.70710677, %v5709_v3  ;;  %v5743_v33 = vmul.f32 0.5, %v5709_v3 }
 0xcb3   : > { %v7918_v60 = vpop.eup %7917  ;;  %v5789_v15 = vadd.f32 1.0, %v7916_v0  ;;  %v5758_v6 = vmul.f32 0.70710677, %v5704_v47  ;;  %v5742_v16 = vmul.f32 0.5, %v5704_v47 }
 0xcb4   : > { %v5788_v62 = vadd.f32 1.0, %v7918_v60  ;;  %7919 = verf.f32 %v5759_v5 }
 0xcb5   : > { %7921 = verf.f32 %v5758_v6  ;;  %v5805_v44 = vmul.f32 %v5789_v15, %v5741_v56 }
 0xcb6   : > { %v5804_v35 = vmul.f32 %v5788_v62, %v5740_v57 }
 0xcb8   : > { %7182 = vmatprep.mubr.msk.f32.mxu0 %vm5821_vm10, %v5804_v35 }
 0xcb9   : > { %7183 = vmatmul.mubr.msk.f32.gmra.mrb[24].mxu0 %vm5821_vm10, %v5805_v44 }
 0xcbb   : > { %v7158_v48 = vpop.f32.mrb[12].mxu1 }
 0xcbc   : > { %v5719_v18 = vadd.f32 %v7158_v48, %v11000_v14  ;;  %v5713_v52 = vpop.f32.mrb[13].mxu1 }
 0xcbd   : > { %v5714_v43 = vadd.f32 %v11000_v14, %v5713_v52 }
 0xcbe   : > { %v7920_v9 = vpop.eup %7919  ;;  %v5761_v7 = vmul.f32 0.70710677, %v5719_v18  ;;  %v5745_v46 = vmul.f32 0.5, %v5719_v18 }
 0xcbf   : > { %v7922_v37 = vpop.eup %7921  ;;  %v5791_v49 = vadd.f32 1.0, %v7920_v9  ;;  %v5760_v22 = vmul.f32 0.70710677, %v5714_v43  ;;  %v5744_v32 = vmul.f32 0.5, %v5714_v43 }
 0xcc0   : > { %v5790_v41 = vadd.f32 1.0, %v7922_v37  ;;  %7923 = verf.f32 %v5761_v7 }
 0xcc1   : > { %7925 = verf.f32 %v5760_v22  ;;  %v5807_v39 = vmul.f32 %v5791_v49, %v5743_v33 }
 0xcc2   : > { %v5806_v1 = vmul.f32 %v5790_v41, %v5742_v16 }
 0xcc4   : > { %7185 = vmatprep.mubr.msk.f32.mxu0 %vm5821_vm10, %v5806_v1 }
 0xcc5   : > { %7186 = vmatmul.mubr.msk.f32.gmra.mrb[26].mxu0 %vm5821_vm10, %v5807_v39 }
 0xcc7   : > { %v7161_v45 = vpop.f32.mrb[14].mxu1 }
 0xcc8   : > { %v5729_v42 = vadd.f32 %v7161_v45, %v11000_v14  ;;  %v5723_v34 = vpop.f32.mrb[15].mxu1 }
 0xcc9   : > { %v5724_v28 = vadd.f32 %v11000_v14, %v5723_v34 }
 0xcca   : > { %v7924_v63 = vpop.eup %7923  ;;  %v5763_v58 = vmul.f32 0.70710677, %v5729_v42  ;;  %v5747_v23 = vmul.f32 0.5, %v5729_v42 }
 0xccb   : > { %v7926_v20 = vpop.eup %7925  ;;  %v5793_v31 = vadd.f32 1.0, %v7924_v63  ;;  %v5762_v38 = vmul.f32 0.70710677, %v5724_v28  ;;  %v5746_v17 = vmul.f32 0.5, %v5724_v28 }
 0xccc   : > { %v5792_v36 = vadd.f32 1.0, %v7926_v20  ;;  %7927 = verf.f32 %v5763_v58 }
 0xccd   : > { %7929 = verf.f32 %v5762_v38  ;;  %v5809_v21 = vmul.f32 %v5793_v31, %v5745_v46 }
 0xcce   : > { %v5808_v40 = vmul.f32 %v5792_v36, %v5744_v32 }
 0xcd0   : > { %7188 = vmatprep.mubr.msk.f32.mxu1 %vm5821_vm10, %v5808_v40 }
 0xcd1   : > { %7189 = vmatmul.mubr.msk.f32.vlgmr.msra.gmra.mrb[16].mxu1 %vm5821_vm10, %v5809_v21 }
 0xcd6   : > { %v7928_v61 = vpop.eup %7927 }
 0xcd7   : > { %v7930_v51 = vpop.eup %7929  ;;  %v5795_v14 = vadd.f32 1.0, %v7928_v61 }
 0xcd8   : > { %v5794_v54 = vadd.f32 1.0, %v7930_v51 }
 0xcd9   : > { %v5811_v3 = vmul.f32 %v5795_v14, %v5747_v23 }
 0xcda   : > { %v5810_v29 = vmul.f32 %v5794_v54, %v5746_v17 }
 0xcdc   : > { %7191 = vmatprep.mubr.msk.f32.mxu1 %vm5821_vm10, %v5810_v29 }
 0xcdd   : > { %7192 = vmatmul.mubr.msk.f32.gmra.mrb[18].mxu1 %vm5821_vm10, %v5811_v3 }
 0xd54   : > { %v7172_v47 = vpop.f32.mrb[16].mxu0 }
 0xd55   : > { %v5954_v0 = vadd.f32 %v7172_v47, %v6423_v50  ;;  %v5948_v5 = vpop.f32.mrb[17].mxu0 }
 0xd56   : > { %v5949_v60 = vadd.f32 %v6423_v50, %v5948_v5 }
 0xd57   : > { %v6028_v15 = vadd.f32 %v5954_v0, %v10879_v19 }
 0xd58   : > { %v6027_v6 = vadd.f32 %v5949_v60, %v10876_v11 }
 0xd59   : > { %6044 = vst.msk [vmem:[%s8072_s16 + $0x8] sm:$0xff] %vm423_vm0, %v6028_v15 }
 0xd5a   : > { %6043 = vst.msk [vmem:[%s8072_s16] sm:$0xff] %vm423_vm0, %v6027_v6 }
 0xd67   : > { %v7175_v57 = vpop.f32.mrb[18].mxu0 }
 0xd68   : > { %v5964_v62 = vadd.f32 %v7175_v57, %v6423_v50  ;;  %v5958_v56 = vpop.f32.mrb[19].mxu0 }
 0xd69   : > { %v5959_v35 = vadd.f32 %v6423_v50, %v5958_v56 }
 0xd6a   : > { %v6030_v44 = vadd.f32 %v5964_v62, %v10895_v25 }
 0xd6b   : > { %v6029_v48 = vadd.f32 %v5959_v35, %v10888_v24 }
 0xd6c   : > { %6046 = vst.msk [vmem:[%s8072_s16 + $0x18] sm:$0xff] %vm423_vm0, %v6030_v44 }
 0xd6d   : > { %6045 = vst.msk [vmem:[%s8072_s16 + $0x10] sm:$0xff] %vm423_vm0, %v6029_v48 }
 0xd74   : > { %v7178_v11 = vpop.f32.mrb[20].mxu0 }
 0xd75   : > { %v5974_v19 = vadd.f32 %v7178_v11, %v6423_v50  ;;  %v5968_v18 = vpop.f32.mrb[21].mxu0 }
 0xd76   : > { %v5969_v52 = vadd.f32 %v6423_v50, %v5968_v18 }
 0xd77   : > { %v6032_v43 = vadd.f32 %v5974_v19, %v10907_v4 }
 0xd78   : > { %v6031_v9 = vadd.f32 %v5969_v52, %v10904_v13 }
 0xd79   : > { %6048 = vst.msk [vmem:[%s8072_s16 + $0x28] sm:$0xff] %vm423_vm0, %v6032_v43 }
 0xd7a   : > { %6047 = vst.msk [vmem:[%s8072_s16 + $0x20] sm:$0xff] %vm423_vm0, %v6031_v9 }
 0xd80   : > { %v7181_v24 = vpop.f32.mrb[22].mxu0 }
 0xd81   : > { %v5984_v25 = vadd.f32 %v7181_v24, %v6423_v50  ;;  %v5978_v7 = vpop.f32.mrb[23].mxu0 }
 0xd82   : > { %v5979_v37 = vadd.f32 %v6423_v50, %v5978_v7 }
 0xd83   : > { %v6034_v49 = vadd.f32 %v5984_v25, %v10921_v26 }
 0xd84   : > { %v6033_v22 = vadd.f32 %v5979_v37, %v10918_v8 }
 0xd85   : > { %6050 = vst.msk [vmem:[%s8072_s16 + $0x38] sm:$0xff] %vm423_vm0, %v6034_v49 }
 0xd86   : > { %6049 = vst.msk [vmem:[%s8072_s16 + $0x30] sm:$0xff] %vm423_vm0, %v6033_v22 }
 0xd8c   : > { %v7184_v13 = vpop.f32.mrb[24].mxu0 }
 0xd8d   : > { %v5994_v4 = vadd.f32 %v7184_v13, %v6423_v50  ;;  %v5988_v16 = vpop.f32.mrb[25].mxu0 }
 0xd8e   : > { %v5989_v41 = vadd.f32 %v6423_v50, %v5988_v16 }
 0xd8f   : > { %v6036_v33 = vadd.f32 %v5994_v4, %v10935_v12 }
 0xd90   : > { %v6035_v1 = vadd.f32 %v5989_v41, %v10932_v27 }
 0xd91   : > { %6052 = vst.msk [vmem:[%s8072_s16 + $0x48] sm:$0xff] %vm423_vm0, %v6036_v33 }
 0xd92   : > { %6051 = vst.msk [vmem:[%s8072_s16 + $0x40] sm:$0xff] %vm423_vm0, %v6035_v1 }
 0xd98   : > { %v7187_v8 = vpop.f32.mrb[26].mxu0 }
 0xd99   : > { %v6004_v26 = vadd.f32 %v7187_v8, %v6423_v50  ;;  %v5998_v39 = vpop.f32.mrb[27].mxu0 }
 0xd9a   : > { %v5999_v45 = vadd.f32 %v6423_v50, %v5998_v39 }
 0xd9b   : > { %v6038_v42 = vadd.f32 %v6004_v26, %v10949_v30 }
 0xd9c   : > { %v6037_v34 = vadd.f32 %v5999_v45, %v10946_v10 }
 0xd9d   : > { %6054 = vst.msk [vmem:[%s8072_s16 + $0x58] sm:$0xff] %vm423_vm0, %v6038_v42 }
 0xd9e   : > { %6053 = vst.msk [vmem:[%s8072_s16 + $0x50] sm:$0xff] %vm423_vm0, %v6037_v34 }
 0xda4   : > { %v7190_v27 = vpop.f32.mrb[16].mxu1 }
 0xda5   : > { %v6014_v12 = vadd.f32 %v7190_v27, %v6423_v50  ;;  %v6008_v28 = vpop.f32.mrb[17].mxu1 }
 0xda6   : > { %v6009_v63 = vadd.f32 %v6423_v50, %v6008_v28 }
 0xda7   : > { %v6040_v58 = vadd.f32 %v6014_v12, %v10963_v2 }
 0xda8   : > { %v6039_v20 = vadd.f32 %v6009_v63, %v10960_v55 }
 0xda9   : > { %6056 = vst.msk [vmem:[%s8072_s16 + $0x68] sm:$0xff] %vm423_vm0, %v6040_v58 }
 0xdaa   : > { %6055 = vst.msk [vmem:[%s8072_s16 + $0x60] sm:$0xff] %vm423_vm0, %v6039_v20 }
 0xdb0   : > { %v7193_v30 = vpop.f32.mrb[18].mxu1 }
 0xdb1   : > { %v6024_v10 = vadd.f32 %v7193_v30, %v6423_v50  ;;  %v6018_v31 = vpop.f32.mrb[19].mxu1 }
 0xdb2   : > { %v6019_v38 = vadd.f32 %v6423_v50, %v6018_v31 }
 0xdb3   : > { %v6042_v32 = vadd.f32 %v6024_v10, %v10985_v53 }
 0xdb4   : > { %v6041_v36 = vadd.f32 %v6019_v38, %v10980_v59 }
 0xdb5   : > { %6058 = vst.msk [vmem:[%s8072_s16 + $0x78] sm:$0xff] %vm423_vm0, %v6042_v32 }
 0xdb6   : > { %6057 = vst.msk [vmem:[%s8072_s16 + $0x70] sm:$0xff] %vm423_vm0, %v6041_v36 }
 0xdb7 PF: > { %s26_s7 = sadd.s32 1, %s7980_s7   ;;  %s11174_s1 = smov %s7976_s30 }
 0xdb8   : > { %p23_p5 = scmp.ge.s32.totalorder %s26_s7, 4   ;;  %s11175_s30 = smov %s11177_s8 }
 0xdba   :  { %25 = sbr.rel (!%p23_p5) target bundleno = 27 (0x1b), region = 84 }

</bundles_post_ra>
